<compile_context>
chip_gen: v5e
topology: v5e:2x2
jax: 0.10.0
libtpu: 0.0.40
codegen_flags: <defaults>
</compile_context>

<pallas_src>
import functools

import jax
import jax.numpy as jnp
from jax.experimental import pallas as pl
from jax.experimental.pallas import tpu as pltpu

CP = 128                      # lane-padded channel width for every tensor

# (cin, cout, expand_ratio, stride) — reduced EfficientNet-style config.
BLOCK_CFG = [(16, 16, 1, 1),
             (16, 24, 4, 2),
             (24, 24, 4, 1)]
STEM_CH = 16
HEAD_CH = 64
IN_CH = 3


# ----------------------------------------------------------------------------
# In-kernel helpers (traced inside the single fused Pallas kernel)
# ----------------------------------------------------------------------------
def _silu(x):
    return x * jax.nn.sigmoid(x)


def _mm(a, w, b):
    """act @ w + b with bf16 MXU inputs and f32 accumulation."""
    y = jnp.dot(a.astype(jnp.bfloat16), w.astype(jnp.bfloat16),
                preferred_element_type=jnp.float32)
    return y + b


def _dw3x3_silu(h, pad_ref, w9, b, H, W):
    """Depthwise 3x3 (stride 1, pad 1) + bias + SiLU using a VMEM halo scratch.

    Only the 1-wide border ring of the scratch is zeroed (interior is fully
    overwritten right after) — done every call so megacore sharding is safe.
    """
    C = h.shape[-1]
    zrow = jnp.zeros((1, W + 2, C), jnp.float32)
    zcol = jnp.zeros((H, 1, C), jnp.float32)
    pad_ref[0:1, :, :] = zrow
    pad_ref[H + 1:H + 2, :, :] = zrow
    pad_ref[1:H + 1, 0:1, :] = zcol
    pad_ref[1:H + 1, W + 1:W + 2, :] = zcol
    pad_ref[1:H + 1, 1:W + 1, :] = h
    acc = jnp.zeros((H, W, C), jnp.float32)
    for t in range(9):                            # static unroll over 9 taps
        dh, dw = divmod(t, 3)
        acc = acc + pad_ref[dh:dh + H, dw:dw + W, :] * w9[t]
    y = acc + b
    return y * jax.nn.sigmoid(y)


def _se_gate(h, se1_w, se1_b, se2_w, se2_b, HW):
    """Squeeze-excite gate: GAP -> FC(SiLU) -> FC(sigmoid) -> (1, C)."""
    C = h.shape[-1]
    s = jnp.mean(h.reshape(HW, C), axis=0, keepdims=True)
    s = _silu(_mm(s, se1_w, se1_b))
    return jax.nn.sigmoid(_mm(s, se2_w, se2_b))


# ----------------------------------------------------------------------------
# The single fused kernel: stem -> block0 -> block1(stride2) -> block2 -> head
# ----------------------------------------------------------------------------
def _rlnet_kernel(p_ref, S_ref,
                  stem_w, stem_b,
                  b0_dw_w, b0_dw_b, b0_s1_w, b0_s1_b, b0_s2_w, b0_s2_b,
                  b0_pj_w, b0_pj_b,
                  b1_ex_w, b1_ex_b, b1_dw_w, b1_dw_b, b1_s1_w, b1_s1_b,
                  b1_s2_w, b1_s2_b, b1_pj_w, b1_pj_b,
                  b2_ex_w, b2_ex_b, b2_dw_w, b2_dw_b, b2_s1_w, b2_s1_b,
                  b2_s2_w, b2_s2_b, b2_pj_w, b2_pj_b,
                  head_w, head_b, fc_w, fc_b,
                  o_ref, pad_hi, pad_lo, *, Ho, Wo, Hq, Wq):
    C = CP

    # --- stem: (Ho*Wo, 128) @ (128, 128) + b -> SiLU (lane-dense, padded K)
    x = _silu(_mm(p_ref[...], stem_w[...], stem_b[...]))          # (Ho*Wo, C)

    # --- block 0: expand=1, stride=1, residual -------------------------------
    h = _dw3x3_silu(x.reshape(Ho, Wo, C), pad_hi,
                    b0_dw_w[...], b0_dw_b[...], Ho, Wo)
    g = _se_gate(h, b0_s1_w[...], b0_s1_b[...], b0_s2_w[...], b0_s2_b[...],
                 Ho * Wo)
    x = _mm((h * g).reshape(Ho * Wo, C), b0_pj_w[...], b0_pj_b[...]) + x

    # --- block 1: expand=4, stride=2 -----------------------------------------
    h = _silu(_mm(x, b1_ex_w[...], b1_ex_b[...]))                 # expand 1x1
    h = _dw3x3_silu(h.reshape(Ho, Wo, C), pad_hi,
                    b1_dw_w[...], b1_dw_b[...], Ho, Wo)
    # in-VMEM spatial subsample via one-hot selection matmul on the MXU
    h = jnp.dot(S_ref[...], h.reshape(Ho * Wo, C).astype(jnp.bfloat16),
                preferred_element_type=jnp.float32)               # (Hq*Wq, C)
    h3 = h.reshape(Hq, Wq, C)
    g = _se_gate(h3, b1_s1_w[...], b1_s1_b[...], b1_s2_w[...], b1_s2_b[...],
                 Hq * Wq)
    x = _mm((h3 * g).reshape(Hq * Wq, C), b1_pj_w[...], b1_pj_b[...])

    # --- block 2: expand=4, stride=1, residual -------------------------------
    h = _silu(_mm(x, b2_ex_w[...], b2_ex_b[...]))
    h = _dw3x3_silu(h.reshape(Hq, Wq, C), pad_lo,
                    b2_dw_w[...], b2_dw_b[...], Hq, Wq)
    g = _se_gate(h, b2_s1_w[...], b2_s1_b[...], b2_s2_w[...], b2_s2_b[...],
                 Hq * Wq)
    x = _mm((h * g).reshape(Hq * Wq, C), b2_pj_w[...], b2_pj_b[...]) + x

    # --- head: 1x1 conv + SiLU -> global average pool -> linear classifier ---
    h = _silu(_mm(x, head_w[...], head_b[...]))                   # (Hq*Wq, C)
    gap = jnp.mean(h, axis=0, keepdims=True)                      # (1, C)
    o_ref[...] = _mm(gap, fc_w[...], fc_b[...]).reshape(1, 1, C)


# ----------------------------------------------------------------------------
# pallas_call wrapper
# ----------------------------------------------------------------------------
def _wspec():
    return pl.BlockSpec((CP, CP), lambda n: (0, 0))


def _bspec():
    return pl.BlockSpec((1, CP), lambda n: (0, 0))


def _dwspec():
    return pl.BlockSpec((9, CP), lambda n: (0, 0))


def _subsample_matrix(Ho, Wo):
    """One-hot (Hq*Wq, Ho*Wo) matrix selecting even (row, col) positions."""
    Hq, Wq = Ho // 2, Wo // 2
    oi = jnp.arange(Hq * Wq)
    src = (oi // Wq) * (2 * Wo) + (oi % Wq) * 2
    return jax.nn.one_hot(src, Ho * Wo, dtype=jnp.float32).astype(jnp.bfloat16)


def rlnet_forward(params, x_nchw, n_actions):
    x = jnp.transpose(x_nchw, (0, 2, 3, 1)).astype(jnp.float32)   # NCHW -> NHWC
    N, H, W, Cin = x.shape
    Ho, Wo = H // 2, W // 2          # spatial after stride-2 stem
    Hq, Wq = Ho // 2, Wo // 2        # spatial after stride-2 MBConv block

    # Stem 3x3/s2 patch gather: cheap XLA glue on a tiny (N,34,34,3) input.
    # K is zero-padded 27 -> 128 so every kernel-side load is lane-dense.
    xp = jnp.pad(x, ((0, 0), (1, 1), (1, 1), (0, 0)))
    taps = [xp[:, dh:dh + 2 * Ho:2, dw:dw + 2 * Wo:2, :]
            for dh in range(3) for dw in range(3)]
    patches = jnp.concatenate(taps, axis=-1).reshape(N * Ho * Wo, 9 * Cin)
    patches = jnp.pad(patches, ((0, 0), (0, CP - 9 * Cin)))

    S = _subsample_matrix(Ho, Wo)                                  # (Hq*Wq, Ho*Wo)
    M = Ho * Wo

    b0, b1, b2 = params["blocks"]
    args = [patches, S,
            params["stem_w"], params["stem_b"],
            b0["dw_w"], b0["dw_b"], b0["se1_w"], b0["se1_b"],
            b0["se2_w"], b0["se2_b"], b0["proj_w"], b0["proj_b"],
            b1["exp_w"], b1["exp_b"], b1["dw_w"], b1["dw_b"],
            b1["se1_w"], b1["se1_b"], b1["se2_w"], b1["se2_b"],
            b1["proj_w"], b1["proj_b"],
            b2["exp_w"], b2["exp_b"], b2["dw_w"], b2["dw_b"],
            b2["se1_w"], b2["se1_b"], b2["se2_w"], b2["se2_b"],
            b2["proj_w"], b2["proj_b"],
            params["head_w"], params["head_b"],
            params["fc_w"], params["fc_b"]]

    in_specs = [pl.BlockSpec((M, CP), lambda n: (n, 0)),           # patches
                pl.BlockSpec((Hq * Wq, M), lambda n: (0, 0)),      # subsample S
                _wspec(), _bspec(),                                # stem
                # block 0 (no expand)
                _dwspec(), _bspec(), _wspec(), _bspec(),
                _wspec(), _bspec(), _wspec(), _bspec(),
                # block 1 (expand)
                _wspec(), _bspec(), _dwspec(), _bspec(),
                _wspec(), _bspec(), _wspec(), _bspec(), _wspec(), _bspec(),
                # block 2 (expand)
                _wspec(), _bspec(), _dwspec(), _bspec(),
                _wspec(), _bspec(), _wspec(), _bspec(), _wspec(), _bspec(),
                # head + fc
                _wspec(), _bspec(), _wspec(), _bspec()]

    out = pl.pallas_call(
        functools.partial(_rlnet_kernel, Ho=Ho, Wo=Wo, Hq=Hq, Wq=Wq),
        out_shape=jax.ShapeDtypeStruct((N, 1, CP), jnp.float32),
        grid=(N,),
        in_specs=in_specs,
        out_specs=pl.BlockSpec((1, 1, CP), lambda n: (n, 0, 0)),
        scratch_shapes=[pltpu.VMEM((Ho + 2, Wo + 2, CP), jnp.float32),
                        pltpu.VMEM((Hq + 2, Wq + 2, CP), jnp.float32)],
        compiler_params=pltpu.CompilerParams(
            dimension_semantics=("parallel",)),
    )(*args)
    return out.reshape(N, CP)[:, :n_actions]


# ----------------------------------------------------------------------------
# Parameters (channel-padded to CP; matmul weights stored bf16, rest f32)
# ----------------------------------------------------------------------------
def init_params(key, n_actions):
    keys = iter(jax.random.split(key, 64))

    def wmat(rin, cout):                       # (CP, CP) bf16, zero-padded
        w = (float(rin) ** -0.5) * jax.random.normal(
            next(keys), (rin, cout), jnp.float32)
        return jnp.pad(w, ((0, CP - rin), (0, CP - cout))).astype(jnp.bfloat16)

    def bvec(c):                               # (1, CP) f32, zero-padded
        b = 0.02 * jax.random.normal(next(keys), (c,), jnp.float32)
        return jnp.pad(b, (0, CP - c)).reshape(1, CP)

    params = {"stem_w": wmat(9 * IN_CH, STEM_CH), "stem_b": bvec(STEM_CH)}
    blocks = []
    for (cin, cout, expand, stride) in BLOCK_CFG:
        cmid = cin * expand
        cse = max(1, cin // 4)
        p = {}
        if expand != 1:
            p["exp_w"], p["exp_b"] = wmat(cin, cmid), bvec(cmid)
        dw = (1.0 / 3.0) * jax.random.normal(next(keys), (9, cmid), jnp.float32)
        p["dw_w"] = jnp.pad(dw, ((0, 0), (0, CP - cmid)))   # f32 (VPU math)
        p["dw_b"] = bvec(cmid)
        p["se1_w"], p["se1_b"] = wmat(cmid, cse), bvec(cse)
        p["se2_w"], p["se2_b"] = wmat(cse, cmid), bvec(cmid)
        p["proj_w"], p["proj_b"] = wmat(cmid, cout), bvec(cout)
        blocks.append(p)
    params["blocks"] = blocks
    params["head_w"], params["head_b"] = wmat(BLOCK_CFG[-1][1], HEAD_CH), bvec(HEAD_CH)
    params["fc_w"], params["fc_b"] = wmat(HEAD_CH, n_actions), bvec(n_actions)
    return params


if __name__ == "__main__":
    n_actions = 4
    kx, kp = jax.random.split(jax.random.PRNGKey(0))
    x = jax.random.normal(kx, (2, 3, 32, 32), jnp.float32)   # NCHW, like PyTorch
    params = init_params(kp, n_actions)

    fwd = jax.jit(functools.partial(rlnet_forward, n_actions=n_actions))
    out = fwd(params, x)
    jax.block_until_ready(out)
    assert out.shape == (2, n_actions), out.shape
    assert out.dtype == jnp.float32
    assert bool(jnp.all(jnp.isfinite(out)))
    print("KERNEL_OK")
</pallas_src>

<mosaic_0001>
module attributes {stable_mosaic.version = 11 : i64} {
  func.func @_rlnet_kernel(%arg0: i32, %arg1: memref<256x128xf32, #tpu.memory_space<vmem>>, %arg2: memref<64x256xbf16, #tpu.memory_space<vmem>>, %arg3: memref<128x128xbf16, #tpu.memory_space<vmem>>, %arg4: memref<1x128xf32, #tpu.memory_space<vmem>>, %arg5: memref<9x128xf32, #tpu.memory_space<vmem>>, %arg6: memref<1x128xf32, #tpu.memory_space<vmem>>, %arg7: memref<128x128xbf16, #tpu.memory_space<vmem>>, %arg8: memref<1x128xf32, #tpu.memory_space<vmem>>, %arg9: memref<128x128xbf16, #tpu.memory_space<vmem>>, %arg10: memref<1x128xf32, #tpu.memory_space<vmem>>, %arg11: memref<128x128xbf16, #tpu.memory_space<vmem>>, %arg12: memref<1x128xf32, #tpu.memory_space<vmem>>, %arg13: memref<128x128xbf16, #tpu.memory_space<vmem>>, %arg14: memref<1x128xf32, #tpu.memory_space<vmem>>, %arg15: memref<9x128xf32, #tpu.memory_space<vmem>>, %arg16: memref<1x128xf32, #tpu.memory_space<vmem>>, %arg17: memref<128x128xbf16, #tpu.memory_space<vmem>>, %arg18: memref<1x128xf32, #tpu.memory_space<vmem>>, %arg19: memref<128x128xbf16, #tpu.memory_space<vmem>>, %arg20: memref<1x128xf32, #tpu.memory_space<vmem>>, %arg21: memref<128x128xbf16, #tpu.memory_space<vmem>>, %arg22: memref<1x128xf32, #tpu.memory_space<vmem>>, %arg23: memref<128x128xbf16, #tpu.memory_space<vmem>>, %arg24: memref<1x128xf32, #tpu.memory_space<vmem>>, %arg25: memref<9x128xf32, #tpu.memory_space<vmem>>, %arg26: memref<1x128xf32, #tpu.memory_space<vmem>>, %arg27: memref<128x128xbf16, #tpu.memory_space<vmem>>, %arg28: memref<1x128xf32, #tpu.memory_space<vmem>>, %arg29: memref<128x128xbf16, #tpu.memory_space<vmem>>, %arg30: memref<1x128xf32, #tpu.memory_space<vmem>>, %arg31: memref<128x128xbf16, #tpu.memory_space<vmem>>, %arg32: memref<1x128xf32, #tpu.memory_space<vmem>>, %arg33: memref<128x128xbf16, #tpu.memory_space<vmem>>, %arg34: memref<1x128xf32, #tpu.memory_space<vmem>>, %arg35: memref<128x128xbf16, #tpu.memory_space<vmem>>, %arg36: memref<1x128xf32, #tpu.memory_space<vmem>>, %arg37: memref<1x1x128xf32, #tpu.memory_space<vmem>>, %arg38: memref<18x18x128xf32, #tpu.memory_space<vmem>>, %arg39: memref<10x10x128xf32, #tpu.memory_space<vmem>>) attributes {dimension_semantics = [#tpu.dimension_semantics<parallel>], iteration_bounds = array<i64: 2>, scalar_prefetch = 0 : i64, scratch_operands = 2 : i64, tpu.core_type = #tpu.core_type<tc>, window_params = [{transform_indices = @transform_0, window_bounds = array<i64: 256, 128>}, {pipeline_mode = #tpu.pipeline_mode<synchronous>, transform_indices = @transform_1, window_bounds = array<i64: 64, 256>}, {pipeline_mode = #tpu.pipeline_mode<synchronous>, transform_indices = @transform_2, window_bounds = array<i64: 128, 128>}, {pipeline_mode = #tpu.pipeline_mode<synchronous>, transform_indices = @transform_3, window_bounds = array<i64: 1, 128>}, {pipeline_mode = #tpu.pipeline_mode<synchronous>, transform_indices = @transform_4, window_bounds = array<i64: 9, 128>}, {pipeline_mode = #tpu.pipeline_mode<synchronous>, transform_indices = @transform_5, window_bounds = array<i64: 1, 128>}, {pipeline_mode = #tpu.pipeline_mode<synchronous>, transform_indices = @transform_6, window_bounds = array<i64: 128, 128>}, {pipeline_mode = #tpu.pipeline_mode<synchronous>, transform_indices = @transform_7, window_bounds = array<i64: 1, 128>}, {pipeline_mode = #tpu.pipeline_mode<synchronous>, transform_indices = @transform_8, window_bounds = array<i64: 128, 128>}, {pipeline_mode = #tpu.pipeline_mode<synchronous>, transform_indices = @transform_9, window_bounds = array<i64: 1, 128>}, {pipeline_mode = #tpu.pipeline_mode<synchronous>, transform_indices = @transform_10, window_bounds = array<i64: 128, 128>}, {pipeline_mode = #tpu.pipeline_mode<synchronous>, transform_indices = @transform_11, window_bounds = array<i64: 1, 128>}, {pipeline_mode = #tpu.pipeline_mode<synchronous>, transform_indices = @transform_12, window_bounds = array<i64: 128, 128>}, {pipeline_mode = #tpu.pipeline_mode<synchronous>, transform_indices = @transform_13, window_bounds = array<i64: 1, 128>}, {pipeline_mode = #tpu.pipeline_mode<synchronous>, transform_indices = @transform_14, window_bounds = array<i64: 9, 128>}, {pipeline_mode = #tpu.pipeline_mode<synchronous>, transform_indices = @transform_15, window_bounds = array<i64: 1, 128>}, {pipeline_mode = #tpu.pipeline_mode<synchronous>, transform_indices = @transform_16, window_bounds = array<i64: 128, 128>}, {pipeline_mode = #tpu.pipeline_mode<synchronous>, transform_indices = @transform_17, window_bounds = array<i64: 1, 128>}, {pipeline_mode = #tpu.pipeline_mode<synchronous>, transform_indices = @transform_18, window_bounds = array<i64: 128, 128>}, {pipeline_mode = #tpu.pipeline_mode<synchronous>, transform_indices = @transform_19, window_bounds = array<i64: 1, 128>}, {pipeline_mode = #tpu.pipeline_mode<synchronous>, transform_indices = @transform_20, window_bounds = array<i64: 128, 128>}, {pipeline_mode = #tpu.pipeline_mode<synchronous>, transform_indices = @transform_21, window_bounds = array<i64: 1, 128>}, {pipeline_mode = #tpu.pipeline_mode<synchronous>, transform_indices = @transform_22, window_bounds = array<i64: 128, 128>}, {pipeline_mode = #tpu.pipeline_mode<synchronous>, transform_indices = @transform_23, window_bounds = array<i64: 1, 128>}, {pipeline_mode = #tpu.pipeline_mode<synchronous>, transform_indices = @transform_24, window_bounds = array<i64: 9, 128>}, {pipeline_mode = #tpu.pipeline_mode<synchronous>, transform_indices = @transform_25, window_bounds = array<i64: 1, 128>}, {pipeline_mode = #tpu.pipeline_mode<synchronous>, transform_indices = @transform_26, window_bounds = array<i64: 128, 128>}, {pipeline_mode = #tpu.pipeline_mode<synchronous>, transform_indices = @transform_27, window_bounds = array<i64: 1, 128>}, {pipeline_mode = #tpu.pipeline_mode<synchronous>, transform_indices = @transform_28, window_bounds = array<i64: 128, 128>}, {pipeline_mode = #tpu.pipeline_mode<synchronous>, transform_indices = @transform_29, window_bounds = array<i64: 1, 128>}, {pipeline_mode = #tpu.pipeline_mode<synchronous>, transform_indices = @transform_30, window_bounds = array<i64: 128, 128>}, {pipeline_mode = #tpu.pipeline_mode<synchronous>, transform_indices = @transform_31, window_bounds = array<i64: 1, 128>}, {pipeline_mode = #tpu.pipeline_mode<synchronous>, transform_indices = @transform_32, window_bounds = array<i64: 128, 128>}, {pipeline_mode = #tpu.pipeline_mode<synchronous>, transform_indices = @transform_33, window_bounds = array<i64: 1, 128>}, {pipeline_mode = #tpu.pipeline_mode<synchronous>, transform_indices = @transform_34, window_bounds = array<i64: 128, 128>}, {pipeline_mode = #tpu.pipeline_mode<synchronous>, transform_indices = @transform_35, window_bounds = array<i64: 1, 128>}, {transform_indices = @transform_36, window_bounds = array<i64: 1, 1, 128>}]} {
    %c0 = arith.constant 0 : index
    %c0_0 = arith.constant 0 : index
    %0 = vector.load %arg1[%c0, %c0_0] : memref<256x128xf32, #tpu.memory_space<vmem>>, vector<256x128xf32>
    %c0_1 = arith.constant 0 : index
    %c0_2 = arith.constant 0 : index
    %1 = vector.load %arg3[%c0_1, %c0_2] : memref<128x128xbf16, #tpu.memory_space<vmem>>, vector<128x128xbf16>
    %c0_3 = arith.constant 0 : index
    %c0_4 = arith.constant 0 : index
    %2 = vector.load %arg4[%c0_3, %c0_4] : memref<1x128xf32, #tpu.memory_space<vmem>>, vector<1x128xf32>
    %3 = arith.truncf %0 : vector<256x128xf32> to vector<256x128xbf16>
    %cst = arith.constant dense<0.000000e+00> : vector<256x128xf32>
    %4 = tpu.matmul %3, %1, %cst {dimension_numbers = #tpu.dot_dimension_numbers<[1], [0], [0], [1], [0, 0, 1, 1], [], []>} : vector<256x128xbf16>, vector<128x128xbf16>, vector<256x128xf32> -> vector<256x128xf32>
    %5 = vector.broadcast %2 : vector<1x128xf32> to vector<256x128xf32>
    %6 = arith.addf %4, %5 : vector<256x128xf32>
    %7 = arith.negf %6 : vector<256x128xf32>
    %8 = math.exp %7 : vector<256x128xf32>
    %cst_5 = arith.constant 1.000000e+00 : f32
    %9 = vector.broadcast %cst_5 : f32 to vector<256x128xf32>
    %10 = arith.addf %9, %8 : vector<256x128xf32>
    %11 = arith.divf %9, %10 : vector<256x128xf32>
    %12 = arith.mulf %6, %11 : vector<256x128xf32>
    %13 = vector.shape_cast %12 : vector<256x128xf32> to vector<16x16x128xf32>
    %c0_6 = arith.constant 0 : index
    %c0_7 = arith.constant 0 : index
    %14 = vector.load %arg5[%c0_6, %c0_7] : memref<9x128xf32, #tpu.memory_space<vmem>>, vector<9x128xf32>
    %c0_8 = arith.constant 0 : index
    %c0_9 = arith.constant 0 : index
    %15 = vector.load %arg6[%c0_8, %c0_9] : memref<1x128xf32, #tpu.memory_space<vmem>>, vector<1x128xf32>
    %cst_10 = arith.constant 0.000000e+00 : f32
    %16 = vector.broadcast %cst_10 : f32 to vector<1x18x128xf32>
    %cst_11 = arith.constant 0.000000e+00 : f32
    %17 = vector.broadcast %cst_11 : f32 to vector<16x1x128xf32>
    %c0_12 = arith.constant 0 : index
    %c0_13 = arith.constant 0 : index
    %c0_14 = arith.constant 0 : index
    %18 = vector.load %arg38[%c0_12, %c0_13, %c0_14] : memref<18x18x128xf32, #tpu.memory_space<vmem>>, vector<1x18x128xf32>
    tpu.vector_store %arg38[%c0_12, %c0_13, %c0_14], %16 {strides = array<i32>} : memref<18x18x128xf32, #tpu.memory_space<vmem>>, vector<1x18x128xf32>,
    %c17 = arith.constant 17 : index
    %c0_15 = arith.constant 0 : index
    %c0_16 = arith.constant 0 : index
    %19 = vector.load %arg38[%c17, %c0_15, %c0_16] : memref<18x18x128xf32, #tpu.memory_space<vmem>>, vector<1x18x128xf32>
    tpu.vector_store %arg38[%c17, %c0_15, %c0_16], %16 {strides = array<i32>} : memref<18x18x128xf32, #tpu.memory_space<vmem>>, vector<1x18x128xf32>,
    %c1 = arith.constant 1 : index
    %c0_17 = arith.constant 0 : index
    %c0_18 = arith.constant 0 : index
    %20 = vector.load %arg38[%c1, %c0_17, %c0_18] : memref<18x18x128xf32, #tpu.memory_space<vmem>>, vector<16x1x128xf32>
    tpu.vector_store %arg38[%c1, %c0_17, %c0_18], %17 {strides = array<i32>} : memref<18x18x128xf32, #tpu.memory_space<vmem>>, vector<16x1x128xf32>,
    %c1_19 = arith.constant 1 : index
    %c17_20 = arith.constant 17 : index
    %c0_21 = arith.constant 0 : index
    %21 = vector.load %arg38[%c1_19, %c17_20, %c0_21] : memref<18x18x128xf32, #tpu.memory_space<vmem>>, vector<16x1x128xf32>
    tpu.vector_store %arg38[%c1_19, %c17_20, %c0_21], %17 {strides = array<i32>} : memref<18x18x128xf32, #tpu.memory_space<vmem>>, vector<16x1x128xf32>,
    %c1_22 = arith.constant 1 : index
    %c1_23 = arith.constant 1 : index
    %c0_24 = arith.constant 0 : index
    %22 = vector.load %arg38[%c1_22, %c1_23, %c0_24] : memref<18x18x128xf32, #tpu.memory_space<vmem>>, vector<16x16x128xf32>
    tpu.vector_store %arg38[%c1_22, %c1_23, %c0_24], %13 {strides = array<i32>} : memref<18x18x128xf32, #tpu.memory_space<vmem>>, vector<16x16x128xf32>,
    %cst_25 = arith.constant 0.000000e+00 : f32
    %23 = vector.broadcast %cst_25 : f32 to vector<16x16x128xf32>
    %c0_26 = arith.constant 0 : index
    %c0_27 = arith.constant 0 : index
    %c0_28 = arith.constant 0 : index
    %24 = vector.load %arg38[%c0_26, %c0_27, %c0_28] : memref<18x18x128xf32, #tpu.memory_space<vmem>>, vector<16x16x128xf32>
    %25 = vector.extract_strided_slice %14 {offsets = [0, 0], sizes = [1, 128], strides = [1, 1]} : vector<9x128xf32> to vector<1x128xf32>
    %26 = vector.shape_cast %25 : vector<1x128xf32> to vector<128xf32>
    %27 = vector.shape_cast %26 : vector<128xf32> to vector<1x1x128xf32>
    %28 = vector.broadcast %27 : vector<1x1x128xf32> to vector<16x16x128xf32>
    %29 = arith.mulf %24, %28 : vector<16x16x128xf32>
    %30 = arith.addf %23, %29 : vector<16x16x128xf32>
    %c0_29 = arith.constant 0 : index
    %c1_30 = arith.constant 1 : index
    %c0_31 = arith.constant 0 : index
    %31 = vector.load %arg38[%c0_29, %c1_30, %c0_31] : memref<18x18x128xf32, #tpu.memory_space<vmem>>, vector<16x16x128xf32>
    %32 = vector.extract_strided_slice %14 {offsets = [1, 0], sizes = [1, 128], strides = [1, 1]} : vector<9x128xf32> to vector<1x128xf32>
    %33 = vector.shape_cast %32 : vector<1x128xf32> to vector<128xf32>
    %34 = vector.shape_cast %33 : vector<128xf32> to vector<1x1x128xf32>
    %35 = vector.broadcast %34 : vector<1x1x128xf32> to vector<16x16x128xf32>
    %36 = arith.mulf %31, %35 : vector<16x16x128xf32>
    %37 = arith.addf %30, %36 : vector<16x16x128xf32>
    %c0_32 = arith.constant 0 : index
    %c2 = arith.constant 2 : index
    %c0_33 = arith.constant 0 : index
    %38 = vector.load %arg38[%c0_32, %c2, %c0_33] : memref<18x18x128xf32, #tpu.memory_space<vmem>>, vector<16x16x128xf32>
    %39 = vector.extract_strided_slice %14 {offsets = [2, 0], sizes = [1, 128], strides = [1, 1]} : vector<9x128xf32> to vector<1x128xf32>
    %40 = vector.shape_cast %39 : vector<1x128xf32> to vector<128xf32>
    %41 = vector.shape_cast %40 : vector<128xf32> to vector<1x1x128xf32>
    %42 = vector.broadcast %41 : vector<1x1x128xf32> to vector<16x16x128xf32>
    %43 = arith.mulf %38, %42 : vector<16x16x128xf32>
    %44 = arith.addf %37, %43 : vector<16x16x128xf32>
    %c1_34 = arith.constant 1 : index
    %c0_35 = arith.constant 0 : index
    %c0_36 = arith.constant 0 : index
    %45 = vector.load %arg38[%c1_34, %c0_35, %c0_36] : memref<18x18x128xf32, #tpu.memory_space<vmem>>, vector<16x16x128xf32>
    %46 = vector.extract_strided_slice %14 {offsets = [3, 0], sizes = [1, 128], strides = [1, 1]} : vector<9x128xf32> to vector<1x128xf32>
    %47 = vector.shape_cast %46 : vector<1x128xf32> to vector<128xf32>
    %48 = vector.shape_cast %47 : vector<128xf32> to vector<1x1x128xf32>
    %49 = vector.broadcast %48 : vector<1x1x128xf32> to vector<16x16x128xf32>
    %50 = arith.mulf %45, %49 : vector<16x16x128xf32>
    %51 = arith.addf %44, %50 : vector<16x16x128xf32>
    %c1_37 = arith.constant 1 : index
    %c1_38 = arith.constant 1 : index
    %c0_39 = arith.constant 0 : index
    %52 = vector.load %arg38[%c1_37, %c1_38, %c0_39] : memref<18x18x128xf32, #tpu.memory_space<vmem>>, vector<16x16x128xf32>
    %53 = vector.extract_strided_slice %14 {offsets = [4, 0], sizes = [1, 128], strides = [1, 1]} : vector<9x128xf32> to vector<1x128xf32>
    %54 = vector.shape_cast %53 : vector<1x128xf32> to vector<128xf32>
    %55 = vector.shape_cast %54 : vector<128xf32> to vector<1x1x128xf32>
    %56 = vector.broadcast %55 : vector<1x1x128xf32> to vector<16x16x128xf32>
    %57 = arith.mulf %52, %56 : vector<16x16x128xf32>
    %58 = arith.addf %51, %57 : vector<16x16x128xf32>
    %c1_40 = arith.constant 1 : index
    %c2_41 = arith.constant 2 : index
    %c0_42 = arith.constant 0 : index
    %59 = vector.load %arg38[%c1_40, %c2_41, %c0_42] : memref<18x18x128xf32, #tpu.memory_space<vmem>>, vector<16x16x128xf32>
    %60 = vector.extract_strided_slice %14 {offsets = [5, 0], sizes = [1, 128], strides = [1, 1]} : vector<9x128xf32> to vector<1x128xf32>
    %61 = vector.shape_cast %60 : vector<1x128xf32> to vector<128xf32>
    %62 = vector.shape_cast %61 : vector<128xf32> to vector<1x1x128xf32>
    %63 = vector.broadcast %62 : vector<1x1x128xf32> to vector<16x16x128xf32>
    %64 = arith.mulf %59, %63 : vector<16x16x128xf32>
    %65 = arith.addf %58, %64 : vector<16x16x128xf32>
    %c2_43 = arith.constant 2 : index
    %c0_44 = arith.constant 0 : index
    %c0_45 = arith.constant 0 : index
    %66 = vector.load %arg38[%c2_43, %c0_44, %c0_45] : memref<18x18x128xf32, #tpu.memory_space<vmem>>, vector<16x16x128xf32>
    %67 = vector.extract_strided_slice %14 {offsets = [6, 0], sizes = [1, 128], strides = [1, 1]} : vector<9x128xf32> to vector<1x128xf32>
    %68 = vector.shape_cast %67 : vector<1x128xf32> to vector<128xf32>
    %69 = vector.shape_cast %68 : vector<128xf32> to vector<1x1x128xf32>
    %70 = vector.broadcast %69 : vector<1x1x128xf32> to vector<16x16x128xf32>
    %71 = arith.mulf %66, %70 : vector<16x16x128xf32>
    %72 = arith.addf %65, %71 : vector<16x16x128xf32>
    %c2_46 = arith.constant 2 : index
    %c1_47 = arith.constant 1 : index
    %c0_48 = arith.constant 0 : index
    %73 = vector.load %arg38[%c2_46, %c1_47, %c0_48] : memref<18x18x128xf32, #tpu.memory_space<vmem>>, vector<16x16x128xf32>
    %74 = vector.extract_strided_slice %14 {offsets = [7, 0], sizes = [1, 128], strides = [1, 1]} : vector<9x128xf32> to vector<1x128xf32>
    %75 = vector.shape_cast %74 : vector<1x128xf32> to vector<128xf32>
    %76 = vector.shape_cast %75 : vector<128xf32> to vector<1x1x128xf32>
    %77 = vector.broadcast %76 : vector<1x1x128xf32> to vector<16x16x128xf32>
    %78 = arith.mulf %73, %77 : vector<16x16x128xf32>
    %79 = arith.addf %72, %78 : vector<16x16x128xf32>
    %c2_49 = arith.constant 2 : index
    %c2_50 = arith.constant 2 : index
    %c0_51 = arith.constant 0 : index
    %80 = vector.load %arg38[%c2_49, %c2_50, %c0_51] : memref<18x18x128xf32, #tpu.memory_space<vmem>>, vector<16x16x128xf32>
    %81 = vector.extract_strided_slice %14 {offsets = [8, 0], sizes = [1, 128], strides = [1, 1]} : vector<9x128xf32> to vector<1x128xf32>
    %82 = vector.shape_cast %81 : vector<1x128xf32> to vector<128xf32>
    %83 = vector.shape_cast %82 : vector<128xf32> to vector<1x1x128xf32>
    %84 = vector.broadcast %83 : vector<1x1x128xf32> to vector<16x16x128xf32>
    %85 = arith.mulf %80, %84 : vector<16x16x128xf32>
    %86 = arith.addf %79, %85 : vector<16x16x128xf32>
    %87 = vector.shape_cast %15 : vector<1x128xf32> to vector<1x1x128xf32>
    %88 = vector.broadcast %87 : vector<1x1x128xf32> to vector<16x16x128xf32>
    %89 = arith.addf %86, %88 : vector<16x16x128xf32>
    %90 = arith.negf %89 : vector<16x16x128xf32>
    %91 = math.exp %90 : vector<16x16x128xf32>
    %cst_52 = arith.constant 1.000000e+00 : f32
    %92 = vector.broadcast %cst_52 : f32 to vector<16x16x128xf32>
    %93 = arith.addf %92, %91 : vector<16x16x128xf32>
    %94 = arith.divf %92, %93 : vector<16x16x128xf32>
    %95 = arith.mulf %89, %94 : vector<16x16x128xf32>
    %c0_53 = arith.constant 0 : index
    %c0_54 = arith.constant 0 : index
    %96 = vector.load %arg7[%c0_53, %c0_54] : memref<128x128xbf16, #tpu.memory_space<vmem>>, vector<128x128xbf16>
    %c0_55 = arith.constant 0 : index
    %c0_56 = arith.constant 0 : index
    %97 = vector.load %arg8[%c0_55, %c0_56] : memref<1x128xf32, #tpu.memory_space<vmem>>, vector<1x128xf32>
    %c0_57 = arith.constant 0 : index
    %c0_58 = arith.constant 0 : index
    %98 = vector.load %arg9[%c0_57, %c0_58] : memref<128x128xbf16, #tpu.memory_space<vmem>>, vector<128x128xbf16>
    %c0_59 = arith.constant 0 : index
    %c0_60 = arith.constant 0 : index
    %99 = vector.load %arg10[%c0_59, %c0_60] : memref<1x128xf32, #tpu.memory_space<vmem>>, vector<1x128xf32>
    %100 = vector.shape_cast %95 : vector<16x16x128xf32> to vector<256x128xf32>
    %cst_61 = arith.constant dense<0.000000e+00> : vector<128xf32>
    %101 = vector.multi_reduction <add>, %100, %cst_61 [0] : vector<256x128xf32> to vector<128xf32>
    %102 = vector.shape_cast %101 : vector<128xf32> to vector<1x128xf32>
    %cst_62 = arith.constant 2.560000e+02 : f32
    %103 = vector.broadcast %cst_62 : f32 to vector<1x128xf32>
    %104 = arith.divf %102, %103 : vector<1x128xf32>
    %105 = arith.truncf %104 : vector<1x128xf32> to vector<1x128xbf16>
    %cst_63 = arith.constant dense<0.000000e+00> : vector<1x128xf32>
    %106 = tpu.matmul %105, %96, %cst_63 {dimension_numbers = #tpu.dot_dimension_numbers<[1], [0], [0], [1], [0, 0, 1, 1], [], []>} : vector<1x128xbf16>, vector<128x128xbf16>, vector<1x128xf32> -> vector<1x128xf32>
    %107 = arith.addf %106, %97 : vector<1x128xf32>
    %108 = arith.negf %107 : vector<1x128xf32>
    %109 = math.exp %108 : vector<1x128xf32>
    %cst_64 = arith.constant 1.000000e+00 : f32
    %110 = vector.broadcast %cst_64 : f32 to vector<1x128xf32>
    %111 = arith.addf %110, %109 : vector<1x128xf32>
    %112 = arith.divf %110, %111 : vector<1x128xf32>
    %113 = arith.mulf %107, %112 : vector<1x128xf32>
    %114 = arith.truncf %113 : vector<1x128xf32> to vector<1x128xbf16>
    %cst_65 = arith.constant dense<0.000000e+00> : vector<1x128xf32>
    %115 = tpu.matmul %114, %98, %cst_65 {dimension_numbers = #tpu.dot_dimension_numbers<[1], [0], [0], [1], [0, 0, 1, 1], [], []>} : vector<1x128xbf16>, vector<128x128xbf16>, vector<1x128xf32> -> vector<1x128xf32>
    %116 = arith.addf %115, %99 : vector<1x128xf32>
    %117 = arith.negf %116 : vector<1x128xf32>
    %118 = math.exp %117 : vector<1x128xf32>
    %cst_66 = arith.constant 1.000000e+00 : f32
    %119 = vector.broadcast %cst_66 : f32 to vector<1x128xf32>
    %120 = arith.addf %119, %118 : vector<1x128xf32>
    %121 = arith.divf %119, %120 : vector<1x128xf32>
    %122 = vector.shape_cast %121 : vector<1x128xf32> to vector<1x1x128xf32>
    %123 = vector.broadcast %122 : vector<1x1x128xf32> to vector<16x16x128xf32>
    %124 = arith.mulf %95, %123 : vector<16x16x128xf32>
    %125 = vector.shape_cast %124 : vector<16x16x128xf32> to vector<256x128xf32>
    %c0_67 = arith.constant 0 : index
    %c0_68 = arith.constant 0 : index
    %126 = vector.load %arg11[%c0_67, %c0_68] : memref<128x128xbf16, #tpu.memory_space<vmem>>, vector<128x128xbf16>
    %c0_69 = arith.constant 0 : index
    %c0_70 = arith.constant 0 : index
    %127 = vector.load %arg12[%c0_69, %c0_70] : memref<1x128xf32, #tpu.memory_space<vmem>>, vector<1x128xf32>
    %128 = arith.truncf %125 : vector<256x128xf32> to vector<256x128xbf16>
    %cst_71 = arith.constant dense<0.000000e+00> : vector<256x128xf32>
    %129 = tpu.matmul %128, %126, %cst_71 {dimension_numbers = #tpu.dot_dimension_numbers<[1], [0], [0], [1], [0, 0, 1, 1], [], []>} : vector<256x128xbf16>, vector<128x128xbf16>, vector<256x128xf32> -> vector<256x128xf32>
    %130 = vector.broadcast %127 : vector<1x128xf32> to vector<256x128xf32>
    %131 = arith.addf %129, %130 : vector<256x128xf32>
    %132 = arith.addf %131, %12 : vector<256x128xf32>
    %c0_72 = arith.constant 0 : index
    %c0_73 = arith.constant 0 : index
    %133 = vector.load %arg13[%c0_72, %c0_73] : memref<128x128xbf16, #tpu.memory_space<vmem>>, vector<128x128xbf16>
    %c0_74 = arith.constant 0 : index
    %c0_75 = arith.constant 0 : index
    %134 = vector.load %arg14[%c0_74, %c0_75] : memref<1x128xf32, #tpu.memory_space<vmem>>, vector<1x128xf32>
    %135 = arith.truncf %132 : vector<256x128xf32> to vector<256x128xbf16>
    %cst_76 = arith.constant dense<0.000000e+00> : vector<256x128xf32>
    %136 = tpu.matmul %135, %133, %cst_76 {dimension_numbers = #tpu.dot_dimension_numbers<[1], [0], [0], [1], [0, 0, 1, 1], [], []>} : vector<256x128xbf16>, vector<128x128xbf16>, vector<256x128xf32> -> vector<256x128xf32>
    %137 = vector.broadcast %134 : vector<1x128xf32> to vector<256x128xf32>
    %138 = arith.addf %136, %137 : vector<256x128xf32>
    %139 = arith.negf %138 : vector<256x128xf32>
    %140 = math.exp %139 : vector<256x128xf32>
    %cst_77 = arith.constant 1.000000e+00 : f32
    %141 = vector.broadcast %cst_77 : f32 to vector<256x128xf32>
    %142 = arith.addf %141, %140 : vector<256x128xf32>
    %143 = arith.divf %141, %142 : vector<256x128xf32>
    %144 = arith.mulf %138, %143 : vector<256x128xf32>
    %145 = vector.shape_cast %144 : vector<256x128xf32> to vector<16x16x128xf32>
    %c0_78 = arith.constant 0 : index
    %c0_79 = arith.constant 0 : index
    %146 = vector.load %arg15[%c0_78, %c0_79] : memref<9x128xf32, #tpu.memory_space<vmem>>, vector<9x128xf32>
    %c0_80 = arith.constant 0 : index
    %c0_81 = arith.constant 0 : index
    %147 = vector.load %arg16[%c0_80, %c0_81] : memref<1x128xf32, #tpu.memory_space<vmem>>, vector<1x128xf32>
    %cst_82 = arith.constant 0.000000e+00 : f32
    %148 = vector.broadcast %cst_82 : f32 to vector<1x18x128xf32>
    %cst_83 = arith.constant 0.000000e+00 : f32
    %149 = vector.broadcast %cst_83 : f32 to vector<16x1x128xf32>
    %c0_84 = arith.constant 0 : index
    %c0_85 = arith.constant 0 : index
    %c0_86 = arith.constant 0 : index
    %150 = vector.load %arg38[%c0_84, %c0_85, %c0_86] : memref<18x18x128xf32, #tpu.memory_space<vmem>>, vector<1x18x128xf32>
    tpu.vector_store %arg38[%c0_84, %c0_85, %c0_86], %148 {strides = array<i32>} : memref<18x18x128xf32, #tpu.memory_space<vmem>>, vector<1x18x128xf32>,
    %c17_87 = arith.constant 17 : index
    %c0_88 = arith.constant 0 : index
    %c0_89 = arith.constant 0 : index
    %151 = vector.load %arg38[%c17_87, %c0_88, %c0_89] : memref<18x18x128xf32, #tpu.memory_space<vmem>>, vector<1x18x128xf32>
    tpu.vector_store %arg38[%c17_87, %c0_88, %c0_89], %148 {strides = array<i32>} : memref<18x18x128xf32, #tpu.memory_space<vmem>>, vector<1x18x128xf32>,
    %c1_90 = arith.constant 1 : index
    %c0_91 = arith.constant 0 : index
    %c0_92 = arith.constant 0 : index
    %152 = vector.load %arg38[%c1_90, %c0_91, %c0_92] : memref<18x18x128xf32, #tpu.memory_space<vmem>>, vector<16x1x128xf32>
    tpu.vector_store %arg38[%c1_90, %c0_91, %c0_92], %149 {strides = array<i32>} : memref<18x18x128xf32, #tpu.memory_space<vmem>>, vector<16x1x128xf32>,
    %c1_93 = arith.constant 1 : index
    %c17_94 = arith.constant 17 : index
    %c0_95 = arith.constant 0 : index
    %153 = vector.load %arg38[%c1_93, %c17_94, %c0_95] : memref<18x18x128xf32, #tpu.memory_space<vmem>>, vector<16x1x128xf32>
    tpu.vector_store %arg38[%c1_93, %c17_94, %c0_95], %149 {strides = array<i32>} : memref<18x18x128xf32, #tpu.memory_space<vmem>>, vector<16x1x128xf32>,
    %c1_96 = arith.constant 1 : index
    %c1_97 = arith.constant 1 : index
    %c0_98 = arith.constant 0 : index
    %154 = vector.load %arg38[%c1_96, %c1_97, %c0_98] : memref<18x18x128xf32, #tpu.memory_space<vmem>>, vector<16x16x128xf32>
    tpu.vector_store %arg38[%c1_96, %c1_97, %c0_98], %145 {strides = array<i32>} : memref<18x18x128xf32, #tpu.memory_space<vmem>>, vector<16x16x128xf32>,
    %cst_99 = arith.constant 0.000000e+00 : f32
    %155 = vector.broadcast %cst_99 : f32 to vector<16x16x128xf32>
    %c0_100 = arith.constant 0 : index
    %c0_101 = arith.constant 0 : index
    %c0_102 = arith.constant 0 : index
    %156 = vector.load %arg38[%c0_100, %c0_101, %c0_102] : memref<18x18x128xf32, #tpu.memory_space<vmem>>, vector<16x16x128xf32>
    %157 = vector.extract_strided_slice %146 {offsets = [0, 0], sizes = [1, 128], strides = [1, 1]} : vector<9x128xf32> to vector<1x128xf32>
    %158 = vector.shape_cast %157 : vector<1x128xf32> to vector<128xf32>
    %159 = vector.shape_cast %158 : vector<128xf32> to vector<1x1x128xf32>
    %160 = vector.broadcast %159 : vector<1x1x128xf32> to vector<16x16x128xf32>
    %161 = arith.mulf %156, %160 : vector<16x16x128xf32>
    %162 = arith.addf %155, %161 : vector<16x16x128xf32>
    %c0_103 = arith.constant 0 : index
    %c1_104 = arith.constant 1 : index
    %c0_105 = arith.constant 0 : index
    %163 = vector.load %arg38[%c0_103, %c1_104, %c0_105] : memref<18x18x128xf32, #tpu.memory_space<vmem>>, vector<16x16x128xf32>
    %164 = vector.extract_strided_slice %146 {offsets = [1, 0], sizes = [1, 128], strides = [1, 1]} : vector<9x128xf32> to vector<1x128xf32>
    %165 = vector.shape_cast %164 : vector<1x128xf32> to vector<128xf32>
    %166 = vector.shape_cast %165 : vector<128xf32> to vector<1x1x128xf32>
    %167 = vector.broadcast %166 : vector<1x1x128xf32> to vector<16x16x128xf32>
    %168 = arith.mulf %163, %167 : vector<16x16x128xf32>
    %169 = arith.addf %162, %168 : vector<16x16x128xf32>
    %c0_106 = arith.constant 0 : index
    %c2_107 = arith.constant 2 : index
    %c0_108 = arith.constant 0 : index
    %170 = vector.load %arg38[%c0_106, %c2_107, %c0_108] : memref<18x18x128xf32, #tpu.memory_space<vmem>>, vector<16x16x128xf32>
    %171 = vector.extract_strided_slice %146 {offsets = [2, 0], sizes = [1, 128], strides = [1, 1]} : vector<9x128xf32> to vector<1x128xf32>
    %172 = vector.shape_cast %171 : vector<1x128xf32> to vector<128xf32>
    %173 = vector.shape_cast %172 : vector<128xf32> to vector<1x1x128xf32>
    %174 = vector.broadcast %173 : vector<1x1x128xf32> to vector<16x16x128xf32>
    %175 = arith.mulf %170, %174 : vector<16x16x128xf32>
    %176 = arith.addf %169, %175 : vector<16x16x128xf32>
    %c1_109 = arith.constant 1 : index
    %c0_110 = arith.constant 0 : index
    %c0_111 = arith.constant 0 : index
    %177 = vector.load %arg38[%c1_109, %c0_110, %c0_111] : memref<18x18x128xf32, #tpu.memory_space<vmem>>, vector<16x16x128xf32>
    %178 = vector.extract_strided_slice %146 {offsets = [3, 0], sizes = [1, 128], strides = [1, 1]} : vector<9x128xf32> to vector<1x128xf32>
    %179 = vector.shape_cast %178 : vector<1x128xf32> to vector<128xf32>
    %180 = vector.shape_cast %179 : vector<128xf32> to vector<1x1x128xf32>
    %181 = vector.broadcast %180 : vector<1x1x128xf32> to vector<16x16x128xf32>
    %182 = arith.mulf %177, %181 : vector<16x16x128xf32>
    %183 = arith.addf %176, %182 : vector<16x16x128xf32>
    %c1_112 = arith.constant 1 : index
    %c1_113 = arith.constant 1 : index
    %c0_114 = arith.constant 0 : index
    %184 = vector.load %arg38[%c1_112, %c1_113, %c0_114] : memref<18x18x128xf32, #tpu.memory_space<vmem>>, vector<16x16x128xf32>
    %185 = vector.extract_strided_slice %146 {offsets = [4, 0], sizes = [1, 128], strides = [1, 1]} : vector<9x128xf32> to vector<1x128xf32>
    %186 = vector.shape_cast %185 : vector<1x128xf32> to vector<128xf32>
    %187 = vector.shape_cast %186 : vector<128xf32> to vector<1x1x128xf32>
    %188 = vector.broadcast %187 : vector<1x1x128xf32> to vector<16x16x128xf32>
    %189 = arith.mulf %184, %188 : vector<16x16x128xf32>
    %190 = arith.addf %183, %189 : vector<16x16x128xf32>
    %c1_115 = arith.constant 1 : index
    %c2_116 = arith.constant 2 : index
    %c0_117 = arith.constant 0 : index
    %191 = vector.load %arg38[%c1_115, %c2_116, %c0_117] : memref<18x18x128xf32, #tpu.memory_space<vmem>>, vector<16x16x128xf32>
    %192 = vector.extract_strided_slice %146 {offsets = [5, 0], sizes = [1, 128], strides = [1, 1]} : vector<9x128xf32> to vector<1x128xf32>
    %193 = vector.shape_cast %192 : vector<1x128xf32> to vector<128xf32>
    %194 = vector.shape_cast %193 : vector<128xf32> to vector<1x1x128xf32>
    %195 = vector.broadcast %194 : vector<1x1x128xf32> to vector<16x16x128xf32>
    %196 = arith.mulf %191, %195 : vector<16x16x128xf32>
    %197 = arith.addf %190, %196 : vector<16x16x128xf32>
    %c2_118 = arith.constant 2 : index
    %c0_119 = arith.constant 0 : index
    %c0_120 = arith.constant 0 : index
    %198 = vector.load %arg38[%c2_118, %c0_119, %c0_120] : memref<18x18x128xf32, #tpu.memory_space<vmem>>, vector<16x16x128xf32>
    %199 = vector.extract_strided_slice %146 {offsets = [6, 0], sizes = [1, 128], strides = [1, 1]} : vector<9x128xf32> to vector<1x128xf32>
    %200 = vector.shape_cast %199 : vector<1x128xf32> to vector<128xf32>
    %201 = vector.shape_cast %200 : vector<128xf32> to vector<1x1x128xf32>
    %202 = vector.broadcast %201 : vector<1x1x128xf32> to vector<16x16x128xf32>
    %203 = arith.mulf %198, %202 : vector<16x16x128xf32>
    %204 = arith.addf %197, %203 : vector<16x16x128xf32>
    %c2_121 = arith.constant 2 : index
    %c1_122 = arith.constant 1 : index
    %c0_123 = arith.constant 0 : index
    %205 = vector.load %arg38[%c2_121, %c1_122, %c0_123] : memref<18x18x128xf32, #tpu.memory_space<vmem>>, vector<16x16x128xf32>
    %206 = vector.extract_strided_slice %146 {offsets = [7, 0], sizes = [1, 128], strides = [1, 1]} : vector<9x128xf32> to vector<1x128xf32>
    %207 = vector.shape_cast %206 : vector<1x128xf32> to vector<128xf32>
    %208 = vector.shape_cast %207 : vector<128xf32> to vector<1x1x128xf32>
    %209 = vector.broadcast %208 : vector<1x1x128xf32> to vector<16x16x128xf32>
    %210 = arith.mulf %205, %209 : vector<16x16x128xf32>
    %211 = arith.addf %204, %210 : vector<16x16x128xf32>
    %c2_124 = arith.constant 2 : index
    %c2_125 = arith.constant 2 : index
    %c0_126 = arith.constant 0 : index
    %212 = vector.load %arg38[%c2_124, %c2_125, %c0_126] : memref<18x18x128xf32, #tpu.memory_space<vmem>>, vector<16x16x128xf32>
    %213 = vector.extract_strided_slice %146 {offsets = [8, 0], sizes = [1, 128], strides = [1, 1]} : vector<9x128xf32> to vector<1x128xf32>
    %214 = vector.shape_cast %213 : vector<1x128xf32> to vector<128xf32>
    %215 = vector.shape_cast %214 : vector<128xf32> to vector<1x1x128xf32>
    %216 = vector.broadcast %215 : vector<1x1x128xf32> to vector<16x16x128xf32>
    %217 = arith.mulf %212, %216 : vector<16x16x128xf32>
    %218 = arith.addf %211, %217 : vector<16x16x128xf32>
    %219 = vector.shape_cast %147 : vector<1x128xf32> to vector<1x1x128xf32>
    %220 = vector.broadcast %219 : vector<1x1x128xf32> to vector<16x16x128xf32>
    %221 = arith.addf %218, %220 : vector<16x16x128xf32>
    %222 = arith.negf %221 : vector<16x16x128xf32>
    %223 = math.exp %222 : vector<16x16x128xf32>
    %cst_127 = arith.constant 1.000000e+00 : f32
    %224 = vector.broadcast %cst_127 : f32 to vector<16x16x128xf32>
    %225 = arith.addf %224, %223 : vector<16x16x128xf32>
    %226 = arith.divf %224, %225 : vector<16x16x128xf32>
    %227 = arith.mulf %221, %226 : vector<16x16x128xf32>
    %c0_128 = arith.constant 0 : index
    %c0_129 = arith.constant 0 : index
    %228 = vector.load %arg2[%c0_128, %c0_129] : memref<64x256xbf16, #tpu.memory_space<vmem>>, vector<64x256xbf16>
    %229 = vector.shape_cast %227 : vector<16x16x128xf32> to vector<256x128xf32>
    %230 = arith.truncf %229 : vector<256x128xf32> to vector<256x128xbf16>
    %cst_130 = arith.constant dense<0.000000e+00> : vector<64x128xf32>
    %231 = tpu.matmul %228, %230, %cst_130 {dimension_numbers = #tpu.dot_dimension_numbers<[1], [0], [0], [1], [0, 0, 1, 1], [], []>} : vector<64x256xbf16>, vector<256x128xbf16>, vector<64x128xf32> -> vector<64x128xf32>
    %232 = vector.shape_cast %231 : vector<64x128xf32> to vector<8x8x128xf32>
    %c0_131 = arith.constant 0 : index
    %c0_132 = arith.constant 0 : index
    %233 = vector.load %arg17[%c0_131, %c0_132] : memref<128x128xbf16, #tpu.memory_space<vmem>>, vector<128x128xbf16>
    %c0_133 = arith.constant 0 : index
    %c0_134 = arith.constant 0 : index
    %234 = vector.load %arg18[%c0_133, %c0_134] : memref<1x128xf32, #tpu.memory_space<vmem>>, vector<1x128xf32>
    %c0_135 = arith.constant 0 : index
    %c0_136 = arith.constant 0 : index
    %235 = vector.load %arg19[%c0_135, %c0_136] : memref<128x128xbf16, #tpu.memory_space<vmem>>, vector<128x128xbf16>
    %c0_137 = arith.constant 0 : index
    %c0_138 = arith.constant 0 : index
    %236 = vector.load %arg20[%c0_137, %c0_138] : memref<1x128xf32, #tpu.memory_space<vmem>>, vector<1x128xf32>
    %237 = vector.shape_cast %232 : vector<8x8x128xf32> to vector<64x128xf32>
    %cst_139 = arith.constant dense<0.000000e+00> : vector<128xf32>
    %238 = vector.multi_reduction <add>, %237, %cst_139 [0] : vector<64x128xf32> to vector<128xf32>
    %239 = vector.shape_cast %238 : vector<128xf32> to vector<1x128xf32>
    %cst_140 = arith.constant 6.400000e+01 : f32
    %240 = vector.broadcast %cst_140 : f32 to vector<1x128xf32>
    %241 = arith.divf %239, %240 : vector<1x128xf32>
    %242 = arith.truncf %241 : vector<1x128xf32> to vector<1x128xbf16>
    %cst_141 = arith.constant dense<0.000000e+00> : vector<1x128xf32>
    %243 = tpu.matmul %242, %233, %cst_141 {dimension_numbers = #tpu.dot_dimension_numbers<[1], [0], [0], [1], [0, 0, 1, 1], [], []>} : vector<1x128xbf16>, vector<128x128xbf16>, vector<1x128xf32> -> vector<1x128xf32>
    %244 = arith.addf %243, %234 : vector<1x128xf32>
    %245 = arith.negf %244 : vector<1x128xf32>
    %246 = math.exp %245 : vector<1x128xf32>
    %cst_142 = arith.constant 1.000000e+00 : f32
    %247 = vector.broadcast %cst_142 : f32 to vector<1x128xf32>
    %248 = arith.addf %247, %246 : vector<1x128xf32>
    %249 = arith.divf %247, %248 : vector<1x128xf32>
    %250 = arith.mulf %244, %249 : vector<1x128xf32>
    %251 = arith.truncf %250 : vector<1x128xf32> to vector<1x128xbf16>
    %cst_143 = arith.constant dense<0.000000e+00> : vector<1x128xf32>
    %252 = tpu.matmul %251, %235, %cst_143 {dimension_numbers = #tpu.dot_dimension_numbers<[1], [0], [0], [1], [0, 0, 1, 1], [], []>} : vector<1x128xbf16>, vector<128x128xbf16>, vector<1x128xf32> -> vector<1x128xf32>
    %253 = arith.addf %252, %236 : vector<1x128xf32>
    %254 = arith.negf %253 : vector<1x128xf32>
    %255 = math.exp %254 : vector<1x128xf32>
    %cst_144 = arith.constant 1.000000e+00 : f32
    %256 = vector.broadcast %cst_144 : f32 to vector<1x128xf32>
    %257 = arith.addf %256, %255 : vector<1x128xf32>
    %258 = arith.divf %256, %257 : vector<1x128xf32>
    %259 = vector.shape_cast %258 : vector<1x128xf32> to vector<1x1x128xf32>
    %260 = vector.broadcast %259 : vector<1x1x128xf32> to vector<8x8x128xf32>
    %261 = arith.mulf %232, %260 : vector<8x8x128xf32>
    %262 = vector.shape_cast %261 : vector<8x8x128xf32> to vector<64x128xf32>
    %c0_145 = arith.constant 0 : index
    %c0_146 = arith.constant 0 : index
    %263 = vector.load %arg21[%c0_145, %c0_146] : memref<128x128xbf16, #tpu.memory_space<vmem>>, vector<128x128xbf16>
    %c0_147 = arith.constant 0 : index
    %c0_148 = arith.constant 0 : index
    %264 = vector.load %arg22[%c0_147, %c0_148] : memref<1x128xf32, #tpu.memory_space<vmem>>, vector<1x128xf32>
    %265 = arith.truncf %262 : vector<64x128xf32> to vector<64x128xbf16>
    %cst_149 = arith.constant dense<0.000000e+00> : vector<64x128xf32>
    %266 = tpu.matmul %265, %263, %cst_149 {dimension_numbers = #tpu.dot_dimension_numbers<[1], [0], [0], [1], [0, 0, 1, 1], [], []>} : vector<64x128xbf16>, vector<128x128xbf16>, vector<64x128xf32> -> vector<64x128xf32>
    %267 = vector.broadcast %264 : vector<1x128xf32> to vector<64x128xf32>
    %268 = arith.addf %266, %267 : vector<64x128xf32>
    %c0_150 = arith.constant 0 : index
    %c0_151 = arith.constant 0 : index
    %269 = vector.load %arg23[%c0_150, %c0_151] : memref<128x128xbf16, #tpu.memory_space<vmem>>, vector<128x128xbf16>
    %c0_152 = arith.constant 0 : index
    %c0_153 = arith.constant 0 : index
    %270 = vector.load %arg24[%c0_152, %c0_153] : memref<1x128xf32, #tpu.memory_space<vmem>>, vector<1x128xf32>
    %271 = arith.truncf %268 : vector<64x128xf32> to vector<64x128xbf16>
    %cst_154 = arith.constant dense<0.000000e+00> : vector<64x128xf32>
    %272 = tpu.matmul %271, %269, %cst_154 {dimension_numbers = #tpu.dot_dimension_numbers<[1], [0], [0], [1], [0, 0, 1, 1], [], []>} : vector<64x128xbf16>, vector<128x128xbf16>, vector<64x128xf32> -> vector<64x128xf32>
    %273 = vector.broadcast %270 : vector<1x128xf32> to vector<64x128xf32>
    %274 = arith.addf %272, %273 : vector<64x128xf32>
    %275 = arith.negf %274 : vector<64x128xf32>
    %276 = math.exp %275 : vector<64x128xf32>
    %cst_155 = arith.constant 1.000000e+00 : f32
    %277 = vector.broadcast %cst_155 : f32 to vector<64x128xf32>
    %278 = arith.addf %277, %276 : vector<64x128xf32>
    %279 = arith.divf %277, %278 : vector<64x128xf32>
    %280 = arith.mulf %274, %279 : vector<64x128xf32>
    %281 = vector.shape_cast %280 : vector<64x128xf32> to vector<8x8x128xf32>
    %c0_156 = arith.constant 0 : index
    %c0_157 = arith.constant 0 : index
    %282 = vector.load %arg25[%c0_156, %c0_157] : memref<9x128xf32, #tpu.memory_space<vmem>>, vector<9x128xf32>
    %c0_158 = arith.constant 0 : index
    %c0_159 = arith.constant 0 : index
    %283 = vector.load %arg26[%c0_158, %c0_159] : memref<1x128xf32, #tpu.memory_space<vmem>>, vector<1x128xf32>
    %cst_160 = arith.constant 0.000000e+00 : f32
    %284 = vector.broadcast %cst_160 : f32 to vector<1x10x128xf32>
    %cst_161 = arith.constant 0.000000e+00 : f32
    %285 = vector.broadcast %cst_161 : f32 to vector<8x1x128xf32>
    %c0_162 = arith.constant 0 : index
    %c0_163 = arith.constant 0 : index
    %c0_164 = arith.constant 0 : index
    %286 = vector.load %arg39[%c0_162, %c0_163, %c0_164] : memref<10x10x128xf32, #tpu.memory_space<vmem>>, vector<1x10x128xf32>
    tpu.vector_store %arg39[%c0_162, %c0_163, %c0_164], %284 {strides = array<i32>} : memref<10x10x128xf32, #tpu.memory_space<vmem>>, vector<1x10x128xf32>,
    %c9 = arith.constant 9 : index
    %c0_165 = arith.constant 0 : index
    %c0_166 = arith.constant 0 : index
    %287 = vector.load %arg39[%c9, %c0_165, %c0_166] : memref<10x10x128xf32, #tpu.memory_space<vmem>>, vector<1x10x128xf32>
    tpu.vector_store %arg39[%c9, %c0_165, %c0_166], %284 {strides = array<i32>} : memref<10x10x128xf32, #tpu.memory_space<vmem>>, vector<1x10x128xf32>,
    %c1_167 = arith.constant 1 : index
    %c0_168 = arith.constant 0 : index
    %c0_169 = arith.constant 0 : index
    %288 = vector.load %arg39[%c1_167, %c0_168, %c0_169] : memref<10x10x128xf32, #tpu.memory_space<vmem>>, vector<8x1x128xf32>
    tpu.vector_store %arg39[%c1_167, %c0_168, %c0_169], %285 {strides = array<i32>} : memref<10x10x128xf32, #tpu.memory_space<vmem>>, vector<8x1x128xf32>,
    %c1_170 = arith.constant 1 : index
    %c9_171 = arith.constant 9 : index
    %c0_172 = arith.constant 0 : index
    %289 = vector.load %arg39[%c1_170, %c9_171, %c0_172] : memref<10x10x128xf32, #tpu.memory_space<vmem>>, vector<8x1x128xf32>
    tpu.vector_store %arg39[%c1_170, %c9_171, %c0_172], %285 {strides = array<i32>} : memref<10x10x128xf32, #tpu.memory_space<vmem>>, vector<8x1x128xf32>,
    %c1_173 = arith.constant 1 : index
    %c1_174 = arith.constant 1 : index
    %c0_175 = arith.constant 0 : index
    %290 = vector.load %arg39[%c1_173, %c1_174, %c0_175] : memref<10x10x128xf32, #tpu.memory_space<vmem>>, vector<8x8x128xf32>
    tpu.vector_store %arg39[%c1_173, %c1_174, %c0_175], %281 {strides = array<i32>} : memref<10x10x128xf32, #tpu.memory_space<vmem>>, vector<8x8x128xf32>,
    %cst_176 = arith.constant 0.000000e+00 : f32
    %291 = vector.broadcast %cst_176 : f32 to vector<8x8x128xf32>
    %c0_177 = arith.constant 0 : index
    %c0_178 = arith.constant 0 : index
    %c0_179 = arith.constant 0 : index
    %292 = vector.load %arg39[%c0_177, %c0_178, %c0_179] : memref<10x10x128xf32, #tpu.memory_space<vmem>>, vector<8x8x128xf32>
    %293 = vector.extract_strided_slice %282 {offsets = [0, 0], sizes = [1, 128], strides = [1, 1]} : vector<9x128xf32> to vector<1x128xf32>
    %294 = vector.shape_cast %293 : vector<1x128xf32> to vector<128xf32>
    %295 = vector.shape_cast %294 : vector<128xf32> to vector<1x1x128xf32>
    %296 = vector.broadcast %295 : vector<1x1x128xf32> to vector<8x8x128xf32>
    %297 = arith.mulf %292, %296 : vector<8x8x128xf32>
    %298 = arith.addf %291, %297 : vector<8x8x128xf32>
    %c0_180 = arith.constant 0 : index
    %c1_181 = arith.constant 1 : index
    %c0_182 = arith.constant 0 : index
    %299 = vector.load %arg39[%c0_180, %c1_181, %c0_182] : memref<10x10x128xf32, #tpu.memory_space<vmem>>, vector<8x8x128xf32>
    %300 = vector.extract_strided_slice %282 {offsets = [1, 0], sizes = [1, 128], strides = [1, 1]} : vector<9x128xf32> to vector<1x128xf32>
    %301 = vector.shape_cast %300 : vector<1x128xf32> to vector<128xf32>
    %302 = vector.shape_cast %301 : vector<128xf32> to vector<1x1x128xf32>
    %303 = vector.broadcast %302 : vector<1x1x128xf32> to vector<8x8x128xf32>
    %304 = arith.mulf %299, %303 : vector<8x8x128xf32>
    %305 = arith.addf %298, %304 : vector<8x8x128xf32>
    %c0_183 = arith.constant 0 : index
    %c2_184 = arith.constant 2 : index
    %c0_185 = arith.constant 0 : index
    %306 = vector.load %arg39[%c0_183, %c2_184, %c0_185] : memref<10x10x128xf32, #tpu.memory_space<vmem>>, vector<8x8x128xf32>
    %307 = vector.extract_strided_slice %282 {offsets = [2, 0], sizes = [1, 128], strides = [1, 1]} : vector<9x128xf32> to vector<1x128xf32>
    %308 = vector.shape_cast %307 : vector<1x128xf32> to vector<128xf32>
    %309 = vector.shape_cast %308 : vector<128xf32> to vector<1x1x128xf32>
    %310 = vector.broadcast %309 : vector<1x1x128xf32> to vector<8x8x128xf32>
    %311 = arith.mulf %306, %310 : vector<8x8x128xf32>
    %312 = arith.addf %305, %311 : vector<8x8x128xf32>
    %c1_186 = arith.constant 1 : index
    %c0_187 = arith.constant 0 : index
    %c0_188 = arith.constant 0 : index
    %313 = vector.load %arg39[%c1_186, %c0_187, %c0_188] : memref<10x10x128xf32, #tpu.memory_space<vmem>>, vector<8x8x128xf32>
    %314 = vector.extract_strided_slice %282 {offsets = [3, 0], sizes = [1, 128], strides = [1, 1]} : vector<9x128xf32> to vector<1x128xf32>
    %315 = vector.shape_cast %314 : vector<1x128xf32> to vector<128xf32>
    %316 = vector.shape_cast %315 : vector<128xf32> to vector<1x1x128xf32>
    %317 = vector.broadcast %316 : vector<1x1x128xf32> to vector<8x8x128xf32>
    %318 = arith.mulf %313, %317 : vector<8x8x128xf32>
    %319 = arith.addf %312, %318 : vector<8x8x128xf32>
    %c1_189 = arith.constant 1 : index
    %c1_190 = arith.constant 1 : index
    %c0_191 = arith.constant 0 : index
    %320 = vector.load %arg39[%c1_189, %c1_190, %c0_191] : memref<10x10x128xf32, #tpu.memory_space<vmem>>, vector<8x8x128xf32>
    %321 = vector.extract_strided_slice %282 {offsets = [4, 0], sizes = [1, 128], strides = [1, 1]} : vector<9x128xf32> to vector<1x128xf32>
    %322 = vector.shape_cast %321 : vector<1x128xf32> to vector<128xf32>
    %323 = vector.shape_cast %322 : vector<128xf32> to vector<1x1x128xf32>
    %324 = vector.broadcast %323 : vector<1x1x128xf32> to vector<8x8x128xf32>
    %325 = arith.mulf %320, %324 : vector<8x8x128xf32>
    %326 = arith.addf %319, %325 : vector<8x8x128xf32>
    %c1_192 = arith.constant 1 : index
    %c2_193 = arith.constant 2 : index
    %c0_194 = arith.constant 0 : index
    %327 = vector.load %arg39[%c1_192, %c2_193, %c0_194] : memref<10x10x128xf32, #tpu.memory_space<vmem>>, vector<8x8x128xf32>
    %328 = vector.extract_strided_slice %282 {offsets = [5, 0], sizes = [1, 128], strides = [1, 1]} : vector<9x128xf32> to vector<1x128xf32>
    %329 = vector.shape_cast %328 : vector<1x128xf32> to vector<128xf32>
    %330 = vector.shape_cast %329 : vector<128xf32> to vector<1x1x128xf32>
    %331 = vector.broadcast %330 : vector<1x1x128xf32> to vector<8x8x128xf32>
    %332 = arith.mulf %327, %331 : vector<8x8x128xf32>
    %333 = arith.addf %326, %332 : vector<8x8x128xf32>
    %c2_195 = arith.constant 2 : index
    %c0_196 = arith.constant 0 : index
    %c0_197 = arith.constant 0 : index
    %334 = vector.load %arg39[%c2_195, %c0_196, %c0_197] : memref<10x10x128xf32, #tpu.memory_space<vmem>>, vector<8x8x128xf32>
    %335 = vector.extract_strided_slice %282 {offsets = [6, 0], sizes = [1, 128], strides = [1, 1]} : vector<9x128xf32> to vector<1x128xf32>
    %336 = vector.shape_cast %335 : vector<1x128xf32> to vector<128xf32>
    %337 = vector.shape_cast %336 : vector<128xf32> to vector<1x1x128xf32>
    %338 = vector.broadcast %337 : vector<1x1x128xf32> to vector<8x8x128xf32>
    %339 = arith.mulf %334, %338 : vector<8x8x128xf32>
    %340 = arith.addf %333, %339 : vector<8x8x128xf32>
    %c2_198 = arith.constant 2 : index
    %c1_199 = arith.constant 1 : index
    %c0_200 = arith.constant 0 : index
    %341 = vector.load %arg39[%c2_198, %c1_199, %c0_200] : memref<10x10x128xf32, #tpu.memory_space<vmem>>, vector<8x8x128xf32>
    %342 = vector.extract_strided_slice %282 {offsets = [7, 0], sizes = [1, 128], strides = [1, 1]} : vector<9x128xf32> to vector<1x128xf32>
    %343 = vector.shape_cast %342 : vector<1x128xf32> to vector<128xf32>
    %344 = vector.shape_cast %343 : vector<128xf32> to vector<1x1x128xf32>
    %345 = vector.broadcast %344 : vector<1x1x128xf32> to vector<8x8x128xf32>
    %346 = arith.mulf %341, %345 : vector<8x8x128xf32>
    %347 = arith.addf %340, %346 : vector<8x8x128xf32>
    %c2_201 = arith.constant 2 : index
    %c2_202 = arith.constant 2 : index
    %c0_203 = arith.constant 0 : index
    %348 = vector.load %arg39[%c2_201, %c2_202, %c0_203] : memref<10x10x128xf32, #tpu.memory_space<vmem>>, vector<8x8x128xf32>
    %349 = vector.extract_strided_slice %282 {offsets = [8, 0], sizes = [1, 128], strides = [1, 1]} : vector<9x128xf32> to vector<1x128xf32>
    %350 = vector.shape_cast %349 : vector<1x128xf32> to vector<128xf32>
    %351 = vector.shape_cast %350 : vector<128xf32> to vector<1x1x128xf32>
    %352 = vector.broadcast %351 : vector<1x1x128xf32> to vector<8x8x128xf32>
    %353 = arith.mulf %348, %352 : vector<8x8x128xf32>
    %354 = arith.addf %347, %353 : vector<8x8x128xf32>
    %355 = vector.shape_cast %283 : vector<1x128xf32> to vector<1x1x128xf32>
    %356 = vector.broadcast %355 : vector<1x1x128xf32> to vector<8x8x128xf32>
    %357 = arith.addf %354, %356 : vector<8x8x128xf32>
    %358 = arith.negf %357 : vector<8x8x128xf32>
    %359 = math.exp %358 : vector<8x8x128xf32>
    %cst_204 = arith.constant 1.000000e+00 : f32
    %360 = vector.broadcast %cst_204 : f32 to vector<8x8x128xf32>
    %361 = arith.addf %360, %359 : vector<8x8x128xf32>
    %362 = arith.divf %360, %361 : vector<8x8x128xf32>
    %363 = arith.mulf %357, %362 : vector<8x8x128xf32>
    %c0_205 = arith.constant 0 : index
    %c0_206 = arith.constant 0 : index
    %364 = vector.load %arg27[%c0_205, %c0_206] : memref<128x128xbf16, #tpu.memory_space<vmem>>, vector<128x128xbf16>
    %c0_207 = arith.constant 0 : index
    %c0_208 = arith.constant 0 : index
    %365 = vector.load %arg28[%c0_207, %c0_208] : memref<1x128xf32, #tpu.memory_space<vmem>>, vector<1x128xf32>
    %c0_209 = arith.constant 0 : index
    %c0_210 = arith.constant 0 : index
    %366 = vector.load %arg29[%c0_209, %c0_210] : memref<128x128xbf16, #tpu.memory_space<vmem>>, vector<128x128xbf16>
    %c0_211 = arith.constant 0 : index
    %c0_212 = arith.constant 0 : index
    %367 = vector.load %arg30[%c0_211, %c0_212] : memref<1x128xf32, #tpu.memory_space<vmem>>, vector<1x128xf32>
    %368 = vector.shape_cast %363 : vector<8x8x128xf32> to vector<64x128xf32>
    %cst_213 = arith.constant dense<0.000000e+00> : vector<128xf32>
    %369 = vector.multi_reduction <add>, %368, %cst_213 [0] : vector<64x128xf32> to vector<128xf32>
    %370 = vector.shape_cast %369 : vector<128xf32> to vector<1x128xf32>
    %cst_214 = arith.constant 6.400000e+01 : f32
    %371 = vector.broadcast %cst_214 : f32 to vector<1x128xf32>
    %372 = arith.divf %370, %371 : vector<1x128xf32>
    %373 = arith.truncf %372 : vector<1x128xf32> to vector<1x128xbf16>
    %cst_215 = arith.constant dense<0.000000e+00> : vector<1x128xf32>
    %374 = tpu.matmul %373, %364, %cst_215 {dimension_numbers = #tpu.dot_dimension_numbers<[1], [0], [0], [1], [0, 0, 1, 1], [], []>} : vector<1x128xbf16>, vector<128x128xbf16>, vector<1x128xf32> -> vector<1x128xf32>
    %375 = arith.addf %374, %365 : vector<1x128xf32>
    %376 = arith.negf %375 : vector<1x128xf32>
    %377 = math.exp %376 : vector<1x128xf32>
    %cst_216 = arith.constant 1.000000e+00 : f32
    %378 = vector.broadcast %cst_216 : f32 to vector<1x128xf32>
    %379 = arith.addf %378, %377 : vector<1x128xf32>
    %380 = arith.divf %378, %379 : vector<1x128xf32>
    %381 = arith.mulf %375, %380 : vector<1x128xf32>
    %382 = arith.truncf %381 : vector<1x128xf32> to vector<1x128xbf16>
    %cst_217 = arith.constant dense<0.000000e+00> : vector<1x128xf32>
    %383 = tpu.matmul %382, %366, %cst_217 {dimension_numbers = #tpu.dot_dimension_numbers<[1], [0], [0], [1], [0, 0, 1, 1], [], []>} : vector<1x128xbf16>, vector<128x128xbf16>, vector<1x128xf32> -> vector<1x128xf32>
    %384 = arith.addf %383, %367 : vector<1x128xf32>
    %385 = arith.negf %384 : vector<1x128xf32>
    %386 = math.exp %385 : vector<1x128xf32>
    %cst_218 = arith.constant 1.000000e+00 : f32
    %387 = vector.broadcast %cst_218 : f32 to vector<1x128xf32>
    %388 = arith.addf %387, %386 : vector<1x128xf32>
    %389 = arith.divf %387, %388 : vector<1x128xf32>
    %390 = vector.shape_cast %389 : vector<1x128xf32> to vector<1x1x128xf32>
    %391 = vector.broadcast %390 : vector<1x1x128xf32> to vector<8x8x128xf32>
    %392 = arith.mulf %363, %391 : vector<8x8x128xf32>
    %393 = vector.shape_cast %392 : vector<8x8x128xf32> to vector<64x128xf32>
    %c0_219 = arith.constant 0 : index
    %c0_220 = arith.constant 0 : index
    %394 = vector.load %arg31[%c0_219, %c0_220] : memref<128x128xbf16, #tpu.memory_space<vmem>>, vector<128x128xbf16>
    %c0_221 = arith.constant 0 : index
    %c0_222 = arith.constant 0 : index
    %395 = vector.load %arg32[%c0_221, %c0_222] : memref<1x128xf32, #tpu.memory_space<vmem>>, vector<1x128xf32>
    %396 = arith.truncf %393 : vector<64x128xf32> to vector<64x128xbf16>
    %cst_223 = arith.constant dense<0.000000e+00> : vector<64x128xf32>
    %397 = tpu.matmul %396, %394, %cst_223 {dimension_numbers = #tpu.dot_dimension_numbers<[1], [0], [0], [1], [0, 0, 1, 1], [], []>} : vector<64x128xbf16>, vector<128x128xbf16>, vector<64x128xf32> -> vector<64x128xf32>
    %398 = vector.broadcast %395 : vector<1x128xf32> to vector<64x128xf32>
    %399 = arith.addf %397, %398 : vector<64x128xf32>
    %400 = arith.addf %399, %268 : vector<64x128xf32>
    %c0_224 = arith.constant 0 : index
    %c0_225 = arith.constant 0 : index
    %401 = vector.load %arg33[%c0_224, %c0_225] : memref<128x128xbf16, #tpu.memory_space<vmem>>, vector<128x128xbf16>
    %c0_226 = arith.constant 0 : index
    %c0_227 = arith.constant 0 : index
    %402 = vector.load %arg34[%c0_226, %c0_227] : memref<1x128xf32, #tpu.memory_space<vmem>>, vector<1x128xf32>
    %403 = arith.truncf %400 : vector<64x128xf32> to vector<64x128xbf16>
    %cst_228 = arith.constant dense<0.000000e+00> : vector<64x128xf32>
    %404 = tpu.matmul %403, %401, %cst_228 {dimension_numbers = #tpu.dot_dimension_numbers<[1], [0], [0], [1], [0, 0, 1, 1], [], []>} : vector<64x128xbf16>, vector<128x128xbf16>, vector<64x128xf32> -> vector<64x128xf32>
    %405 = vector.broadcast %402 : vector<1x128xf32> to vector<64x128xf32>
    %406 = arith.addf %404, %405 : vector<64x128xf32>
    %407 = arith.negf %406 : vector<64x128xf32>
    %408 = math.exp %407 : vector<64x128xf32>
    %cst_229 = arith.constant 1.000000e+00 : f32
    %409 = vector.broadcast %cst_229 : f32 to vector<64x128xf32>
    %410 = arith.addf %409, %408 : vector<64x128xf32>
    %411 = arith.divf %409, %410 : vector<64x128xf32>
    %412 = arith.mulf %406, %411 : vector<64x128xf32>
    %cst_230 = arith.constant dense<0.000000e+00> : vector<128xf32>
    %413 = vector.multi_reduction <add>, %412, %cst_230 [0] : vector<64x128xf32> to vector<128xf32>
    %414 = vector.shape_cast %413 : vector<128xf32> to vector<1x128xf32>
    %cst_231 = arith.constant 6.400000e+01 : f32
    %415 = vector.broadcast %cst_231 : f32 to vector<1x128xf32>
    %416 = arith.divf %414, %415 : vector<1x128xf32>
    %c0_232 = arith.constant 0 : index
    %c0_233 = arith.constant 0 : index
    %417 = vector.load %arg35[%c0_232, %c0_233] : memref<128x128xbf16, #tpu.memory_space<vmem>>, vector<128x128xbf16>
    %c0_234 = arith.constant 0 : index
    %c0_235 = arith.constant 0 : index
    %418 = vector.load %arg36[%c0_234, %c0_235] : memref<1x128xf32, #tpu.memory_space<vmem>>, vector<1x128xf32>
    %419 = arith.truncf %416 : vector<1x128xf32> to vector<1x128xbf16>
    %cst_236 = arith.constant dense<0.000000e+00> : vector<1x128xf32>
    %420 = tpu.matmul %419, %417, %cst_236 {dimension_numbers = #tpu.dot_dimension_numbers<[1], [0], [0], [1], [0, 0, 1, 1], [], []>} : vector<1x128xbf16>, vector<128x128xbf16>, vector<1x128xf32> -> vector<1x128xf32>
    %421 = arith.addf %420, %418 : vector<1x128xf32>
    %422 = vector.shape_cast %421 : vector<1x128xf32> to vector<1x1x128xf32>
    %c0_237 = arith.constant 0 : index
    %c0_238 = arith.constant 0 : index
    %c0_239 = arith.constant 0 : index
    %423 = vector.load %arg37[%c0_237, %c0_238, %c0_239] : memref<1x1x128xf32, #tpu.memory_space<vmem>>, vector<1x1x128xf32>
    tpu.vector_store %arg37[%c0_237, %c0_238, %c0_239], %422 {strides = array<i32>} : memref<1x1x128xf32, #tpu.memory_space<vmem>>, vector<1x1x128xf32>,
    return
  }
  func.func @transform_0(%arg0: i32) -> (i32, i32) {
    %c0_i32 = arith.constant 0 : i32
    %c0_i32_0 = arith.constant 0 : i32
    return %arg0, %c0_i32 : i32, i32
  }
  func.func @transform_1(%arg0: i32) -> (i32, i32) {
    %c0_i32 = arith.constant 0 : i32
    %c0_i32_0 = arith.constant 0 : i32
    %c0_i32_1 = arith.constant 0 : i32
    return %c0_i32, %c0_i32_0 : i32, i32
  }
  func.func @transform_2(%arg0: i32) -> (i32, i32) {
    %c0_i32 = arith.constant 0 : i32
    %c0_i32_0 = arith.constant 0 : i32
    %c0_i32_1 = arith.constant 0 : i32
    return %c0_i32, %c0_i32_0 : i32, i32
  }
  func.func @transform_3(%arg0: i32) -> (i32, i32) {
    %c0_i32 = arith.constant 0 : i32
    %c0_i32_0 = arith.constant 0 : i32
    %c0_i32_1 = arith.constant 0 : i32
    return %c0_i32, %c0_i32_0 : i32, i32
  }
  func.func @transform_4(%arg0: i32) -> (i32, i32) {
    %c0_i32 = arith.constant 0 : i32
    %c0_i32_0 = arith.constant 0 : i32
    %c0_i32_1 = arith.constant 0 : i32
    return %c0_i32, %c0_i32_0 : i32, i32
  }
  func.func @transform_5(%arg0: i32) -> (i32, i32) {
    %c0_i32 = arith.constant 0 : i32
    %c0_i32_0 = arith.constant 0 : i32
    %c0_i32_1 = arith.constant 0 : i32
    return %c0_i32, %c0_i32_0 : i32, i32
  }
  func.func @transform_6(%arg0: i32) -> (i32, i32) {
    %c0_i32 = arith.constant 0 : i32
    %c0_i32_0 = arith.constant 0 : i32
    %c0_i32_1 = arith.constant 0 : i32
    return %c0_i32, %c0_i32_0 : i32, i32
  }
  func.func @transform_7(%arg0: i32) -> (i32, i32) {
    %c0_i32 = arith.constant 0 : i32
    %c0_i32_0 = arith.constant 0 : i32
    %c0_i32_1 = arith.constant 0 : i32
    return %c0_i32, %c0_i32_0 : i32, i32
  }
  func.func @transform_8(%arg0: i32) -> (i32, i32) {
    %c0_i32 = arith.constant 0 : i32
    %c0_i32_0 = arith.constant 0 : i32
    %c0_i32_1 = arith.constant 0 : i32
    return %c0_i32, %c0_i32_0 : i32, i32
  }
  func.func @transform_9(%arg0: i32) -> (i32, i32) {
    %c0_i32 = arith.constant 0 : i32
    %c0_i32_0 = arith.constant 0 : i32
    %c0_i32_1 = arith.constant 0 : i32
    return %c0_i32, %c0_i32_0 : i32, i32
  }
  func.func @transform_10(%arg0: i32) -> (i32, i32) {
    %c0_i32 = arith.constant 0 : i32
    %c0_i32_0 = arith.constant 0 : i32
    %c0_i32_1 = arith.constant 0 : i32
    return %c0_i32, %c0_i32_0 : i32, i32
  }
  func.func @transform_11(%arg0: i32) -> (i32, i32) {
    %c0_i32 = arith.constant 0 : i32
    %c0_i32_0 = arith.constant 0 : i32
    %c0_i32_1 = arith.constant 0 : i32
    return %c0_i32, %c0_i32_0 : i32, i32
  }
  func.func @transform_12(%arg0: i32) -> (i32, i32) {
    %c0_i32 = arith.constant 0 : i32
    %c0_i32_0 = arith.constant 0 : i32
    %c0_i32_1 = arith.constant 0 : i32
    return %c0_i32, %c0_i32_0 : i32, i32
  }
  func.func @transform_13(%arg0: i32) -> (i32, i32) {
    %c0_i32 = arith.constant 0 : i32
    %c0_i32_0 = arith.constant 0 : i32
    %c0_i32_1 = arith.constant 0 : i32
    return %c0_i32, %c0_i32_0 : i32, i32
  }
  func.func @transform_14(%arg0: i32) -> (i32, i32) {
    %c0_i32 = arith.constant 0 : i32
    %c0_i32_0 = arith.constant 0 : i32
    %c0_i32_1 = arith.constant 0 : i32
    return %c0_i32, %c0_i32_0 : i32, i32
  }
  func.func @transform_15(%arg0: i32) -> (i32, i32) {
    %c0_i32 = arith.constant 0 : i32
    %c0_i32_0 = arith.constant 0 : i32
    %c0_i32_1 = arith.constant 0 : i32
    return %c0_i32, %c0_i32_0 : i32, i32
  }
  func.func @transform_16(%arg0: i32) -> (i32, i32) {
    %c0_i32 = arith.constant 0 : i32
    %c0_i32_0 = arith.constant 0 : i32
    %c0_i32_1 = arith.constant 0 : i32
    return %c0_i32, %c0_i32_0 : i32, i32
  }
  func.func @transform_17(%arg0: i32) -> (i32, i32) {
    %c0_i32 = arith.constant 0 : i32
    %c0_i32_0 = arith.constant 0 : i32
    %c0_i32_1 = arith.constant 0 : i32
    return %c0_i32, %c0_i32_0 : i32, i32
  }
  func.func @transform_18(%arg0: i32) -> (i32, i32) {
    %c0_i32 = arith.constant 0 : i32
    %c0_i32_0 = arith.constant 0 : i32
    %c0_i32_1 = arith.constant 0 : i32
    return %c0_i32, %c0_i32_0 : i32, i32
  }
  func.func @transform_19(%arg0: i32) -> (i32, i32) {
    %c0_i32 = arith.constant 0 : i32
    %c0_i32_0 = arith.constant 0 : i32
    %c0_i32_1 = arith.constant 0 : i32
    return %c0_i32, %c0_i32_0 : i32, i32
  }
  func.func @transform_20(%arg0: i32) -> (i32, i32) {
    %c0_i32 = arith.constant 0 : i32
    %c0_i32_0 = arith.constant 0 : i32
    %c0_i32_1 = arith.constant 0 : i32
    return %c0_i32, %c0_i32_0 : i32, i32
  }
  func.func @transform_21(%arg0: i32) -> (i32, i32) {
    %c0_i32 = arith.constant 0 : i32
    %c0_i32_0 = arith.constant 0 : i32
    %c0_i32_1 = arith.constant 0 : i32
    return %c0_i32, %c0_i32_0 : i32, i32
  }
  func.func @transform_22(%arg0: i32) -> (i32, i32) {
    %c0_i32 = arith.constant 0 : i32
    %c0_i32_0 = arith.constant 0 : i32
    %c0_i32_1 = arith.constant 0 : i32
    return %c0_i32, %c0_i32_0 : i32, i32
  }
  func.func @transform_23(%arg0: i32) -> (i32, i32) {
    %c0_i32 = arith.constant 0 : i32
    %c0_i32_0 = arith.constant 0 : i32
    %c0_i32_1 = arith.constant 0 : i32
    return %c0_i32, %c0_i32_0 : i32, i32
  }
  func.func @transform_24(%arg0: i32) -> (i32, i32) {
    %c0_i32 = arith.constant 0 : i32
    %c0_i32_0 = arith.constant 0 : i32
    %c0_i32_1 = arith.constant 0 : i32
    return %c0_i32, %c0_i32_0 : i32, i32
  }
  func.func @transform_25(%arg0: i32) -> (i32, i32) {
    %c0_i32 = arith.constant 0 : i32
    %c0_i32_0 = arith.constant 0 : i32
    %c0_i32_1 = arith.constant 0 : i32
    return %c0_i32, %c0_i32_0 : i32, i32
  }
  func.func @transform_26(%arg0: i32) -> (i32, i32) {
    %c0_i32 = arith.constant 0 : i32
    %c0_i32_0 = arith.constant 0 : i32
    %c0_i32_1 = arith.constant 0 : i32
    return %c0_i32, %c0_i32_0 : i32, i32
  }
  func.func @transform_27(%arg0: i32) -> (i32, i32) {
    %c0_i32 = arith.constant 0 : i32
    %c0_i32_0 = arith.constant 0 : i32
    %c0_i32_1 = arith.constant 0 : i32
    return %c0_i32, %c0_i32_0 : i32, i32
  }
  func.func @transform_28(%arg0: i32) -> (i32, i32) {
    %c0_i32 = arith.constant 0 : i32
    %c0_i32_0 = arith.constant 0 : i32
    %c0_i32_1 = arith.constant 0 : i32
    return %c0_i32, %c0_i32_0 : i32, i32
  }
  func.func @transform_29(%arg0: i32) -> (i32, i32) {
    %c0_i32 = arith.constant 0 : i32
    %c0_i32_0 = arith.constant 0 : i32
    %c0_i32_1 = arith.constant 0 : i32
    return %c0_i32, %c0_i32_0 : i32, i32
  }
  func.func @transform_30(%arg0: i32) -> (i32, i32) {
    %c0_i32 = arith.constant 0 : i32
    %c0_i32_0 = arith.constant 0 : i32
    %c0_i32_1 = arith.constant 0 : i32
    return %c0_i32, %c0_i32_0 : i32, i32
  }
  func.func @transform_31(%arg0: i32) -> (i32, i32) {
    %c0_i32 = arith.constant 0 : i32
    %c0_i32_0 = arith.constant 0 : i32
    %c0_i32_1 = arith.constant 0 : i32
    return %c0_i32, %c0_i32_0 : i32, i32
  }
  func.func @transform_32(%arg0: i32) -> (i32, i32) {
    %c0_i32 = arith.constant 0 : i32
    %c0_i32_0 = arith.constant 0 : i32
    %c0_i32_1 = arith.constant 0 : i32
    return %c0_i32, %c0_i32_0 : i32, i32
  }
  func.func @transform_33(%arg0: i32) -> (i32, i32) {
    %c0_i32 = arith.constant 0 : i32
    %c0_i32_0 = arith.constant 0 : i32
    %c0_i32_1 = arith.constant 0 : i32
    return %c0_i32, %c0_i32_0 : i32, i32
  }
  func.func @transform_34(%arg0: i32) -> (i32, i32) {
    %c0_i32 = arith.constant 0 : i32
    %c0_i32_0 = arith.constant 0 : i32
    %c0_i32_1 = arith.constant 0 : i32
    return %c0_i32, %c0_i32_0 : i32, i32
  }
  func.func @transform_35(%arg0: i32) -> (i32, i32) {
    %c0_i32 = arith.constant 0 : i32
    %c0_i32_0 = arith.constant 0 : i32
    %c0_i32_1 = arith.constant 0 : i32
    return %c0_i32, %c0_i32_0 : i32, i32
  }
  func.func @transform_36(%arg0: i32) -> (i32, i32, i32) {
    %c0_i32 = arith.constant 0 : i32
    %c0_i32_0 = arith.constant 0 : i32
    %c0_i32_1 = arith.constant 0 : i32
    return %arg0, %c0_i32, %c0_i32_0 : i32, i32, i32
  }
}

</mosaic_0001>

<bundles_post_ra>
// kernel: rlnet_forward.1
= control target key start
LH: loop header
LB: loop body
LE: loop exit
PB: predicated region body
PF: predicated region fallthrough
CT: control target
= control target key end

     0   :  { %s10036_s6 = smov 1   ;;  %s10037_s10 = smov 2   ;;  %s15952_s0 = inlined_call_operand.smem [shape: u32[37], index: -1, kind: input, shape index: {}] }
   0x1   :  { %s10083_s5 = sld [smem:[%s15952_s0]]   ;;  %s10038_s14 = smov 3  }
   0x2   :  { %s10088_s9 = sld [smem:[%s15952_s0 + %s10036_s6]]   ;;  %s10039_s18 = smov 4  }
   0x3   :  { %s10093_s13 = sld [smem:[%s15952_s0 + %s10037_s10]]   ;;  %s10040_s22 = smov 5  }
   0x4   :  { %s10098_s17 = sld [smem:[%s15952_s0 + %s10038_s14]]   ;;  %s10041_s26 = smov 6  }
   0x5   :  { %s10103_s21 = sld [smem:[%s15952_s0 + %s10039_s18]]   ;;  %s10042_s30 = smov 7  }
   0x6   :  { %s10108_s25 = sld [smem:[%s15952_s0 + %s10040_s22]]   ;;  %s10043_s4 = smov 8  }
   0x7   :  { %16052 = sst [smem:[#allocation7_spill]] %s10083_s5  ;;  %s10044_s10 = smov 9  }
   0x8   :  { %16053 = sst [smem:[#allocation8_spill]] %s10088_s9  ;;  %s10045_s15 = smov 10  }
   0x9   :  { %s10113_s29 = sld [smem:[%s15952_s0 + %s10041_s26]]   ;;  %s10046_s20 = smov 11  }
   0xa   :  { %s10118_s3 = sld [smem:[%s15952_s0 + %s10042_s30]]   ;;  %s10047_s26 = smov 12  }
   0xb   :  { %s10123_s8 = sld [smem:[%s15952_s0 + %s10043_s4]]   ;;  %s10048_s1 = smov 13  }
   0xc   :  { %s10128_s14 = sld [smem:[%s15952_s0 + %s10044_s10]]   ;;  %s10049_s7 = smov 14  }
   0xd   :  { %s10133_s19 = sld [smem:[%s15952_s0 + %s10045_s15]]   ;;  %s10050_s15 = smov 15  }
   0xe   :  { %s10138_s24 = sld [smem:[%s15952_s0 + %s10046_s20]]   ;;  %s10051_s22 = smov 16  }
   0xf   :  { %s10143_s30 = sld [smem:[%s15952_s0 + %s10047_s26]]   ;;  %s10052_s28 = smov 17  }
  0x10   :  { %16054 = sst [smem:[#allocation9_spill]] %s10118_s3 }
  0x11   :  { %16055 = sst [smem:[#allocation10_spill]] %s10123_s8 }
  0x12   :  { %s10148_s6 = sld [smem:[%s15952_s0 + %s10048_s1]]  }
  0x13   :  { %s10153_s12 = sld [smem:[%s15952_s0 + %s10049_s7]]   ;;  %s10053_s7 = smov 18  }
  0x14   :  { %s10158_s20 = sld [smem:[%s15952_s0 + %s10050_s15]]   ;;  %s10054_s15 = smov 19  }
  0x15   :  { %s10163_s27 = sld [smem:[%s15952_s0 + %s10051_s22]]   ;;  %s10055_s22 = smov 20  }
  0x16   :  { %s10168_s4 = sld [smem:[%s15952_s0 + %s10052_s28]]   ;;  %s10056_s28 = smov 21  }
  0x17   :  { %s10173_s9 = sld [smem:[%s15952_s0 + %s10053_s7]]   ;;  %s10057_s7 = smov 22  }
  0x18   :  { %16056 = sst [smem:[#allocation11_spill]] %s10148_s6 }
  0x19   :  { %16057 = sst [smem:[#allocation12_spill]] %s10153_s12 }
  0x1a   :  { %16058 = sst [smem:[#allocation13_spill]] %s10158_s20 }
  0x1b   :  { %16059 = sst [smem:[#allocation14_spill]] %s10163_s27 }
  0x1c   :  { %16060 = sst [smem:[#allocation15_spill]] %s10168_s4 }
  0x1d   :  { %16061 = sst [smem:[#allocation16_spill]] %s10173_s9 }
  0x1e   :  { %s10178_s20 = sld [smem:[%s15952_s0 + %s10054_s15]]   ;;  %s10058_s15 = smov 23  }
  0x1f   :  { %s10183_s27 = sld [smem:[%s15952_s0 + %s10055_s22]]   ;;  %s10059_s22 = smov 24  }
  0x20   :  { %s10188_s4 = sld [smem:[%s15952_s0 + %s10056_s28]]   ;;  %s10060_s28 = smov 25  }
  0x21   :  { %s10193_s9 = sld [smem:[%s15952_s0 + %s10057_s7]]   ;;  %s10061_s7 = smov 26  }
  0x24   :  { %16062 = sst [smem:[#allocation17_spill]] %s10178_s20 }
  0x25   :  { %16063 = sst [smem:[#allocation18_spill]] %s10183_s27 }
  0x26   :  { %16064 = sst [smem:[#allocation19_spill]] %s10188_s4 }
  0x27   :  { %16065 = sst [smem:[#allocation20_spill]] %s10193_s9 }
  0x28   :  { %s10198_s20 = sld [smem:[%s15952_s0 + %s10058_s15]]   ;;  %s10062_s15 = smov 27  }
  0x29   :  { %s10203_s27 = sld [smem:[%s15952_s0 + %s10059_s22]]   ;;  %s10063_s22 = smov 28  }
  0x2a   :  { %s10208_s4 = sld [smem:[%s15952_s0 + %s10060_s28]]   ;;  %s10064_s28 = smov 29  }
  0x2b   :  { %s10213_s9 = sld [smem:[%s15952_s0 + %s10061_s7]]   ;;  %s10065_s7 = smov 30  }
  0x2e   :  { %16066 = sst [smem:[#allocation21_spill]] %s10198_s20 }
  0x2f   :  { %16067 = sst [smem:[#allocation22_spill]] %s10203_s27 }
  0x30   :  { %16068 = sst [smem:[#allocation23_spill]] %s10208_s4 }
  0x31   :  { %16069 = sst [smem:[#allocation24_spill]] %s10213_s9 }
  0x32   :  { %s10218_s20 = sld [smem:[%s15952_s0 + %s10062_s15]]   ;;  %s10066_s15 = smov 31  }
  0x33   :  { %s10223_s27 = sld [smem:[%s15952_s0 + %s10063_s22]]   ;;  %s10067_s22 = smov 32  }
  0x34   :  { %s10228_s4 = sld [smem:[%s15952_s0 + %s10064_s28]]   ;;  %s10068_s28 = smov 33  }
  0x35   :  { %s10233_s9 = sld [smem:[%s15952_s0 + %s10065_s7]]   ;;  %s10069_s7 = smov 34  }
  0x38   :  { %16070 = sst [smem:[#allocation25_spill]] %s10218_s20 }
  0x39   :  { %16071 = sst [smem:[#allocation26_spill]] %s10223_s27 }
  0x3a   :  { %16072 = sst [smem:[#allocation27_spill]] %s10228_s4 }
  0x3b   :  { %16073 = sst [smem:[#allocation28_spill]] %s10233_s9 }
  0x3c   :  { %s10238_s20 = sld [smem:[%s15952_s0 + %s10066_s15]]   ;;  %s10070_s15 = smov 35  }
  0x3d   :  { %s10243_s27 = sld [smem:[%s15952_s0 + %s10067_s22]]   ;;  %s10071_s22 = smov 36  }
  0x3e   :  { %s10248_s4 = sld [smem:[%s15952_s0 + %s10068_s28]]  }
  0x3f   :  { %s10253_s9 = sld [smem:[%s15952_s0 + %s10069_s7]]  }
  0x42   :  { %16074 = sst [smem:[#allocation29_spill]] %s10238_s20 }
  0x43   :  { %16075 = sst [smem:[#allocation30_spill]] %s10243_s27 }
  0x44   :  { %16076 = sst [smem:[#allocation31_spill]] %s10248_s4 }
  0x45   :  { %16077 = sst [smem:[#allocation32_spill]] %s10253_s9 }
  0x46   :  { %s10258_s20 = sld [smem:[%s15952_s0 + %s10070_s15]]  }
  0x47   :  { %s10263_s27 = sld [smem:[%s15952_s0 + %s10071_s22]]  }
  0x48   :  { %78 = vsyncpa [#allocation5], 0 }
  0x49   :  { %80 = vsyncpa [#allocation5 + $0x1], 0  ;;  %s10265_s28 = smov 0   ;;  %s10267_s1 = smov 0  }
  0x4a   :  { %s10269_s2 = smov 0   ;;  %s10271_s7 = smov 0  }
  0x4b LB: > { %s16078_s12 = sld [smem:[#allocation12_spill]]  ;;  %s10286_s0 = sadd.s32 4294967295, %s10034_s7   ;;  %s10034_s7 = sphi %s10271_s7, %s16493_s7   ;;  %s10030_s2 = sphi %s10269_s2, %s16492_s2   ;;  %s10026_s1 = sphi %s10267_s1, %s16491_s1   ;;  %s10022_s28 = sphi %s10265_s28, %s16490_s28  }
  0x4c   : > { %s16079_s9 = sld [smem:[#allocation32_spill]]  ;;  %s8410_s10 = sadd.s32 4294967294, %s10034_s7  }
  0x4d   : > { %s16080_s8 = sld [smem:[#allocation10_spill]]  ;;  %s10290_s11 = sadd.s32 1, %s10034_s7  }
  0x4e   : > { %s16081_s6 = sld [smem:[#allocation11_spill]]  ;;  %s854_s15 = sadd.s32 1, %s10030_s2 }
  0x4f   : > { %s851_s16 = ssub.s32 %s10034_s7, %s10290_s11  ;;  %p864_p0 = scmp.ne.s32.totalorder %s10030_s2, %s10026_s1 }
  0x50   : > { %p852_p1 = scmp.eq.s32.totalorder %s851_s16, 0  ;;  %p865_p2 = scmp.eq.s32.totalorder %s10286_s0, 1 }
  0x51   : > { %p870_p3 = scmp.ne.s32.totalorder %s10026_s1, %s10022_s28  ;;  %p871_p4 = scmp.eq.s32.totalorder %s8410_s10, 1 }
  0x52   : > { %s10301_s18 = scalar_select %p852_p1, %s10030_s2, %s854_s15  }
  0x53   : > { %p10303_p5 = por %p865_p2, %p864_p0  ;;  %p10307_p6 = por %p871_p4, %p870_p3 }
  0x54   : > { %p8413_p7 = scmp.ge.s32.totalorder %s10034_s7, 1  ;;  %p1003_p8 = scmp.lt.s32.totalorder %s10034_s7, 3 }
  0x56   : > { %p1004_p9 = pnand %p8413_p7, %p1003_p8 }
  0x58   : > { %1007 = sbr.rel (%p1004_p9) target bundleno = 3740 (0xe9c), region = 164 }
  0x5d   : > { %v9063_v0 = vld [vmem:[%s10093_s13 + $0x38] sm:$0xff]  ;;  %s16084_s5 = sld [smem:[#allocation7_spill]]  ;;  %v9062_v1 = vld [vmem:[%s10093_s13 + $0x30] sm:$0xff]  ;;  %v9061_v2 = vld [vmem:[%s10093_s13 + $0x28] sm:$0xff]  ;;  %s8414_s26 = sshll.u32 %s10286_s0, 5  ;;  %v10072_v35 = vmov 0.0  }
  0x5e   : > { %1214 = vmatpush.bf16.msra.mxu0 %v9063_v0  ;;  %v9060_v3 = vld [vmem:[%s10093_s13 + $0x20] sm:$0xff]  ;;  %p1093_p10 = scmp.lt.s32.totalorder %s8414_s26, 63  ;;  %v9059_v4 = vld [vmem:[%s10093_s13 + $0x18] sm:$0xff]  ;;  %v9058_v5 = vld [vmem:[%s10093_s13 + $0x10] sm:$0xff]  ;;  %1946 = vst [vmem:[#allocation2] sm:$0xff] %v10072_v35  ;;  %s16301_s3 = sld [smem:[#allocation9_spill]] }
  0x5f   : > { %v9057_v6 = vld [vmem:[%s10093_s13 + $0x8] sm:$0xff]  ;;  %v9056_v7 = vld [vmem:[%s10093_s13] sm:$0xff]  ;;  %1947 = vst [vmem:[#allocation2 + $0x8] sm:$0xff] %v10072_v35  ;;  %s16330_s16 = sld [smem:[#allocation13_spill]] }
  0x60   : > { %s16495_s26 = smov (!%p1093_p10, %s8414_s26), 63  ;;  %v10344_v34 = vld [vmem:[%s10098_s17] ss:$0 sm:$0xff]  ;;  %1954 = vst [vmem:[#allocation2 + $0x18] sm:$0x1] %v10072_v35  ;;  %s16471_s4 = sld [smem:[#allocation31_spill]] }
  0x61   : > { %s8415_s10 = sshll.u32 %s16495_s26, 3  ;;  %1948 = vst [vmem:[#allocation2 + $0x10] sm:$0x3] %v10072_v35  ;;  %v10354_v39 = vld [vmem:[%s10103_s21] sm:$0xff]  ;;  %s16361_s26 = sld [smem:[#allocation8_spill]] }
  0x62   : > { %1215 = vmatpush.bf16.msra.mxu0 %v9062_v1  ;;  %1950 = vst [vmem:[#allocation2 + $0x198] sm:$0xff] %v10072_v35  ;;  %v10360_v41 = vperm.slane %v10354_v39, 0  ;;  %v10364_v42 = vperm.slane %v10354_v39, 1  ;;  %v10371_v45 = vperm.slane %v10354_v39, 2 }
  0x63   : > { %s10322_s15 = scalar_lea.vmem %s16084_s5, %s8415_s10  ;;  %1951 = vst [vmem:[#allocation2 + $0x1a0] sm:$0xff] %v10072_v35  ;;  %s16428_s10 = sld [smem:[#allocation14_spill]] }
  0x64   : > { %v1098_v8 = vld [vmem:[%s10322_s15] sm:$0xff]  ;;  %v1099_v9 = vld [vmem:[%s10322_s15 + $0x8] sm:$0xff]  ;;  %v1100_v11 = vld [vmem:[%s10322_s15 + $0x10] sm:$0xff]  ;;  %1952 = vst [vmem:[#allocation2 + $0x1a8] sm:$0x3] %v10072_v35  ;;  %v10368_v43 = vmul.f32 0.0, %v10360_v41 }
  0x65   : > { %v1147_v10 = vpack.c.bf16 %v1099_v9, %v1098_v8  ;;  %v1101_v12 = vld [vmem:[%s10322_s15 + $0x18] sm:$0xff]  ;;  %v1102_v14 = vld [vmem:[%s10322_s15 + $0x20] sm:$0xff]  ;;  %v1103_v15 = vld [vmem:[%s10322_s15 + $0x28] sm:$0xff]  ;;  %1955 = vst [vmem:[#allocation2 + $0x30] sm:$0x1] %v10072_v35  ;;  %s16431_s5 = sld [smem:[#allocation20_spill]] }
  0x66   : > { %1216 = vmatpush.bf16.msra.mxu0 %v9061_v2  ;;  %v1148_v13 = vpack.c.bf16 %v1101_v12, %v1100_v11  ;;  %v1149_v16 = vpack.c.bf16 %v1103_v15, %v1102_v14  ;;  %v1104_v17 = vld [vmem:[%s10322_s15 + $0x30] sm:$0xff]  ;;  %v1105_v18 = vld [vmem:[%s10322_s15 + $0x38] sm:$0xff]  ;;  %v1106_v20 = vld [vmem:[%s10322_s15 + $0x40] sm:$0xff]  ;;  %1956 = vst [vmem:[#allocation2 + $0x48] sm:$0x1] %v10072_v35 }
  0x67   : > { %v1150_v19 = vpack.c.bf16 %v1105_v18, %v1104_v17  ;;  %v1107_v21 = vld [vmem:[%s10322_s15 + $0x48] sm:$0xff]  ;;  %v1108_v23 = vld [vmem:[%s10322_s15 + $0x50] sm:$0xff]  ;;  %v1109_v24 = vld [vmem:[%s10322_s15 + $0x58] sm:$0xff]  ;;  %1957 = vst [vmem:[#allocation2 + $0x60] sm:$0x1] %v10072_v35 }
  0x68   : > { %v1151_v22 = vpack.c.bf16 %v1107_v21, %v1106_v20  ;;  %v1152_v25 = vpack.c.bf16 %v1109_v24, %v1108_v23  ;;  %v1110_v26 = vld [vmem:[%s10322_s15 + $0x60] sm:$0xff]  ;;  %v1111_v27 = vld [vmem:[%s10322_s15 + $0x68] sm:$0xff]  ;;  %v1112_v29 = vld [vmem:[%s10322_s15 + $0x70] sm:$0xff]  ;;  %1958 = vst [vmem:[#allocation2 + $0x78] sm:$0x1] %v10072_v35 }
  0x69   : > { %v1153_v28 = vpack.c.bf16 %v1111_v27, %v1110_v26  ;;  %v1113_v30 = vld [vmem:[%s10322_s15 + $0x78] sm:$0xff]  ;;  %v1114_v32 = vld [vmem:[%s10322_s15 + $0x80] sm:$0xff]  ;;  %v1115_v33 = vld [vmem:[%s10322_s15 + $0x88] sm:$0xff]  ;;  %1959 = vst [vmem:[#allocation2 + $0x90] sm:$0x1] %v10072_v35 }
  0x6a   : > { %1217 = vmatpush.bf16.msra.mxu0 %v9060_v3  ;;  %v1154_v31 = vpack.c.bf16 %v1113_v30, %v1112_v29  ;;  %v1155_v36 = vpack.c.bf16 %v1115_v33, %v1114_v32  ;;  %v2115_v44 = vld [vmem:[#allocation2 + $0x1] sm:$0xff]  ;;  %1960 = vst [vmem:[#allocation2 + $0xa8] sm:$0x1] %v10072_v35  ;;  %v1116_v56 = vld [vmem:[%s10322_s15 + $0x90] sm:$0xff]  ;;  %v1117_v57 = vld [vmem:[%s10322_s15 + $0x98] sm:$0xff] }
  0x6b   : > { %v2148_v46 = vmul.f32 %v10364_v42, %v2115_v44  ;;  %v2212_v47 = vld [vmem:[#allocation2 + $0x2] sm:$0xff]  ;;  %1961 = vst [vmem:[#allocation2 + $0xc0] sm:$0x1] %v10072_v35  ;;  %v1156_v58 = vpack.c.bf16 %v1117_v57, %v1116_v56 }
  0x6c   : > { %v2245_v48 = vmul.f32 %v10371_v45, %v2212_v47  ;;  %4863 = vst [vmem:[#allocation2] sm:$0xff] %v10072_v35  ;;  %v1118_v14 = vld [vmem:[%s10322_s15 + $0xa0] sm:$0xff]  ;;  %v1119_v15 = vld [vmem:[%s10322_s15 + $0xa8] sm:$0xff] }
  0x6d   : > { %v2180_v49 = vadd.f32 %v2148_v46, %v10368_v43  ;;  %1962 = vst [vmem:[#allocation2 + $0xd8] sm:$0x1] %v10072_v35  ;;  %v2116_v17 = vld [vmem:[#allocation2 + $0x9] sm:$0xff]  ;;  %v1157_v23 = vpack.c.bf16 %v1119_v15, %v1118_v14 }
  0x6e   : > { %1218 = vmatpush.bf16.msra.mxu0 %v9059_v4  ;;  %1963 = vst [vmem:[#allocation2 + $0xf0] sm:$0x1] %v10072_v35  ;;  %v2149_v20 = vmul.f32 %v10364_v42, %v2116_v17 }
  0x6f   : > { %v10384_v52 = vadd.f32 %v2245_v48, %v2180_v49  ;;  %1964 = vst [vmem:[#allocation2 + $0x108] sm:$0x1] %v10072_v35 }
  0x70   : > { %1965 = vst [vmem:[#allocation2 + $0x120] sm:$0x1] %v10072_v35  ;;  %v2181_v24 = vadd.f32 %v2149_v20, %v10368_v43 }
  0x71   : > { %1966 = vst [vmem:[#allocation2 + $0x138] sm:$0x1] %v10072_v35 }
  0x72   : > { %1219 = vmatpush.bf16.msra.mxu0 %v9058_v5  ;;  %1967 = vst [vmem:[#allocation2 + $0x150] sm:$0x1] %v10072_v35 }
  0x73   : > { %1968 = vst [vmem:[#allocation2 + $0x168] sm:$0x1] %v10072_v35 }
  0x74   : > { %1969 = vst [vmem:[#allocation2 + $0x180] sm:$0x1] %v10072_v35 }
  0x75   : > { %1970 = vst [vmem:[#allocation2 + $0x29] sm:$0x1] %v10072_v35 }
  0x76   : > { %1220 = vmatpush.bf16.msra.mxu0 %v9057_v6  ;;  %1971 = vst [vmem:[#allocation2 + $0x41] sm:$0x1] %v10072_v35 }
  0x77   : > { %1972 = vst [vmem:[#allocation2 + $0x59] sm:$0x1] %v10072_v35 }
  0x78   : > { %1973 = vst [vmem:[#allocation2 + $0x71] sm:$0x1] %v10072_v35 }
  0x79   : > { %1974 = vst [vmem:[#allocation2 + $0x89] sm:$0x1] %v10072_v35 }
  0x7a   : > { %1221 = vmatpush.bf16.msra.mxu0 %v9056_v7  ;;  %1975 = vst [vmem:[#allocation2 + $0xa1] sm:$0x1] %v10072_v35 }
  0x7b   : > { %1976 = vst [vmem:[#allocation2 + $0xb9] sm:$0x1] %v10072_v35 }
  0x7c   : > { %1977 = vst [vmem:[#allocation2 + $0xd1] sm:$0x1] %v10072_v35 }
  0x7d   : > { %1222 = vmatmul.bf16.vlgmr.msra.gmra.mxu0 %v1147_v10  ;;  %1978 = vst [vmem:[#allocation2 + $0xe9] sm:$0x1] %v10072_v35 }
  0x7e   : > { %1979 = vst [vmem:[#allocation2 + $0x101] sm:$0x1] %v10072_v35 }
  0x7f   : > { %1980 = vst [vmem:[#allocation2 + $0x119] sm:$0x1] %v10072_v35 }
  0x80   : > { %1981 = vst [vmem:[#allocation2 + $0x131] sm:$0x1] %v10072_v35 }
  0x81   : > { %1982 = vst [vmem:[#allocation2 + $0x149] sm:$0x1] %v10072_v35 }
  0x82   : > { %1983 = vst [vmem:[#allocation2 + $0x161] sm:$0x1] %v10072_v35 }
  0x83   : > { %1984 = vst [vmem:[#allocation2 + $0x179] sm:$0x1] %v10072_v35 }
  0x84   : > { %1985 = vst [vmem:[#allocation2 + $0x191] sm:$0x1] %v10072_v35 }
  0x85   : > { %7195 = vst [vmem:[#allocation3] sm:$0xff] %v10072_v35 }
  0x86   : > { %7196 = vst [vmem:[#allocation3 + $0x8] sm:$0x3] %v10072_v35 }
  0x87   : > { %7198 = vst [vmem:[#allocation3 + $0x90] sm:$0xff] %v10072_v35 }
  0x88   : > { %7199 = vst [vmem:[#allocation3 + $0x98] sm:$0x3] %v10072_v35 }
  0x89   : > { %7201 = vst [vmem:[#allocation3 + $0x10] sm:$0x1] %v10072_v35 }
  0x8a   : > { %7202 = vst [vmem:[#allocation3 + $0x20] sm:$0x1] %v10072_v35 }
  0x8b   : > { %7203 = vst [vmem:[#allocation3 + $0x30] sm:$0x1] %v10072_v35 }
  0x8c   : > { %7204 = vst [vmem:[#allocation3 + $0x40] sm:$0x1] %v10072_v35 }
  0x8d   : > { %1227 = vmatmul.bf16.gmra.mxu0 %v1148_v13  ;;  %7205 = vst [vmem:[#allocation3 + $0x50] sm:$0x1] %v10072_v35 }
  0x8e   : > { %7206 = vst [vmem:[#allocation3 + $0x60] sm:$0x1] %v10072_v35 }
  0x8f   : > { %7207 = vst [vmem:[#allocation3 + $0x70] sm:$0x1] %v10072_v35 }
  0x90   : > { %7208 = vst [vmem:[#allocation3 + $0x80] sm:$0x1] %v10072_v35 }
  0x91   : > { %7209 = vst [vmem:[#allocation3 + $0x19] sm:$0x1] %v10072_v35 }
  0x92   : > { %7210 = vst [vmem:[#allocation3 + $0x29] sm:$0x1] %v10072_v35 }
  0x93   : > { %7211 = vst [vmem:[#allocation3 + $0x39] sm:$0x1] %v10072_v35 }
  0x94   : > { %7212 = vst [vmem:[#allocation3 + $0x49] sm:$0x1] %v10072_v35 }
  0x95   : > { %7213 = vst [vmem:[#allocation3 + $0x59] sm:$0x1] %v10072_v35 }
  0x96   : > { %7214 = vst [vmem:[#allocation3 + $0x69] sm:$0x1] %v10072_v35 }
  0x97   : > { %7215 = vst [vmem:[#allocation3 + $0x79] sm:$0x1] %v10072_v35 }
  0x98   : > { %7216 = vst [vmem:[#allocation3 + $0x89] sm:$0x1] %v10072_v35 }
  0x9d   : > { %1232 = vmatmul.bf16.gmra.mxu0 %v1149_v16 }
  0xad   : > { %1237 = vmatmul.bf16.gmra.mxu0 %v1150_v19 }
  0xbd   : > { %1242 = vmatmul.bf16.gmra.mxu0 %v1151_v22  ;;  %v2213_v22 = vld [vmem:[#allocation2 + $0xa] sm:$0xff] }
  0xbe   : > { %4865 = vst [vmem:[#allocation2 + $0x10] sm:$0x3] %v10072_v35 }
  0xbf   : > { %4864 = vst [vmem:[#allocation2 + $0x8] sm:$0xff] %v10072_v35 }
  0xcd   : > { %1247 = vmatmul.bf16.gmra.mxu0 %v1152_v25  ;;  %v2246_v25 = vmul.f32 %v10371_v45, %v2213_v22 }
  0xdd   : > { %1252 = vmatmul.bf16.gmra.mxu0 %v1153_v28  ;;  %v10440_v28 = vadd.f32 %v2246_v25, %v2181_v24 }
  0xed   : > { %1257 = vmatmul.bf16.gmra.mxu0 %v1154_v31 }
  0xfa   : > { %v1223_v37 = vpop.f32.mrf.mxu0 }
  0xfb   : > { %v10351_v38 = vadd.f32 %v10344_v34, %v1223_v37 }
  0xfd   : > { %v8448_v40 = vmul.f32 -1.442695, %v10351_v38  ;;  %1262 = vmatmul.bf16.gmra.mxu0 %v1155_v36 }
  0xff   : > { %9275 = vpow2.f32 %v8448_v40 }
 0x102   : > { %v1225_v50 = vpop.f32.mrf.mxu0 }
 0x103   : > { %v10382_v51 = vadd.f32 %v10344_v34, %v1225_v50  ;;  %v1120_v50 = vld [vmem:[%s10322_s15 + $0xb0] sm:$0xff] }
 0x105   : > { %v9276_v53 = vpop.eup %9275  ;;  %v8449_v54 = vmul.f32 -1.442695, %v10382_v51 }
 0x106   : > { %v1399_v55 = vadd.f32 1.0, %v9276_v53  ;;  %v1121_v53 = vld [vmem:[%s10322_s15 + $0xb8] sm:$0xff] }
 0x107   : > { %9277 = vpow2.f32 %v8449_v54 }
 0x108   : > { %9279 = vrcp.f32 %v1399_v55  ;;  %v1442_v3 = vand.u32 2147483648, %v1399_v55  ;;  %v1440_v6 = vand.u32 2147483647, %v1399_v55  ;;  %vm1436_vm1 = vweird.f32 %v1399_v55 }
 0x10a   : > { %v1228_v59 = vpop.f32.mrf.mxu0  ;;  %v1443_v12 = vor.u32 1.1754944e-38, %v1442_v3  ;;  %vm1441_vm3 = vcmp.eq.f32.partialorder %v1440_v6, 8.507059e+37 }
 0x10b   : > { %v10398_v60 = vadd.f32 %v10344_v34, %v1228_v59 }
 0x10d   : > { %v9278_v61 = vpop.eup %9277  ;;  %v8450_v62 = vmul.f32 -1.442695, %v10398_v60  ;;  %1267 = vmatmul.bf16.gmra.mxu0 %v1156_v58 }
 0x10e   : > { %v9280_v63 = vpop.eup %9279  ;;  %v10404_v0 = vadd.f32 1.0, %v9278_v61 }
 0x10f   : > { %v1432_v1 = vmul.f32 %v9280_v63, %v1399_v55  ;;  %9281 = vpow2.f32 %v8450_v62  ;;  %vm1437_vm0 = vweird.f32 %v9280_v63 }
 0x110   : > { %9283 = vrcp.f32 %v10404_v0  ;;  %vm1438_vm2 = vmor %vm1436_vm1, %vm1437_vm0  ;;  %v1455_v44 = vand.u32 2147483647, %v10404_v0  ;;  %v1457_v47 = vand.u32 2147483648, %v10404_v0  ;;  %vm1451_vm5 = vweird.f32 %v10404_v0 }
 0x111   : > { %v1433_v2 = vsub.f32 1.0, %v1432_v1 }
 0x112   : > { %v1230_v4 = vpop.f32.mrf.mxu0  ;;  %vm10483_vm7 = vcmp.eq.f32.partialorder %v1455_v44, 8.507059e+37  ;;  %v1458_v62 = vor.u32 1.1754944e-38, %v1457_v47 }
 0x113   : > { %v1434_v5 = vmul.f32 %v9280_v63, %v1433_v2  ;;  %v10413_v7 = vadd.f32 %v10344_v34, %v1230_v4 }
 0x115   : > { %v9282_v8 = vpop.eup %9281  ;;  %v1435_v9 = vadd.f32 %v9280_v63, %v1434_v5  ;;  %v8451_v10 = vmul.f32 -1.442695, %v10413_v7 }
 0x116   : > { %v10418_v11 = vpop.eup %9283  ;;  %v10421_v13 = vadd.f32 1.0, %v9282_v8 }
 0x117   : > { %v1439_v16 = vsel %vm1438_vm2, %v9280_v63, %v1435_v9  ;;  %9285 = vpow2.f32 %v8451_v10  ;;  %v1447_v19 = vmul.f32 %v10418_v11, %v10404_v0  ;;  %vm1452_vm4 = vweird.f32 %v10418_v11 }
 0x118   : > { %v1444_v18 = vsel %vm1441_vm3, %v1443_v12, %v1439_v16  ;;  %9287 = vrcp.f32 %v10421_v13  ;;  %vm10479_vm6 = vmor %vm1451_vm5, %vm1452_vm4  ;;  %v1158_v0 = vpack.c.bf16 %v1121_v53, %v1120_v50  ;;  %vm1466_vm9 = vweird.f32 %v10421_v13 }
 0x119   : > { %v10432_v21 = vmul.f32 %v1444_v18, %v10351_v38  ;;  %v1448_v27 = vsub.f32 1.0, %v1447_v19  ;;  %v1470_v3 = vand.u32 2147483647, %v10421_v13  ;;  %v1472_v4 = vand.u32 2147483648, %v10421_v13 }
 0x11a   : > { %v1233_v26 = vpop.f32.mrf.mxu0 }
 0x11b   : > { %1986 = vst [vmem:[#allocation2 + $0x19] sm:$0xff] %v10432_v21  ;;  %v10443_v29 = vadd.f32 %v10344_v34, %v1233_v26  ;;  %v1449_v37 = vmul.f32 %v10418_v11, %v1448_v27  ;;  %v1473_v16 = vor.u32 1.1754944e-38, %v1472_v4  ;;  %vm1471_vm14 = vcmp.eq.f32.partialorder %v1470_v3, 8.507059e+37  ;;  %v1122_v3 = vld [vmem:[%s10322_s15 + $0xc0] sm:$0xff]  ;;  %v1123_v4 = vld [vmem:[%s10322_s15 + $0xc8] sm:$0xff] }
 0x11d   : > { %v9286_v30 = vpop.eup %9285  ;;  %1272 = vmatmul.bf16.gmra.mxu0 %v1157_v23  ;;  %v8452_v33 = vmul.f32 -1.442695, %v10443_v29  ;;  %v1450_v46 = vadd.f32 %v10418_v11, %v1449_v37 }
 0x11e   : > { %v10446_v31 = vpop.eup %9287  ;;  %v10449_v32 = vadd.f32 1.0, %v9286_v30 }
 0x11f   : > { %v1462_v36 = vmul.f32 %v10446_v31, %v10421_v13  ;;  %v1454_v61 = vsel %vm10479_vm6, %v10418_v11, %v1450_v46  ;;  %vm1467_vm8 = vweird.f32 %v10446_v31 }
 0x120   : > { %9289 = vrcp.f32 %v10449_v32  ;;  %v1487_v8 = vand.u32 2147483648, %v10449_v32  ;;  %v1459_v10 = vsel %vm10483_vm7, %v1458_v62, %v1454_v61  ;;  %vm10512_vm11 = vmor %vm1466_vm9, %vm1467_vm8  ;;  %v1485_v12 = vand.u32 2147483647, %v10449_v32 }
 0x121   : > { %v1463_v38 = vsub.f32 1.0, %v1462_v36  ;;  %9291 = vpow2.f32 %v8452_v33  ;;  %vm1481_vm12 = vweird.f32 %v10449_v32  ;;  %v10528_v22 = vmul.f32 %v1459_v10, %v10382_v51 }
 0x122   : > { %v10459_v40 = vld [vmem:[#allocation2 + $0x18] sm:$0xff]  ;;  %v1235_v43 = vpop.f32.mrf.mxu0  ;;  %v1488_v19 = vor.u32 1.1754944e-38, %v1487_v8  ;;  %vm1486_vm15 = vcmp.eq.f32.partialorder %v1485_v12, 8.507059e+37 }
 0x123   : > { %4869 = vst [vmem:[#allocation2 + $0x18] sm:$0x1] %v10072_v35  ;;  %v10469_v48 = vadd.f32 %v10344_v34, %v1235_v43  ;;  %v1464_v49 = vmul.f32 %v10446_v31, %v1463_v38 }
 0x124   : > { %1987 = vst [vmem:[#allocation2 + $0x21] sm:$0xff] %v10528_v22 }
 0x125   : > { %v8453_v55 = vmul.f32 -1.442695, %v10469_v48  ;;  %v1465_v1 = vadd.f32 %v10446_v31, %v1464_v49 }
 0x126   : > { %v9290_v54 = vpop.eup %9289 }
 0x127   : > { %v9292_v56 = vpop.eup %9291  ;;  %v1477_v59 = vmul.f32 %v9290_v54, %v10449_v32  ;;  %9293 = vpow2.f32 %v8453_v55  ;;  %vm1482_vm10 = vweird.f32 %v9290_v54  ;;  %v1469_v13 = vsel %vm10512_vm11, %v10446_v31, %v1465_v1 }
 0x128   : > { %v10492_v63 = vadd.f32 1.0, %v9292_v56  ;;  %vm1483_vm13 = vmor %vm1481_vm12, %vm1482_vm10  ;;  %v1474_v23 = vsel %vm1471_vm14, %v1473_v16, %v1469_v13  ;;  %v1159_v16 = vpack.c.bf16 %v1123_v4, %v1122_v3 }
 0x129   : > { %v1478_v2 = vsub.f32 1.0, %v1477_v59  ;;  %v10535_v27 = vmul.f32 %v1474_v23, %v10398_v60 }
 0x12a   : > { %9295 = vrcp.f32 %v10492_v63  ;;  %v1238_v5 = vpop.f32.mrf.mxu0  ;;  %v1502_v31 = vand.u32 2147483648, %v10492_v63  ;;  %v1500_v33 = vand.u32 2147483647, %v10492_v63  ;;  %vm1496_vm1 = vweird.f32 %v10492_v63 }
 0x12b   : > { %v1479_v6 = vmul.f32 %v9290_v54, %v1478_v2  ;;  %v10505_v9 = vadd.f32 %v10344_v34, %v1238_v5  ;;  %1988 = vst [vmem:[#allocation2 + $0x31] sm:$0xff] %v10535_v27  ;;  %v10551_v47 = vld [vmem:[#allocation2 + $0x22] sm:$0xff]  ;;  %v10569_v2 = vperm.slane %v10354_v39, 3 }
 0x12c   : > { %vm1501_vm3 = vcmp.eq.f32.partialorder %v1500_v33, 8.507059e+37  ;;  %4885 = vst [vmem:[#allocation2 + $0x29] sm:$0x1] %v10072_v35  ;;  %v10575_v13 = vld [vmem:[#allocation2 + $0x20] sm:$0xff] }
 0x12d   : > { %v1480_v14 = vadd.f32 %v9290_v54, %v1479_v6  ;;  %v8454_v15 = vmul.f32 -1.442695, %v10505_v9  ;;  %1277 = vmatmul.bf16.gmra.mxu0 %v1158_v0  ;;  %v9294_v17 = vpop.eup %9293 }
 0x12e   : > { %v1404_v26 = vadd.f32 1.0, %v9294_v17  ;;  %v2342_v17 = vmul.f32 %v10569_v2, %v10459_v40 }
 0x12f   : > { %v1484_v18 = vsel %vm1483_vm13, %v9290_v54, %v1480_v14  ;;  %9297 = vpow2.f32 %v8454_v15 }
 0x130   : > { %v9296_v20 = vpop.eup %9295  ;;  %v1489_v24 = vsel %vm1486_vm15, %v1488_v19, %v1484_v18  ;;  %9299 = vrcp.f32 %v1404_v26  ;;  %v1515_v59 = vand.u32 2147483647, %v1404_v26  ;;  %v1517_v62 = vand.u32 2147483648, %v1404_v26 }
 0x131   : > { %v1492_v25 = vmul.f32 %v9296_v20, %v10492_v63  ;;  %v10539_v51 = vmul.f32 %v1489_v24, %v10413_v7  ;;  %vm1497_vm0 = vweird.f32 %v9296_v20  ;;  %v1503_v7 = vor.u32 1.1754944e-38, %v1502_v31 }
 0x132   : > { %v1240_v36 = vpop.f32.mrf.mxu0  ;;  %vm1498_vm2 = vmor %vm1496_vm1, %vm1497_vm0  ;;  %v10559_v54 = vld [vmem:[#allocation2 + $0x30] sm:$0xff]  ;;  %vm1511_vm5 = vweird.f32 %v1404_v26  ;;  %vm1516_vm6 = vcmp.eq.f32.partialorder %v1515_v59, 8.507059e+37  ;;  %v1518_v8 = vor.u32 1.1754944e-38, %v1517_v62  ;;  %v2343_v24 = vmul.f32 %v10569_v2, %v10575_v13  ;;  %v1125_v59 = vld [vmem:[%s10322_s15 + $0xd8] sm:$0xff] }
 0x133   : > { %v1493_v30 = vsub.f32 1.0, %v1492_v25  ;;  %1989 = vst [vmem:[#allocation2 + $0x39] sm:$0xff] %v10539_v51  ;;  %v10549_v43 = vadd.f32 %v10344_v34, %v1240_v36  ;;  %v2374_v36 = vadd.f32 %v2342_v17, %v10384_v52  ;;  %v10622_v62 = vperm.slane %v10354_v39, 7 }
 0x134   : > { %4870 = vst [vmem:[#allocation2 + $0x30] sm:$0x1] %v10072_v35 }
 0x135   : > { %v1494_v32 = vmul.f32 %v9296_v20, %v1493_v30  ;;  %v9298_v60 = vpop.eup %9297  ;;  %v8455_v53 = vmul.f32 -1.442695, %v10549_v43  ;;  %v10592_v30 = vperm.slane %v10354_v39, 5 }
 0x136   : > { %v1405_v46 = vadd.f32 1.0, %v9298_v60  ;;  %v9300_v50 = vpop.eup %9299  ;;  %v10599_v60 = vperm.slane %v10354_v39, 6 }
 0x137   : > { %v1495_v37 = vadd.f32 %v9296_v20, %v1494_v32  ;;  %v1507_v56 = vmul.f32 %v9300_v50, %v1404_v26  ;;  %vm1512_vm4 = vweird.f32 %v9300_v50  ;;  %v10589_v26 = vperm.slane %v10354_v39, 4  ;;  %v10595_v32 = vld [vmem:[#allocation2 + $0x1a] sm:$0xff] }
 0x138   : > { %9301 = vrcp.f32 %v1405_v46  ;;  %vm1513_vm7 = vmor %vm1511_vm5, %vm1512_vm4  ;;  %v1530_v10 = vand.u32 2147483647, %v1405_v46  ;;  %v1532_v11 = vand.u32 2147483648, %v1405_v46  ;;  %vm1526_vm9 = vweird.f32 %v1405_v46 }
 0x139   : > { %v1499_v38 = vsel %vm1498_vm2, %v9296_v20, %v1495_v37  ;;  %9303 = vpow2.f32 %v8455_v53 }
 0x13a   : > { %v1504_v44 = vsel %vm1501_vm3, %v1503_v7, %v1499_v38  ;;  %v10562_v55 = vld [vmem:[#allocation2 + $0x3a] sm:$0xff]  ;;  %v1243_v61 = vpop.f32.mrf.mxu0  ;;  %v1533_v25 = vor.u32 1.1754944e-38, %v1532_v11  ;;  %vm1531_vm11 = vcmp.eq.f32.partialorder %v1530_v10, 8.507059e+37  ;;  %v2375_v38 = vadd.f32 %v2343_v24, %v10440_v28  ;;  %v10631_v3 = vld [vmem:[#allocation2 + $0x32] sm:$0xff] }
 0x13b   : > { %v10554_v49 = vmul.f32 %v1504_v44, %v10443_v29  ;;  %4886 = vst [vmem:[#allocation2 + $0x41] sm:$0x1] %v10072_v35  ;;  %v1508_v29 = vsub.f32 1.0, %v1507_v56  ;;  %v10583_v23 = vadd.f32 %v10344_v34, %v1243_v61  ;;  %v2439_v44 = vmul.f32 %v10589_v26, %v10432_v21  ;;  %v10615_v56 = vld [vmem:[#allocation2 + $0x38] sm:$0xff] }
 0x13c   : > { %v2635_v4 = vmul.f32 %v10599_v60, %v10615_v56 }
 0x13d   : > { %1990 = vst [vmem:[#allocation2 + $0x49] sm:$0xff] %v10554_v49  ;;  %v1509_v0 = vmul.f32 %v9300_v50, %v1508_v29  ;;  %1282 = vmatmul.bf16.gmra.mxu0 %v1159_v16  ;;  %v8456_v7 = vmul.f32 -1.442695, %v10583_v23  ;;  %v2471_v53 = vadd.f32 %v2439_v44, %v2374_v36 }
 0x13e   : > { %v9302_v57 = vpop.eup %9301 }
 0x13f   : > { %v9304_v63 = vpop.eup %9303  ;;  %v1522_v1 = vmul.f32 %v9302_v57, %v1405_v46  ;;  %v1510_v5 = vadd.f32 %v9300_v50, %v1509_v0  ;;  %vm1527_vm8 = vweird.f32 %v9302_v57  ;;  %v2536_v46 = vmul.f32 %v10592_v30, %v10595_v32 }
 0x140   : > { %v10573_v12 = vadd.f32 1.0, %v9304_v63  ;;  %vm1528_vm10 = vmor %vm1526_vm9, %vm1527_vm8  ;;  %v10625_v63 = vld [vmem:[%s10103_s21 + $0x8] ss:$0 sm:$0xff] }
 0x141   : > { %v1523_v6 = vsub.f32 1.0, %v1522_v1  ;;  %v1514_v14 = vsel %vm1513_vm7, %v9300_v50, %v1510_v5  ;;  %v2440_v50 = vmul.f32 %v10589_v26, %v10528_v22  ;;  %v2568_v61 = vadd.f32 %v2536_v46, %v2471_v53 }
 0x142   : > { %v1519_v18 = vsel %vm1516_vm6, %v1518_v8, %v1514_v14  ;;  %9305 = vrcp.f32 %v10573_v12  ;;  %v1245_v31 = vpop.f32.mrf.mxu0  ;;  %v2537_v1 = vmul.f32 %v10592_v30, %v10551_v47  ;;  %v2828_v16 = vmul.f32 %v10625_v63, %v10631_v3 }
 0x143   : > { %v1524_v15 = vmul.f32 %v9302_v57, %v1523_v6  ;;  %v10580_v19 = vmul.f32 %v1519_v18, %v10469_v48  ;;  %9307 = vpow2.f32 %v8456_v7  ;;  %v2472_v28 = vadd.f32 %v2440_v50, %v2375_v38  ;;  %v10655_v7 = vld [vmem:[%s10108_s25] ss:$0 sm:$0xff] }
 0x144   : > { %v10565_v58 = vld [vmem:[#allocation2 + $0x48] sm:$0xff]  ;;  %v10636_v5 = vadd.f32 %v10344_v34, %v1245_v31  ;;  %v1547_v31 = vand.u32 2147483648, %v10573_v12  ;;  %v1545_v44 = vand.u32 2147483647, %v10573_v12  ;;  %vm1541_vm13 = vweird.f32 %v10573_v12 }
 0x145   : > { %4871 = vst [vmem:[#allocation2 + $0x48] sm:$0x1] %v10072_v35  ;;  %v1525_v20 = vadd.f32 %v9302_v57, %v1524_v15  ;;  %v2569_v10 = vadd.f32 %v2537_v1, %v2472_v28  ;;  %v2731_v15 = vmul.f32 %v10622_v62, %v10535_v27 }
 0x146   : > { %1991 = vst [vmem:[#allocation2 + $0x51] sm:$0xff] %v10580_v19  ;;  %v1548_v28 = vor.u32 1.1754944e-38, %v1547_v31  ;;  %vm1546_vm15 = vcmp.eq.f32.partialorder %v1545_v44, 8.507059e+37  ;;  %v2441_v31 = vmul.f32 %v10589_v26, %v10535_v27 }
 0x147   : > { %v1529_v48 = vsel %vm1528_vm10, %v9302_v57, %v1525_v20  ;;  %v1124_v57 = vld [vmem:[%s10322_s15 + $0xd0] sm:$0xff]  ;;  %v2667_v18 = vadd.f32 %v2635_v4, %v2569_v10  ;;  %v8457_v20 = vmul.f32 -1.442695, %v10636_v5  ;;  %v2247_v4 = vmul.f32 %v10371_v45, %v10595_v32 }
 0x148   : > { %v1534_v33 = vsel %vm1531_vm11, %v1533_v25, %v1529_v48  ;;  %v9306_v52 = vpop.eup %9305  ;;  %v1160_v8 = vpack.c.bf16 %v1125_v59, %v1124_v57  ;;  %v2732_v48 = vmul.f32 %v10622_v62, %v10539_v51  ;;  %v2053_v57 = vmul.f32 %v10360_v41, %v10459_v40 }
 0x149   : > { %v10602_v37 = vmul.f32 %v1534_v33, %v10505_v9  ;;  %v2634_v9 = vmul.f32 %v10599_v60, %v10559_v54  ;;  %v1537_v0 = vmul.f32 %v9306_v52, %v10573_v12  ;;  %v9308_v14 = vpop.eup %9307  ;;  %vm1542_vm12 = vweird.f32 %v9306_v52 }
 0x14a   : > { %v1248_v39 = vpop.f32.mrf.mxu0  ;;  %v10652_v33 = vadd.f32 1.0, %v9308_v14  ;;  %v2764_v46 = vadd.f32 %v2732_v48, %v2667_v18  ;;  %9309 = vpow2.f32 %v8457_v20  ;;  %vm1543_vm14 = vmor %vm1541_vm13, %vm1542_vm12  ;;  %v2150_v12 = vmul.f32 %v10364_v42, %v10432_v21 }
 0x14b   : > { %1992 = vst [vmem:[#allocation2 + $0x61] sm:$0xff] %v10602_v37  ;;  %v2666_v6 = vadd.f32 %v2634_v9, %v2568_v61  ;;  %v1538_v17 = vsub.f32 1.0, %v1537_v0  ;;  %v10647_v24 = vadd.f32 %v10344_v34, %v1248_v39  ;;  %v2829_v9 = vmul.f32 %v10625_v63, %v10562_v55 }
 0x14c   : > { %9311 = vrcp.f32 %v10652_v33  ;;  %v2054_v40 = vmul.f32 %v10360_v41, %v10575_v13  ;;  %v2151_v21 = vmul.f32 %v10364_v42, %v10528_v22  ;;  %v2248_v20 = vmul.f32 %v10371_v45, %v10551_v47 }
 0x14d   : > { %v10617_v29 = vld [vmem:[#allocation2 + $0x52] sm:$0xff]  ;;  %v2763_v25 = vadd.f32 %v2731_v15, %v2666_v6  ;;  %1287 = vmatmul.bf16.gmra.mxu0 %v1160_v8  ;;  %v1539_v38 = vmul.f32 %v9306_v52, %v1538_v17  ;;  %v8458_v50 = vmul.f32 -1.442695, %v10647_v24  ;;  %v2861_v0 = vadd.f32 %v2829_v9, %v2764_v46 }
 0x14e   : > { %4887 = vst [vmem:[#allocation2 + $0x59] sm:$0x1] %v10072_v35  ;;  %v2182_v8 = vadd.f32 %v2150_v12, %v2053_v57  ;;  %v2183_v17 = vadd.f32 %v2151_v21, %v2054_v40  ;;  %vm1556_vm1 = vweird.f32 %v10652_v33 }
 0x14f   : > { %v2860_v36 = vadd.f32 %v2828_v16, %v2763_v25  ;;  %v1540_v53 = vadd.f32 %v9306_v52, %v1539_v38  ;;  %9313 = vpow2.f32 %v8458_v50  ;;  %v10684_v32 = vadd.f32 %v10655_v7, %v2861_v0  ;;  %v10709_v0 = vld [vmem:[#allocation2 + $0x4a] sm:$0xff] }
 0x150   : > { %v9310_v39 = vpop.eup %9309  ;;  %v2345_v25 = vmul.f32 %v10569_v2, %v10615_v56  ;;  %v2280_v44 = vadd.f32 %v2248_v20, %v2183_v17  ;;  %v2636_v50 = vmul.f32 %v10599_v60, %v10565_v58  ;;  %v2539_v17 = vmul.f32 %v10592_v30, %v10562_v55 }
 0x151   : > { %v10666_v59 = vadd.f32 %v10655_v7, %v2860_v36  ;;  %v1544_v61 = vsel %vm1543_vm14, %v9306_v52, %v1540_v53  ;;  %v2344_v52 = vmul.f32 %v10569_v2, %v10559_v54  ;;  %v10687_v16 = vadd.f32 1.0, %v9310_v39 }
 0x152   : > { %v10638_v11 = vld [vmem:[#allocation2 + $0x60] sm:$0xff]  ;;  %v1549_v1 = vsel %vm1546_vm15, %v1548_v28, %v1544_v61  ;;  %v9312_v14 = vpop.eup %9311  ;;  %v8481_v22 = vmul.f32 -1.442695, %v10684_v32  ;;  %v2538_v36 = vmul.f32 %v10592_v30, %v10631_v3  ;;  %v2377_v53 = vadd.f32 %v2345_v25, %v2280_v44  ;;  %v1250_v40 = vpop.f32.mrf.mxu0 }
 0x153   : > { %4872 = vst [vmem:[#allocation2 + $0x60] sm:$0x1] %v10072_v35  ;;  %v10673_v6 = vmul.f32 %v1549_v1, %v10549_v43  ;;  %v8480_v10 = vmul.f32 -1.442695, %v10666_v59  ;;  %v2279_v43 = vadd.f32 %v2247_v4, %v2182_v8  ;;  %v1552_v15 = vmul.f32 %v9312_v14, %v10652_v33 }
 0x154   : > { %v2442_v61 = vmul.f32 %v10589_v26, %v10539_v51  ;;  %vm1557_vm0 = vweird.f32 %v9312_v14  ;;  %v1562_v1 = vand.u32 2147483648, %v10652_v33  ;;  %v1560_v39 = vand.u32 2147483647, %v10652_v33 }
 0x155   : > { %1993 = vst [vmem:[#allocation2 + $0x69] sm:$0xff] %v10673_v6  ;;  %v9314_v13 = vpop.eup %9313  ;;  %v2376_v18 = vadd.f32 %v2344_v52, %v2279_v43  ;;  %9315 = vpow2.f32 %v8480_v10  ;;  %v1553_v48 = vsub.f32 1.0, %v1552_v15  ;;  %v10715_v10 = vld [vmem:[#allocation2 + $0x50] sm:$0xff]  ;;  %v2733_v43 = vmul.f32 %v10622_v62, %v10554_v49  ;;  %vm1558_vm2 = vmor %vm1556_vm1, %vm1557_vm0 }
 0x156   : > { %9317 = vrcp.f32 %v10687_v16  ;;  %v10699_v38 = vadd.f32 1.0, %v9314_v13  ;;  %v2474_v8 = vadd.f32 %v2442_v61, %v2377_v53  ;;  %v2830_v15 = vmul.f32 %v10625_v63, %v10709_v0 }
 0x157   : > { %v2473_v47 = vadd.f32 %v2441_v31, %v2376_v18  ;;  %9319 = vpow2.f32 %v8481_v22  ;;  %v1554_v9 = vmul.f32 %v9312_v14, %v1553_v48  ;;  %v1563_v20 = vor.u32 1.1754944e-38, %v1562_v1 }
 0x158   : > { %9321 = vrcp.f32 %v10699_v38  ;;  %v2637_v33 = vmul.f32 %v10599_v60, %v10715_v10  ;;  %vm1561_vm3 = vcmp.eq.f32.partialorder %v1560_v39, 8.507059e+37  ;;  %v2571_v31 = vadd.f32 %v2539_v17, %v2474_v8 }
 0x159   : > { %v2570_v57 = vadd.f32 %v2538_v36, %v2473_v47  ;;  %v1555_v21 = vadd.f32 %v9312_v14, %v1554_v9  ;;  %v1577_v53 = vand.u32 2147483648, %v10687_v16  ;;  %v2055_v61 = vmul.f32 %v10360_v41, %v10559_v54 }
 0x15a   : > { %v2152_v1 = vmul.f32 %v10364_v42, %v10535_v27  ;;  %v2734_v39 = vmul.f32 %v10622_v62, %v10580_v19  ;;  %vm1571_vm5 = vweird.f32 %v10687_v16  ;;  %vm1586_vm9 = vweird.f32 %v10699_v38 }
 0x15b   : > { %v9316_v28 = vpop.eup %9315  ;;  %v2668_v4 = vadd.f32 %v2636_v50, %v2570_v57  ;;  %v1559_v18 = vsel %vm1558_vm2, %v9312_v14, %v1555_v21  ;;  %v1578_v27 = vor.u32 1.1754944e-38, %v1577_v53  ;;  %v2831_v53 = vmul.f32 %v10625_v63, %v10617_v29 }
 0x15c   : > { %v10701_v46 = vld [vmem:[#allocation2 + $0x6a] sm:$0xff]  ;;  %v9318_v12 = vpop.eup %9317  ;;  %v10713_v52 = vadd.f32 1.0, %v9316_v28  ;;  %v1564_v36 = vsel %vm1561_vm3, %v1563_v20, %v1559_v18  ;;  %v1575_v28 = vand.u32 2147483647, %v10687_v16  ;;  %v2184_v20 = vadd.f32 %v2152_v1, %v2055_v61 }
 0x15d   : > { %4888 = vst [vmem:[#allocation2 + $0x71] sm:$0x1] %v10072_v35  ;;  %v9320_v13 = vpop.eup %9319  ;;  %v1567_v25 = vmul.f32 %v9318_v12, %v10687_v16  ;;  %v2765_v48 = vadd.f32 %v2733_v43, %v2668_v4  ;;  %v10733_v14 = vmul.f32 %v1564_v36, %v10583_v23  ;;  %vm1572_vm4 = vweird.f32 %v9318_v12  ;;  %v1253_v43 = vpop.f32.mrf.mxu0  ;;  %v1126_v16 = vld [vmem:[%s10322_s15 + $0xe0] sm:$0xff]  ;;  %v1127_v18 = vld [vmem:[%s10322_s15 + $0xe8] sm:$0xff] }
 0x15e   : > { %v10725_v22 = vpop.eup %9321  ;;  %9323 = vrcp.f32 %v10713_v52  ;;  %v10730_v47 = vadd.f32 1.0, %v9320_v13  ;;  %v2669_v4 = vadd.f32 %v2637_v33, %v2571_v31  ;;  %v2153_v23 = vmul.f32 %v10364_v42, %v10539_v51  ;;  %vm1573_vm6 = vmor %vm1571_vm5, %vm1572_vm4 }
 0x15f   : > { %v1568_v44 = vsub.f32 1.0, %v1567_v25  ;;  %v2862_v50 = vadd.f32 %v2830_v15, %v2765_v48  ;;  %v1582_v57 = vmul.f32 %v10725_v22, %v10699_v38  ;;  %1994 = vst [vmem:[#allocation2 + $0x79] sm:$0xff] %v10733_v14  ;;  %v2056_v51 = vmul.f32 %v10360_v41, %v10615_v56 }
 0x160   : > { %9325 = vrcp.f32 %v10730_v47  ;;  %v2249_v13 = vmul.f32 %v10371_v45, %v10631_v3  ;;  %vm1576_vm7 = vcmp.eq.f32.partialorder %v1575_v28, 8.507059e+37  ;;  %v2346_v25 = vmul.f32 %v10569_v2, %v10565_v58 }
 0x161   : > { %v1569_v9 = vmul.f32 %v9318_v12, %v1568_v44  ;;  %v10751_v54 = vadd.f32 %v10655_v7, %v2862_v50  ;;  %v1583_v21 = vsub.f32 1.0, %v1582_v57  ;;  %v2766_v48 = vadd.f32 %v2734_v39, %v2669_v4 }
 0x162   : > { %vm1587_vm8 = vweird.f32 %v10725_v22  ;;  %v10769_v56 = vadd.f32 %v10344_v34, %v1250_v40  ;;  %v1592_v44 = vand.u32 2147483648, %v10699_v38  ;;  %v1161_v50 = vpack.c.bf16 %v1127_v18, %v1126_v16 }
 0x163   : > { %v1570_v8 = vadd.f32 %v9318_v12, %v1569_v9  ;;  %v1584_v36 = vmul.f32 %v10725_v22, %v1583_v21  ;;  %v1590_v40 = vand.u32 2147483647, %v10699_v38  ;;  %v2185_v57 = vadd.f32 %v2153_v23, %v2056_v51  ;;  %vm10790_vm10 = vmor %vm1586_vm9, %vm1587_vm8 }
 0x164   : > { %v10753_v15 = vpop.eup %9323  ;;  %v2250_v61 = vmul.f32 %v10371_v45, %v10562_v55  ;;  %1292 = vmatmul.bf16.gmra.mxu0 %v1161_v50  ;;  %v2281_v4 = vadd.f32 %v2249_v13, %v2184_v20  ;;  %v2863_v39 = vadd.f32 %v2831_v53, %v2766_v48  ;;  %v8459_v23 = vmul.f32 -1.442695, %v10769_v56 }
 0x165   : > { %v1574_v17 = vsel %vm1573_vm6, %v9318_v12, %v1570_v8  ;;  %v3056_v3 = vmul.f32 %v10753_v15, %v10713_v52  ;;  %v8482_v12 = vmul.f32 -1.442695, %v10751_v54  ;;  %v1585_v9 = vadd.f32 %v10725_v22, %v1584_v36  ;;  %v10809_v18 = vpop.f32.mrf.mxu0 }
 0x166   : > { %v1579_v33 = vsel %vm1576_vm7, %v1578_v27, %v1574_v17  ;;  %v10783_v28 = vpop.eup %9325  ;;  %v2057_v55 = vmul.f32 %v10360_v41, %v10565_v58  ;;  %v1593_v8 = vor.u32 1.1754944e-38, %v1592_v44  ;;  %v10801_v27 = vadd.f32 %v10344_v34, %v1253_v43 }
 0x167   : > { %v10764_v31 = vmul.f32 %v1579_v33, %v10636_v5  ;;  %v10777_v5 = vld [vmem:[#allocation2 + $0x78] sm:$0xff]  ;;  %v1589_v38 = vsel %vm10790_vm10, %v10725_v22, %v1585_v9  ;;  %9327 = vpow2.f32 %v8482_v12  ;;  %v3057_v21 = vsub.f32 1.0, %v3056_v3 }
 0x168   : > { %4873 = vst [vmem:[#allocation2 + $0x78] sm:$0x1] %v10072_v35  ;;  %v3071_v51 = vmul.f32 %v10783_v28, %v10730_v47  ;;  %v2378_v13 = vadd.f32 %v2346_v25, %v2281_v4  ;;  %vm1591_vm11 = vcmp.eq.f32.partialorder %v1590_v40, 8.507059e+37  ;;  %v2154_v17 = vmul.f32 %v10364_v42, %v10554_v49 }
 0x169   : > { %1995 = vst [vmem:[#allocation2 + $0x81] sm:$0xff] %v10764_v31  ;;  %v2347_v22 = vmul.f32 %v10569_v2, %v10715_v10  ;;  %v1594_v16 = vsel %vm1591_vm11, %v1593_v8, %v1589_v38  ;;  %v2282_v58 = vadd.f32 %v2250_v61, %v2185_v57  ;;  %v2443_v34 = vmul.f32 %v10589_v26, %v10554_v49 }
 0x16a   : > { %v10814_v43 = vadd.f32 %v10655_v7, %v2863_v39  ;;  %9329 = vpow2.f32 %v8459_v23  ;;  %v3064_v20 = vand.u32 2147483647, %v10713_v52  ;;  %v3066_v25 = vand.u32 2147483648, %v10713_v52 }
 0x16b   : > { %v10821_v33 = vmul.f32 %v1594_v16, %v10647_v24  ;;  %v8460_v36 = vmul.f32 -1.442695, %v10801_v27  ;;  %v3058_v3 = vmul.f32 %v10753_v15, %v3057_v21  ;;  %v3072_v12 = vsub.f32 1.0, %v3071_v51 }
 0x16c   : > { %v2186_v44 = vadd.f32 %v2154_v17, %v2057_v55  ;;  %v2475_v49 = vadd.f32 %v2443_v34, %v2378_v13  ;;  %v2155_v53 = vmul.f32 %v10364_v42, %v10580_v19  ;;  %v2379_v9 = vadd.f32 %v2347_v22, %v2282_v58  ;;  %v10854_v13 = vld [vmem:[#allocation2 + $0x68] sm:$0xff] }
 0x16d   : > { %v9328_v50 = vpop.eup %9327  ;;  %v2444_v40 = vmul.f32 %v10589_v26, %v10580_v19  ;;  %v2156_v24 = vmul.f32 %v10364_v42, %v10602_v37  ;;  %1996 = vst [vmem:[#allocation2 + $0x91] sm:$0xff] %v10821_v33  ;;  %vm3060_vm12 = vweird.f32 %v10713_v52  ;;  %v2251_v57 = vmul.f32 %v10371_v45, %v10709_v0 }
 0x16e   : > { %v2445_v61 = vmul.f32 %v10589_v26, %v10602_v37  ;;  %vm10839_vm13 = vcmp.eq.f32.partialorder %v3064_v20, 8.507059e+37  ;;  %v3067_v19 = vor.u32 1.1754944e-38, %v3066_v25  ;;  %v2540_v4 = vmul.f32 %v10592_v30, %v10709_v0  ;;  %v1258_v20 = vpop.f32.mrf.mxu0 }
 0x16f   : > { %9331 = vpow2.f32 %v8460_v36  ;;  %v3059_v38 = vadd.f32 %v10753_v15, %v3058_v3  ;;  %vm3061_vm14 = vweird.f32 %v10753_v15  ;;  %v3073_v23 = vmul.f32 %v10783_v28, %v3072_v12 }
 0x170   : > { %v10818_v48 = vld [vmem:[#allocation2 + $0x82] sm:$0xff]  ;;  %v9330_v39 = vpop.eup %9329  ;;  %v10848_v55 = vadd.f32 1.0, %v9328_v50  ;;  %vm3075_vm15 = vweird.f32 %v10730_v47  ;;  %v3079_v8 = vand.u32 2147483647, %v10730_v47  ;;  %v2058_v21 = vmul.f32 %v10360_v41, %v10715_v10  ;;  %vm10862_vm0 = vmor %vm3060_vm12, %vm3061_vm14 }
 0x171   : > { %4889 = vst [vmem:[#allocation2 + $0x89] sm:$0x1] %v10072_v35  ;;  %v8483_v35 = vmul.f32 -1.442695, %v10814_v43  ;;  %v2476_v51 = vadd.f32 %v2444_v40, %v2379_v9  ;;  %v2283_v0 = vadd.f32 %v2251_v57, %v2186_v44  ;;  %v2348_v17 = vmul.f32 %v10569_v2, %v10638_v11  ;;  %v10883_v40 = vld [vmem:[#allocation2 + $0x62] sm:$0xff] }
 0x172   : > { %v2638_v22 = vmul.f32 %v10599_v60, %v10638_v11  ;;  %vm3076_vm1 = vweird.f32 %v10783_v28  ;;  %v2541_v10 = vmul.f32 %v10592_v30, %v10617_v29  ;;  %v2572_v58 = vadd.f32 %v2540_v4, %v2475_v49  ;;  %v10890_v4 = vld [vmem:[%s10098_s17] ss:$0 sm:$0xff] }
 0x173   : > { %9333 = vpow2.f32 %v8483_v35  ;;  %v10869_v34 = vadd.f32 1.0, %v9330_v39  ;;  %v3063_v25 = vsel %vm10862_vm0, %v10753_v15, %v3059_v38  ;;  %v3074_v52 = vadd.f32 %v10783_v28, %v3073_v23  ;;  %v10885_v15 = vld [vmem:[#allocation2 + $0x198] sm:$0xff]  ;;  %vm10902_vm2 = vmor %vm3075_vm15, %vm3076_vm1 }
 0x174   : > { %9335 = vrcp.f32 %v10848_v55  ;;  %v2639_v36 = vmul.f32 %v10599_v60, %v10854_v13  ;;  %v10878_v3 = vld [vmem:[#allocation2 + $0x90] sm:$0xff]  ;;  %v3081_v44 = vand.u32 2147483648, %v10730_v47  ;;  %v2187_v49 = vadd.f32 %v2155_v53, %v2058_v21 }
 0x175   : > { %v9332_v12 = vpop.eup %9331  ;;  %v2573_v50 = vadd.f32 %v2541_v10, %v2476_v51  ;;  %v2059_v9 = vmul.f32 %v10360_v41, %v10638_v11  ;;  %4874 = vst [vmem:[#allocation2 + $0x90] sm:$0x1] %v10885_v15  ;;  %v2380_v57 = vadd.f32 %v2348_v17, %v2283_v0  ;;  %v2670_v35 = vadd.f32 %v2638_v22, %v2572_v58 }
 0x176   : > { %9337 = vrcp.f32 %v10869_v34  ;;  %v10894_v39 = vadd.f32 %v10890_v4, %v10809_v18  ;;  %v3068_v53 = vsel %vm10839_vm13, %v3067_v19, %v3063_v25  ;;  %v2252_v38 = vmul.f32 %v10371_v45, %v10617_v29 }
 0x177   : > { %v2735_v23 = vmul.f32 %v10622_v62, %v10602_v37  ;;  %v2349_v18 = vmul.f32 %v10569_v2, %v10854_v13  ;;  %v3078_v1 = vsel %vm10902_vm2, %v10783_v28, %v3074_v52  ;;  %v2671_v19 = vadd.f32 %v2639_v36, %v2573_v50 }
 0x178   : > { %v2832_v47 = vmul.f32 %v10625_v63, %v10883_v40  ;;  %v10917_v51 = vadd.f32 1.0, %v9332_v12  ;;  %vm3080_vm3 = vcmp.eq.f32.partialorder %v3079_v8, 8.507059e+37  ;;  %v3082_v0 = vor.u32 1.1754944e-38, %v3081_v44  ;;  %v1128_v44 = vld [vmem:[%s10322_s15 + $0xf0] sm:$0xff] }
 0x179   : > { %v9334_v21 = vpop.eup %9333  ;;  %v2284_v29 = vadd.f32 %v2252_v38, %v2187_v49  ;;  %v10919_v17 = vadd.f32 %v2156_v24, %v2059_v9  ;;  %v2477_v22 = vadd.f32 %v2445_v61, %v2380_v57  ;;  %v2767_v16 = vadd.f32 %v2735_v23, %v2670_v35  ;;  %v1129_v49 = vld [vmem:[%s10322_s15 + $0xf8] sm:$0xff]  ;;  %v1260_v35 = vpop.f32.mrf.mxu0  ;;  %s16429_s15 = sld [smem:[#allocation15_spill]] }
 0x17a   : > { %v10921_v37 = vpop.eup %9335  ;;  %v2736_v28 = vmul.f32 %v10622_v62, %v10673_v6  ;;  %v8461_v10 = vmul.f32 -1.442695, %v10894_v39  ;;  %v3083_v58 = vsel %vm3080_vm3, %v3082_v0, %v3078_v1  ;;  %v10927_v25 = vmul.f32 %v3068_v53, %v10666_v59 }
 0x17b   : > { %v10929_v8 = vadd.f32 1.0, %v9334_v21  ;;  %v2381_v52 = vadd.f32 %v2349_v18, %v2284_v29  ;;  %v10933_v24 = vmul.f32 %v10364_v42, %v10673_v6  ;;  %v2864_v61 = vadd.f32 %v2832_v47, %v2767_v16 }
 0x17c   : > { %16099 = vst [vmem:[#allocation33_spill] sm:$0xff] %v10927_v25  ;;  %v9338_v36 = vpop.eup %9337  ;;  %v2768_v12 = vadd.f32 %v2736_v28, %v2671_v19  ;;  %9339 = vrcp.f32 %v10917_v51  ;;  %v10940_v50 = vmul.f32 %v10921_v37, %v10848_v55  ;;  %v2446_v59 = vmul.f32 %v10589_v26, %v10673_v6  ;;  %v10956_v6 = vld [vmem:[#allocation2 + $0x80] sm:$0xff] }
 0x17d   : > { %v2542_v9 = vmul.f32 %v10592_v30, %v10883_v40  ;;  %v1597_v57 = vmul.f32 %v9338_v36, %v10869_v34  ;;  %v10948_v53 = vmul.f32 %v3083_v58, %v10684_v32  ;;  %v2833_v11 = vmul.f32 %v10625_v63, %v10701_v46 }
 0x17e   : > { %9341 = vpow2.f32 %v8461_v10  ;;  %v10953_v38 = vadd.f32 %v10890_v4, %v1258_v20  ;;  %v2478_v23 = vadd.f32 %v2446_v59, %v2381_v52  ;;  %v1162_v21 = vpack.c.bf16 %v1129_v49, %v1128_v44 }
 0x17f   : > { %16100 = vst [vmem:[#allocation34_spill] sm:$0xff] %v10948_v53  ;;  %9343 = vrcp.f32 %v10929_v8  ;;  %v1598_v18 = vsub.f32 1.0, %v1597_v57  ;;  %v2865_v1 = vadd.f32 %v2833_v11, %v2768_v12  ;;  %v10959_v19 = vadd.f32 %v10655_v7, %v2864_v61 }
 0x180   : > { %v8462_v32 = vmul.f32 -1.442695, %v10953_v38  ;;  %v10963_v47 = vadd.f32 %v10890_v4, %v1260_v35  ;;  %v3087_v0 = vsub.f32 1.0, %v10940_v50  ;;  %v2543_v20 = vmul.f32 %v10592_v30, %v10701_v46  ;;  %1297 = vmatmul.bf16.gmra.mxu0 %v1162_v21  ;;  %v10987_v21 = vld [vmem:[#allocation2 + $0x7a] sm:$0xff] }
 0x181   : > { %16101 = vst [vmem:[#allocation35_spill] sm:$0xff] %v10959_v19  ;;  %v2574_v29 = vadd.f32 %v2542_v9, %v2477_v22  ;;  %v2640_v16 = vmul.f32 %v10599_v60, %v10777_v5  ;;  %v2641_v10 = vmul.f32 %v10599_v60, %v10956_v6  ;;  %v1599_v58 = vmul.f32 %v9338_v36, %v1598_v18 }
 0x182   : > { %16102 = vst [vmem:[#allocation36_spill] sm:$0xff] %v10963_v47  ;;  %v9340_v28 = vpop.eup %9339  ;;  %v1605_v52 = vand.u32 2147483647, %v10869_v34  ;;  %v1607_v12 = vand.u32 2147483648, %v10869_v34  ;;  %v2575_v61 = vadd.f32 %v2543_v20, %v2478_v23  ;;  %vm1602_vm4 = vweird.f32 %v9338_v36 }
 0x183   : > { %v1612_v44 = vmul.f32 %v9340_v28, %v10917_v51  ;;  %9345 = vpow2.f32 %v8462_v32  ;;  %v10976_v22 = vadd.f32 %v10655_v7, %v2865_v1  ;;  %v8484_v50 = vmul.f32 -1.442695, %v10959_v19 }
 0x184   : > { %v9342_v49 = vpop.eup %9341  ;;  %v2737_v59 = vmul.f32 %v10622_v62, %v10733_v14  ;;  %v8463_v9 = vmul.f32 -1.442695, %v10963_v47  ;;  %v1600_v35 = vadd.f32 %v9338_v36, %v1599_v58  ;;  %vm1601_vm5 = vweird.f32 %v10869_v34 }
 0x185   : > { %v10982_v57 = vpop.eup %9343  ;;  %v1613_v11 = vsub.f32 1.0, %v1612_v44  ;;  %v10985_v23 = vadd.f32 1.0, %v9342_v49  ;;  %v2672_v18 = vadd.f32 %v2640_v16, %v2574_v29  ;;  %v2673_v1 = vadd.f32 %v2641_v10, %v2575_v61  ;;  %vm1603_vm6 = vmor %vm1601_vm5, %vm1602_vm4 }
 0x186   : > { %vm1606_vm7 = vcmp.eq.f32.partialorder %v1605_v52, 8.507059e+37  ;;  %v1608_v32 = vor.u32 1.1754944e-38, %v1607_v12  ;;  %v1604_v20 = vsel %vm1603_vm6, %v9338_v36, %v1600_v35  ;;  %v1622_v47 = vand.u32 2147483648, %v10917_v51 }
 0x187   : > { %v1614_v19 = vmul.f32 %v9340_v28, %v1613_v11  ;;  %9347 = vrcp.f32 %v10985_v23  ;;  %vm1617_vm8 = vweird.f32 %v9340_v28  ;;  %v1620_v34 = vand.u32 2147483647, %v10917_v51 }
 0x188   : > { %v1609_v58 = vsel %vm1606_vm7, %v1608_v32, %v1604_v20  ;;  %9349 = vpow2.f32 %v8463_v9  ;;  %v8485_v29 = vmul.f32 -1.442695, %v10976_v22  ;;  %v2834_v16 = vmul.f32 %v10625_v63, %v10987_v21 }
 0x189   : > { %v9346_v44 = vpop.eup %9345  ;;  %v10997_v10 = vmul.f32 %v1609_v58, %v10769_v56  ;;  %v1615_v36 = vadd.f32 %v9340_v28, %v1614_v19  ;;  %v3101_v52 = vmul.f32 %v10982_v57, %v10929_v8  ;;  %9351 = vpow2.f32 %v8484_v50 }
 0x18a   : > { %v2738_v12 = vmul.f32 %v10622_v62, %v10764_v31  ;;  %vm1616_vm9 = vweird.f32 %v10917_v51  ;;  %v11006_v61 = vadd.f32 %v10948_v53, %v10927_v25  ;;  %v2060_v49 = vmul.f32 %v10360_v41, %v10854_v13 }
 0x18b   : > { %v2769_v9 = vadd.f32 %v2737_v59, %v2672_v18  ;;  %1997 = vst [vmem:[#allocation2 + $0x99] sm:$0xff] %v10997_v10  ;;  %vm1618_vm10 = vmor %vm1616_vm9, %vm1617_vm8  ;;  %v1623_v56 = vor.u32 1.1754944e-38, %v1622_v47  ;;  %vm1621_vm11 = vcmp.eq.f32.partialorder %v1620_v34, 8.507059e+37  ;;  %v11012_v35 = vadd.f32 1.0, %v9346_v44 }
 0x18c   : > { %v2770_v19 = vadd.f32 %v2738_v12, %v2673_v1  ;;  %v1619_v50 = vsel %vm1618_vm10, %v9340_v28, %v1615_v36  ;;  %v3088_v51 = vmul.f32 %v10921_v37, %v3087_v0  ;;  %9353 = vpow2.f32 %v8485_v29 }
 0x18d   : > { %v11014_v11 = vpop.eup %9347  ;;  %v2866_v32 = vadd.f32 %v2834_v16, %v2769_v9  ;;  %v1624_v20 = vsel %vm1621_vm11, %v1623_v56, %v1619_v50  ;;  %v3094_v13 = vand.u32 2147483647, %v10848_v55  ;;  %v3102_v59 = vsub.f32 1.0, %v3101_v52 }
 0x18e   : > { %v9350_v58 = vpop.eup %9349  ;;  %v2835_v18 = vmul.f32 %v10625_v63, %v10818_v48  ;;  %v11021_v47 = vmul.f32 %v1624_v20, %v10801_v27  ;;  %v3096_v28 = vand.u32 2147483648, %v10848_v55  ;;  %v3109_v1 = vand.u32 2147483647, %v10929_v8 }
 0x18f   : > { %v2253_v0 = vmul.f32 %v10371_v45, %v10883_v40  ;;  %v1627_v34 = vmul.f32 %v11014_v11, %v10985_v23  ;;  %v9352_v44 = vpop.eup %9351  ;;  %v3111_v29 = vand.u32 2147483648, %v10929_v8  ;;  %v2189_v16 = vadd.f32 %v10933_v24, %v2060_v49 }
 0x190   : > { %v2867_v36 = vadd.f32 %v2835_v18, %v2770_v19  ;;  %1998 = vst [vmem:[#allocation2 + $0xa9] sm:$0xff] %v11021_v47  ;;  %9355 = vrcp.f32 %v11012_v35  ;;  %v3089_v27 = vadd.f32 %v10921_v37, %v3088_v51  ;;  %vm3091_vm12 = vweird.f32 %v10921_v37 }
 0x191   : > { %v11036_v52 = vadd.f32 %v10655_v7, %v2866_v32  ;;  %v11038_v40 = vadd.f32 1.0, %v9350_v58  ;;  %vm3090_vm13 = vweird.f32 %v10848_v55  ;;  %vm11041_vm14 = vcmp.eq.f32.partialorder %v3094_v13, 8.507059e+37 }
 0x192   : > { %v3103_v24 = vmul.f32 %v10982_v57, %v3102_v59  ;;  %v2254_v49 = vmul.f32 %v10371_v45, %v10701_v46  ;;  %v11048_v9 = vld [vmem:[#allocation2 + $0x9a] sm:$0xff]  ;;  %v9354_v56 = vpop.eup %9353  ;;  %v3097_v19 = vor.u32 1.1754944e-38, %v3096_v28  ;;  %vm3105_vm15 = vweird.f32 %v10929_v8  ;;  %vm11054_vm0 = vmor %vm3090_vm13, %vm3091_vm12 }
 0x193   : > { %v11051_v50 = vadd.f32 1.0, %v9352_v44  ;;  %4890 = vst [vmem:[#allocation2 + $0xa1] sm:$0x1] %v10885_v15  ;;  %v1628_v55 = vsub.f32 1.0, %v1627_v34  ;;  %v3112_v32 = vor.u32 1.1754944e-38, %v3111_v29  ;;  %v2285_v20 = vadd.f32 %v2253_v0, %v10919_v17 }
 0x194   : > { %v2286_v58 = vadd.f32 %v2254_v49, %v2189_v16  ;;  %v11060_v46 = vadd.f32 %v10655_v7, %v2867_v36  ;;  %v3093_v13 = vsel %vm11054_vm0, %v10921_v37, %v3089_v27  ;;  %vm3106_vm1 = vweird.f32 %v10982_v57  ;;  %v1263_v49 = vpop.f32.mrf.mxu0 }
 0x195   : > { %vm11066_vm2 = vcmp.eq.f32.partialorder %v3109_v1, 8.507059e+37  ;;  %v8486_v18 = vmul.f32 -1.442695, %v11036_v52  ;;  %9357 = vrcp.f32 %v11038_v40  ;;  %v3104_v17 = vadd.f32 %v10982_v57, %v3103_v24  ;;  %vm11098_vm4 = vmor %vm3105_vm15, %vm3106_vm1 }
 0x196   : > { %v11072_v28 = vpop.eup %9355  ;;  %v11075_v0 = vadd.f32 1.0, %v9354_v56  ;;  %v2350_v34 = vmul.f32 %v10569_v2, %v10777_v5  ;;  %v1637_v37 = vand.u32 2147483648, %v10985_v23  ;;  %9359 = vrcp.f32 %v11051_v50 }
 0x197   : > { %v11081_v1 = vld [vmem:[#allocation2 + $0xa8] sm:$0xff]  ;;  %v1629_v44 = vmul.f32 %v11014_v11, %v1628_v55  ;;  %vm1632_vm3 = vweird.f32 %v11014_v11  ;;  %v1635_v29 = vand.u32 2147483647, %v10985_v23  ;;  %v3098_v16 = vsel %vm11041_vm14, %v3097_v19, %v3093_v13 }
 0x198   : > { %v2447_v36 = vmul.f32 %v10589_v26, %v10733_v14  ;;  %v2351_v27 = vmul.f32 %v10569_v2, %v10956_v6  ;;  %v8487_v24 = vmul.f32 -1.442695, %v11060_v46  ;;  %4875 = vst [vmem:[#allocation2 + $0xa8] sm:$0x1] %v10885_v15  ;;  %9361 = vpow2.f32 %v8486_v18 }
 0x199   : > { %v1630_v12 = vadd.f32 %v11014_v11, %v1629_v44  ;;  %vm1631_vm5 = vweird.f32 %v10985_v23  ;;  %v1642_v19 = vmul.f32 %v11072_v28, %v11012_v35  ;;  %v3108_v55 = vsel %vm11098_vm4, %v10982_v57, %v3104_v17 }
 0x19a   : > { %9363 = vrcp.f32 %v11075_v0  ;;  %v2382_v51 = vadd.f32 %v2350_v34, %v2285_v20  ;;  %vm1633_vm6 = vmor %vm1631_vm5, %vm1632_vm3  ;;  %v1638_v8 = vor.u32 1.1754944e-38, %v1637_v37  ;;  %v2544_v18 = vmul.f32 %v10592_v30, %v10987_v21 }
 0x19b   : > { %v11112_v13 = vpop.eup %9357  ;;  %v1634_v23 = vsel %vm1633_vm6, %v11014_v11, %v1630_v12  ;;  %vm1636_vm7 = vcmp.eq.f32.partialorder %v1635_v29, 8.507059e+37  ;;  %v1643_v44 = vsub.f32 1.0, %v1642_v19  ;;  %v2383_v53 = vadd.f32 %v2351_v27, %v2286_v58  ;;  %v11137_v19 = vld [vmem:[#allocation2 + $0x98] sm:$0xff] }
 0x19c   : > { %9365 = vpow2.f32 %v8487_v24  ;;  %v1639_v56 = vsel %vm1636_vm7, %v1638_v8, %v1634_v23  ;;  %v1652_v57 = vand.u32 2147483648, %v11012_v35  ;;  %v11118_v17 = vpop.eup %9359  ;;  %vm1647_vm8 = vweird.f32 %v11072_v28  ;;  %v1265_v25 = vpop.f32.mrf.mxu0 }
 0x19d   : > { %v11121_v20 = vmul.f32 %v1639_v56, %v10894_v39  ;;  %v1644_v34 = vmul.f32 %v11072_v28, %v1643_v44  ;;  %v1650_v37 = vand.u32 2147483647, %v11012_v35  ;;  %v3113_v11 = vsel %vm11066_vm2, %v3112_v32, %v3108_v55  ;;  %v11153_v56 = vld [vmem:[#allocation2 + $0x92] sm:$0xff] }
 0x19e   : > { %v11129_v58 = vmul.f32 %v3098_v16, %v10751_v54  ;;  %v2448_v29 = vmul.f32 %v10589_v26, %v10764_v31  ;;  %v1657_v27 = vmul.f32 %v11112_v13, %v11038_v40  ;;  %v9362_v39 = vpop.eup %9361  ;;  %v2479_v24 = vadd.f32 %v2447_v36, %v2382_v51 }
 0x19f   : > { %v2642_v12 = vmul.f32 %v10599_v60, %v10878_v3  ;;  %1999 = vst [vmem:[#allocation2 + $0xb1] sm:$0xff] %v11121_v20  ;;  %v1645_v32 = vadd.f32 %v11072_v28, %v1644_v34  ;;  %vm1646_vm9 = vweird.f32 %v11012_v35  ;;  %v3116_v59 = vmul.f32 %v11118_v17, %v11051_v50 }
 0x1a0   : > { %16111 = vst [vmem:[#allocation37_spill] sm:$0xff] %v11129_v58  ;;  %v11142_v54 = vpop.eup %9363  ;;  %v2480_v16 = vadd.f32 %v2448_v29, %v2383_v53  ;;  %v2545_v36 = vmul.f32 %v10592_v30, %v10818_v48  ;;  %vm1648_vm10 = vmor %vm1646_vm9, %vm1647_vm8  ;;  %v1653_v55 = vor.u32 1.1754944e-38, %v1652_v57  ;;  %v2576_v51 = vadd.f32 %v2544_v18, %v2479_v24 }
 0x1a1   : > { %v1649_v8 = vsel %vm1648_vm10, %v11072_v28, %v1645_v32  ;;  %vm1651_vm11 = vcmp.eq.f32.partialorder %v1650_v37, 8.507059e+37  ;;  %v1658_v23 = vsub.f32 1.0, %v1657_v27  ;;  %v11151_v35 = vadd.f32 1.0, %v9362_v39 }
 0x1a2   : > { %v9366_v44 = vpop.eup %9365  ;;  %v2643_v53 = vmul.f32 %v10599_v60, %v11137_v19  ;;  %v1654_v34 = vsel %vm1651_vm11, %v1653_v55, %v1649_v8  ;;  %v11158_v29 = vadd.f32 %v10890_v4, %v1263_v49  ;;  %v11161_v57 = vmul.f32 %v3113_v11, %v10814_v43 }
 0x1a3   : > { %v2158_v28 = vmul.f32 %v10364_v42, %v10733_v14  ;;  %v2674_v18 = vadd.f32 %v2642_v12, %v2576_v51  ;;  %v11166_v37 = vmul.f32 %v1654_v34, %v10953_v38  ;;  %v3602_v27 = vadd.f32 %v11006_v61, %v11129_v58 }
 0x1a4   : > { %16112 = vst [vmem:[#allocation38_spill] sm:$0xff] %v11161_v57  ;;  %v3117_v39 = vsub.f32 1.0, %v3116_v59  ;;  %v3131_v24 = vmul.f32 %v11142_v54, %v11075_v0  ;;  %v2577_v49 = vadd.f32 %v2545_v36, %v2480_v16  ;;  %v11172_v32 = vadd.f32 1.0, %v9366_v44 }
 0x1a5   : > { %v2739_v43 = vmul.f32 %v10622_v62, %v10821_v33  ;;  %v2836_v14 = vmul.f32 %v10625_v63, %v11153_v56  ;;  %2000 = vst [vmem:[#allocation2 + $0xc1] sm:$0xff] %v11166_v37  ;;  %v1659_v38 = vmul.f32 %v11112_v13, %v1658_v23  ;;  %9367 = vrcp.f32 %v11151_v35 }
 0x1a6   : > { %v2675_v61 = vadd.f32 %v2643_v53, %v2577_v49  ;;  %v11181_v11 = vld [vmem:[#allocation2 + $0xb2] sm:$0xff]  ;;  %v8464_v12 = vmul.f32 -1.442695, %v11158_v29  ;;  %v11185_v59 = vadd.f32 %v10890_v4, %v1265_v25  ;;  %v11188_v16 = vadd.f32 %v3602_v27, %v11161_v57 }
 0x1a7   : > { %v2061_v36 = vmul.f32 %v10360_v41, %v10777_v5  ;;  %v2159_v55 = vmul.f32 %v10364_v42, %v10764_v31  ;;  %v2771_v51 = vadd.f32 %v2739_v43, %v2674_v18  ;;  %4891 = vst [vmem:[#allocation2 + $0xb9] sm:$0x1] %v10885_v15  ;;  %v3118_v8 = vmul.f32 %v11118_v17, %v3117_v39 }
 0x1a8   : > { %vm3120_vm12 = vweird.f32 %v11051_v50  ;;  %v3126_v23 = vand.u32 2147483648, %v11051_v50  ;;  %v3132_v25 = vsub.f32 1.0, %v3131_v24  ;;  %v2740_v44 = vmul.f32 %v10622_v62, %v10997_v10 }
 0x1a9   : > { %9369 = vrcp.f32 %v11172_v32  ;;  %v2868_v53 = vadd.f32 %v2836_v14, %v2771_v51  ;;  %v1660_v5 = vadd.f32 %v11112_v13, %v1659_v38  ;;  %vm1662_vm13 = vweird.f32 %v11112_v13 }
 0x1aa   : > { %v2772_v31 = vadd.f32 %v2740_v44, %v2675_v61  ;;  %v1667_v34 = vand.u32 2147483648, %v11038_v40  ;;  %9371 = vpow2.f32 %v8464_v12  ;;  %v8465_v18 = vmul.f32 -1.442695, %v11185_v59 }
 0x1ab   : > { %v3124_v27 = vand.u32 2147483647, %v11051_v50  ;;  %v2190_v39 = vadd.f32 %v2158_v28, %v2061_v36  ;;  %vm1661_vm14 = vweird.f32 %v11038_v40  ;;  %v1665_v24 = vand.u32 2147483647, %v11038_v40  ;;  %v11208_v49 = vpop.eup %9367  ;;  %v1268_v40 = vpop.f32.mrf.mxu0  ;;  %v11261_v50 = vld [vmem:[%s10108_s25] ss:$0 sm:$0xff] }
 0x1ac   : > { %v3127_v43 = vor.u32 1.1754944e-38, %v3126_v23  ;;  %v2062_v14 = vmul.f32 %v10360_v41, %v10956_v6  ;;  %v2255_v38 = vmul.f32 %v10371_v45, %v10987_v21  ;;  %v2837_v61 = vmul.f32 %v10625_v63, %v11048_v9  ;;  %v11216_v12 = vld [vmem:[#allocation2 + $0xc0] sm:$0xff]  ;;  %vm11220_vm15 = vmor %vm1661_vm14, %vm1662_vm13 }
 0x1ad   : > { %v3119_v36 = vadd.f32 %v11118_v17, %v3118_v8  ;;  %vm3121_vm0 = vweird.f32 %v11118_v17  ;;  %v3133_v6 = vmul.f32 %v11142_v54, %v3132_v25  ;;  %4876 = vst [vmem:[#allocation2 + $0xc0] sm:$0x1] %v10885_v15  ;;  %v1664_v63 = vsel %vm11220_vm15, %v11112_v13, %v1660_v5 }
 0x1ae   : > { %v2869_v21 = vadd.f32 %v2837_v61, %v2772_v31  ;;  %v11232_v51 = vadd.f32 %v10655_v7, %v2868_v53  ;;  %v1668_v23 = vor.u32 1.1754944e-38, %v1667_v34  ;;  %9373 = vpow2.f32 %v8465_v18  ;;  %vm11247_vm3 = vmor %vm3120_vm12, %vm3121_vm0 }
 0x1af   : > { %v11234_v44 = vpop.eup %9369  ;;  %vm3135_vm1 = vweird.f32 %v11075_v0  ;;  %v3139_v8 = vand.u32 2147483647, %v11075_v0  ;;  %v3146_v25 = vmul.f32 %v11208_v49, %v11151_v35  ;;  %vm1666_vm2 = vcmp.eq.f32.partialorder %v1665_v24, 8.507059e+37 }
 0x1b0   : > { %v9372_v57 = vpop.eup %9371  ;;  %v3141_v13 = vand.u32 2147483648, %v11075_v0  ;;  %v2191_v5 = vadd.f32 %v2159_v55, %v2062_v14  ;;  %v2256_v7 = vmul.f32 %v10371_v45, %v10818_v48  ;;  %v1669_v53 = vsel %vm1666_vm2, %v1668_v23, %v1664_v63 }
 0x1b1   : > { %v3134_v34 = vadd.f32 %v11142_v54, %v3133_v6  ;;  %vm3136_vm4 = vweird.f32 %v11142_v54  ;;  %v2287_v18 = vadd.f32 %v2255_v38, %v2190_v39  ;;  %v2352_v55 = vmul.f32 %v10569_v2, %v10878_v3  ;;  %v16117_v38 = vld [vmem:[#allocation36_spill] sm:$0xff] }
 0x1b2   : > { %v3123_v48 = vsel %vm11247_vm3, %v11118_v17, %v3119_v36  ;;  %v3161_v24 = vmul.f32 %v11234_v44, %v11172_v32  ;;  %v11264_v14 = vadd.f32 %v11261_v50, %v2869_v21  ;;  %v8488_v61 = vmul.f32 -1.442695, %v11232_v51  ;;  %vm11276_vm6 = vmor %vm3135_vm1, %vm3136_vm4 }
 0x1b3   : > { %v3147_v28 = vsub.f32 1.0, %v3146_v25  ;;  %v2353_v39 = vmul.f32 %v10569_v2, %v11137_v19  ;;  %v11270_v6 = vmul.f32 %v1669_v53, %v16117_v38  ;;  %v11272_v63 = vadd.f32 1.0, %v9372_v57 }
 0x1b4   : > { %v9374_v17 = vpop.eup %9373  ;;  %vm3125_vm5 = vcmp.eq.f32.partialorder %v3124_v27, 8.507059e+37  ;;  %vm11280_vm7 = vcmp.eq.f32.partialorder %v3139_v8, 8.507059e+37  ;;  %v3142_v23 = vor.u32 1.1754944e-38, %v3141_v13  ;;  %v2288_v25 = vadd.f32 %v2256_v7, %v2191_v5  ;;  %v11294_v13 = vpop.f32.mrf.mxu0  ;;  %v16122_v7 = vld [vmem:[#allocation35_spill] sm:$0xff] }
 0x1b5   : > { %v3128_v31 = vsel %vm3125_vm5, %v3127_v43, %v3123_v48  ;;  %v3138_v57 = vsel %vm11276_vm6, %v11142_v54, %v3134_v34  ;;  %v2384_v53 = vadd.f32 %v2352_v55, %v2287_v18  ;;  %2001 = vst [vmem:[#allocation2 + $0xc9] sm:$0xff] %v11270_v6  ;;  %v11289_v0 = vadd.f32 %v10890_v4, %v1268_v40 }
 0x1b6   : > { %v3162_v27 = vsub.f32 1.0, %v3161_v24  ;;  %v2449_v8 = vmul.f32 %v10589_v26, %v10821_v33  ;;  %9375 = vpow2.f32 %v8488_v61  ;;  %v8489_v38 = vmul.f32 -1.442695, %v11264_v14 }
 0x1b7   : > { %v3148_v43 = vmul.f32 %v11208_v49, %v3147_v28  ;;  %v2385_v5 = vadd.f32 %v2353_v39, %v2288_v25  ;;  %9377 = vrcp.f32 %v11272_v63  ;;  %v11298_v54 = vadd.f32 1.0, %v9374_v17 }
 0x1b8   : > { %v3143_v40 = vsel %vm11280_vm7, %v3142_v23, %v3138_v57  ;;  %v11303_v34 = vmul.f32 %v3128_v31, %v16122_v7  ;;  %v2063_v18 = vmul.f32 %v10360_v41, %v10878_v3  ;;  %v2160_v55 = vmul.f32 %v10364_v42, %v10821_v33  ;;  %v11317_v3 = vld [vmem:[#allocation2 + $0xb0] sm:$0xff] }
 0x1b9   : > { %v2481_v48 = vadd.f32 %v2449_v8, %v2384_v53  ;;  %v2450_v24 = vmul.f32 %v10589_v26, %v10997_v10  ;;  %v2546_v61 = vmul.f32 %v10592_v30, %v11153_v56  ;;  %v8466_v28 = vmul.f32 -1.442695, %v11289_v0 }
 0x1ba   : > { %16123 = vst [vmem:[#allocation36_spill] sm:$0xff] %v11303_v34  ;;  %vm3151_vm8 = vweird.f32 %v11208_v49  ;;  %v3156_v39 = vand.u32 2147483648, %v11151_v35  ;;  %v3163_v17 = vmul.f32 %v11234_v44, %v3162_v27  ;;  %9379 = vpow2.f32 %v8489_v38 }
 0x1bb   : > { %v3149_v33 = vadd.f32 %v11208_v49, %v3148_v43  ;;  %v2482_v36 = vadd.f32 %v2450_v24, %v2385_v5  ;;  %v2644_v21 = vmul.f32 %v10599_v60, %v11081_v1  ;;  %9381 = vrcp.f32 %v11298_v54 }
 0x1bc   : > { %v9376_v23 = vpop.eup %9375  ;;  %v3604_v25 = vadd.f32 %v11188_v16, %v11303_v34  ;;  %vm3150_vm9 = vweird.f32 %v11151_v35  ;;  %v3154_v31 = vand.u32 2147483647, %v11151_v35  ;;  %v11327_v57 = vadd.f32 %v2160_v55, %v2063_v18  ;;  %v11329_v53 = vld [vmem:[#allocation2 + $0xca] sm:$0xff]  ;;  %v11363_v34 = vpop.f32.mrf.mxu0 }
 0x1bd   : > { %16124 = vst [vmem:[#allocation35_spill] sm:$0xff] %v11329_v53  ;;  %v11331_v27 = vpop.eup %9377  ;;  %v2547_v8 = vmul.f32 %v10592_v30, %v11048_v9  ;;  %v2578_v38 = vadd.f32 %v2546_v61, %v2481_v48  ;;  %v2645_v43 = vmul.f32 %v10599_v60, %v11317_v3  ;;  %9383 = vpow2.f32 %v8466_v28  ;;  %vm11343_vm10 = vmor %vm3150_vm9, %vm3151_vm8  ;;  %v11352_v18 = vld [vmem:[#allocation2 + $0xaa] sm:$0xff] }
 0x1be   : > { %4892 = vst [vmem:[#allocation2 + $0xd1] sm:$0x1] %v10885_v15  ;;  %v11339_v16 = vmul.f32 %v3143_v40, %v10976_v22  ;;  %v11348_v5 = vadd.f32 %v11234_v44, %v3163_v17  ;;  %vm3166_vm11 = vweird.f32 %v11234_v44  ;;  %v3171_v7 = vand.u32 2147483648, %v11172_v32 }
 0x1bf   : > { %v3153_v22 = vsel %vm11343_vm10, %v11208_v49, %v3149_v33  ;;  %v3157_v40 = vor.u32 1.1754944e-38, %v3156_v39  ;;  %v2579_v55 = vadd.f32 %v2547_v8, %v2482_v36  ;;  %v2676_v48 = vadd.f32 %v2644_v21, %v2578_v38  ;;  %v11376_v33 = vld [vmem:[%s10103_s21 + $0x8] ss:$0 sm:$0xff] }
 0x1c0   : > { %16125 = vst [vmem:[#allocation39_spill] sm:$0xff] %v11339_v16  ;;  %v9380_v24 = vpop.eup %9379  ;;  %vm3165_vm12 = vweird.f32 %v11172_v32  ;;  %v3169_v61 = vand.u32 2147483647, %v11172_v32  ;;  %v11359_v28 = vadd.f32 1.0, %v9376_v23  ;;  %v1672_v17 = vmul.f32 %v11331_v27, %v11272_v63 }
 0x1c1   : > { %v11365_v58 = vpop.eup %9381  ;;  %vm3155_vm13 = vcmp.eq.f32.partialorder %v3154_v31, 8.507059e+37  ;;  %vm11369_vm14 = vmor %vm3165_vm12, %vm3166_vm11  ;;  %v2741_v39 = vmul.f32 %v10622_v62, %v11021_v47  ;;  %v2677_v32 = vadd.f32 %v2645_v43, %v2579_v55  ;;  %v2838_v36 = vmul.f32 %v11376_v33, %v11352_v18 }
 0x1c2   : > { %v11381_v21 = vadd.f32 %v3604_v25, %v11339_v16  ;;  %v3158_v23 = vsel %vm3155_vm13, %v3157_v40, %v3153_v22  ;;  %v3168_v31 = vsel %vm11369_vm14, %v11234_v44, %v11348_v5  ;;  %v3172_v8 = vor.u32 1.1754944e-38, %v3171_v7 }
 0x1c3   : > { %v9384_v38 = vpop.eup %9383  ;;  %v2064_v35 = vmul.f32 %v10360_v41, %v11137_v19  ;;  %v11389_v43 = vadd.f32 1.0, %v9380_v24  ;;  %v2773_v55 = vadd.f32 %v2741_v39, %v2676_v48  ;;  %v2742_v53 = vmul.f32 %v10622_v62, %v11121_v20 }
 0x1c4   : > { %vm11393_vm15 = vcmp.eq.f32.partialorder %v3169_v61, 8.507059e+37  ;;  %v2257_v22 = vmul.f32 %v10371_v45, %v11153_v56  ;;  %9385 = vrcp.f32 %v11359_v28  ;;  %v1673_v44 = vsub.f32 1.0, %v1672_v17 }
 0x1c5   : > { %v1687_v5 = vmul.f32 %v11365_v58, %v11298_v54  ;;  %v2774_v19 = vadd.f32 %v2742_v53, %v2677_v32  ;;  %v2870_v7 = vadd.f32 %v2838_v36, %v2773_v55  ;;  %v1680_v40 = vand.u32 2147483647, %v11272_v63  ;;  %v11417_v36 = vpop.f32.mrf.mxu0 }
 0x1c6   : > { %v1682_v48 = vand.u32 2147483648, %v11272_v63  ;;  %v1674_v24 = vmul.f32 %v11331_v27, %v1673_v44  ;;  %vm1677_vm0 = vweird.f32 %v11331_v27  ;;  %v11406_v49 = vadd.f32 1.0, %v9384_v38 }
 0x1c7   : > { %v1688_v61 = vsub.f32 1.0, %v1687_v5  ;;  %9387 = vrcp.f32 %v11389_v43  ;;  %v2839_v56 = vmul.f32 %v11376_v33, %v11181_v11  ;;  %vm1676_vm1 = vweird.f32 %v11272_v63 }
 0x1c8   : > { %v1697_v53 = vand.u32 2147483648, %v11298_v54  ;;  %v1675_v17 = vadd.f32 %v11331_v27, %v1674_v24  ;;  %vm1692_vm2 = vweird.f32 %v11365_v58  ;;  %v1695_v32 = vand.u32 2147483647, %v11298_v54  ;;  %vm1678_vm3 = vmor %vm1676_vm1, %vm1677_vm0 }
 0x1c9   : > { %v1689_v39 = vmul.f32 %v11365_v58, %v1688_v61  ;;  %v2871_v38 = vadd.f32 %v2839_v56, %v2774_v19  ;;  %v11420_v55 = vadd.f32 %v11261_v50, %v2870_v7  ;;  %v1683_v44 = vor.u32 1.1754944e-38, %v1682_v48 }
 0x1ca   : > { %9389 = vrcp.f32 %v11406_v49  ;;  %v11423_v63 = vpop.eup %9385  ;;  %v1679_v5 = vsel %vm1678_vm3, %v11331_v27, %v1675_v17  ;;  %vm1681_vm4 = vcmp.eq.f32.partialorder %v1680_v40, 8.507059e+37  ;;  %vm1691_vm5 = vweird.f32 %v11298_v54 }
 0x1cb   : > { %v1690_v24 = vadd.f32 %v11365_v58, %v1689_v39  ;;  %v2161_v61 = vmul.f32 %v10364_v42, %v10997_v10  ;;  %v2354_v19 = vmul.f32 %v10569_v2, %v11081_v1  ;;  %v1684_v7 = vsel %vm1681_vm4, %v1683_v44, %v1679_v5  ;;  %vm1693_vm6 = vmor %vm1691_vm5, %vm1692_vm2 }
 0x1cc   : > { %v1698_v48 = vor.u32 1.1754944e-38, %v1697_v53  ;;  %v11435_v56 = vmul.f32 %v3158_v23, %v11036_v52  ;;  %v11438_v27 = vmul.f32 %v1684_v7, %v11158_v29  ;;  %vm1696_vm7 = vcmp.eq.f32.partialorder %v1695_v32, 8.507059e+37 }
 0x1cd   : > { %v1694_v40 = vsel %vm1693_vm6, %v11365_v58, %v1690_v24  ;;  %v11441_v54 = vpop.eup %9387  ;;  %v3173_v10 = vsel %vm11393_vm15, %v3172_v8, %v3168_v31  ;;  %v2193_v17 = vadd.f32 %v2161_v61, %v2064_v35  ;;  %v2289_v39 = vadd.f32 %v2257_v22, %v11327_v57  ;;  %v11472_v32 = vpop.f32.mrf.mxu0 }
 0x1ce   : > { %16132 = vst [vmem:[#allocation40_spill] sm:$0xff] %v11435_v56  ;;  %v1699_v44 = vsel %vm1696_vm7, %v1698_v48, %v1694_v40  ;;  %v3176_v53 = vmul.f32 %v11423_v63, %v11359_v28  ;;  %v2065_v52 = vmul.f32 %v10360_v41, %v11081_v1  ;;  %v11451_v29 = vadd.f32 %v11261_v50, %v2871_v38 }
 0x1cf   : > { %v8490_v58 = vmul.f32 -1.442695, %v11420_v55  ;;  %2002 = vst [vmem:[#allocation2 + $0xd9] sm:$0xff] %v11438_v27  ;;  %v2258_v31 = vmul.f32 %v10371_v45, %v11048_v9  ;;  %v2386_v57 = vadd.f32 %v2354_v19, %v2289_v39  ;;  %v11460_v8 = vmul.f32 %v1699_v44, %v11185_v59 }
 0x1d0   : > { %v11455_v23 = vpop.eup %9389  ;;  %v11464_v35 = vadd.f32 %v10890_v4, %v11294_v13  ;;  %v3191_v1 = vmul.f32 %v11441_v54, %v11389_v43  ;;  %v2162_v25 = vmul.f32 %v10364_v42, %v11021_v47  ;;  %v11475_v9 = vmul.f32 %v3173_v10, %v11060_v46 }
 0x1d1   : > { %v1702_v22 = vmul.f32 %v11455_v23, %v11406_v49  ;;  %v11479_v59 = vadd.f32 %v11381_v21, %v11435_v56  ;;  %v2290_v13 = vadd.f32 %v2258_v31, %v2193_v17  ;;  %v2451_v38 = vmul.f32 %v10589_v26, %v11021_v47  ;;  %2003 = vst [vmem:[#allocation2 + $0xe1] sm:$0xff] %v11460_v8 }
 0x1d2   : > { %16133 = vst [vmem:[#allocation41_spill] sm:$0xff] %v11475_v9  ;;  %v3177_v5 = vsub.f32 1.0, %v3176_v53  ;;  %v2194_v24 = vadd.f32 %v2162_v25, %v2065_v52  ;;  %9391 = vpow2.f32 %v8490_v58  ;;  %v8491_v61 = vmul.f32 -1.442695, %v11451_v29 }
 0x1d3   : > { %v2483_v19 = vadd.f32 %v2451_v38, %v2386_v57  ;;  %v2163_v46 = vmul.f32 %v10364_v42, %v11121_v20  ;;  %v2355_v7 = vmul.f32 %v10569_v2, %v11317_v3  ;;  %v8467_v21 = vmul.f32 -1.442695, %v11464_v35 }
 0x1d4   : > { %v3184_v48 = vand.u32 2147483647, %v11359_v28  ;;  %v3186_v47 = vand.u32 2147483648, %v11359_v28  ;;  %v3192_v40 = vsub.f32 1.0, %v3191_v1  ;;  %v1703_v10 = vsub.f32 1.0, %v1702_v22 }
 0x1d5   : > { %v2066_v17 = vmul.f32 %v10360_v41, %v11317_v3  ;;  %v2259_v39 = vmul.f32 %v10371_v45, %v11352_v18  ;;  %v2452_v44 = vmul.f32 %v10589_v26, %v11121_v20  ;;  %v11502_v52 = vadd.f32 %v10890_v4, %v11363_v34 }
 0x1d6   : > { %v11498_v53 = vld [vmem:[#allocation2 + $0xd8] sm:$0xff]  ;;  %v3178_v58 = vmul.f32 %v11423_v63, %v3177_v5  ;;  %9393 = vpow2.f32 %v8491_v61  ;;  %v11507_v31 = vmul.f32 %v10364_v42, %v11166_v37  ;;  %v11511_v3 = vmul.f32 %v10589_v26, %v11166_v37  ;;  %v11529_v61 = vpop.f32.mrf.mxu0 }
 0x1d7   : > { %4877 = vst [vmem:[#allocation2 + $0xd8] sm:$0x1] %v10885_v15  ;;  %vm3180_vm8 = vweird.f32 %v11359_v28  ;;  %v2387_v20 = vadd.f32 %v2355_v7, %v2290_v13  ;;  %v11517_v34 = vmul.f32 %v10622_v62, %v11166_v37  ;;  %9395 = vpow2.f32 %v8467_v21 }
 0x1d8   : > { %v9392_v57 = vpop.eup %9391  ;;  %vm11519_vm9 = vcmp.eq.f32.partialorder %v3184_v48, 8.507059e+37  ;;  %v3187_v25 = vor.u32 1.1754944e-38, %v3186_v47  ;;  %v3193_v22 = vmul.f32 %v11441_v54, %v3192_v40  ;;  %v2548_v38 = vmul.f32 %v10592_v30, %v11352_v18  ;;  %v11526_v5 = vld [vmem:[#allocation2 + $0xe2] sm:$0xff] }
 0x1d9   : > { %v1704_v13 = vmul.f32 %v11455_v23, %v1703_v10  ;;  %vm3195_vm10 = vweird.f32 %v11389_v43  ;;  %v2195_v37 = vadd.f32 %v2163_v46, %v2066_v17  ;;  %v2291_v7 = vadd.f32 %v2259_v39, %v2194_v24  ;;  %4893 = vst [vmem:[#allocation2 + $0xe9] sm:$0x1] %v10885_v15 }
 0x1da   : > { %v8468_v21 = vmul.f32 -1.442695, %v11502_v52  ;;  %v3179_v48 = vadd.f32 %v11423_v63, %v3178_v58  ;;  %vm3181_vm11 = vweird.f32 %v11423_v63  ;;  %v3199_v18 = vand.u32 2147483647, %v11389_v43 }
 0x1db   : > { %v3201_v47 = vand.u32 2147483648, %v11389_v43  ;;  %vm3196_vm12 = vweird.f32 %v11441_v54  ;;  %v2484_v40 = vadd.f32 %v2452_v44, %v2387_v20  ;;  %v11539_v10 = vadd.f32 1.0, %v9392_v57  ;;  %vm11548_vm14 = vmor %vm3180_vm8, %vm3181_vm11 }
 0x1dc   : > { %v1712_v46 = vand.u32 2147483648, %v11406_v49  ;;  %v9394_v24 = vpop.eup %9393  ;;  %v3194_v15 = vadd.f32 %v11441_v54, %v3193_v22  ;;  %v1705_v17 = vadd.f32 %v11455_v23, %v1704_v13  ;;  %vm1707_vm13 = vweird.f32 %v11455_v23  ;;  %vm11563_vm15 = vmor %vm3195_vm10, %vm3196_vm12 }
 0x1dd   : > { %v1710_v39 = vand.u32 2147483647, %v11406_v49  ;;  %v9396_v58 = vpop.eup %9395  ;;  %v2580_v44 = vadd.f32 %v2548_v38, %v2483_v19  ;;  %v2356_v20 = vmul.f32 %v10569_v2, %v11216_v12  ;;  %v2646_v57 = vmul.f32 %v10599_v60, %v11216_v12 }
 0x1de   : > { %9397 = vpow2.f32 %v8468_v21  ;;  %v3183_v22 = vsel %vm11548_vm14, %v11423_v63, %v3179_v48  ;;  %v3202_v19 = vor.u32 1.1754944e-38, %v3201_v47  ;;  %v2067_v38 = vmul.f32 %v10360_v41, %v11216_v12 }
 0x1df   : > { %vm1706_vm0 = vweird.f32 %v11406_v49  ;;  %v11570_v13 = vadd.f32 1.0, %v9394_v24  ;;  %9399 = vrcp.f32 %v11539_v10  ;;  %v1713_v63 = vor.u32 1.1754944e-38, %v1712_v46 }
 0x1e0   : > { %vm1708_vm1 = vmor %vm1706_vm0, %vm1707_vm13  ;;  %v11577_v43 = vadd.f32 %v10890_v4, %v11417_v36  ;;  %v3198_v56 = vsel %vm11563_vm15, %v11441_v54, %v3194_v15  ;;  %vm1711_vm2 = vcmp.eq.f32.partialorder %v1710_v39, 8.507059e+37  ;;  %v11583_v49 = vadd.f32 1.0, %v9396_v58  ;;  %v11593_v54 = vpop.f32.mrf.mxu0 }
 0x1e1   : > { %v1709_v12 = vsel %vm1708_vm1, %v11455_v23, %v1705_v17  ;;  %v3188_v21 = vsel %vm11519_vm9, %v3187_v25, %v3183_v22  ;;  %v2388_v48 = vadd.f32 %v2356_v20, %v2291_v7  ;;  %v2678_v47 = vadd.f32 %v2646_v57, %v2580_v44  ;;  %v11598_v25 = vld [vmem:[#allocation2 + $0xc2] sm:$0xff] }
 0x1e2   : > { %v1714_v24 = vsel %vm1711_vm2, %v1713_v63, %v1709_v12  ;;  %vm3200_vm3 = vcmp.eq.f32.partialorder %v3199_v18, 8.507059e+37  ;;  %v2260_v4 = vmul.f32 %v10371_v45, %v11181_v11  ;;  %9401 = vrcp.f32 %v11583_v49  ;;  %v2035_v17 = vld [vmem:[#allocation2 + $0xc8] sm:$0xff] }
 0x1e3   : > { %v11590_v36 = vmul.f32 %v1714_v24, %v11289_v0  ;;  %v3203_v46 = vsel %vm3200_vm3, %v3202_v19, %v3198_v56  ;;  %v2549_v1 = vmul.f32 %v10592_v30, %v11181_v11  ;;  %9403 = vrcp.f32 %v11570_v13  ;;  %v16143_v56 = vld [vmem:[#allocation35_spill] sm:$0xff] }
 0x1e4   : > { %v9398_v23 = vpop.eup %9397  ;;  %v8469_v7 = vmul.f32 -1.442695, %v11577_v43  ;;  %v3607_v18 = vadd.f32 %v11479_v59, %v11475_v9  ;;  %v11604_v0 = vmul.f32 %v3188_v21, %v11232_v51  ;;  %v2292_v15 = vadd.f32 %v2260_v4, %v2195_v37 }
 0x1e5   : > { %16140 = vst [vmem:[#allocation42_spill] sm:$0xff] %v11590_v36  ;;  %v11607_v39 = vpop.eup %9399  ;;  %v2581_v11 = vadd.f32 %v2549_v1, %v2484_v40  ;;  %v11610_v58 = vadd.f32 %v11507_v31, %v2067_v38  ;;  %v11613_v44 = vadd.f32 %v11511_v3, %v2388_v48  ;;  %v2775_v20 = vadd.f32 %v11517_v34, %v2678_v47  ;;  %v11631_v3 = vld [vmem:[%s10098_s17] ss:$0 sm:$0xff] }
 0x1e6   : > { %16141 = vst [vmem:[#allocation43_spill] sm:$0xff] %v11604_v0  ;;  %v11617_v59 = vmul.f32 %v3203_v46, %v11264_v14  ;;  %v2165_v51 = vmul.f32 %v10364_v42, %v11270_v6  ;;  %v2840_v37 = vmul.f32 %v11376_v33, %v11598_v25  ;;  %v11623_v57 = vadd.f32 1.0, %v9398_v23 }
 0x1e7   : > { %2004 = vst [vmem:[#allocation2 + $0xf1] sm:$0xff] %v11590_v36  ;;  %v2068_v40 = vmul.f32 %v10360_v41, %v2035_v17  ;;  %v11628_v31 = vmul.f32 %v10589_v26, %v11270_v6  ;;  %9405 = vpow2.f32 %v8469_v7  ;;  %v11635_v14 = vadd.f32 %v11631_v3, %v11472_v32 }
 0x1e8   : > { %16142 = vst [vmem:[#allocation44_spill] sm:$0xff] %v11617_v59  ;;  %v9402_v34 = vpop.eup %9401  ;;  %v3608_v22 = vadd.f32 %v3607_v18, %v11604_v0  ;;  %v3206_v28 = vmul.f32 %v11607_v39, %v11539_v10  ;;  %v2647_v19 = vmul.f32 %v10599_v60, %v2035_v17  ;;  %9407 = vrcp.f32 %v11623_v57 }
 0x1e9   : > { %v11642_v38 = vpop.eup %9403  ;;  %v11646_v63 = vmul.f32 %v10371_v45, %v11598_v25  ;;  %v11650_v32 = vmul.f32 %v10371_v45, %v16143_v56  ;;  %v2744_v12 = vmul.f32 %v10622_v62, %v11270_v6  ;;  %v1717_v21 = vmul.f32 %v9402_v34, %v11583_v49 }
 0x1ea   : > { %v11656_v48 = vadd.f32 %v3608_v22, %v11617_v59  ;;  %v2357_v47 = vmul.f32 %v10569_v2, %v2035_v17  ;;  %v2872_v24 = vadd.f32 %v2840_v37, %v2775_v20  ;;  %v8470_v4 = vmul.f32 -1.442695, %v11635_v14  ;;  %v11668_v59 = vld [vmem:[#allocation2 + $0x198] sm:$0xff]  ;;  %v1285_v20 = vpop.f32.mrf.mxu0 }
 0x1eb   : > { %v11662_v1 = vadd.f32 %v2165_v51, %v2068_v40  ;;  %v1718_v18 = vsub.f32 1.0, %v1717_v21  ;;  %v3207_v6 = vsub.f32 1.0, %v3206_v28  ;;  %v3221_v0 = vmul.f32 %v11642_v38, %v11570_v13 }
 0x1ec   : > { %v2679_v22 = vadd.f32 %v2647_v19, %v2581_v11  ;;  %v1727_v17 = vand.u32 2147483648, %v11583_v49  ;;  %vm1722_vm4 = vweird.f32 %v9402_v34  ;;  %v1725_v51 = vand.u32 2147483647, %v11583_v49 }
 0x1ed   : > { %v9406_v37 = vpop.eup %9405  ;;  %v1719_v23 = vmul.f32 %v9402_v34, %v1718_v18  ;;  %9409 = vpow2.f32 %v8470_v4  ;;  %v11673_v21 = vadd.f32 %v2357_v47, %v2292_v15  ;;  %v11676_v28 = vadd.f32 %v11261_v50, %v2872_v24 }
 0x1ee   : > { %v11664_v7 = vld [vmem:[#allocation2 + $0xf0] sm:$0xff]  ;;  %v9408_v40 = vpop.eup %9407  ;;  %v11678_v11 = vadd.f32 1.0, %v9406_v37  ;;  %v11682_v19 = vadd.f32 %v11631_v3, %v11529_v61  ;;  %v2841_v46 = vmul.f32 %v11376_v33, %v16143_v56  ;;  %vm1721_vm5 = vweird.f32 %v11583_v49 }
 0x1ef   : > { %16144 = vst [vmem:[#allocation35_spill] sm:$0xff] %v11664_v7  ;;  %v1720_v18 = vadd.f32 %v9402_v34, %v1719_v23  ;;  %v1732_v4 = vmul.f32 %v9408_v40, %v11623_v57  ;;  %v3208_v15 = vmul.f32 %v11607_v39, %v3207_v6  ;;  %v2776_v47 = vadd.f32 %v2744_v12, %v2679_v22  ;;  %vm1723_vm6 = vmor %vm1721_vm5, %vm1722_vm4 }
 0x1f0   : > { %4878 = vst [vmem:[#allocation2 + $0xf0] sm:$0x1] %v11668_v59  ;;  %v1728_v24 = vor.u32 1.1754944e-38, %v1727_v17  ;;  %9411 = vrcp.f32 %v11678_v11  ;;  %vm3210_vm7 = vweird.f32 %v11539_v10  ;;  %v3222_v37 = vsub.f32 1.0, %v3221_v0 }
 0x1f1   : > { %16145 = vst [vmem:[#allocation45_spill] sm:$0xff] %v11676_v28  ;;  %v1724_v61 = vsel %vm1723_vm6, %v9402_v34, %v1720_v18  ;;  %vm1726_vm8 = vcmp.eq.f32.partialorder %v1725_v51, 8.507059e+37  ;;  %v1733_v9 = vsub.f32 1.0, %v1732_v4  ;;  %v8492_v16 = vmul.f32 -1.442695, %v11676_v28 }
 0x1f2   : > { %v1729_v23 = vsel %vm1726_vm8, %v1728_v24, %v1724_v61  ;;  %v1742_v49 = vand.u32 2147483648, %v11623_v57  ;;  %v8471_v7 = vmul.f32 -1.442695, %v11682_v19  ;;  %vm1737_vm9 = vweird.f32 %v9408_v40  ;;  %v11703_v18 = vpop.f32.mrf.mxu0 }
 0x1f3   : > { %v9410_v36 = vpop.eup %9409  ;;  %v11695_v12 = vmul.f32 %v1729_v23, %v11464_v35  ;;  %v1734_v6 = vmul.f32 %v9408_v40, %v1733_v9  ;;  %v1740_v22 = vand.u32 2147483647, %v11623_v57  ;;  %v3231_v0 = vand.u32 2147483648, %v11570_v13 }
 0x1f4   : > { %v2550_v34 = vmul.f32 %v10592_v30, %v11598_v25  ;;  %v2873_v17 = vadd.f32 %v2841_v46, %v2776_v47  ;;  %v11701_v51 = vadd.f32 1.0, %v9410_v36  ;;  %v3223_v4 = vmul.f32 %v11642_v38, %v3222_v37 }
 0x1f5   : > { %2005 = vst [vmem:[#allocation2 + $0xf9] sm:$0xff] %v11695_v12  ;;  %v1735_v35 = vadd.f32 %v9408_v40, %v1734_v6  ;;  %vm1736_vm10 = vweird.f32 %v11623_v57  ;;  %9413 = vpow2.f32 %v8471_v7  ;;  %v3209_v24 = vadd.f32 %v11607_v39, %v3208_v15 }
 0x1f6   : > { %v11708_v9 = vpop.eup %9411  ;;  %vm3211_vm11 = vweird.f32 %v11607_v39  ;;  %9415 = vpow2.f32 %v8492_v16  ;;  %vm1738_vm12 = vmor %vm1736_vm10, %vm1737_vm9  ;;  %v1743_v36 = vor.u32 1.1754944e-38, %v1742_v49  ;;  %vm1741_vm13 = vcmp.eq.f32.partialorder %v1740_v22, 8.507059e+37 }
 0x1f7   : > { %v1739_v25 = vsel %vm1738_vm12, %v9408_v40, %v1735_v35  ;;  %v1747_v46 = vmul.f32 %v11708_v9, %v11678_v11  ;;  %v11717_v47 = vadd.f32 %v11631_v3, %v11593_v54  ;;  %vm3226_vm14 = vweird.f32 %v11642_v38  ;;  %vm11735_vm15 = vmor %vm3210_vm7, %vm3211_vm11 }
 0x1f8   : > { %v1744_v57 = vsel %vm1741_vm13, %v1743_v36, %v1739_v25  ;;  %9417 = vrcp.f32 %v11701_v51  ;;  %v11722_v7 = vadd.f32 %v11631_v3, %v1285_v20  ;;  %v3224_v16 = vadd.f32 %v11642_v38, %v3223_v4 }
 0x1f9   : > { %v11726_v40 = vadd.f32 %v11261_v50, %v2873_v17  ;;  %v11729_v15 = vmul.f32 %v1744_v57, %v11502_v52  ;;  %v1748_v37 = vsub.f32 1.0, %v1747_v46  ;;  %v16149_v20 = vand.u32 2147483647, %v11539_v10 }
 0x1fa   : > { %vm3225_vm1 = vweird.f32 %v11570_v13  ;;  %v11748_v52 = vadd.f32 %v11646_v63, %v11610_v58  ;;  %v2551_v23 = vmul.f32 %v10592_v30, %v16143_v56  ;;  %v3213_v6 = vsel %vm11735_vm15, %v11607_v39, %v3209_v24  ;;  %v11776_v24 = vpop.f32.mrf.mxu0 }
 0x1fb   : > { %16146 = vst [vmem:[#allocation46_spill] sm:$0xff] %v11726_v40  ;;  %vm11741_vm0 = vcmp.eq.f32.partialorder %v16149_v20, 8.507059e+37  ;;  %v9414_v49 = vpop.eup %9413  ;;  %v3229_v22 = vand.u32 2147483647, %v11570_v13  ;;  %v2486_v17 = vadd.f32 %v11628_v31, %v11673_v21  ;;  %v8472_v4 = vmul.f32 -1.442695, %v11717_v47  ;;  %vm11764_vm2 = vmor %vm3225_vm1, %vm3226_vm14 }
 0x1fc   : > { %2006 = vst [vmem:[#allocation2 + $0x109] sm:$0xff] %v11729_v15  ;;  %v9416_v35 = vpop.eup %9415  ;;  %v16152_v58 = vand.u32 2147483648, %v11539_v10  ;;  %v11770_v13 = vadd.f32 %v11650_v32, %v11662_v1  ;;  %v11772_v39 = vld [vmem:[#allocation2 + $0xfa] sm:$0xff]  ;;  %v1749_v31 = vmul.f32 %v11708_v9, %v1748_v37  ;;  %v8473_v21 = vmul.f32 -1.442695, %v11722_v7 }
 0x1fd   : > { %v3228_v10 = vsel %vm11764_vm2, %v11642_v38, %v3224_v16  ;;  %v3232_v36 = vor.u32 1.1754944e-38, %v3231_v0  ;;  %v2582_v25 = vadd.f32 %v2550_v34, %v11613_v44  ;;  %v8493_v46 = vmul.f32 -1.442695, %v11726_v40  ;;  %4894 = vst [vmem:[#allocation2 + $0x101] sm:$0x1] %v11668_v59  ;;  %v11800_v20 = vld [vmem:[#allocation2 + $0xe0] sm:$0xff] }
 0x1fe   : > { %v3217_v63 = vor.u32 1.1754944e-38, %v16152_v58  ;;  %v11784_v32 = vpop.eup %9417  ;;  %vm1752_vm3 = vweird.f32 %v11708_v9  ;;  %v1757_v57 = vand.u32 2147483648, %v11678_v11  ;;  %v11790_v37 = vadd.f32 1.0, %v9414_v49 }
 0x1ff   : > { %vm3230_vm4 = vcmp.eq.f32.partialorder %v3229_v22, 8.507059e+37  ;;  %v2583_v38 = vadd.f32 %v2551_v23, %v2486_v17  ;;  %v1755_v0 = vand.u32 2147483647, %v11678_v11  ;;  %9419 = vpow2.f32 %v8472_v4 }
 0x200   : > { %v3218_v1 = vsel %vm11741_vm0, %v3217_v63, %v3213_v6  ;;  %v3233_v44 = vsel %vm3230_vm4, %v3232_v36, %v3228_v10  ;;  %v1750_v34 = vadd.f32 %v11708_v9, %v1749_v31  ;;  %vm1751_vm5 = vweird.f32 %v11678_v11  ;;  %v11833_v31 = vld [vmem:[#allocation2 + $0xda] sm:$0xff] }
 0x201   : > { %9421 = vpow2.f32 %v8473_v21  ;;  %v11796_v16 = vmul.f32 %v3218_v1, %v11420_v55  ;;  %v11798_v54 = vadd.f32 1.0, %v9416_v35  ;;  %vm1753_vm6 = vmor %vm1751_vm5, %vm1752_vm3  ;;  %v1762_v61 = vmul.f32 %v11784_v32, %v11701_v51 }
 0x202   : > { %9423 = vpow2.f32 %v8493_v46  ;;  %v2648_v23 = vmul.f32 %v10599_v60, %v11498_v53  ;;  %v1754_v11 = vsel %vm1753_vm6, %v11708_v9, %v1750_v34  ;;  %v1758_v55 = vor.u32 1.1754944e-38, %v1757_v57  ;;  %v11828_v58 = vpop.f32.mrf.mxu0 }
 0x203   : > { %16155 = vst [vmem:[#allocation47_spill] sm:$0xff] %v11796_v16  ;;  %v11808_v49 = vld [vmem:[#allocation2 + $0x108] sm:$0xff]  ;;  %9425 = vrcp.f32 %v11790_v37  ;;  %v11813_v6 = vmul.f32 %v3233_v44, %v11451_v29  ;;  %v11817_v22 = vmul.f32 %v10364_v42, %v11438_v27  ;;  %v11821_v17 = vmul.f32 %v10589_v26, %v11438_v27 }
 0x204   : > { %16156 = vst [vmem:[#allocation48_spill] sm:$0xff] %v11798_v54  ;;  %vm1756_vm7 = vcmp.eq.f32.partialorder %v1755_v0, 8.507059e+37  ;;  %v2745_v9 = vmul.f32 %v10622_v62, %v11438_v27  ;;  %v2649_v4 = vmul.f32 %v10599_v60, %v11800_v20  ;;  %v1763_v29 = vsub.f32 1.0, %v1762_v61 }
 0x205   : > { %16157 = vst [vmem:[#allocation49_spill] sm:$0xff] %v11813_v6  ;;  %v1759_v35 = vsel %vm1756_vm7, %v1758_v55, %v1754_v11  ;;  %v9420_v63 = vpop.eup %9419  ;;  %v3610_v56 = vadd.f32 %v11656_v48, %v11796_v16  ;;  %9427 = vrcp.f32 %v11798_v54  ;;  %v1772_v27 = vand.u32 2147483648, %v11701_v51 }
 0x206   : > { %4879 = vst [vmem:[#allocation2 + $0x108] sm:$0x1] %v11668_v59  ;;  %v11836_v21 = vmul.f32 %v1759_v35, %v11577_v43  ;;  %v2680_v36 = vadd.f32 %v2648_v23, %v2582_v25  ;;  %v1764_v46 = vmul.f32 %v11784_v32, %v1763_v29  ;;  %vm1767_vm8 = vweird.f32 %v11784_v32 }
 0x207   : > { %v9422_v10 = vpop.eup %9421  ;;  %v1770_v1 = vand.u32 2147483647, %v11701_v51  ;;  %v11843_v48 = vadd.f32 %v3610_v56, %v11813_v6  ;;  %v2167_v0 = vmul.f32 %v10364_v42, %v11460_v8  ;;  %v11849_v43 = vmul.f32 %v10589_v26, %v11460_v8 }
 0x208   : > { %v9424_v57 = vpop.eup %9423  ;;  %v2746_v25 = vmul.f32 %v10622_v62, %v11460_v8  ;;  %2007 = vst [vmem:[#allocation2 + $0x111] sm:$0xff] %v11836_v21  ;;  %v2681_v34 = vadd.f32 %v2649_v4, %v2583_v38  ;;  %v2842_v61 = vmul.f32 %v11376_v33, %v11833_v31  ;;  %v1765_v23 = vadd.f32 %v11784_v32, %v1764_v46 }
 0x209   : > { %16158 = vst [vmem:[#allocation50_spill] sm:$0xff] %v11843_v48  ;;  %v11854_v44 = vpop.eup %9425  ;;  %vm1766_vm9 = vweird.f32 %v11701_v51  ;;  %v1773_v11 = vor.u32 1.1754944e-38, %v1772_v27  ;;  %v11862_v35 = vadd.f32 1.0, %v9420_v63  ;;  %v11864_v8 = vadd.f32 1.0, %v9422_v10 }
 0x20a   : > { %vm1768_vm10 = vmor %vm1766_vm9, %vm1767_vm8  ;;  %v1777_v55 = vmul.f32 %v11854_v44, %v11790_v37  ;;  %v2777_v29 = vadd.f32 %v2745_v9, %v2680_v36  ;;  %vm1771_vm11 = vcmp.eq.f32.partialorder %v1770_v1, 8.507059e+37  ;;  %v11869_v38 = vadd.f32 %v11631_v3, %v11703_v18 }
 0x20b   : > { %v1769_v56 = vsel %vm1768_vm10, %v11784_v32, %v1765_v23  ;;  %v11871_v4 = vpop.eup %9427  ;;  %v11873_v51 = vadd.f32 1.0, %v9424_v57  ;;  %9429 = vrcp.f32 %v11862_v35  ;;  %v2778_v63 = vadd.f32 %v2746_v25, %v2681_v34 }
 0x20c   : > { %16159 = vst [vmem:[#allocation51_spill] sm:$0xff] %v11871_v4  ;;  %v1774_v27 = vsel %vm1771_vm11, %v1773_v11, %v1769_v56  ;;  %v1778_v46 = vsub.f32 1.0, %v1777_v55  ;;  %v2874_v6 = vadd.f32 %v2842_v61, %v2777_v29  ;;  %9431 = vrcp.f32 %v11864_v8  ;;  %v11895_v61 = vpop.f32.mrf.mxu0 }
 0x20d   : > { %16160 = vst [vmem:[#allocation52_spill] sm:$0xff] %v11873_v51  ;;  %v11877_v10 = vmul.f32 %v1774_v27, %v11635_v14  ;;  %v2069_v9 = vmul.f32 %v10360_v41, %v11498_v53  ;;  %v2358_v36 = vmul.f32 %v10569_v2, %v11498_v53  ;;  %v3236_v1 = vmul.f32 %v11871_v4, %v11798_v54 }
 0x20e   : > { %v2843_v57 = vmul.f32 %v11376_v33, %v11526_v5  ;;  %v1779_v25 = vmul.f32 %v11854_v44, %v1778_v46  ;;  %v8474_v34 = vmul.f32 -1.442695, %v11869_v38  ;;  %9433 = vrcp.f32 %v11873_v51 }
 0x20f   : > { %v11890_v14 = vld [vmem:[#allocation2 + $0x112] sm:$0xff]  ;;  %2008 = vst [vmem:[#allocation2 + $0x121] sm:$0xff] %v11877_v10  ;;  %v2070_v53 = vmul.f32 %v10360_v41, %v11800_v20  ;;  %v2359_v23 = vmul.f32 %v10569_v2, %v11800_v20  ;;  %v1787_v33 = vand.u32 2147483648, %v11790_v37  ;;  %v11905_v55 = vadd.f32 %v11261_v50, %v2874_v6 }
 0x210   : > { %4895 = vst [vmem:[#allocation2 + $0x119] sm:$0x1] %v11668_v59  ;;  %v2875_v11 = vadd.f32 %v2843_v57, %v2778_v63  ;;  %vm1782_vm12 = vweird.f32 %v11854_v44  ;;  %v1785_v29 = vand.u32 2147483647, %v11790_v37  ;;  %v11910_v27 = vadd.f32 %v11817_v22, %v2069_v9 }
 0x211   : > { %16161 = vst [vmem:[#allocation53_spill] sm:$0xff] %v11905_v55  ;;  %v9430_v56 = vpop.eup %9429  ;;  %v11913_v46 = vadd.f32 %v2358_v36, %v11748_v52  ;;  %v11917_v20 = vmul.f32 %v10371_v45, %v11833_v31  ;;  %v11921_v63 = vmul.f32 %v10371_v45, %v11526_v5  ;;  %v3237_v57 = vsub.f32 1.0, %v3236_v1 }
 0x212   : > { %v11923_v6 = vpop.eup %9431  ;;  %v1780_v32 = vadd.f32 %v11854_v44, %v1779_v25  ;;  %vm1781_vm13 = vweird.f32 %v11790_v37  ;;  %9435 = vpow2.f32 %v8474_v34  ;;  %v11927_v22 = vadd.f32 %v2167_v0, %v2070_v53 }
 0x213   : > { %v2391_v52 = vadd.f32 %v2359_v23, %v11770_v13  ;;  %vm1783_vm14 = vmor %vm1781_vm13, %vm1782_vm12  ;;  %v1788_v9 = vor.u32 1.1754944e-38, %v1787_v33  ;;  %v1792_v36 = vmul.f32 %v9430_v56, %v11862_v35  ;;  %v11932_v18 = vadd.f32 %v11261_v50, %v2875_v11 }
 0x214   : > { %v8494_v16 = vmul.f32 -1.442695, %v11905_v55  ;;  %v1784_v1 = vsel %vm1783_vm14, %v11854_v44, %v1780_v32  ;;  %vm1786_vm15 = vcmp.eq.f32.partialorder %v1785_v29, 8.507059e+37  ;;  %v11936_v25 = vpop.eup %9433  ;;  %v11940_v37 = vmul.f32 %v10592_v30, %v11833_v31 }
 0x215   : > { %16162 = vst [vmem:[#allocation54_spill] sm:$0xff] %v11932_v18  ;;  %v1789_v13 = vsel %vm1786_vm15, %v1788_v9, %v1784_v1  ;;  %v1793_v34 = vsub.f32 1.0, %v1792_v36  ;;  %v1807_v53 = vmul.f32 %v11923_v6, %v11864_v8  ;;  %v3238_v50 = vmul.f32 %v11871_v4, %v3237_v57  ;;  %v1298_v1 = vpop.f32.mrf.mxu0 }
 0x216   : > { %16163 = vst [vmem:[#allocation55_spill] sm:$0xff] %v11936_v25  ;;  %v11942_v0 = vld [vmem:[#allocation2 + $0x120] sm:$0xff]  ;;  %v1800_v44 = vand.u32 2147483647, %v11862_v35  ;;  %v1802_v32 = vand.u32 2147483648, %v11862_v35  ;;  %v11952_v23 = vadd.f32 %v11631_v3, %v11776_v24  ;;  %v11955_v31 = vmul.f32 %v1789_v13, %v11682_v19 }
 0x217   : > { %4880 = vst [vmem:[#allocation2 + $0x120] sm:$0x1] %v11668_v59  ;;  %v1794_v33 = vmul.f32 %v9430_v56, %v1793_v34  ;;  %vm1797_vm0 = vweird.f32 %v9430_v56  ;;  %v1808_v11 = vsub.f32 1.0, %v1807_v53  ;;  %v3251_v57 = vmul.f32 %v11936_v25, %v11873_v51 }
 0x218   : > { %v9436_v29 = vpop.eup %9435  ;;  %v2488_v9 = vadd.f32 %v11849_v43, %v2391_v52  ;;  %9437 = vpow2.f32 %v8494_v16  ;;  %v8495_v36 = vmul.f32 -1.442695, %v11932_v18  ;;  %vm3240_vm1 = vweird.f32 %v11798_v54  ;;  %2009 = vst [vmem:[#allocation2 + $0x129] sm:$0xff] %v11955_v31 }
 0x219   : > { %v1795_v24 = vadd.f32 %v9430_v56, %v1794_v33  ;;  %vm1796_vm2 = vweird.f32 %v11862_v35  ;;  %v1815_v19 = vand.u32 2147483647, %v11864_v8  ;;  %v1817_v13 = vand.u32 2147483648, %v11864_v8 }
 0x21a   : > { %vm1798_vm3 = vmor %vm1796_vm2, %vm1797_vm0  ;;  %vm1801_vm4 = vcmp.eq.f32.partialorder %v1800_v44, 8.507059e+37  ;;  %v1803_v34 = vor.u32 1.1754944e-38, %v1802_v32  ;;  %v1809_v43 = vmul.f32 %v11923_v6, %v1808_v11  ;;  %vm1812_vm5 = vweird.f32 %v11923_v6 }
 0x21b   : > { %v1799_v16 = vsel %vm1798_vm3, %v9430_v56, %v1795_v24  ;;  %v11968_v52 = vadd.f32 1.0, %v9436_v29  ;;  %v8475_v53 = vmul.f32 -1.442695, %v11952_v23  ;;  %v11973_v33 = vadd.f32 %v11631_v3, %v11828_v58 }
 0x21c   : > { %9439 = vpow2.f32 %v8495_v36  ;;  %v1804_v35 = vsel %vm1801_vm4, %v1803_v34, %v1799_v16  ;;  %v1810_v18 = vadd.f32 %v11923_v6, %v1809_v43  ;;  %vm1811_vm6 = vweird.f32 %v11864_v8 }
 0x21d   : > { %v3252_v44 = vsub.f32 1.0, %v3251_v57  ;;  %v11978_v32 = vmul.f32 %v1804_v35, %v11717_v47  ;;  %vm1813_vm7 = vmor %vm1811_vm6, %vm1812_vm5  ;;  %v1818_v56 = vor.u32 1.1754944e-38, %v1817_v13  ;;  %9441 = vrcp.f32 %v11968_v52  ;;  %v1300_v16 = vpop.f32.mrf.mxu0 }
 0x21e   : > { %v9438_v11 = vpop.eup %9437  ;;  %v1814_v29 = vsel %vm1813_vm7, %v11923_v6, %v1810_v18  ;;  %vm1816_vm8 = vcmp.eq.f32.partialorder %v1815_v19, 8.507059e+37  ;;  %9443 = vpow2.f32 %v8475_v53  ;;  %v8476_v58 = vmul.f32 -1.442695, %v11973_v33 }
 0x21f   : > { %v11984_v36 = vadd.f32 %v11871_v4, %v3238_v50  ;;  %vm3241_vm9 = vweird.f32 %v11871_v4  ;;  %v2487_v47 = vadd.f32 %v11821_v17, %v11913_v46  ;;  %2010 = vst [vmem:[#allocation2 + $0x139] sm:$0xff] %v11978_v32  ;;  %v1819_v8 = vsel %vm1816_vm8, %v1818_v56, %v1814_v29  ;;  %v11992_v24 = vld [vmem:[#allocation2 + $0x12a] sm:$0xff] }
 0x220   : > { %v2553_v57 = vmul.f32 %v10592_v30, %v11526_v5  ;;  %v11995_v18 = vmul.f32 %v1819_v8, %v11722_v7  ;;  %9445 = vpow2.f32 %v8476_v58  ;;  %v11999_v6 = vadd.f32 %v11631_v3, %v11895_v61  ;;  %4896 = vst [vmem:[#allocation2 + $0x131] sm:$0x1] %v11668_v59  ;;  %vm12015_vm10 = vmor %vm3240_vm1, %vm3241_vm9  ;;  %v9069_v4 = vld [vmem:[%s10113_s29 + $0x28] sm:$0xff] }
 0x221   : > { %16164 = vst [vmem:[#allocation56_spill] sm:$0xff] %v11984_v36  ;;  %v16165_v50 = vand.u32 2147483648, %v11798_v54  ;;  %v3253_v17 = vmul.f32 %v11936_v25, %v3252_v44  ;;  %v12009_v5 = vadd.f32 %v11631_v3, %v1298_v1  ;;  %v16167_v61 = vmov 0  ;;  %v16170_v44 = vld [vmem:[#allocation42_spill] sm:$0xff] }
 0x222   : > { %v9440_v7 = vpop.eup %9439  ;;  %v16168_v61 = vsel %vm12015_vm10, 4294967295, %v16167_v61  ;;  %v2295_v13 = vadd.f32 %v11917_v20, %v11910_v27  ;;  %v12023_v34 = vadd.f32 %v11921_v63, %v11927_v22  ;;  %v2584_v43 = vadd.f32 %v11940_v37, %v2487_v47  ;;  %2011 = vst [vmem:[#allocation2 + $0x141] sm:$0xff] %v11995_v18  ;;  %v16171_v20 = vld [vmem:[#allocation35_spill] sm:$0xff] }
 0x223   : > { %v12003_v19 = vor.u32 1.1754944e-38, %v16165_v50  ;;  %16169 = vst [vmem:[#allocation58_spill] sm:$0xff] %v16168_v61  ;;  %v12026_v1 = vadd.f32 %v2553_v57, %v2488_v9  ;;  %v9442_v53 = vpop.eup %9441  ;;  %v2168_v27 = vmul.f32 %v10364_v42, %v16170_v44  ;;  %v2360_v63 = vmul.f32 %v10569_v2, %v16171_v20 }
 0x224   : > { %v2650_v22 = vmul.f32 %v10599_v60, %v16171_v20  ;;  %v9444_v37 = vpop.eup %9443  ;;  %v12039_v9 = vadd.f32 1.0, %v9438_v11  ;;  %v2457_v56 = vmul.f32 %v10589_v26, %v16170_v44  ;;  %v1822_v29 = vmul.f32 %v9442_v53, %v11968_v52 }
 0x225   : > { %16166 = vst [vmem:[#allocation57_spill] sm:$0xff] %v12003_v19  ;;  %v8477_v58 = vmul.f32 -1.442695, %v11999_v6  ;;  %v12046_v47 = vadd.f32 %v11936_v25, %v3253_v17  ;;  %v12048_v8 = vadd.f32 1.0, %v9444_v37  ;;  %v8478_v57 = vmul.f32 -1.442695, %v12009_v5 }
 0x226   : > { %16172 = vst [vmem:[#allocation42_spill] sm:$0xff] %v12039_v9  ;;  %v12052_v50 = vadd.f32 %v11631_v3, %v1300_v16  ;;  %v9446_v35 = vpop.eup %9445  ;;  %v12054_v11 = vadd.f32 1.0, %v9440_v7  ;;  %v2071_v46 = vmul.f32 %v10360_v41, %v16171_v20  ;;  %v12058_v48 = vld [vmem:[#allocation2 + $0x138] sm:$0xff]  ;;  %v1823_v55 = vsub.f32 1.0, %v1822_v29 }
 0x227   : > { %16173 = vst [vmem:[#allocation35_spill] sm:$0xff] %v12046_v47  ;;  %9447 = vpow2.f32 %v8477_v58  ;;  %v2392_v40 = vadd.f32 %v2360_v63, %v2295_v13  ;;  %v2682_v17 = vadd.f32 %v2650_v22, %v2584_v43  ;;  %v1832_v37 = vand.u32 2147483648, %v11968_v52  ;;  %v2039_v58 = vld [vmem:[#allocation2 + $0xf8] sm:$0xff] }
 0x228   : > { %16174 = vst [vmem:[#allocation59_spill] sm:$0xff] %v12054_v11  ;;  %9449 = vrcp.f32 %v12048_v8  ;;  %v1824_v3 = vmul.f32 %v9442_v53, %v1823_v55  ;;  %vm1827_vm11 = vweird.f32 %v9442_v53  ;;  %v1830_v7 = vand.u32 2147483647, %v11968_v52  ;;  %v9071_v55 = vld [vmem:[%s10113_s29 + $0x38] sm:$0xff] }
 0x229   : > { %4881 = vst [vmem:[#allocation2 + $0x138] sm:$0x1] %v11668_v59  ;;  %9451 = vrcp.f32 %v12039_v9  ;;  %v2747_v16 = vmul.f32 %v10622_v62, %v16170_v44  ;;  %v12067_v20 = vld [vmem:[#allocation2 + $0x142] sm:$0xff]  ;;  %v12069_v13 = vadd.f32 1.0, %v9446_v35  ;;  %v8479_v43 = vmul.f32 -1.442695, %v12052_v50  ;;  %3695 = vmatpush.bf16.msra.mxu1 %v9071_v55 }
 0x22a   : > { %16175 = vst [vmem:[#allocation60_spill] sm:$0xff] %v12067_v20  ;;  %9453 = vpow2.f32 %v8478_v57  ;;  %v2200_v63 = vadd.f32 %v2168_v27, %v2071_v46  ;;  %v1825_v22 = vadd.f32 %v9442_v53, %v1824_v3  ;;  %vm1826_vm12 = vweird.f32 %v11968_v52  ;;  %v2232_v27 = vld [vmem:[#allocation2 + $0xf2] sm:$0xff] }
 0x22b   : > { %9455 = vrcp.f32 %v12054_v11  ;;  %4897 = vst [vmem:[#allocation2 + $0x149] sm:$0x1] %v11668_v59  ;;  %v12076_v29 = vadd.f32 %v2457_v56, %v2392_v40  ;;  %v2779_v44 = vadd.f32 %v2747_v16, %v2682_v17  ;;  %vm1828_vm13 = vmor %vm1826_vm12, %vm1827_vm11  ;;  %v1833_v35 = vor.u32 1.1754944e-38, %v1832_v37  ;;  %v9070_v52 = vld [vmem:[%s10113_s29 + $0x30] sm:$0xff] }
 0x22c   : > { %9457 = vrcp.f32 %v12069_v13  ;;  %v2169_v46 = vmul.f32 %v10364_v42, %v11695_v12  ;;  %v1829_v3 = vsel %vm1828_vm13, %v9442_v53, %v1825_v22  ;;  %vm1831_vm14 = vcmp.eq.f32.partialorder %v1830_v7, 8.507059e+37 }
 0x22d   : > { %v9448_v57 = vpop.eup %9447  ;;  %9459 = vpow2.f32 %v8479_v43  ;;  %v12085_v56 = vmul.f32 %v10589_v26, %v11695_v12  ;;  %v12089_v17 = vmul.f32 %v10622_v62, %v11695_v12  ;;  %v1834_v37 = vsel %vm1831_vm14, %v1833_v35, %v1829_v3  ;;  %3696 = vmatpush.bf16.msra.mxu1 %v9070_v52 }
 0x22e   : > { %v9450_v40 = vpop.eup %9449  ;;  %v12091_v16 = vadd.f32 1.0, %v9448_v57  ;;  %v2072_v53 = vmul.f32 %v10360_v41, %v2039_v58  ;;  %v12098_v7 = vmul.f32 %v10364_v42, %v11729_v15  ;;  %v12101_v43 = vmul.f32 %v1834_v37, %v11869_v38  ;;  %v12107_v57 = vld [vmem:[%s10103_s21 + $0x8] ss:$0 sm:$0xff] }
 0x22f   : > { %v12093_v28 = vpop.eup %9451  ;;  %v1837_v22 = vmul.f32 %v9450_v40, %v12048_v8  ;;  %v2265_v12 = vmul.f32 %v10371_v45, %v2232_v27  ;;  %v2361_v35 = vmul.f32 %v10569_v2, %v2039_v58  ;;  %v2844_v3 = vmul.f32 %v12107_v57, %v2232_v27 }
 0x230   : > { %16176 = vst [vmem:[#allocation61_spill] sm:$0xff] %v12093_v28  ;;  %v9454_v55 = vpop.eup %9453  ;;  %9461 = vrcp.f32 %v12091_v16  ;;  %v12115_v19 = vmul.f32 %v10371_v45, %v11772_v39  ;;  %v2554_v38 = vmul.f32 %v10592_v30, %v2232_v27  ;;  %v12124_v11 = vmul.f32 %v10592_v30, %v11772_v39 }
 0x231   : > { %16177 = vst [vmem:[#allocation62_spill] sm:$0xff] %v12101_v43  ;;  %v12111_v47 = vpop.eup %9455  ;;  %v1838_v37 = vsub.f32 1.0, %v1837_v22  ;;  %v12119_v36 = vadd.f32 1.0, %v9454_v55  ;;  %v1845_v28 = vand.u32 2147483647, %v12048_v8  ;;  %v1847_v9 = vand.u32 2147483648, %v12048_v8  ;;  %3697 = vmatpush.bf16.msra.mxu1 %v9069_v4 }
 0x232   : > { %16178 = vst [vmem:[#allocation63_spill] sm:$0xff] %v12111_v47  ;;  %v9458_v61 = vpop.eup %9457  ;;  %v2651_v47 = vmul.f32 %v10599_v60, %v2039_v58  ;;  %v12129_v51 = vadd.f32 %v2169_v46, %v2072_v53  ;;  %vm1842_vm15 = vweird.f32 %v9450_v40  ;;  %v12132_v55 = vadd.f32 %v2265_v12, %v2200_v63  ;;  %v9068_v46 = vld [vmem:[%s10113_s29 + $0x20] sm:$0xff] }
 0x233   : > { %2012 = vst [vmem:[#allocation2 + $0x151] sm:$0xff] %v12101_v43  ;;  %v9460_v27 = vpop.eup %9459  ;;  %v1839_v22 = vmul.f32 %v9450_v40, %v1838_v37  ;;  %v1852_v52 = vmul.f32 %v9458_v61, %v12069_v13  ;;  %v2393_v54 = vadd.f32 %v2361_v35, %v12023_v34  ;;  %v2876_v25 = vadd.f32 %v2844_v3, %v2779_v44  ;;  %v12150_v4 = vld [vmem:[%s10108_s25] ss:$0 sm:$0xff] }
 0x234   : > { %9463 = vrcp.f32 %v12119_v36  ;;  %vm1841_vm0 = vweird.f32 %v12048_v8  ;;  %v12137_v20 = vadd.f32 1.0, %v9460_v27  ;;  %vm1846_vm2 = vcmp.eq.f32.partialorder %v1845_v28, 8.507059e+37  ;;  %16179 = vst [vmem:[#allocation64_spill] sm:$0xff] %v12150_v4 }
 0x235   : > { %v1840_v58 = vadd.f32 %v9450_v40, %v1839_v22  ;;  %v1853_v43 = vsub.f32 1.0, %v1852_v52  ;;  %vm1843_vm1 = vmor %vm1841_vm0, %vm1842_vm15  ;;  %v1848_v63 = vor.u32 1.1754944e-38, %v1847_v9  ;;  %v1860_v12 = vand.u32 2147483647, %v12069_v13  ;;  %3698 = vmatpush.bf16.msra.mxu1 %v9068_v46 }
 0x236   : > { %v12140_v53 = vpop.eup %9461  ;;  %v1862_v34 = vand.u32 2147483648, %v12069_v13  ;;  %vm1857_vm3 = vweird.f32 %v9458_v61  ;;  %v12147_v3 = vadd.f32 %v2554_v38, %v12076_v29  ;;  %v12153_v37 = vadd.f32 %v12150_v4, %v2876_v25  ;;  %v9067_v38 = vld [vmem:[%s10113_s29 + $0x18] sm:$0xff] }
 0x237   : > { %v1844_v44 = vsel %vm1843_vm1, %v9450_v40, %v1840_v58  ;;  %v1854_v35 = vmul.f32 %v9458_v61, %v1853_v43  ;;  %v1867_v8 = vmul.f32 %v12140_v53, %v12091_v16  ;;  %9465 = vrcp.f32 %v12137_v20 }
 0x238   : > { %16180 = vst [vmem:[#allocation65_spill] sm:$0xff] %v12153_v37  ;;  %v1849_v9 = vsel %vm1846_vm2, %v1848_v63, %v1844_v44  ;;  %vm1856_vm4 = vweird.f32 %v12069_v13  ;;  %vm1861_vm6 = vcmp.eq.f32.partialorder %v1860_v12, 8.507059e+37  ;;  %v1863_v25 = vor.u32 1.1754944e-38, %v1862_v34 }
 0x239   : > { %v12160_v40 = vmul.f32 %v1849_v9, %v11952_v23  ;;  %v1855_v43 = vadd.f32 %v9458_v61, %v1854_v35  ;;  %v1868_v29 = vsub.f32 1.0, %v1867_v8  ;;  %vm1858_vm5 = vmor %vm1856_vm4, %vm1857_vm3  ;;  %v1875_v22 = vand.u32 2147483647, %v12091_v16  ;;  %3699 = vmatpush.bf16.msra.mxu1 %v9067_v38  ;;  %v9066_v8 = vld [vmem:[%s10113_s29 + $0x10] sm:$0xff]  ;;  %v12185_v9 = vld [vmem:[#allocation2 + $0x199] sm:$0xff] }
 0x23a   : > { %v12155_v28 = vld [vmem:[#allocation2 + $0x150] sm:$0xff]  ;;  %v12164_v27 = vpop.eup %9463  ;;  %v1877_v52 = vand.u32 2147483648, %v12091_v16  ;;  %vm1872_vm7 = vweird.f32 %v12140_v53  ;;  %v12175_v46 = vadd.f32 %v12085_v56, %v2393_v54  ;;  %v2683_v63 = vadd.f32 %v2651_v47, %v12026_v1 }
 0x23b   : > { %4882 = vst [vmem:[#allocation2 + $0x150] sm:$0x1] %v11668_v59  ;;  %v1859_v23 = vsel %vm1858_vm5, %v9458_v61, %v1855_v43  ;;  %v1869_v58 = vmul.f32 %v12140_v53, %v1868_v29  ;;  %v1882_v13 = vmul.f32 %v12164_v27, %v12119_v36  ;;  %v8496_v12 = vmul.f32 -1.442695, %v12153_v37  ;;  %v12187_v43 = vld [vmem:[#allocation2 + $0x19a] sm:$0xff] }
 0x23c   : > { %2013 = vst [vmem:[#allocation2 + $0x159] sm:$0xff] %v12160_v40  ;;  %v1864_v34 = vsel %vm1861_vm6, %v1863_v25, %v1859_v23  ;;  %vm1871_vm8 = vweird.f32 %v12091_v16  ;;  %vm1876_vm11 = vcmp.eq.f32.partialorder %v1875_v22, 8.507059e+37  ;;  %v1890_v47 = vand.u32 2147483647, %v12119_v36  ;;  %v12208_v25 = vld [vmem:[#allocation2 + $0x1a1] sm:$0xff] }
 0x23d   : > { %v12180_v44 = vmul.f32 %v1864_v34, %v11973_v33  ;;  %v1870_v61 = vadd.f32 %v12140_v53, %v1869_v58  ;;  %v1883_v35 = vsub.f32 1.0, %v1882_v13  ;;  %v12189_v54 = vpop.eup %9465  ;;  %vm12193_vm9 = vmor %vm1871_vm8, %vm1872_vm7  ;;  %v1878_v33 = vor.u32 1.1754944e-38, %v1877_v52  ;;  %4866 = vst [vmem:[#allocation2 + $0x198] sm:$0xff] %v11668_v59  ;;  %v12210_v22 = vld [vmem:[#allocation2 + $0x1a2] sm:$0xff]  ;;  %3700 = vmatpush.bf16.msra.mxu1 %v9066_v8 }
 0x23e   : > { %v1892_v56 = vand.u32 2147483648, %v12119_v36  ;;  %vm1887_vm12 = vweird.f32 %v12164_v27  ;;  %v1897_v38 = vmul.f32 %v12189_v54, %v12137_v20  ;;  %v2780_v52 = vadd.f32 %v12089_v17, %v2683_v63  ;;  %4867 = vst [vmem:[#allocation2 + $0x1a0] sm:$0xff] %v11668_v59 }
 0x23f   : > { %2014 = vst [vmem:[#allocation2 + $0x169] sm:$0xff] %v12180_v44  ;;  %v1874_v16 = vsel %vm12193_vm9, %v12140_v53, %v1870_v61  ;;  %v1884_v29 = vmul.f32 %v12164_v27, %v1883_v35  ;;  %v2362_v23 = vmul.f32 %v10569_v2, %v11808_v49  ;;  %v2652_v53 = vmul.f32 %v10599_v60, %v11808_v49  ;;  %v9065_v35 = vld [vmem:[%s10113_s29 + $0x8] sm:$0xff] }
 0x240   : > { %v1879_v58 = vsel %vm1876_vm11, %v1878_v33, %v1874_v16  ;;  %vm1886_vm13 = vweird.f32 %v12119_v36  ;;  %v1898_v61 = vsub.f32 1.0, %v1897_v38  ;;  %4868 = vst [vmem:[#allocation2 + $0x1a8] sm:$0x3] %v11668_v59  ;;  %9467 = vpow2.f32 %v8496_v12  ;;  %v9064_v38 = vld [vmem:[%s10113_s29] sm:$0xff] }
 0x241   : > { %v12219_v13 = vmul.f32 %v1879_v58, %v11999_v6  ;;  %v1885_v34 = vadd.f32 %v12164_v27, %v1884_v29  ;;  %vm1888_vm14 = vmor %vm1886_vm13, %vm1887_vm12  ;;  %vm1891_vm15 = vcmp.eq.f32.partialorder %v1890_v47, 8.507059e+37  ;;  %v1893_v17 = vor.u32 1.1754944e-38, %v1892_v56  ;;  %3701 = vmatpush.bf16.msra.mxu1 %v9065_v35  ;;  %v2234_v58 = vld [vmem:[#allocation2 + $0x10a] sm:$0xff] }
 0x242   : > { %v1907_v63 = vand.u32 2147483648, %v12137_v20  ;;  %v1899_v36 = vmul.f32 %v12189_v54, %v1898_v61  ;;  %vm1902_vm0 = vweird.f32 %v12189_v54  ;;  %v1905_v8 = vand.u32 2147483647, %v12137_v20 }
 0x243   : > { %2015 = vst [vmem:[#allocation2 + $0x171] sm:$0xff] %v12219_v13  ;;  %v1889_v6 = vsel %vm1888_vm14, %v12164_v27, %v1885_v34  ;;  %v12233_v1 = vld [vmem:[#allocation2 + $0x15a] sm:$0xff]  ;;  %v2073_v12 = vmul.f32 %v10360_v41, %v11808_v49  ;;  %v2394_v33 = vadd.f32 %v2362_v23, %v12132_v55  ;;  %v2684_v47 = vadd.f32 %v2652_v53, %v12147_v3  ;;  %v2041_v23 = vld [vmem:[#allocation2 + $0x110] sm:$0xff] }
 0x244   : > { %v1894_v56 = vsel %vm1891_vm15, %v1893_v17, %v1889_v6  ;;  %4898 = vst [vmem:[#allocation2 + $0x161] sm:$0x1] %v11668_v59  ;;  %v2845_v27 = vmul.f32 %v12107_v57, %v11772_v39  ;;  %v1900_v29 = vadd.f32 %v12189_v54, %v1899_v36  ;;  %vm1901_vm1 = vweird.f32 %v12137_v20 }
 0x245   : > { %v12243_v16 = vmul.f32 %v1894_v56, %v12009_v5  ;;  %v2298_v49 = vadd.f32 %v12115_v19, %v12129_v51  ;;  %v2459_v55 = vmul.f32 %v10589_v26, %v11729_v15  ;;  %v2749_v3 = vmul.f32 %v10622_v62, %v11729_v15  ;;  %vm1903_vm2 = vmor %vm1901_vm1, %vm1902_vm0  ;;  %3702 = vmatpush.bf16.msra.mxu1 %v9064_v38 }
 0x246   : > { %v1908_v39 = vor.u32 1.1754944e-38, %v1907_v63  ;;  %v12256_v5 = vld [vmem:[#allocation2 + $0x168] sm:$0xff]  ;;  %v2587_v20 = vadd.f32 %v12124_v11, %v12175_v46  ;;  %v12260_v53 = vadd.f32 %v2845_v27, %v2780_v52  ;;  %v1904_v51 = vsel %vm1903_vm2, %v12189_v54, %v1900_v29  ;;  %v9468_v19 = vpop.eup %9467 }
 0x247   : > { %16183 = vst [vmem:[#allocation66_spill] sm:$0xff] %v12243_v16  ;;  %vm1906_vm3 = vcmp.eq.f32.partialorder %v1905_v8, 8.507059e+37  ;;  %v2202_v15 = vadd.f32 %v12098_v7, %v2073_v12  ;;  %v2491_v34 = vadd.f32 %v2459_v55, %v2394_v33  ;;  %v2781_v61 = vadd.f32 %v2749_v3, %v2684_v47 }
 0x248   : > { %16184 = vst [vmem:[#allocation67_spill] sm:$0xff] %v12260_v53  ;;  %v1909_v35 = vsel %vm1906_vm3, %v1908_v39, %v1904_v51  ;;  %v2171_v17 = vmul.f32 %v10364_v42, %v11836_v21  ;;  %v2363_v11 = vmul.f32 %v10569_v2, %v2041_v23  ;;  %v2081_v54 = vmul.f32 %v10360_v41, %v12256_v5 }
 0x249   : > { %2016 = vst [vmem:[#allocation2 + $0x181] sm:$0xff] %v12243_v16  ;;  %v12270_v46 = vmul.f32 %v1909_v35, %v12052_v50  ;;  %v2074_v52 = vmul.f32 %v10360_v41, %v2041_v23  ;;  %v2267_v7 = vmul.f32 %v10371_v45, %v2234_v58  ;;  %v2460_v63 = vmul.f32 %v10589_v26, %v11836_v21 }
 0x24a   : > { %4883 = vst [vmem:[#allocation2 + $0x168] sm:$0x1] %v11668_v59  ;;  %v2750_v6 = vmul.f32 %v10622_v62, %v11836_v21  ;;  %v12280_v36 = vld [vmem:[#allocation2 + $0x170] sm:$0xff]  ;;  %v12284_v50 = vadd.f32 1.0, %v9468_v19  ;;  %v2178_v33 = vmul.f32 %v10364_v42, %v12180_v44  ;;  %v2653_v21 = vmul.f32 %v10599_v60, %v2041_v23 }
 0x24b   : > { %v12282_v8 = vld [vmem:[#allocation2 + $0x16a] sm:$0xff]  ;;  %2017 = vst [vmem:[#allocation2 + $0x189] sm:$0xff] %v12270_v46  ;;  %v2082_v12 = vmul.f32 %v10360_v41, %v12280_v36  ;;  %v12291_v47 = vld [vmem:[#allocation2 + $0x172] sm:$0xff]  ;;  %v2172_v27 = vmul.f32 %v10364_v42, %v11877_v10  ;;  %v2461_v29 = vmul.f32 %v10589_v26, %v11877_v10  ;;  %v2751_v38 = vmul.f32 %v10622_v62, %v11877_v10 }
 0x24c   : > { %16185 = vst [vmem:[#allocation68_spill] sm:$0xff] %v12284_v50  ;;  %v2275_v56 = vmul.f32 %v10371_v45, %v12282_v8  ;;  %v2268_v55 = vmul.f32 %v10371_v45, %v11890_v14  ;;  %v2395_v3 = vadd.f32 %v2363_v11, %v2298_v49  ;;  %v2179_v39 = vmul.f32 %v10364_v42, %v12219_v13  ;;  %v9919_v11 = vld [vmem:[#allocation2] sm:$0xff] }
 0x24d   : > { %4899 = vst [vmem:[#allocation2 + $0x179] sm:$0x1] %v11668_v59  ;;  %v2210_v51 = vadd.f32 %v2178_v33, %v2081_v54  ;;  %v2203_v23 = vadd.f32 %v2171_v17, %v2074_v52  ;;  %v2299_v19 = vadd.f32 %v2267_v7, %v2202_v15  ;;  %v2556_v35 = vmul.f32 %v10592_v30, %v2234_v58 }
 0x24e   : > { %v2557_v37 = vmul.f32 %v10592_v30, %v11890_v14  ;;  %v2846_v10 = vmul.f32 %v12107_v57, %v2234_v58  ;;  %v2211_v59 = vadd.f32 %v2179_v39, %v2082_v12  ;;  %v2685_v53 = vadd.f32 %v2653_v21, %v2587_v20 }
 0x24f   : > { %v2307_v4 = vadd.f32 %v2275_v56, %v2210_v51  ;;  %v12317_v15 = vmul.f32 %v12107_v57, %v11890_v14  ;;  %v2364_v17 = vmul.f32 %v10569_v2, %v11942_v0  ;;  %v2654_v54 = vmul.f32 %v10599_v60, %v11942_v0 }
 0x250   : > { %v12310_v50 = vld [vmem:[#allocation2 + $0x180] sm:$0xff]  ;;  %v2492_v52 = vadd.f32 %v2460_v63, %v2395_v3  ;;  %v2276_v58 = vmul.f32 %v10371_v45, %v12291_v47  ;;  %v2469_v12 = vmul.f32 %v10589_v26, %v12243_v16  ;;  %v2300_v33 = vadd.f32 %v2268_v55, %v2203_v23 }
 0x251   : > { %v2372_v49 = vmul.f32 %v10569_v2, %v12310_v50  ;;  %4884 = vst [vmem:[#allocation2 + $0x180] sm:$0x1] %v9919_v11  ;;  %v2588_v20 = vadd.f32 %v2556_v35, %v2491_v34  ;;  %v2075_v14 = vmul.f32 %v10360_v41, %v11942_v0  ;;  %v2664_v63 = vmul.f32 %v9919_v11, %v10599_v60 }
 0x252   : > { %16186 = vst [vmem:[#allocation69_spill] sm:$0xff] %v12317_v15  ;;  %v12329_v56 = vld [vmem:[#allocation2 + $0x188] sm:$0xff]  ;;  %v2308_v3 = vadd.f32 %v2276_v58, %v2211_v59  ;;  %v12340_v34 = vadd.f32 %v2750_v6, %v2685_v53  ;;  %v12342_v0 = vadd.f32 %v2846_v10, %v2781_v61  ;;  %v2396_v23 = vadd.f32 %v2364_v17, %v2299_v19 }
 0x253   : > { %v2404_v7 = vadd.f32 %v2372_v49, %v2307_v4  ;;  %16187 = vst [vmem:[#allocation70_spill] sm:$0xff] %v12329_v56  ;;  %v12331_v21 = vld [vmem:[#allocation2 + $0x182] sm:$0xff]  ;;  %v12333_v39 = vld [vmem:[#allocation2 + $0x18a] sm:$0xff]  ;;  %v2373_v4 = vmul.f32 %v10569_v2, %v12329_v56  ;;  %v2686_v35 = vadd.f32 %v2654_v54, %v2588_v20  ;;  %v12344_v49 = vadd.f32 %v2557_v37, %v2492_v52 }
 0x254   : > { %16188 = vst [vmem:[#allocation71_spill] sm:$0xff] %v12331_v21  ;;  %v2566_v55 = vmul.f32 %v10592_v30, %v12331_v21  ;;  %v2043_v15 = vld [vmem:[#allocation2 + $0x128] sm:$0xff]  ;;  %v2470_v59 = vmul.f32 %v10589_v26, %v12270_v46  ;;  %v2204_v56 = vadd.f32 %v2172_v27, %v2075_v14  ;;  %v2462_v53 = vmul.f32 %v10589_v26, %v11955_v31 }
 0x255   : > { %16189 = vst [vmem:[#allocation72_spill] sm:$0xff] %v12333_v39  ;;  %v2501_v51 = vadd.f32 %v2469_v12, %v2404_v7  ;;  %v2405_v16 = vadd.f32 %v2373_v4, %v2308_v3  ;;  %v2173_v7 = vmul.f32 %v10364_v42, %v11955_v31  ;;  %v2761_v61 = vmul.f32 %v10622_v62, %v12185_v9  ;;  %v2236_v6 = vld [vmem:[#allocation2 + $0x122] sm:$0xff] }
 0x256   : > { %4900 = vst [vmem:[#allocation2 + $0x191] sm:$0x1] %v9919_v11  ;;  %v12356_v37 = vmul.f32 %v10622_v62, %v11955_v31  ;;  %v2567_v10 = vmul.f32 %v10592_v30, %v12333_v39  ;;  %v2493_v27 = vadd.f32 %v2461_v29, %v2396_v23  ;;  %v12360_v17 = vadd.f32 %v2751_v38, %v2686_v35  ;;  %v12365_v12 = vld [vmem:[#allocation2 + $0x140] sm:$0xff] }
 0x257   : > { %16190 = vst [vmem:[#allocation73_spill] sm:$0xff] %v12342_v0  ;;  %v2598_v58 = vadd.f32 %v2566_v55, %v2501_v51  ;;  %v2502_v19 = vadd.f32 %v2470_v59, %v2405_v16  ;;  %v2076_v54 = vmul.f32 %v10360_v41, %v2043_v15  ;;  %v2174_v52 = vmul.f32 %v10364_v42, %v11978_v32  ;;  %v12381_v51 = vld [vmem:[#allocation2 + $0x158] sm:$0xff] }
 0x258   : > { %v2463_v9 = vmul.f32 %v10589_v26, %v11978_v32  ;;  %v12371_v31 = vmul.f32 %v10622_v62, %v11978_v32  ;;  %v2762_v29 = vmul.f32 %v10622_v62, %v12208_v25  ;;  %v2269_v38 = vmul.f32 %v10371_v45, %v2236_v6 }
 0x259   : > { %v2696_v11 = vadd.f32 %v2664_v63, %v2598_v58  ;;  %v2599_v16 = vadd.f32 %v2567_v10, %v2502_v19  ;;  %v2270_v20 = vmul.f32 %v10371_v45, %v11992_v24  ;;  %v2365_v14 = vmul.f32 %v10569_v2, %v2043_v15 }
 0x25a   : > { %v2078_v4 = vmul.f32 %v10360_v41, %v12365_v12  ;;  %v2858_v32 = vmul.f32 %v12107_v57, %v12187_v43  ;;  %v2859_v25 = vmul.f32 %v12107_v57, %v12210_v22  ;;  %v2205_v23 = vadd.f32 %v2173_v7, %v2076_v54 }
 0x25b   : > { %v2793_v3 = vadd.f32 %v2761_v61, %v2696_v11  ;;  %v2697_v55 = vadd.f32 %v2664_v63, %v2599_v16  ;;  %v2558_v35 = vmul.f32 %v10592_v30, %v2236_v6  ;;  %v2559_v59 = vmul.f32 %v10592_v30, %v11992_v24  ;;  %v12393_v61 = vld [vmem:[#allocation2 + $0x13a] sm:$0xff]  ;;  %v12412_v16 = vld [vmem:[#allocation2 + $0x152] sm:$0xff] }
 0x25c   : > { %v12391_v58 = vmul.f32 %v10599_v60, %v2043_v15  ;;  %v12396_v19 = vmul.f32 %v12107_v57, %v2236_v6  ;;  %v2077_v43 = vmul.f32 %v10360_v41, %v12058_v48  ;;  %v2175_v22 = vmul.f32 %v10364_v42, %v11995_v18 }
 0x25d   : > { %v2794_v63 = vadd.f32 %v2762_v29, %v2697_v55  ;;  %v2397_v7 = vadd.f32 %v2365_v14, %v2300_v33  ;;  %v2366_v10 = vmul.f32 %v10569_v2, %v12058_v48  ;;  %v2080_v15 = vmul.f32 %v10360_v41, %v12381_v51 }
 0x25e   : > { %16191 = vst [vmem:[#allocation74_spill] sm:$0xff] %v12396_v19  ;;  %v12406_v11 = vadd.f32 %v2858_v32, %v2793_v3  ;;  %v2271_v6 = vmul.f32 %v10371_v45, %v12393_v61  ;;  %v2367_v54 = vmul.f32 %v10569_v2, %v12365_v12  ;;  %v2207_v39 = vadd.f32 %v2175_v22, %v2078_v4  ;;  %v16194_v32 = vld [vmem:[#allocation60_spill] sm:$0xff]  ;;  %v16195_v22 = vld [vmem:[#allocation62_spill] sm:$0xff] }
 0x25f   : > { %v12414_v21 = vadd.f32 %v2859_v25, %v2794_v63  ;;  %v2301_v33 = vadd.f32 %v2269_v38, %v2204_v56  ;;  %v2079_v29 = vmul.f32 %v10360_v41, %v12155_v28  ;;  %v2177_v14 = vmul.f32 %v10364_v42, %v12160_v40 }
 0x260   : > { %16192 = vst [vmem:[#allocation75_spill] sm:$0xff] %v12406_v11  ;;  %v2302_v3 = vadd.f32 %v2270_v20, %v2205_v23  ;;  %v2206_v55 = vadd.f32 %v2174_v52, %v2077_v43  ;;  %v2272_v11 = vmul.f32 %v10371_v45, %v16194_v32  ;;  %v2368_v0 = vmul.f32 %v10569_v2, %v12155_v28 }
 0x261   : > { %16193 = vst [vmem:[#allocation76_spill] sm:$0xff] %v12414_v21  ;;  %v2369_v4 = vmul.f32 %v10569_v2, %v12381_v51  ;;  %v2494_v25 = vadd.f32 %v2462_v53, %v2397_v7  ;;  %v2176_v56 = vmul.f32 %v10364_v42, %v16195_v22  ;;  %v2209_v38 = vadd.f32 %v2177_v14, %v2080_v15 }
 0x262   : > { %v2273_v41 = vmul.f32 %v10371_v45, %v12412_v16  ;;  %v2303_v63 = vadd.f32 %v2271_v6, %v2206_v55  ;;  %v2304_v20 = vadd.f32 %v2272_v11, %v2207_v39  ;;  %v2398_v52 = vadd.f32 %v2366_v10, %v2301_v33 }
 0x263   : > { %v2399_v23 = vadd.f32 %v2367_v54, %v2302_v3  ;;  %v2208_v43 = vadd.f32 %v2176_v56, %v2079_v29  ;;  %v2274_v21 = vmul.f32 %v10371_v45, %v12233_v1  ;;  %v2370_v19 = vmul.f32 %v10569_v2, %v12256_v5 }
 0x264   : > { %v2371_v53 = vmul.f32 %v10569_v2, %v12280_v36  ;;  %v2464_v42 = vmul.f32 %v10589_v26, %v11995_v18  ;;  %v2400_v7 = vadd.f32 %v2368_v0, %v2303_v63  ;;  %v2401_v15 = vadd.f32 %v2369_v4, %v2304_v20 }
 0x265   : > { %v2590_v14 = vadd.f32 %v2558_v35, %v2493_v27  ;;  %v2656_v39 = vmul.f32 %v10599_v60, %v12058_v48  ;;  %v2305_v10 = vadd.f32 %v2273_v41, %v2208_v43  ;;  %v2306_v11 = vadd.f32 %v2274_v21, %v2209_v38 }
 0x266   : > { %v2465_v45 = vmul.f32 %v10589_v26, %v16195_v22  ;;  %v2466_v6 = vmul.f32 %v10589_v26, %v12160_v40  ;;  %v2495_v54 = vadd.f32 %v2463_v9, %v2398_v52  ;;  %v2496_v33 = vadd.f32 %v2464_v42, %v2399_v23 }
 0x267   : > { %v2560_v2 = vmul.f32 %v10592_v30, %v12393_v61  ;;  %v2402_v29 = vadd.f32 %v2370_v19, %v2305_v10  ;;  %v2403_v0 = vadd.f32 %v2371_v53, %v2306_v11  ;;  %v2561_v27 = vmul.f32 %v10592_v30, %v16194_v32 }
 0x268   : > { %v2591_v35 = vadd.f32 %v2559_v59, %v2494_v25  ;;  %v2467_v48 = vmul.f32 %v10589_v26, %v12180_v44  ;;  %v2497_v21 = vadd.f32 %v2465_v45, %v2400_v7  ;;  %v2498_v3 = vadd.f32 %v2466_v6, %v2401_v15 }
 0x269   : > { %v2562_v55 = vmul.f32 %v10592_v30, %v12412_v16  ;;  %v2468_v9 = vmul.f32 %v10589_v26, %v12219_v13  ;;  %v2564_v4 = vmul.f32 %v10592_v30, %v12282_v8  ;;  %v2657_v19 = vmul.f32 %v10599_v60, %v12365_v12 }
 0x26a   : > { %v2658_v59 = vmul.f32 %v10599_v60, %v12155_v28  ;;  %v2563_v25 = vmul.f32 %v10592_v30, %v12233_v1  ;;  %v2659_v56 = vmul.f32 %v10599_v60, %v12381_v51  ;;  %v2660_v38 = vmul.f32 %v10599_v60, %v12256_v5 }
 0x26b   : > { %v2661_v26 = vmul.f32 %v10599_v60, %v12280_v36  ;;  %v2499_v41 = vadd.f32 %v2467_v48, %v2402_v29  ;;  %v2500_v63 = vadd.f32 %v2468_v9, %v2403_v0  ;;  %v2592_v20 = vadd.f32 %v2560_v2, %v2495_v54  ;;  %v16198_v2 = vld [vmem:[#allocation67_spill] sm:$0xff]  ;;  %v16199_v29 = vld [vmem:[#allocation64_spill] sm:$0xff]  ;;  %v16200_v0 = vld [vmem:[#allocation70_spill] sm:$0xff] }
 0x26c   : > { %v2662_v12 = vmul.f32 %v10599_v60, %v12310_v50  ;;  %v2593_v52 = vadd.f32 %v2561_v27, %v2496_v33  ;;  %v2594_v28 = vadd.f32 %v2562_v55, %v2497_v21  ;;  %v2595_v23 = vadd.f32 %v2563_v25, %v2498_v3  ;;  %v16197_v33 = vld [vmem:[#allocation69_spill] sm:$0xff]  ;;  %v16201_v48 = vld [vmem:[#allocation74_spill] sm:$0xff]  ;;  %v16204_v25 = vld [vmem:[#allocation48_spill] sm:$0xff] }
 0x26d   : > { %v2687_v43 = vadd.f32 %v12391_v58, %v12344_v49  ;;  %v2565_v51 = vmul.f32 %v10592_v30, %v12291_v47  ;;  %v2596_v53 = vadd.f32 %v2564_v4, %v2499_v41  ;;  %v2688_v5 = vadd.f32 %v2656_v39, %v2590_v14  ;;  %v16196_v39 = vld [vmem:[#allocation66_spill] sm:$0xff]  ;;  %v16202_v9 = vld [vmem:[#allocation73_spill] sm:$0xff] }
 0x26e   : > { %v2689_v42 = vadd.f32 %v2657_v19, %v2591_v35  ;;  %v2690_v7 = vadd.f32 %v2658_v59, %v2592_v20  ;;  %v2691_v36 = vadd.f32 %v2659_v56, %v2593_v52  ;;  %v2692_v15 = vadd.f32 %v2660_v38, %v2594_v28 }
 0x26f   : > { %v2693_v10 = vadd.f32 %v2661_v26, %v2595_v23  ;;  %v2597_v11 = vadd.f32 %v2565_v51, %v2500_v63  ;;  %v2694_v45 = vadd.f32 %v2662_v12, %v2596_v53  ;;  %v2754_v50 = vmul.f32 %v10622_v62, %v11995_v18  ;;  %v16208_v26 = vld [vmem:[#allocation52_spill] sm:$0xff]  ;;  %v16209_v12 = vld [vmem:[#allocation71_spill] sm:$0xff] }
 0x270   : > { %v2755_v6 = vmul.f32 %v10622_v62, %v16195_v22  ;;  %v2756_v49 = vmul.f32 %v10622_v62, %v12160_v40  ;;  %v2757_v30 = vmul.f32 %v10622_v62, %v12180_v44  ;;  %v2758_v58 = vmul.f32 %v10622_v62, %v12219_v13  ;;  %v16210_v53 = vld [vmem:[#allocation68_spill] sm:$0xff] }
 0x271   : > { %v2784_v14 = vadd.f32 %v12356_v37, %v2687_v43  ;;  %v2759_v54 = vmul.f32 %v10622_v62, %v16196_v39  ;;  %v2850_v18 = vmul.f32 %v12107_v57, %v12393_v61  ;;  %v2879_v22 = vadd.f32 %v16197_v33, %v12340_v34 }
 0x272   : > { %v12493_v40 = vadd.f32 %v16199_v29, %v16198_v2  ;;  %v2663_v44 = vmul.f32 %v10599_v60, %v16200_v0  ;;  %v2760_v13 = vmul.f32 %v10622_v62, %v12270_v46  ;;  %v2786_v37 = vadd.f32 %v2754_v50, %v2689_v42  ;;  %v16203_v46 = vld [vmem:[#allocation55_spill] sm:$0xff] }
 0x273   : > { %v2849_v27 = vmul.f32 %v12107_v57, %v11992_v24  ;;  %v2785_v35 = vadd.f32 %v12371_v31, %v2688_v5  ;;  %v2787_v61 = vadd.f32 %v2755_v6, %v2690_v7  ;;  %v2852_v34 = vmul.f32 %v12107_v57, %v12412_v16  ;;  %v16217_v2 = vld [vmem:[#allocation59_spill] sm:$0xff] }
 0x274   : > { %v2880_v21 = vadd.f32 %v16201_v48, %v12360_v17  ;;  %v2788_v3 = vadd.f32 %v2756_v49, %v2691_v36  ;;  %v2851_v60 = vmul.f32 %v12107_v57, %v16194_v32  ;;  %v12510_v62 = vadd.f32 %v16199_v29, %v16202_v9  ;;  %v16211_v36 = vld [vmem:[#allocation72_spill] sm:$0xff]  ;;  %v16218_v0 = vld [vmem:[#allocation63_spill] sm:$0xff]  ;;  %v16233_v9 = vld [vmem:[#allocation46_spill] sm:$0xff] }
 0x275   : > { %v2881_v55 = vadd.f32 %v2849_v27, %v2784_v14  ;;  %vm3256_vm4 = vweird.f32 %v16203_v46  ;;  %v2854_v24 = vmul.f32 %v12107_v57, %v12282_v8  ;;  %v2882_v31 = vadd.f32 %v2850_v18, %v2785_v35  ;;  %v16213_v14 = vld [vmem:[#allocation61_spill] sm:$0xff]  ;;  %v16220_v48 = vld [vmem:[#allocation51_spill] sm:$0xff] }
 0x276   : > { %v12516_v16 = vadd.f32 %v16199_v29, %v2879_v22  ;;  %v8497_v17 = vmul.f32 -1.442695, %v12493_v40  ;;  %v2695_v4 = vadd.f32 %v2663_v44, %v2597_v11  ;;  %v2789_v19 = vadd.f32 %v2757_v30, %v2692_v15 }
 0x277   : > { %v2853_v32 = vmul.f32 %v12107_v57, %v12233_v1  ;;  %v2883_v59 = vadd.f32 %v2851_v60, %v2786_v37  ;;  %v16205_v56 = vand.u32 2147483647, %v16204_v25  ;;  %vm3255_vm6 = vweird.f32 %v16208_v26  ;;  %v16223_v60 = vld [vmem:[#allocation57_spill] sm:$0xff] }
 0x278   : > { %v2790_v8 = vadd.f32 %v2758_v58, %v2693_v10  ;;  %v2855_v41 = vmul.f32 %v12107_v57, %v12291_v47  ;;  %v2884_v63 = vadd.f32 %v2852_v34, %v2787_v61  ;;  %v12531_v20 = vadd.f32 %v16199_v29, %v2880_v21  ;;  %v16221_v21 = vld [vmem:[#allocation56_spill] sm:$0xff]  ;;  %vm12591_vm8 = vmor %vm3255_vm6, %vm3256_vm4 }
 0x279   : > { %vm12523_vm5 = vcmp.eq.f32.partialorder %v16205_v56, 8.507059e+37  ;;  %v2856_v1 = vmul.f32 %v12107_v57, %v16209_v12  ;;  %v2885_v52 = vadd.f32 %v2853_v32, %v2788_v3  ;;  %v12536_v28 = vadd.f32 %v16199_v29, %v2881_v55 }
 0x27a   : > { %v8498_v23 = vmul.f32 -1.442695, %v12510_v62  ;;  %v2886_v43 = vadd.f32 %v2854_v24, %v2789_v19  ;;  %v12540_v51 = vadd.f32 %v16199_v29, %v2882_v31  ;;  %9469 = vpow2.f32 %v8497_v17  ;;  %v16226_v17 = vld [vmem:[#allocation35_spill] sm:$0xff] }
 0x27b   : > { %v8499_v47 = vmul.f32 -1.442695, %v12516_v16  ;;  %9471 = vrcp.f32 %v16210_v53  ;;  %v2791_v5 = vadd.f32 %v2759_v54, %v2694_v45  ;;  %v2792_v42 = vadd.f32 %v2760_v13, %v2695_v4 }
 0x27c   : > { %v12545_v7 = vadd.f32 %v16199_v29, %v2883_v59  ;;  %v2857_v15 = vmul.f32 %v12107_v57, %v16211_v36  ;;  %v2887_v10 = vadd.f32 %v2855_v41, %v2790_v8  ;;  %v12550_v11 = vadd.f32 %v16199_v29, %v2884_v63  ;;  %v16212_v57 = vld [vmem:[#allocation42_spill] sm:$0xff]  ;;  %v16228_v41 = vld [vmem:[#allocation75_spill] sm:$0xff] }
 0x27d   : > { %v8500_v50 = vmul.f32 -1.442695, %v12531_v20  ;;  %v2888_v6 = vadd.f32 %v2856_v1, %v2791_v5  ;;  %v12554_v49 = vadd.f32 %v16199_v29, %v2885_v52  ;;  %9473 = vpow2.f32 %v8498_v23  ;;  %v16230_v1 = vld [vmem:[#allocation45_spill] sm:$0xff] }
 0x27e   : > { %v8501_v45 = vmul.f32 -1.442695, %v12536_v28  ;;  %v12558_v30 = vadd.f32 %v16199_v29, %v2886_v43  ;;  %9475 = vpow2.f32 %v8499_v47  ;;  %v8502_v58 = vmul.f32 -1.442695, %v12540_v51 }
 0x27f   : > { %v3266_v39 = vmul.f32 %v16213_v14, %v16212_v57  ;;  %v16214_v54 = vand.u32 2147483647, %v16208_v26  ;;  %v3261_v33 = vand.u32 2147483648, %v16208_v26  ;;  %v8503_v22 = vmul.f32 -1.442695, %v12545_v7 }
 0x280   : > { %v3281_v44 = vmul.f32 %v16218_v0, %v16217_v2  ;;  %v9470_v13 = vpop.eup %9469  ;;  %v2889_v37 = vadd.f32 %v2857_v15, %v2792_v42  ;;  %v12574_v27 = vadd.f32 %v16199_v29, %v2887_v10  ;;  %9477 = vpow2.f32 %v8500_v50  ;;  %v16231_v15 = vld [vmem:[#allocation76_spill] sm:$0xff] }
 0x281   : > { %vm12565_vm7 = vcmp.eq.f32.partialorder %v16214_v54, 8.507059e+37  ;;  %v8504_v35 = vmul.f32 -1.442695, %v12550_v11  ;;  %v12577_v61 = vpop.eup %9471  ;;  %v16222_v3 = vsel %vm12015_vm10, %v16220_v48, %v16221_v21  ;;  %v12596_v24 = vadd.f32 %v16199_v29, %v2888_v6 }
 0x282   : > { %v3248_v55 = vsel %vm12523_vm5, %v16223_v60, %v16222_v3  ;;  %9479 = vpow2.f32 %v8501_v45  ;;  %v8505_v31 = vmul.f32 -1.442695, %v12554_v49  ;;  %v3258_v4 = vsel %vm12591_vm8, %v16203_v46, %v16226_v17 }
 0x283   : > { %9481 = vpow2.f32 %v8502_v58  ;;  %v8506_v19 = vmul.f32 -1.442695, %v12558_v30  ;;  %v3267_v32 = vsub.f32 1.0, %v3266_v39  ;;  %v9474_v59 = vpop.eup %9473  ;;  %v3262_v25 = vor.u32 1.1754944e-38, %v3261_v33 }
 0x284   : > { %9483 = vpow2.f32 %v8503_v22  ;;  %v12604_v56 = vadd.f32 1.0, %v9470_v13  ;;  %v3282_v38 = vsub.f32 1.0, %v3281_v44  ;;  %v9476_v26 = vpop.eup %9475  ;;  %v12607_v8 = vadd.f32 %v16199_v29, %v2889_v37 }
 0x285   : > { %v12611_v63 = vadd.f32 %v16199_v29, %v16228_v41  ;;  %9485 = vpow2.f32 %v8504_v35  ;;  %v8507_v46 = vmul.f32 -1.442695, %v12574_v27  ;;  %v3263_v12 = vsel %vm12565_vm7, %v3262_v25, %v3258_v4 }
 0x286   : > { %16227 = vst [vmem:[#allocation60_spill] sm:$0xff] %v12607_v8  ;;  %v12617_v52 = vmul.f32 %v3248_v55, %v16230_v1  ;;  %9487 = vpow2.f32 %v8505_v31  ;;  %v8508_v23 = vmul.f32 -1.442695, %v12596_v24  ;;  %v9478_v43 = vpop.eup %9477  ;;  %v12620_v47 = vadd.f32 1.0, %v9474_v59 }
 0x287   : > { %16229 = vst [vmem:[#allocation62_spill] sm:$0xff] %v12611_v63  ;;  %9489 = vpow2.f32 %v8506_v19  ;;  %v3268_v5 = vmul.f32 %v16213_v14, %v3267_v32  ;;  %v3296_v42 = vmul.f32 %v12577_v61, %v16210_v53  ;;  %v12627_v10 = vadd.f32 %v16199_v29, %v16231_v15 }
 0x288   : > { %v9480_v36 = vpop.eup %9479  ;;  %v12629_v50 = vadd.f32 1.0, %v9476_v26  ;;  %v3283_v6 = vmul.f32 %v16218_v0, %v3282_v38  ;;  %9491 = vrcp.f32 %v12604_v56  ;;  %v8509_v58 = vmul.f32 -1.442695, %v12607_v8 }
 0x289   : > { %16232 = vst [vmem:[#allocation66_spill] sm:$0xff] %v12627_v10  ;;  %v9482_v45 = vpop.eup %9481  ;;  %9493 = vpow2.f32 %v8507_v46  ;;  %v8510_v39 = vmul.f32 -1.442695, %v12611_v63  ;;  %vm3271_vm10 = vweird.f32 %v16213_v14  ;;  %v12636_v18 = vadd.f32 1.0, %v9478_v43 }
 0x28a   : > { %v9484_v54 = vpop.eup %9483  ;;  %9495 = vpow2.f32 %v8508_v23  ;;  %v3274_v29 = vand.u32 2147483647, %v16212_v57  ;;  %v3276_v33 = vand.u32 2147483648, %v16212_v57  ;;  %v3269_v44 = vadd.f32 %v16213_v14, %v3268_v5 }
 0x28b   : > { %v9486_v22 = vpop.eup %9485  ;;  %vm3286_vm9 = vweird.f32 %v16218_v0  ;;  %v3297_v13 = vsub.f32 1.0, %v3296_v42  ;;  %9497 = vrcp.f32 %v12620_v47  ;;  %v12643_v35 = vadd.f32 1.0, %v9480_v36 }
 0x28c   : > { %v9488_v37 = vpop.eup %9487  ;;  %v3284_v34 = vadd.f32 %v16218_v0, %v3283_v6  ;;  %v3289_v48 = vand.u32 2147483647, %v16217_v2  ;;  %9499 = vrcp.f32 %v12629_v50  ;;  %v8511_v3 = vmul.f32 -1.442695, %v12627_v10 }
 0x28d   : > { %v9490_v21 = vpop.eup %9489  ;;  %9501 = vpow2.f32 %v8509_v58  ;;  %vm3270_vm11 = vweird.f32 %v16212_v57  ;;  %v3291_v60 = vand.u32 2147483648, %v16217_v2  ;;  %v12654_v31 = vmul.f32 %v3263_v12, %v16233_v9 }
 0x28e   : > { %v12651_v55 = vpop.eup %9491  ;;  %v12656_v17 = vadd.f32 1.0, %v9482_v45  ;;  %vm12660_vm12 = vmor %vm3270_vm11, %vm3271_vm10  ;;  %vm3285_vm13 = vweird.f32 %v16217_v2  ;;  %9503 = vrcp.f32 %v12636_v18  ;;  %vm3275_vm14 = vcmp.eq.f32.partialorder %v3274_v29, 8.507059e+37 }
 0x28f   : > { %v9494_v57 = vpop.eup %9493  ;;  %9505 = vpow2.f32 %v8510_v39  ;;  %v3273_v19 = vsel %vm12660_vm12, %v16213_v14, %v3269_v44  ;;  %vm12671_vm15 = vmor %vm3285_vm13, %vm3286_vm9  ;;  %v3298_v59 = vmul.f32 %v12577_v61, %v3297_v13  ;;  %v3277_v38 = vor.u32 1.1754944e-38, %v3276_v33 }
 0x290   : > { %v9496_v25 = vpop.eup %9495  ;;  %v3288_v2 = vsel %vm12671_vm15, %v16218_v0, %v3284_v34  ;;  %vm3290_vm0 = vcmp.eq.f32.partialorder %v3289_v48, 8.507059e+37  ;;  %9507 = vrcp.f32 %v12643_v35  ;;  %v3292_v14 = vor.u32 1.1754944e-38, %v3291_v60 }
 0x291   : > { %v12680_v26 = vpop.eup %9497  ;;  %9509 = vpow2.f32 %v8511_v3  ;;  %v3304_v41 = vand.u32 2147483647, %v16210_v53  ;;  %v3311_v46 = vmul.f32 %v12651_v55, %v12604_v56  ;;  %v12687_v1 = vadd.f32 1.0, %v9484_v54 }
 0x292   : > { %v12685_v12 = vpop.eup %9499  ;;  %v12689_v23 = vsel %vm3275_vm14, %v3277_v38, %v3273_v19  ;;  %v3306_v0 = vand.u32 2147483648, %v16210_v53  ;;  %9511 = vrcp.f32 %v12656_v17  ;;  %v12693_v5 = vsel %vm3290_vm0, %v3292_v14, %v3288_v2 }
 0x293   : > { %v9502_v43 = vpop.eup %9501  ;;  %v3299_v42 = vadd.f32 %v12577_v61, %v3298_v59  ;;  %vm3300_vm1 = vweird.f32 %v16210_v53  ;;  %vm3301_vm2 = vweird.f32 %v12577_v61  ;;  %v12700_v15 = vadd.f32 1.0, %v9486_v22 }
 0x294   : > { %v12698_v36 = vpop.eup %9503  ;;  %v12702_v6 = vadd.f32 1.0, %v9488_v37  ;;  %v3321_v45 = vand.u32 2147483648, %v12604_v56  ;;  %v3326_v58 = vmul.f32 %v12680_v26, %v12620_v47  ;;  %v12707_v54 = vadd.f32 1.0, %v9490_v21  ;;  %vm12717_vm4 = vmor %vm3300_vm1, %vm3301_vm2 }
 0x295   : > { %v9506_v39 = vpop.eup %9505  ;;  %vm12709_vm3 = vcmp.eq.f32.partialorder %v3304_v41, 8.507059e+37  ;;  %v3312_v53 = vsub.f32 1.0, %v3311_v46  ;;  %v3341_v33 = vmul.f32 %v12685_v12, %v12629_v50  ;;  %v3307_v13 = vor.u32 1.1754944e-38, %v3306_v0 }
 0x296   : > { %v12715_v22 = vpop.eup %9507  ;;  %v3319_v37 = vand.u32 2147483647, %v12604_v56  ;;  %v3336_v34 = vand.u32 2147483648, %v12620_v47  ;;  %9513 = vrcp.f32 %v12687_v1  ;;  %v12724_v21 = vadd.f32 1.0, %v9494_v57 }
 0x297   : > { %v9510_v48 = vpop.eup %9509  ;;  %v12726_v3 = vadd.f32 1.0, %v9496_v25  ;;  %v3303_v60 = vsel %vm12717_vm4, %v12577_v61, %v3299_v42  ;;  %vm3315_vm5 = vweird.f32 %v12604_v56  ;;  %v3356_v9 = vmul.f32 %v12698_v36, %v12636_v18 }
 0x298   : > { %v12734_v4 = vpop.eup %9511  ;;  %v12736_v19 = vadd.f32 1.0, %v9502_v43  ;;  %v3322_v32 = vor.u32 1.1754944e-38, %v3321_v45  ;;  %v3327_v59 = vsub.f32 1.0, %v3326_v58  ;;  %v3334_v57 = vand.u32 2147483647, %v12620_v47 }
 0x299   : > { %v12739_v38 = vadd.f32 1.0, %v9506_v39  ;;  %v3313_v25 = vmul.f32 %v12651_v55, %v3312_v53  ;;  %v3342_v2 = vsub.f32 1.0, %v3341_v33  ;;  %v3371_v61 = vmul.f32 %v12715_v22, %v12643_v35 }
 0x29a   : > { %v12744_v14 = vadd.f32 1.0, %v9510_v48  ;;  %v12748_v41 = vsel %vm12709_vm3, %v3307_v13, %v3303_v60  ;;  %vm3330_vm6 = vweird.f32 %v12620_v47  ;;  %v12751_v46 = vor.u32 1.1754944e-38, %v3336_v34 }
 0x29b   : > { %v3351_v0 = vand.u32 2147483648, %v12629_v50  ;;  %vm12754_vm7 = vcmp.eq.f32.partialorder %v3319_v37, 8.507059e+37  ;;  %vm3345_vm8 = vweird.f32 %v12629_v50  ;;  %v3349_v42 = vand.u32 2147483647, %v12629_v50  ;;  %v16272_v50 = vld [vmem:[#allocation54_spill] sm:$0xff] }
 0x29c   : > { %v3357_v45 = vsub.f32 1.0, %v3356_v9  ;;  %v3386_v58 = vmul.f32 %v12734_v4, %v12656_v17  ;;  %v12762_v39 = vpop.eup %9513  ;;  %vm3316_vm10 = vweird.f32 %v12651_v55  ;;  %v3328_v29 = vmul.f32 %v12680_v26, %v3327_v59 }
 0x29d   : > { %v3366_v53 = vand.u32 2147483648, %v12636_v18  ;;  %9515 = vrcp.f32 %v12700_v15  ;;  %v3314_v33 = vadd.f32 %v12651_v55, %v3313_v25  ;;  %v3343_v44 = vmul.f32 %v12685_v12, %v3342_v2  ;;  %vm12790_vm14 = vmor %vm3315_vm5, %vm3316_vm10 }
 0x29e   : > { %v3364_v13 = vand.u32 2147483647, %v12636_v18  ;;  %v3372_v37 = vsub.f32 1.0, %v3371_v61  ;;  %vm3331_vm9 = vweird.f32 %v12680_v26  ;;  %v3352_v34 = vor.u32 1.1754944e-38, %v3351_v0 }
 0x29f   : > { %vm3360_vm11 = vweird.f32 %v12636_v18  ;;  %v3381_v48 = vand.u32 2147483648, %v12643_v35  ;;  %vm12774_vm12 = vcmp.eq.f32.partialorder %v3334_v57, 8.507059e+37  ;;  %vm12778_vm13 = vcmp.eq.f32.partialorder %v3349_v42, 8.507059e+37  ;;  %vm12816_vm3 = vmor %vm3330_vm6, %vm3331_vm9 }
 0x2a0   : > { %v3358_v59 = vmul.f32 %v12698_v36, %v3357_v45  ;;  %v3379_v25 = vand.u32 2147483647, %v12643_v35  ;;  %v3387_v2 = vsub.f32 1.0, %v3386_v58  ;;  %v3401_v61 = vmul.f32 %v12762_v39, %v12687_v1 }
 0x2a1   : > { %v3329_v0 = vadd.f32 %v12680_v26, %v3328_v29  ;;  %vm3346_vm15 = vweird.f32 %v12685_v12  ;;  %v3367_v42 = vor.u32 1.1754944e-38, %v3366_v53  ;;  %vm3375_vm0 = vweird.f32 %v12643_v35 }
 0x2a2   : > { %v3318_v45 = vsel %vm12790_vm14, %v12651_v55, %v3314_v33  ;;  %v3344_v58 = vadd.f32 %v12685_v12, %v3343_v44  ;;  %vm12801_vm1 = vcmp.eq.f32.partialorder %v3364_v13, 8.507059e+37  ;;  %v3373_v56 = vmul.f32 %v12715_v22, %v3372_v37  ;;  %vm12838_vm6 = vmor %vm3345_vm8, %vm3346_vm15 }
 0x2a3   : > { %vm3390_vm2 = vweird.f32 %v12656_v17  ;;  %v12807_v29 = vpop.eup %9515  ;;  %v3382_v63 = vor.u32 1.1754944e-38, %v3381_v48  ;;  %v3394_v53 = vand.u32 2147483647, %v12656_v17  ;;  %v3396_v8 = vand.u32 2147483648, %v12656_v17 }
 0x2a4   : > { %9517 = vrcp.f32 %v12702_v6  ;;  %v3359_v33 = vadd.f32 %v12698_v36, %v3358_v59  ;;  %vm3361_vm4 = vweird.f32 %v12698_v36  ;;  %vm12822_vm5 = vcmp.eq.f32.partialorder %v3379_v25, 8.507059e+37 }
 0x2a5   : > { %v3388_v13 = vmul.f32 %v12734_v4, %v3387_v2  ;;  %v3402_v37 = vsub.f32 1.0, %v3401_v61  ;;  %v12829_v48 = vsel %vm12754_vm7, %v3322_v32, %v3318_v45  ;;  %v3333_v47 = vsel %vm12816_vm3, %v12680_v26, %v3329_v0  ;;  %vm12853_vm7 = vmor %vm3360_vm11, %vm3361_vm4 }
 0x2a6   : > { %vm3376_vm10 = vweird.f32 %v12715_v22  ;;  %9519 = vrcp.f32 %v12707_v54  ;;  %v3348_v32 = vsel %vm12838_vm6, %v12685_v12, %v3344_v58  ;;  %v3374_v43 = vadd.f32 %v12715_v22, %v3373_v56 }
 0x2a7   : > { %v3409_v26 = vand.u32 2147483647, %v12687_v1  ;;  %v3416_v25 = vmul.f32 %v12807_v29, %v12700_v15  ;;  %vm3391_vm8 = vweird.f32 %v12734_v4  ;;  %vm12858_vm9 = vcmp.eq.f32.partialorder %v3394_v53, 8.507059e+37  ;;  %vm12884_vm11 = vmor %vm3375_vm0, %vm3376_vm10 }
 0x2a8   : > { %v3397_v12 = vor.u32 1.1754944e-38, %v3396_v8  ;;  %v3411_v61 = vand.u32 2147483648, %v12687_v1  ;;  %v3363_v57 = vsel %vm12853_vm7, %v12698_v36, %v3359_v33  ;;  %v3389_v0 = vadd.f32 %v12734_v4, %v3388_v13  ;;  %vm12909_vm15 = vmor %vm3390_vm2, %vm3391_vm8 }
 0x2a9   : > { %v3403_v18 = vmul.f32 %v12762_v39, %v3402_v37  ;;  %9521 = vrcp.f32 %v12724_v21  ;;  %v12874_v58 = vsel %vm12774_vm12, %v12751_v46, %v3333_v47  ;;  %v12878_v8 = vsel %vm12778_vm13, %v3352_v34, %v3348_v32  ;;  %v16268_v47 = vld [vmem:[#allocation53_spill] sm:$0xff] }
 0x2aa   : > { %v12869_v45 = vpop.eup %9517  ;;  %vm3405_vm14 = vweird.f32 %v12687_v1  ;;  %v3426_v56 = vand.u32 2147483648, %v12700_v15  ;;  %v3378_v46 = vsel %vm12884_vm11, %v12715_v22, %v3374_v43  ;;  %vm3406_vm12 = vweird.f32 %v12762_v39 }
 0x2ab   : > { %vm12894_vm13 = vcmp.eq.f32.partialorder %v3409_v26, 8.507059e+37  ;;  %v3417_v60 = vsub.f32 1.0, %v3416_v25  ;;  %9523 = vrcp.f32 %v12726_v3  ;;  %v12903_v9 = vsel %vm12801_vm1, %v3367_v42, %v3363_v57  ;;  %vm12950_vm1 = vmor %vm3405_vm14, %vm3406_vm12 }
 0x2ac   : > { %v12899_v35 = vpop.eup %9519  ;;  %v3412_v53 = vor.u32 1.1754944e-38, %v3411_v61  ;;  %v3424_v55 = vand.u32 2147483647, %v12700_v15  ;;  %9525 = vrcp.f32 %v12736_v19  ;;  %v3393_v33 = vsel %vm12909_vm15, %v12734_v4, %v3389_v0  ;;  %v16269_v4 = vld [vmem:[#allocation50_spill] sm:$0xff] }
 0x2ad   : > { %v3404_v10 = vadd.f32 %v12762_v39, %v3403_v18  ;;  %vm3420_vm0 = vweird.f32 %v12700_v15  ;;  %v3431_v17 = vmul.f32 %v12869_v45, %v12702_v6  ;;  %v3439_v42 = vand.u32 2147483647, %v12702_v6 }
 0x2ae   : > { %v12925_v13 = vsel %vm12822_vm5, %v3382_v63, %v3378_v46  ;;  %v12927_v37 = vor.u32 1.1754944e-38, %v3426_v56  ;;  %v12931_v59 = vmul.f32 %v12689_v23, %v16268_v47  ;;  %v3612_v32 = vadd.f32 %v16269_v4, %v12617_v52  ;;  %v16275_v46 = vld [vmem:[#allocation65_spill] sm:$0xff] }
 0x2af   : > { %v12935_v43 = vpop.eup %9521  ;;  %v3418_v26 = vmul.f32 %v12807_v29, %v3417_v60  ;;  %v3441_v25 = vand.u32 2147483648, %v12702_v6  ;;  %v3446_v44 = vmul.f32 %v12899_v35, %v12707_v54  ;;  %9527 = vrcp.f32 %v12739_v38 }
 0x2b0   : > { %v12944_v63 = vsel %vm12858_vm9, %v3397_v12, %v3393_v33  ;;  %vm3421_vm2 = vweird.f32 %v12807_v29  ;;  %v12957_v61 = vmul.f32 %v12693_v5, %v16272_v50  ;;  %v3613_v57 = vadd.f32 %v3612_v32, %v12654_v31 }
 0x2b1   : > { %v12960_v0 = vpop.eup %9523  ;;  %v3408_v2 = vsel %vm12950_vm1, %v12762_v39, %v3404_v10  ;;  %v3432_v12 = vsub.f32 1.0, %v3431_v17  ;;  %v3456_v1 = vand.u32 2147483648, %v12707_v54  ;;  %9529 = vrcp.f32 %v12744_v14  ;;  %vm13008_vm10 = vmor %vm3420_vm0, %vm3421_vm2 }
 0x2b2   : > { %v12967_v18 = vpop.eup %9525  ;;  %vm12969_vm3 = vcmp.eq.f32.partialorder %v3424_v55, 8.507059e+37  ;;  %v3454_v5 = vand.u32 2147483647, %v12707_v54  ;;  %v3461_v56 = vmul.f32 %v12935_v43, %v12724_v21  ;;  %v12978_v60 = vmul.f32 %v12748_v41, %v16275_v46 }
 0x2b3   : > { %v3614_v39 = vadd.f32 %v3613_v57, %v12931_v59  ;;  %v3419_v22 = vadd.f32 %v12807_v29, %v3418_v26  ;;  %vm3435_vm4 = vweird.f32 %v12702_v6  ;;  %v12983_v33 = vor.u32 1.1754944e-38, %v3441_v25 }
 0x2b4   : > { %v3447_v55 = vsub.f32 1.0, %v3446_v44  ;;  %v3471_v10 = vand.u32 2147483648, %v12724_v21  ;;  %v3413_v17 = vsel %vm12894_vm13, %v3412_v53, %v3408_v2  ;;  %v3476_v47 = vmul.f32 %v12960_v0, %v12726_v3 }
 0x2b5   : > { %v12992_v41 = vmul.f32 %v12829_v48, %v12493_v40  ;;  %v3615_v4 = vadd.f32 %v3614_v39, %v12957_v61  ;;  %v12995_v32 = vpop.eup %9527  ;;  %v3433_v26 = vmul.f32 %v12869_v45, %v3432_v12  ;;  %vm3436_vm5 = vweird.f32 %v12869_v45 }
 0x2b6   : > { %vm3450_vm6 = vweird.f32 %v12707_v54  ;;  %v13000_v25 = vor.u32 1.1754944e-38, %v3456_v1  ;;  %v3491_v34 = vmul.f32 %v12967_v18, %v12736_v19  ;;  %v3462_v48 = vsub.f32 1.0, %v3461_v56  ;;  %vm13064_vm13 = vmor %vm3435_vm4, %vm3436_vm5 }
 0x2b7   : > { %v3469_v53 = vand.u32 2147483647, %v12724_v21  ;;  %v13015_v44 = vmul.f32 %v12874_v58, %v12510_v62  ;;  %v3616_v23 = vadd.f32 %v3615_v4, %v12978_v60  ;;  %v13018_v50 = vpop.eup %9529  ;;  %v3423_v57 = vsel %vm13008_vm10, %v12807_v29, %v3419_v22 }
 0x2b8   : > { %v3448_v15 = vmul.f32 %v12899_v35, %v3447_v55  ;;  %v13024_v2 = vor.u32 1.1754944e-38, %v3471_v10  ;;  %v3486_v12 = vand.u32 2147483648, %v12726_v3  ;;  %vm13027_vm7 = vcmp.eq.f32.partialorder %v3439_v42, 8.507059e+37 }
 0x2b9   : > { %vm3465_vm8 = vweird.f32 %v12724_v21  ;;  %v3477_v62 = vsub.f32 1.0, %v3476_v47  ;;  %v3506_v58 = vmul.f32 %v12995_v32, %v12739_v38  ;;  %v13036_v56 = vmul.f32 %v12878_v8, %v12516_v16 }
 0x2ba   : > { %v3617_v29 = vadd.f32 %v3616_v23, %v12992_v41  ;;  %v3434_v46 = vadd.f32 %v12869_v45, %v3433_v26  ;;  %vm3451_vm9 = vweird.f32 %v12899_v35  ;;  %v3484_v42 = vand.u32 2147483647, %v12726_v3 }
 0x2bb   : > { %v3492_v39 = vsub.f32 1.0, %v3491_v34  ;;  %vm13042_vm11 = vcmp.eq.f32.partialorder %v3454_v5, 8.507059e+37  ;;  %v3463_v55 = vmul.f32 %v12935_v43, %v3462_v48  ;;  %vm3480_vm14 = vweird.f32 %v12726_v3  ;;  %vm13088_vm1 = vmor %vm3450_vm6, %vm3451_vm9 }
 0x2bc   : > { %v3521_v16 = vmul.f32 %v13018_v50, %v12744_v14  ;;  %v13052_v8 = vmul.f32 %v12903_v9, %v12531_v20  ;;  %v3618_v10 = vadd.f32 %v3617_v29, %v13015_v44  ;;  %v3428_v5 = vsel %vm12969_vm3, %v12927_v37, %v3423_v57 }
 0x2bd   : > { %v3449_v47 = vadd.f32 %v12899_v35, %v3448_v15  ;;  %vm3466_vm12 = vweird.f32 %v12935_v43  ;;  %v3487_v4 = vor.u32 1.1754944e-38, %v3486_v12  ;;  %vm13068_vm15 = vcmp.eq.f32.partialorder %v3469_v53, 8.507059e+37 }
 0x2be   : > { %v3478_v9 = vmul.f32 %v12960_v0, %v3477_v62  ;;  %v3507_v37 = vsub.f32 1.0, %v3506_v58  ;;  %v13075_v36 = vmul.f32 %v12925_v13, %v12536_v28  ;;  %v3619_v34 = vadd.f32 %v3618_v10, %v13036_v56  ;;  %vm13121_vm5 = vmor %vm3465_vm8, %vm3466_vm12  ;;  %v16299_v13 = vld [vmem:[#allocation62_spill] sm:$0xff] }
 0x2bf   : > { %v3438_v6 = vsel %vm13064_vm13, %v12869_v45, %v3434_v46  ;;  %v3493_v40 = vmul.f32 %v12967_v18, %v3492_v39  ;;  %vm3495_vm0 = vweird.f32 %v12736_v19  ;;  %v3499_v48 = vand.u32 2147483647, %v12736_v19 }
 0x2c0   : > { %v3464_v28 = vadd.f32 %v12935_v43, %v3463_v55  ;;  %vm13093_vm2 = vcmp.eq.f32.partialorder %v3484_v42, 8.507059e+37  ;;  %v3522_v45 = vsub.f32 1.0, %v3521_v16  ;;  %v13099_v23 = vmul.f32 %v12944_v63, %v12540_v51 }
 0x2c1   : > { %v3620_v57 = vadd.f32 %v3619_v34, %v13052_v8  ;;  %v3453_v54 = vsel %vm13088_vm1, %v12899_v35, %v3449_v47  ;;  %vm3481_vm3 = vweird.f32 %v12960_v0  ;;  %v3501_v15 = vand.u32 2147483648, %v12736_v19 }
 0x2c2   : > { %vm3510_vm4 = vweird.f32 %v12739_v38  ;;  %v3479_v12 = vadd.f32 %v12960_v0, %v3478_v9  ;;  %v3508_v62 = vmul.f32 %v12995_v32, %v3507_v37  ;;  %v13111_v58 = vmul.f32 %v3413_v17, %v12545_v7 }
 0x2c3   : > { %v3621_v51 = vadd.f32 %v3620_v57, %v13075_v36  ;;  %v3443_v63 = vsel %vm13027_vm7, %v12983_v33, %v3438_v6  ;;  %v3494_v29 = vadd.f32 %v12967_v18, %v3493_v40  ;;  %vm3496_vm6 = vweird.f32 %v12967_v18  ;;  %vm13146_vm7 = vmor %vm3480_vm14, %vm3481_vm3  ;;  %v16298_v40 = vld [vmem:[#allocation60_spill] sm:$0xff] }
 0x2c4   : > { %vm13127_vm10 = vcmp.eq.f32.partialorder %v3499_v48, 8.507059e+37  ;;  %v3468_v33 = vsel %vm13121_vm5, %v12935_v43, %v3464_v28  ;;  %v3523_v17 = vmul.f32 %v13018_v50, %v3522_v45  ;;  %v13136_v21 = vmul.f32 %v3428_v5, %v12550_v11  ;;  %vm13157_vm9 = vmor %vm3495_vm0, %vm3496_vm6 }
 0x2c5   : > { %v3622_v1 = vadd.f32 %v3621_v51, %v13099_v23  ;;  %v3458_v46 = vsel %vm13042_vm11, %v13000_v25, %v3453_v54  ;;  %vm3511_vm8 = vweird.f32 %v12995_v32  ;;  %v3514_v43 = vand.u32 2147483647, %v12739_v38  ;;  %v3583_v25 = vld [vmem:[%s16301_s3] sm:$0x1]  ;;  %s16430_s3 = sld [smem:[#allocation16_spill]] }
 0x2c6   : > { %v3483_v11 = vsel %vm13146_vm7, %v12960_v0, %v3479_v12  ;;  %v3509_v3 = vadd.f32 %v12995_v32, %v3508_v62  ;;  %v13163_v39 = vmul.f32 %v3443_v63, %v12554_v49  ;;  %v3473_v55 = vsel %vm13068_vm15, %v13024_v2, %v3468_v33  ;;  %vm3512_vm14 = vmor %vm3510_vm4, %vm3511_vm8 }
 0x2c7   : > { %v3623_v22 = vadd.f32 %v3622_v1, %v13111_v58  ;;  %v3498_v0 = vsel %vm13157_vm9, %v12967_v18, %v3494_v29  ;;  %v3516_v19 = vand.u32 2147483648, %v12739_v38  ;;  %vm3526_vm11 = vweird.f32 %v13018_v50 }
 0x2c8   : > { %v3524_v16 = vadd.f32 %v13018_v50, %v3523_v17  ;;  %v13176_v10 = vmul.f32 %v3458_v46, %v12558_v30  ;;  %v10073_v5 = vmov 256.0   ;;  %v3488_v2 = vsel %vm13093_vm2, %v3487_v4, %v3483_v11 }
 0x2c9   : > { %v3624_v49 = vadd.f32 %v3623_v22, %v13136_v21  ;;  %9531 = vrcp.f32 %v10073_v5  ;;  %v3502_v47 = vor.u32 1.1754944e-38, %v3501_v15  ;;  %vm3525_vm12 = vweird.f32 %v12744_v14 }
 0x2ca   : > { %v3531_v18 = vand.u32 2147483648, %v12744_v14  ;;  %v3513_v30 = vsel %vm3512_vm14, %v12995_v32, %v3509_v3  ;;  %v3529_v26 = vand.u32 2147483647, %v12744_v14  ;;  %v13190_v20 = vmul.f32 %v3473_v55, %v12574_v27  ;;  %vm3527_vm13 = vmor %vm3525_vm12, %vm3526_vm11  ;;  %v9079_v55 = vld [vmem:[%s16080_s8 + $0x38] sm:$0xff] }
 0x2cb   : > { %v3625_v9 = vadd.f32 %v3624_v49, %v13163_v39  ;;  %v3503_v4 = vsel %vm13127_vm10, %v3502_v47, %v3498_v0  ;;  %v3517_v37 = vor.u32 1.1754944e-38, %v3516_v19  ;;  %vm3515_vm15 = vcmp.eq.f32.partialorder %v3514_v43, 8.507059e+37  ;;  %3777 = vmatpush.bf16.msrb.mxu1 %v9079_v55  ;;  %v9078_v19 = vld [vmem:[%s16080_s8 + $0x30] sm:$0xff]  ;;  %v9080_v55 = vld [vmem:[%s10133_s19] sm:$0xff] }
 0x2cc   : > { %v3528_v38 = vsel %vm3527_vm13, %v13018_v50, %v3524_v16  ;;  %v13199_v34 = vmul.f32 %v3488_v2, %v12596_v24  ;;  %v3532_v27 = vor.u32 1.1754944e-38, %v3531_v18  ;;  %vm3530_vm0 = vcmp.eq.f32.partialorder %v3529_v26, 8.507059e+37  ;;  %v16300_v24 = vld [vmem:[#allocation66_spill] sm:$0xff]  ;;  %v9077_v16 = vld [vmem:[%s16080_s8 + $0x28] sm:$0xff] }
 0x2cd   : > { %v3626_v14 = vadd.f32 %v3625_v9, %v13176_v10  ;;  %v3518_v32 = vsel %vm3515_vm15, %v3517_v37, %v3513_v30  ;;  %v13203_v48 = vmul.f32 %v3503_v4, %v16298_v40  ;;  %v9076_v2 = vld [vmem:[%s16080_s8 + $0x20] sm:$0xff]  ;;  %v9075_v18 = vld [vmem:[%s16080_s8 + $0x18] sm:$0xff]  ;;  %v9074_v30 = vld [vmem:[%s16080_s8 + $0x10] sm:$0xff] }
 0x2ce   : > { %v3533_v28 = vsel %vm3530_vm0, %v3532_v27, %v3528_v38  ;;  %v13207_v45 = vmul.f32 %v3518_v32, %v16299_v13  ;;  %v9073_v37 = vld [vmem:[%s16080_s8 + $0x8] sm:$0xff] }
 0x2cf   : > { %v9532_v6 = vpop.eup %9531  ;;  %v3627_v53 = vadd.f32 %v3626_v14, %v13190_v20  ;;  %v13211_v54 = vmul.f32 %v3533_v28, %v16300_v24  ;;  %3778 = vmatpush.bf16.msrb.mxu1 %v9078_v19  ;;  %v9087_v24 = vld [vmem:[%s10133_s19 + $0x38] sm:$0xff] }
 0x2d0   : > { %v3639_v57 = vmul.f32 256.0, %v9532_v6  ;;  %vm3643_vm1 = vweird.f32 %v9532_v6  ;;  %3926 = vmatpush.bf16.msra.mxu3 %v9087_v24 }
 0x2d1   : > { %v3628_v50 = vadd.f32 %v3627_v53, %v13199_v34 }
 0x2d2   : > { %v3640_v62 = vsub.f32 1.0, %v3639_v57  ;;  %v3600_v57 = vld [vmem:[%s10128_s14] sm:$0x1] }
 0x2d3   : > { %v3629_v15 = vadd.f32 %v3628_v50, %v13203_v48  ;;  %3779 = vmatpush.bf16.msrb.mxu1 %v9077_v16 }
 0x2d4   : > { %v3641_v35 = vmul.f32 %v9532_v6, %v3640_v62  ;;  %v9086_v62 = vld [vmem:[%s10133_s19 + $0x30] sm:$0xff] }
 0x2d5   : > { %v3630_v12 = vadd.f32 %v3629_v15, %v13207_v45  ;;  %3927 = vmatpush.bf16.msra.mxu3 %v9086_v62  ;;  %v16311_v62 = vld [vmem:[#allocation44_spill] sm:$0xff] }
 0x2d6   : > { %v3642_v33 = vadd.f32 %v9532_v6, %v3641_v35 }
 0x2d7   : > { %v3631_v51 = vadd.f32 %v3630_v12, %v13211_v54  ;;  %3780 = vmatpush.bf16.msrb.mxu1 %v9076_v2  ;;  %v16302_v2 = vld [vmem:[#allocation33_spill] sm:$0xff] }
 0x2d8   : > { %v3644_v46 = vsel %vm3643_vm1, %v9532_v6, %v3642_v33  ;;  %v9072_v6 = vld [vmem:[%s16080_s8] sm:$0xff]  ;;  %s16468_s8 = sld [smem:[#allocation28_spill]] }
 0x2d9   : > { %v3632_v63 = vrot.slane %v3631_v51, 4 }
 0x2db   : > { %v3633_v29 = vadd.f32 %v3632_v63, %v3631_v51  ;;  %3781 = vmatpush.bf16.msrb.mxu1 %v9075_v18  ;;  %v9085_v63 = vld [vmem:[%s10133_s19 + $0x28] sm:$0xff]  ;;  %v16303_v18 = vld [vmem:[#allocation34_spill] sm:$0xff] }
 0x2dc   : > { %3928 = vmatpush.bf16.msra.mxu3 %v9085_v63 }
 0x2dd   : > { %v3634_v7 = vrot.slane %v3633_v29, 2 }
 0x2df   : > { %v3635_v17 = vadd.f32 %v3634_v7, %v3633_v29  ;;  %3782 = vmatpush.bf16.msrb.mxu1 %v9074_v30  ;;  %v9084_v29 = vld [vmem:[%s10133_s19 + $0x20] sm:$0xff] }
 0x2e0   : > { %3929 = vmatpush.bf16.msra.mxu3 %v9084_v29 }
 0x2e1   : > { %v3636_v1 = vrot.slane %v3635_v17, 1 }
 0x2e3   : > { %v3637_v42 = vadd.f32 %v3636_v1, %v3635_v17  ;;  %3783 = vmatpush.bf16.msrb.mxu1 %v9073_v37  ;;  %v9083_v17 = vld [vmem:[%s10133_s19 + $0x18] sm:$0xff]  ;;  %v9082_v1 = vld [vmem:[%s10133_s19 + $0x10] sm:$0xff] }
 0x2e4   : > { %3930 = vmatpush.bf16.msra.mxu3 %v9083_v17  ;;  %v16305_v37 = vld [vmem:[#allocation38_spill] sm:$0xff] }
 0x2e5   : > { %v3645_v43 = vmul.f32 %v3644_v46, %v3637_v42 }
 0x2e7   : > { %v3646_v11 = vpack.c.bf16 %v3645_v43, %v3645_v43  ;;  %3784 = vmatpush.bf16.msrb.mxu1 %v9072_v6  ;;  %v9081_v43 = vld [vmem:[%s10133_s19 + $0x8] sm:$0xff] }
 0x2e8   : > { %3931 = vmatpush.bf16.msra.mxu3 %v9082_v1  ;;  %v16307_v6 = vld [vmem:[#allocation39_spill] sm:$0xff]  ;;  %v9095_v1 = vld [vmem:[%s10143_s30 + $0x38] sm:$0xff] }
 0x2e9   : > { %3703 = vmatmul.bf16.vlgmr.msra.gmra.mxu1 %v3646_v11 }
 0x2eb   : > { %4131 = vmatpush.bf16.msra.mxu1 %v9095_v1 }
 0x2ec   : > { %3932 = vmatpush.bf16.msra.mxu3 %v9081_v43 }
 0x2f0   : > { %3933 = vmatpush.bf16.msra.mxu3 %v9080_v55  ;;  %v9090_v55 = vld [vmem:[%s10143_s30 + $0x10] sm:$0xff] }
 0x366   : > { %v3704_v3 = vpop.f32.mrf.mxu1 }
 0x367   : > { %v3705_v22 = vadd.f32 %v3704_v3, %v3583_v25 }
 0x369   : > { %v8544_v0 = vmul.f32 -1.442695, %v3705_v22 }
 0x36b   : > { %9533 = vpow2.f32 %v8544_v0 }
 0x36e   : > { %v3706_v49 = vpop.f32.mrf.mxu1 }
 0x371   : > { %v9534_v5 = vpop.eup %9533 }
 0x372   : > { %v3711_v47 = vadd.f32 1.0, %v9534_v5 }
 0x374   : > { %9535 = vrcp.f32 %v3711_v47  ;;  %v3723_v38 = vand.u32 2147483648, %v3711_v47  ;;  %v3721_v32 = vand.u32 2147483647, %v3711_v47  ;;  %vm3717_vm3 = vweird.f32 %v3711_v47 }
 0x376   : > { %v3724_v40 = vor.u32 1.1754944e-38, %v3723_v38  ;;  %vm3722_vm5 = vcmp.eq.f32.partialorder %v3721_v32, 8.507059e+37  ;;  %v16306_v32 = vld [vmem:[#allocation36_spill] sm:$0xff] }
 0x37a   : > { %v9536_v26 = vpop.eup %9535 }
 0x37b   : > { %v3713_v9 = vmul.f32 %v9536_v26, %v3711_v47  ;;  %vm3718_vm2 = vweird.f32 %v9536_v26 }
 0x37c   : > { %vm3719_vm4 = vmor %vm3717_vm3, %vm3718_vm2 }
 0x37d   : > { %v3714_v4 = vsub.f32 1.0, %v3713_v9  ;;  %v16304_v9 = vld [vmem:[#allocation37_spill] sm:$0xff] }
 0x37f   : > { %v3715_v14 = vmul.f32 %v9536_v26, %v3714_v4 }
 0x381   : > { %v3716_v27 = vadd.f32 %v9536_v26, %v3715_v14 }
 0x383   : > { %v3720_v53 = vsel %vm3719_vm4, %v9536_v26, %v3716_v27 }
 0x384   : > { %v3725_v28 = vsel %vm3722_vm5, %v3724_v40, %v3720_v53 }
 0x385   : > { %v3727_v13 = vmul.f32 %v3725_v28, %v3705_v22  ;;  %v16308_v28 = vld [vmem:[#allocation40_spill] sm:$0xff] }
 0x387   : > { %v3728_v50 = vpack.c.bf16 %v3727_v13, %v3727_v13 }
 0x389   : > { %3785 = vmatmul.bf16.vlgmr.msrb.gmra.mxu1 %v3728_v50  ;;  %v16309_v50 = vld [vmem:[#allocation41_spill] sm:$0xff] }
 0x406   : > { %v3786_v15 = vpop.f32.mrf.mxu1 }
 0x407   : > { %v3787_v12 = vadd.f32 %v3786_v15, %v3600_v57  ;;  %v16310_v15 = vld [vmem:[#allocation43_spill] sm:$0xff] }
 0x409   : > { %v8577_v51 = vmul.f32 -1.442695, %v3787_v12 }
 0x40b   : > { %9537 = vpow2.f32 %v8577_v51 }
 0x40e   : > { %v3788_v35 = vpop.f32.mrf.mxu1 }
 0x40f   : > { %v16312_v35 = vld [vmem:[#allocation47_spill] sm:$0xff] }
 0x411   : > { %v9538_v7 = vpop.eup %9537 }
 0x412   : > { %v3793_v33 = vadd.f32 1.0, %v9538_v7  ;;  %v16313_v7 = vld [vmem:[#allocation49_spill] sm:$0xff] }
 0x414   : > { %9539 = vrcp.f32 %v3793_v33  ;;  %v3805_v25 = vand.u32 2147483648, %v3793_v33  ;;  %v3803_v22 = vand.u32 2147483647, %v3793_v33  ;;  %vm3799_vm10 = vweird.f32 %v3793_v33 }
 0x416   : > { %v3806_v19 = vor.u32 1.1754944e-38, %v3805_v25  ;;  %vm3804_vm8 = vcmp.eq.f32.partialorder %v3803_v22, 8.507059e+37  ;;  %v9092_v25 = vld [vmem:[%s10143_s30 + $0x20] sm:$0xff]  ;;  %v9091_v22 = vld [vmem:[%s10143_s30 + $0x18] sm:$0xff] }
 0x41a   : > { %v9540_v46 = vpop.eup %9539 }
 0x41b   : > { %v3795_v42 = vmul.f32 %v9540_v46, %v3793_v33  ;;  %vm3800_vm6 = vweird.f32 %v9540_v46 }
 0x41c   : > { %vm3801_vm7 = vmor %vm3799_vm10, %vm3800_vm6 }
 0x41d   : > { %v3796_v11 = vsub.f32 1.0, %v3795_v42  ;;  %v9093_v42 = vld [vmem:[%s10143_s30 + $0x28] sm:$0xff] }
 0x41f   : > { %v3797_v3 = vmul.f32 %v9540_v46, %v3796_v11 }
 0x421   : > { %v3798_v0 = vadd.f32 %v9540_v46, %v3797_v3 }
 0x423   : > { %v3802_v16 = vsel %vm3801_vm7, %v9540_v46, %v3798_v0  ;;  %v9094_v46 = vld [vmem:[%s10143_s30 + $0x30] sm:$0xff] }
 0x424   : > { %v3807_v49 = vsel %vm3804_vm8, %v3806_v19, %v3802_v16  ;;  %4132 = vmatpush.bf16.msra.mxu1 %v9094_v46  ;;  %v9088_v16 = vld [vmem:[%s10143_s30] sm:$0xff] }
 0x425   : > { %v13234_v5 = vperm.slane %v3807_v49, 0 }
 0x427   : > { %v3810_v47 = vmul.f32 %v13234_v5, %v16302_v2  ;;  %v3811_v30 = vmul.f32 %v13234_v5, %v16303_v18  ;;  %v3812_v4 = vmul.f32 %v13234_v5, %v16304_v9  ;;  %v3813_v38 = vmul.f32 %v13234_v5, %v16305_v37 }
 0x428   : > { %v3814_v27 = vmul.f32 %v13234_v5, %v16306_v32  ;;  %v3815_v40 = vmul.f32 %v13234_v5, %v16307_v6  ;;  %v3816_v13 = vmul.f32 %v13234_v5, %v16308_v28  ;;  %v3817_v57 = vmul.f32 %v13234_v5, %v16309_v50  ;;  %4133 = vmatpush.bf16.msra.mxu1 %v9093_v42  ;;  %v9922_v28 = vld [vmem:[#allocation2 + $0x31] sm:$0xff] }
 0x429   : > { %v3859_v26 = vpack.c.bf16 %v3811_v30, %v3810_v47  ;;  %v3860_v14 = vpack.c.bf16 %v3813_v38, %v3812_v4  ;;  %v3818_v12 = vmul.f32 %v13234_v5, %v16310_v15  ;;  %v3819_v51 = vmul.f32 %v13234_v5, %v16311_v62  ;;  %v9921_v38 = vld [vmem:[#allocation2 + $0x21] sm:$0xff] }
 0x42a   : > { %v3861_v53 = vpack.c.bf16 %v3815_v40, %v3814_v27  ;;  %v3862_v24 = vpack.c.bf16 %v3817_v57, %v3816_v13  ;;  %v3820_v29 = vmul.f32 %v13234_v5, %v16312_v35  ;;  %v3821_v33 = vmul.f32 %v13234_v5, %v16313_v7  ;;  %v9923_v57 = vld [vmem:[#allocation2 + $0x39] sm:$0xff]  ;;  %v9924_v35 = vld [vmem:[#allocation2 + $0x49] sm:$0xff] }
 0x42b   : > { %3934 = vmatmul.bf16.vlgmr.msra.gmra.mxu3 %v3859_v26  ;;  %v3863_v63 = vpack.c.bf16 %v3819_v51, %v3818_v12  ;;  %v3822_v43 = vmul.f32 %v13234_v5, %v12617_v52  ;;  %v3823_v11 = vmul.f32 %v13234_v5, %v12654_v31  ;;  %v3824_v0 = vmul.f32 %v13234_v5, %v12931_v59  ;;  %v9089_v31 = vld [vmem:[%s10143_s30 + $0x8] sm:$0xff]  ;;  %v13281_v59 = vld [vmem:[%s10138_s24] ss:$0 sm:$0xff] }
 0x42c   : > { %v3864_v17 = vpack.c.bf16 %v3821_v33, %v3820_v29  ;;  %4134 = vmatpush.bf16.msra.mxu1 %v9092_v25  ;;  %v3825_v19 = vmul.f32 %v13234_v5, %v12957_v61  ;;  %v3826_v49 = vmul.f32 %v13234_v5, %v12978_v60  ;;  %v3827_v2 = vmul.f32 %v13234_v5, %v12992_v41  ;;  %v9920_v60 = vld [vmem:[#allocation2 + $0x19] sm:$0xff]  ;;  %v9925_v33 = vld [vmem:[#allocation2 + $0x51] sm:$0xff]  ;;  %v9926_v25 = vld [vmem:[#allocation2 + $0x61] sm:$0xff] }
 0x42d   : > { %v3865_v3 = vpack.c.bf16 %v3823_v11, %v3822_v43  ;;  %v3828_v30 = vmul.f32 %v13234_v5, %v13015_v44  ;;  %v3829_v26 = vmul.f32 %v13234_v5, %v13036_v56  ;;  %v3830_v44 = vmul.f32 %v13234_v5, %v13052_v8 }
 0x42e   : > { %v3866_v52 = vpack.c.bf16 %v3825_v19, %v3824_v0  ;;  %v3867_v47 = vpack.c.bf16 %v3827_v2, %v3826_v49  ;;  %v3831_v56 = vmul.f32 %v13234_v5, %v13075_v36  ;;  %v3832_v8 = vmul.f32 %v13234_v5, %v13099_v23  ;;  %v9928_v2 = vld [vmem:[#allocation2 + $0x79] sm:$0xff] }
 0x42f   : > { %v3833_v36 = vmul.f32 %v13234_v5, %v13111_v58  ;;  %v3834_v23 = vmul.f32 %v13234_v5, %v13136_v21  ;;  %v3835_v58 = vmul.f32 %v13234_v5, %v13163_v39  ;;  %v3836_v21 = vmul.f32 %v13234_v5, %v13176_v10 }
 0x430   : > { %4135 = vmatpush.bf16.msra.mxu1 %v9091_v22  ;;  %v3869_v50 = vpack.c.bf16 %v3831_v56, %v3830_v44  ;;  %v3837_v39 = vmul.f32 %v13234_v5, %v13190_v20  ;;  %v3838_v10 = vmul.f32 %v13234_v5, %v13199_v34  ;;  %v3839_v20 = vmul.f32 %v13234_v5, %v13203_v48 }
 0x431   : > { %v3870_v7 = vpack.c.bf16 %v3833_v36, %v3832_v8  ;;  %v3871_v22 = vpack.c.bf16 %v3835_v58, %v3834_v23  ;;  %v3840_v34 = vmul.f32 %v13234_v5, %v13207_v45  ;;  %v3841_v48 = vmul.f32 %v13234_v5, %v13211_v54  ;;  %v9934_v36 = vld [vmem:[#allocation2 + $0xc1] sm:$0xff]  ;;  %v9935_v5 = vld [vmem:[#allocation2 + $0xc9] sm:$0xff] }
 0x434   : > { %4136 = vmatpush.bf16.msra.mxu1 %v9090_v55  ;;  %v9927_v55 = vld [vmem:[#allocation2 + $0x69] sm:$0xff] }
 0x438   : > { %4137 = vmatpush.bf16.msra.mxu1 %v9089_v31 }
 0x43b   : > { %3939 = vmatmul.bf16.gmra.mxu3 %v3860_v14  ;;  %v3868_v14 = vpack.c.bf16 %v3829_v26, %v3828_v30 }
 0x43c   : > { %4138 = vmatpush.bf16.msra.mxu1 %v9088_v16 }
 0x44b   : > { %3944 = vmatmul.bf16.gmra.mxu3 %v3861_v53 }
 0x45b   : > { %3949 = vmatmul.bf16.gmra.mxu3 %v3862_v24 }
 0x46b   : > { %3954 = vmatmul.bf16.gmra.mxu3 %v3863_v63 }
 0x47b   : > { %3959 = vmatmul.bf16.gmra.mxu3 %v3864_v17 }
 0x48b   : > { %3964 = vmatmul.bf16.gmra.mxu3 %v3865_v3 }
 0x49b   : > { %3969 = vmatmul.bf16.gmra.mxu3 %v3866_v52 }
 0x4ab   : > { %3974 = vmatmul.bf16.gmra.mxu3 %v3867_v47 }
 0x4ae   : > { %v3935_v18 = vpop.f32.mrf.mxu3 }
 0x4af   : > { %v3936_v61 = vadd.f32 %v13281_v59, %v3935_v18  ;;  %v3872_v18 = vpack.c.bf16 %v3837_v39, %v3836_v21 }
 0x4b1   : > { %v4015_v37 = vadd.f32 %v9920_v60, %v3936_v61  ;;  %v9929_v61 = vld [vmem:[#allocation2 + $0x81] sm:$0xff] }
 0x4b6   : > { %v3937_v9 = vpop.f32.mrf.mxu3 }
 0x4b7   : > { %v3938_v4 = vadd.f32 %v13281_v59, %v3937_v9 }
 0x4b9   : > { %v4016_v41 = vadd.f32 %v9921_v38, %v3938_v4  ;;  %v9930_v38 = vld [vmem:[#allocation2 + $0x91] sm:$0xff] }
 0x4bb   : > { %v4064_v32 = vpack.c.bf16 %v4016_v41, %v4015_v37  ;;  %3979 = vmatmul.bf16.gmra.mxu3 %v3868_v14  ;;  %v3873_v14 = vpack.c.bf16 %v3839_v20, %v3838_v10 }
 0x4bd   : > { %4139 = vmatmul.bf16.vlgmr.msra.gmra.mxu1 %v4064_v32  ;;  %v9931_v32 = vld [vmem:[#allocation2 + $0x99] sm:$0xff] }
 0x4be   : > { %v3940_v27 = vpop.f32.mrf.mxu3 }
 0x4bf   : > { %v3941_v6 = vadd.f32 %v13281_v59, %v3940_v27 }
 0x4c1   : > { %v4017_v13 = vadd.f32 %v9922_v28, %v3941_v6  ;;  %v9932_v28 = vld [vmem:[#allocation2 + $0xa9] sm:$0xff] }
 0x4c6   : > { %v3942_v40 = vpop.f32.mrf.mxu3 }
 0x4c7   : > { %v3943_v53 = vadd.f32 %v13281_v59, %v3942_v40 }
 0x4c9   : > { %v4018_v24 = vadd.f32 %v9923_v57, %v3943_v53  ;;  %v9933_v57 = vld [vmem:[#allocation2 + $0xb1] sm:$0xff] }
 0x4cb   : > { %3984 = vmatmul.bf16.gmra.mxu3 %v3869_v50  ;;  %v4065_v15 = vpack.c.bf16 %v4018_v24, %v4017_v13  ;;  %v3874_v50 = vpack.c.bf16 %v3841_v48, %v3840_v34 }
 0x4cd   : > { %4144 = vmatmul.bf16.gmra.mxu1 %v4065_v15 }
 0x4ce   : > { %v3945_v12 = vpop.f32.mrf.mxu3 }
 0x4cf   : > { %v3946_v62 = vadd.f32 %v13281_v59, %v3945_v12 }
 0x4d1   : > { %v4019_v29 = vadd.f32 %v9924_v35, %v3946_v62 }
 0x4d6   : > { %v3947_v51 = vpop.f32.mrf.mxu3 }
 0x4d7   : > { %v3948_v63 = vadd.f32 %v13281_v59, %v3947_v51 }
 0x4d9   : > { %v4020_v17 = vadd.f32 %v9925_v33, %v3948_v63 }
 0x4db   : > { %3989 = vmatmul.bf16.gmra.mxu3 %v3870_v7  ;;  %v4066_v1 = vpack.c.bf16 %v4020_v17, %v4019_v29  ;;  %v13330_v17 = vld [vmem:[%s16081_s6] ss:$0 sm:$0xff] }
 0x4dd   : > { %4149 = vmatmul.bf16.gmra.mxu1 %v4066_v1  ;;  %v9936_v1 = vld [vmem:[#allocation2 + $0xd9] sm:$0xff] }
 0x4de   : > { %v3950_v46 = vpop.f32.mrf.mxu3 }
 0x4df   : > { %v3951_v42 = vadd.f32 %v13281_v59, %v3950_v46 }
 0x4e1   : > { %v4021_v3 = vadd.f32 %v9926_v25, %v3951_v42  ;;  %v9937_v42 = vld [vmem:[#allocation2 + $0xe1] sm:$0xff] }
 0x4e6   : > { %v3952_v43 = vpop.f32.mrf.mxu3 }
 0x4e7   : > { %v3953_v11 = vadd.f32 %v13281_v59, %v3952_v43 }
 0x4e9   : > { %v4022_v0 = vadd.f32 %v9927_v55, %v3953_v11 }
 0x4eb   : > { %3994 = vmatmul.bf16.gmra.mxu3 %v3871_v22  ;;  %v4067_v19 = vpack.c.bf16 %v4022_v0, %v4021_v3 }
 0x4ed   : > { %4154 = vmatmul.bf16.gmra.mxu1 %v4067_v19 }
 0x4ee   : > { %v3955_v52 = vpop.f32.mrf.mxu3 }
 0x4ef   : > { %v3956_v31 = vadd.f32 %v13281_v59, %v3955_v52 }
 0x4f1   : > { %v4023_v47 = vadd.f32 %v9928_v2, %v3956_v31  ;;  %v9939_v2 = vld [vmem:[#allocation2 + $0xf9] sm:$0xff] }
 0x4f6   : > { %v3957_v16 = vpop.f32.mrf.mxu3 }
 0x4f7   : > { %v3958_v49 = vadd.f32 %v13281_v59, %v3957_v16  ;;  %v9938_v16 = vld [vmem:[#allocation2 + $0xf1] sm:$0xff] }
 0x4f9   : > { %v4024_v30 = vadd.f32 %v9929_v61, %v3958_v49 }
 0x4fb   : > { %3999 = vmatmul.bf16.gmra.mxu3 %v3872_v18  ;;  %v4068_v26 = vpack.c.bf16 %v4024_v30, %v4023_v47 }
 0x4fd   : > { %4159 = vmatmul.bf16.gmra.mxu1 %v4068_v26 }
 0x4fe   : > { %v3960_v9 = vpop.f32.mrf.mxu3 }
 0x4ff   : > { %v3961_v4 = vadd.f32 %v13281_v59, %v3960_v9 }
 0x501   : > { %v4025_v41 = vadd.f32 %v9930_v38, %v3961_v4 }
 0x506   : > { %v3962_v60 = vpop.f32.mrf.mxu3 }
 0x507   : > { %v3963_v37 = vadd.f32 %v13281_v59, %v3962_v60 }
 0x509   : > { %v4026_v27 = vadd.f32 %v9931_v32, %v3963_v37 }
 0x50b   : > { %4004 = vmatmul.bf16.gmra.mxu3 %v3873_v14  ;;  %v4069_v6 = vpack.c.bf16 %v4026_v27, %v4025_v41 }
 0x50d   : > { %4164 = vmatmul.bf16.gmra.mxu1 %v4069_v6 }
 0x50e   : > { %v3965_v44 = vpop.f32.mrf.mxu3 }
 0x50f   : > { %v3966_v56 = vadd.f32 %v13281_v59, %v3965_v44 }
 0x511   : > { %v4027_v13 = vadd.f32 %v9932_v28, %v3966_v56 }
 0x516   : > { %v3967_v40 = vpop.f32.mrf.mxu3 }
 0x517   : > { %v3968_v53 = vadd.f32 %v13281_v59, %v3967_v40 }
 0x519   : > { %v4028_v24 = vadd.f32 %v9933_v57, %v3968_v53 }
 0x51b   : > { %4009 = vmatmul.bf16.gmra.mxu3 %v3874_v50  ;;  %v4070_v15 = vpack.c.bf16 %v4028_v24, %v4027_v13 }
 0x51d   : > { %4169 = vmatmul.bf16.gmra.mxu1 %v4070_v15 }
 0x51e   : > { %v3970_v12 = vpop.f32.mrf.mxu3 }
 0x51f   : > { %v3971_v62 = vadd.f32 %v13281_v59, %v3970_v12 }
 0x521   : > { %v4029_v54 = vadd.f32 %v9934_v36, %v3971_v62 }
 0x526   : > { %v3972_v8 = vpop.f32.mrf.mxu3 }
 0x527   : > { %v3973_v45 = vadd.f32 %v13281_v59, %v3972_v8 }
 0x529   : > { %v4030_v51 = vadd.f32 %v9935_v5, %v3973_v45  ;;  %v9940_v45 = vld [vmem:[#allocation2 + $0x109] sm:$0xff] }
 0x52b   : > { %v4071_v63 = vpack.c.bf16 %v4030_v51, %v4029_v54  ;;  %v9941_v51 = vld [vmem:[#allocation2 + $0x111] sm:$0xff] }
 0x52d   : > { %4174 = vmatmul.bf16.gmra.mxu1 %v4071_v63 }
 0x52e   : > { %v3975_v35 = vpop.f32.mrf.mxu3 }
 0x52f   : > { %v3976_v29 = vadd.f32 %v13281_v59, %v3975_v35 }
 0x531   : > { %v4031_v46 = vadd.f32 %v9936_v1, %v3976_v29 }
 0x536   : > { %v3977_v7 = vpop.f32.mrf.mxu3 }
 0x537   : > { %v3978_v33 = vadd.f32 %v13281_v59, %v3977_v7 }
 0x539   : > { %v4032_v23 = vadd.f32 %v9937_v42, %v3978_v33 }
 0x53a   : > { %v4140_v58 = vpop.f32.mrf.mxu1 }
 0x53b   : > { %v4141_v43 = vadd.f32 %v13330_v17, %v4140_v58  ;;  %v4072_v11 = vpack.c.bf16 %v4032_v23, %v4031_v46 }
 0x53d   : > { %v8642_v25 = vmul.f32 -1.442695, %v4141_v43  ;;  %4179 = vmatmul.bf16.gmra.mxu1 %v4072_v11 }
 0x53e   : > { %v3980_v3 = vpop.f32.mrf.mxu3 }
 0x53f   : > { %9541 = vpow2.f32 %v8642_v25  ;;  %v3981_v19 = vadd.f32 %v13281_v59, %v3980_v3 }
 0x541   : > { %v4033_v49 = vadd.f32 %v9938_v16, %v3981_v19 }
 0x542   : > { %v4142_v22 = vpop.f32.mrf.mxu1 }
 0x543   : > { %v13334_v55 = vadd.f32 %v13330_v17, %v4142_v22 }
 0x545   : > { %v9542_v0 = vpop.eup %9541  ;;  %v8643_v52 = vmul.f32 -1.442695, %v13334_v55 }
 0x546   : > { %v4316_v31 = vadd.f32 1.0, %v9542_v0  ;;  %v3982_v21 = vpop.f32.mrf.mxu3 }
 0x547   : > { %9543 = vpow2.f32 %v8643_v52  ;;  %v3983_v39 = vadd.f32 %v13281_v59, %v3982_v21 }
 0x548   : > { %9545 = vrcp.f32 %v4316_v31  ;;  %v4359_v38 = vand.u32 2147483648, %v4316_v31  ;;  %v4357_v32 = vand.u32 2147483647, %v4316_v31  ;;  %vm4353_vm11 = vweird.f32 %v4316_v31 }
 0x549   : > { %v4034_v47 = vadd.f32 %v9939_v2, %v3983_v39 }
 0x54a   : > { %v4145_v18 = vpop.f32.mrf.mxu1  ;;  %v4360_v48 = vor.u32 1.1754944e-38, %v4359_v38  ;;  %vm4358_vm12 = vcmp.eq.f32.partialorder %v4357_v32, 8.507059e+37 }
 0x54b   : > { %v13340_v61 = vadd.f32 %v13330_v17, %v4145_v18  ;;  %v4073_v30 = vpack.c.bf16 %v4034_v47, %v4033_v49 }
 0x54d   : > { %v9544_v26 = vpop.eup %9543  ;;  %v8644_v9 = vmul.f32 -1.442695, %v13340_v61  ;;  %4184 = vmatmul.bf16.gmra.mxu1 %v4073_v30 }
 0x54e   : > { %v9546_v4 = vpop.eup %9545  ;;  %v4317_v10 = vadd.f32 1.0, %v9544_v26  ;;  %v3985_v20 = vpop.f32.mrf.mxu3 }
 0x54f   : > { %v4349_v60 = vmul.f32 %v9546_v4, %v4316_v31  ;;  %9547 = vpow2.f32 %v8644_v9  ;;  %vm4354_vm9 = vweird.f32 %v9546_v4  ;;  %v3986_v53 = vadd.f32 %v13281_v59, %v3985_v20 }
 0x550   : > { %9549 = vrcp.f32 %v4317_v10  ;;  %vm4355_vm14 = vmor %vm4353_vm11, %vm4354_vm9  ;;  %v4372_v62 = vand.u32 2147483647, %v4317_v10  ;;  %v4374_v8 = vand.u32 2147483648, %v4317_v10  ;;  %vm4368_vm15 = vweird.f32 %v4317_v10 }
 0x551   : > { %v4350_v37 = vsub.f32 1.0, %v4349_v60  ;;  %v4035_v36 = vadd.f32 %v9940_v45, %v3986_v53 }
 0x552   : > { %v4147_v41 = vpop.f32.mrf.mxu1  ;;  %v4375_v42 = vor.u32 1.1754944e-38, %v4374_v8  ;;  %vm4373_vm1 = vcmp.eq.f32.partialorder %v4372_v62, 8.507059e+37 }
 0x553   : > { %v4351_v14 = vmul.f32 %v9546_v4, %v4350_v37  ;;  %v13344_v27 = vadd.f32 %v13330_v17, %v4147_v41  ;;  %v9942_v41 = vld [vmem:[#allocation2 + $0x121] sm:$0xff] }
 0x555   : > { %v9548_v6 = vpop.eup %9547  ;;  %v4352_v44 = vadd.f32 %v9546_v4, %v4351_v14  ;;  %v8645_v56 = vmul.f32 -1.442695, %v13344_v27 }
 0x556   : > { %v9550_v34 = vpop.eup %9549  ;;  %v4318_v40 = vadd.f32 1.0, %v9548_v6  ;;  %v3987_v28 = vpop.f32.mrf.mxu3 }
 0x557   : > { %v4356_v13 = vsel %vm4355_vm14, %v9546_v4, %v4352_v44  ;;  %v4364_v50 = vmul.f32 %v9550_v34, %v4317_v10  ;;  %9551 = vpow2.f32 %v8645_v56  ;;  %v3988_v12 = vadd.f32 %v13281_v59, %v3987_v28  ;;  %v9943_v44 = vld [vmem:[#allocation2 + $0x129] sm:$0xff] }
 0x558   : > { %v4361_v57 = vsel %vm4358_vm12, %v4360_v48, %v4356_v13  ;;  %9553 = vrcp.f32 %v4318_v40  ;;  %vm4369_vm13 = vweird.f32 %v9550_v34  ;;  %v4389_v0 = vand.u32 2147483648, %v4318_v40 }
 0x559   : > { %v4828_v24 = vmul.f32 %v4361_v57, %v4141_v43  ;;  %v4365_v15 = vsub.f32 1.0, %v4364_v50  ;;  %v4036_v63 = vadd.f32 %v9941_v51, %v3988_v12  ;;  %vm4370_vm0 = vmor %vm4368_vm15, %vm4369_vm13  ;;  %v4387_v31 = vand.u32 2147483647, %v4318_v40 }
 0x55a   : > { %v4150_v54 = vpop.f32.mrf.mxu1  ;;  %vm4383_vm3 = vweird.f32 %v4318_v40  ;;  %v4390_v47 = vor.u32 1.1754944e-38, %v4389_v0 }
 0x55b   : > { %4901 = vst [vmem:[#allocation2 + $0x19] sm:$0xff] %v4828_v24  ;;  %v4366_v5 = vmul.f32 %v9550_v34, %v4365_v15  ;;  %v13350_v35 = vadd.f32 %v13330_v17, %v4150_v54  ;;  %v4074_v1 = vpack.c.bf16 %v4036_v63, %v4035_v36  ;;  %vm4388_vm5 = vcmp.eq.f32.partialorder %v4387_v31, 8.507059e+37 }
 0x55d   : > { %v9552_v29 = vpop.eup %9551  ;;  %v4367_v7 = vadd.f32 %v9550_v34, %v4366_v5  ;;  %v8646_v33 = vmul.f32 -1.442695, %v13350_v35  ;;  %4189 = vmatmul.bf16.gmra.mxu1 %v4074_v1 }
 0x55e   : > { %v9554_v46 = vpop.eup %9553  ;;  %v4319_v23 = vadd.f32 1.0, %v9552_v29  ;;  %v3990_v58 = vpop.f32.mrf.mxu3 }
 0x55f   : > { %v4371_v43 = vsel %vm4370_vm0, %v9550_v34, %v4367_v7  ;;  %v4379_v11 = vmul.f32 %v9554_v46, %v4318_v40  ;;  %9555 = vpow2.f32 %v8646_v33  ;;  %vm4384_vm2 = vweird.f32 %v9554_v46 }
 0x560   : > { %v4376_v25 = vsel %vm4373_vm1, %v4375_v42, %v4371_v43  ;;  %9557 = vrcp.f32 %v4319_v23  ;;  %vm4385_vm4 = vmor %vm4383_vm3, %vm4384_vm2  ;;  %v4402_v37 = vand.u32 2147483647, %v4319_v23  ;;  %v4404_v38 = vand.u32 2147483648, %v4319_v23 }
 0x561   : > { %v4829_v3 = vmul.f32 %v4376_v25, %v13334_v55  ;;  %v4380_v22 = vsub.f32 1.0, %v4379_v11  ;;  %v3991_v55 = vadd.f32 %v13281_v59, %v3990_v58  ;;  %vm4398_vm10 = vweird.f32 %v4319_v23 }
 0x562   : > { %v4152_v19 = vpop.f32.mrf.mxu1  ;;  %v4405_v13 = vor.u32 1.1754944e-38, %v4404_v38  ;;  %vm4403_vm8 = vcmp.eq.f32.partialorder %v4402_v37, 8.507059e+37 }
 0x563   : > { %4902 = vst [vmem:[#allocation2 + $0x21] sm:$0xff] %v4829_v3  ;;  %v4381_v52 = vmul.f32 %v9554_v46, %v4380_v22  ;;  %v13355_v21 = vadd.f32 %v13330_v17, %v4152_v19  ;;  %v4037_v14 = vadd.f32 %v9942_v41, %v3991_v55  ;;  %v9944_v19 = vld [vmem:[#allocation2 + $0x139] sm:$0xff] }
 0x565   : > { %v9556_v39 = vpop.eup %9555  ;;  %v4382_v16 = vadd.f32 %v9554_v46, %v4381_v52  ;;  %v8647_v49 = vmul.f32 -1.442695, %v13355_v21 }
 0x566   : > { %v9558_v2 = vpop.eup %9557  ;;  %v4320_v18 = vadd.f32 1.0, %v9556_v39  ;;  %v3992_v30 = vpop.f32.mrf.mxu3 }
 0x567   : > { %v4386_v26 = vsel %vm4385_vm4, %v9554_v46, %v4382_v16  ;;  %v4394_v9 = vmul.f32 %v9558_v2, %v4319_v23  ;;  %9559 = vpow2.f32 %v8647_v49  ;;  %v3993_v60 = vadd.f32 %v13281_v59, %v3992_v30  ;;  %v9945_v16 = vld [vmem:[#allocation2 + $0x141] sm:$0xff] }
 0x568   : > { %v4391_v4 = vsel %vm4388_vm5, %v4390_v47, %v4386_v26  ;;  %9561 = vrcp.f32 %v4320_v18  ;;  %vm4399_vm6 = vweird.f32 %v9558_v2  ;;  %v4419_v45 = vand.u32 2147483648, %v4320_v18 }
 0x569   : > { %v4830_v10 = vmul.f32 %v4391_v4, %v13340_v61  ;;  %v4395_v20 = vsub.f32 1.0, %v4394_v9  ;;  %v4038_v56 = vadd.f32 %v9943_v44, %v3993_v60  ;;  %vm4400_vm7 = vmor %vm4398_vm10, %vm4399_vm6  ;;  %v4417_v5 = vand.u32 2147483647, %v4320_v18 }
 0x56a   : > { %v4155_v32 = vpop.f32.mrf.mxu1  ;;  %vm4413_vm11 = vweird.f32 %v4320_v18  ;;  %v4420_v1 = vor.u32 1.1754944e-38, %v4419_v45 }
 0x56b   : > { %4903 = vst [vmem:[#allocation2 + $0x31] sm:$0xff] %v4830_v10  ;;  %v4396_v6 = vmul.f32 %v9558_v2, %v4395_v20  ;;  %v13362_v34 = vadd.f32 %v13330_v17, %v4155_v32  ;;  %v4075_v53 = vpack.c.bf16 %v4038_v56, %v4037_v14  ;;  %vm4418_vm12 = vcmp.eq.f32.partialorder %v4417_v5, 8.507059e+37 }
 0x56d   : > { %v9560_v48 = vpop.eup %9559  ;;  %v4397_v40 = vadd.f32 %v9558_v2, %v4396_v6  ;;  %v8648_v61 = vmul.f32 -1.442695, %v13362_v34  ;;  %4194 = vmatmul.bf16.gmra.mxu1 %v4075_v53 }
 0x56e   : > { %v9562_v28 = vpop.eup %9561  ;;  %v4321_v50 = vadd.f32 1.0, %v9560_v48  ;;  %v3995_v57 = vpop.f32.mrf.mxu3 }
 0x56f   : > { %v4401_v24 = vsel %vm4400_vm7, %v9558_v2, %v4397_v40  ;;  %v4409_v15 = vmul.f32 %v9562_v28, %v4320_v18  ;;  %9563 = vpow2.f32 %v8648_v61  ;;  %vm4414_vm9 = vweird.f32 %v9562_v28 }
 0x570   : > { %v4406_v12 = vsel %vm4403_vm8, %v4405_v13, %v4401_v24  ;;  %9565 = vrcp.f32 %v4321_v50  ;;  %vm4415_vm14 = vmor %vm4413_vm11, %vm4414_vm9  ;;  %v4432_v22 = vand.u32 2147483647, %v4321_v50  ;;  %v4434_v0 = vand.u32 2147483648, %v4321_v50 }
 0x571   : > { %v4831_v62 = vmul.f32 %v4406_v12, %v13344_v27  ;;  %v4410_v8 = vsub.f32 1.0, %v4409_v15  ;;  %v3996_v27 = vadd.f32 %v13281_v59, %v3995_v57  ;;  %vm4428_vm15 = vweird.f32 %v4321_v50 }
 0x572   : > { %v4157_v36 = vpop.f32.mrf.mxu1  ;;  %v4435_v26 = vor.u32 1.1754944e-38, %v4434_v0  ;;  %vm4433_vm1 = vcmp.eq.f32.partialorder %v4432_v22, 8.507059e+37 }
 0x573   : > { %4904 = vst [vmem:[#allocation2 + $0x39] sm:$0xff] %v4831_v62  ;;  %v4411_v54 = vmul.f32 %v9562_v28, %v4410_v8  ;;  %v13367_v51 = vadd.f32 %v13330_v17, %v4157_v36  ;;  %v4039_v52 = vadd.f32 %v9944_v19, %v3996_v27  ;;  %v9946_v36 = vld [vmem:[#allocation2 + $0x151] sm:$0xff] }
 0x575   : > { %v9564_v63 = vpop.eup %9563  ;;  %v4412_v29 = vadd.f32 %v9562_v28, %v4411_v54  ;;  %v8649_v7 = vmul.f32 -1.442695, %v13367_v51 }
 0x576   : > { %v9566_v33 = vpop.eup %9565  ;;  %v4322_v46 = vadd.f32 1.0, %v9564_v63  ;;  %v3997_v42 = vpop.f32.mrf.mxu3 }
 0x577   : > { %v4416_v23 = vsel %vm4415_vm14, %v9562_v28, %v4412_v29  ;;  %v4424_v58 = vmul.f32 %v9566_v33, %v4321_v50  ;;  %9567 = vpow2.f32 %v8649_v7  ;;  %v3998_v3 = vadd.f32 %v13281_v59, %v3997_v42  ;;  %v9947_v29 = vld [vmem:[#allocation2 + $0x159] sm:$0xff] }
 0x578   : > { %v4421_v43 = vsel %vm4418_vm12, %v4420_v1, %v4416_v23  ;;  %9569 = vrcp.f32 %v4322_v46  ;;  %vm4429_vm13 = vweird.f32 %v9566_v33  ;;  %v4449_v41 = vand.u32 2147483648, %v4322_v46 }
 0x579   : > { %v4832_v11 = vmul.f32 %v4421_v43, %v13350_v35  ;;  %v4425_v25 = vsub.f32 1.0, %v4424_v58  ;;  %v4040_v49 = vadd.f32 %v9945_v16, %v3998_v3  ;;  %vm4430_vm0 = vmor %vm4428_vm15, %vm4429_vm13  ;;  %v4447_v6 = vand.u32 2147483647, %v4322_v46 }
 0x57a   : > { %v4160_v31 = vpop.f32.mrf.mxu1  ;;  %vm4443_vm3 = vweird.f32 %v4322_v46  ;;  %v4450_v53 = vor.u32 1.1754944e-38, %v4449_v41 }
 0x57b   : > { %4905 = vst [vmem:[#allocation2 + $0x49] sm:$0xff] %v4832_v11  ;;  %v4426_v39 = vmul.f32 %v9566_v33, %v4425_v25  ;;  %v13374_v2 = vadd.f32 %v13330_v17, %v4160_v31  ;;  %v4076_v55 = vpack.c.bf16 %v4040_v49, %v4039_v52  ;;  %vm4448_vm5 = vcmp.eq.f32.partialorder %v4447_v6, 8.507059e+37 }
 0x57d   : > { %v9568_v47 = vpop.eup %9567  ;;  %v4427_v18 = vadd.f32 %v9566_v33, %v4426_v39  ;;  %v8650_v35 = vmul.f32 -1.442695, %v13374_v2  ;;  %4199 = vmatmul.bf16.gmra.mxu1 %v4076_v55 }
 0x57e   : > { %v9570_v30 = vpop.eup %9569  ;;  %v4323_v9 = vadd.f32 1.0, %v9568_v47  ;;  %v4000_v4 = vpop.f32.mrf.mxu3 }
 0x57f   : > { %v4431_v10 = vsel %vm4430_vm0, %v9566_v33, %v4427_v18  ;;  %v4439_v20 = vmul.f32 %v9570_v30, %v4322_v46  ;;  %9571 = vpow2.f32 %v8650_v35  ;;  %vm4444_vm2 = vweird.f32 %v9570_v30 }
 0x580   : > { %v4436_v60 = vsel %vm4433_vm1, %v4435_v26, %v4431_v10  ;;  %9573 = vrcp.f32 %v4323_v9  ;;  %vm4445_vm4 = vmor %vm4443_vm3, %vm4444_vm2  ;;  %v4462_v8 = vand.u32 2147483647, %v4323_v9  ;;  %v4464_v45 = vand.u32 2147483648, %v4323_v9 }
 0x581   : > { %v4833_v37 = vmul.f32 %v4436_v60, %v13355_v21  ;;  %v4440_v38 = vsub.f32 1.0, %v4439_v20  ;;  %v4001_v21 = vadd.f32 %v13281_v59, %v4000_v4  ;;  %vm4458_vm10 = vweird.f32 %v4323_v9 }
 0x582   : > { %v4162_v14 = vpop.f32.mrf.mxu1  ;;  %v4465_v23 = vor.u32 1.1754944e-38, %v4464_v45  ;;  %vm4463_vm8 = vcmp.eq.f32.partialorder %v4462_v8, 8.507059e+37 }
 0x583   : > { %4906 = vst [vmem:[#allocation2 + $0x51] sm:$0xff] %v4833_v37  ;;  %v4441_v32 = vmul.f32 %v9570_v30, %v4440_v38  ;;  %v13379_v44 = vadd.f32 %v13330_v17, %v4162_v14  ;;  %v4041_v54 = vadd.f32 %v9946_v36, %v4001_v21  ;;  %v9948_v14 = vld [vmem:[#allocation2 + $0x169] sm:$0xff] }
 0x585   : > { %v9572_v56 = vpop.eup %9571  ;;  %v4442_v48 = vadd.f32 %v9570_v30, %v4441_v32  ;;  %v8651_v40 = vmul.f32 -1.442695, %v13379_v44 }
 0x586   : > { %v9574_v61 = vpop.eup %9573  ;;  %v4324_v28 = vadd.f32 1.0, %v9572_v56  ;;  %v4002_v13 = vpop.f32.mrf.mxu3 }
 0x587   : > { %v4446_v50 = vsel %vm4445_vm4, %v9570_v30, %v4442_v48  ;;  %v4454_v57 = vmul.f32 %v9574_v61, %v4323_v9  ;;  %9575 = vpow2.f32 %v8651_v40  ;;  %v4003_v62 = vadd.f32 %v13281_v59, %v4002_v13  ;;  %v9949_v48 = vld [vmem:[#allocation2 + $0x171] sm:$0xff] }
 0x588   : > { %v4451_v24 = vsel %vm4448_vm5, %v4450_v53, %v4446_v50  ;;  %9577 = vrcp.f32 %v4324_v28  ;;  %vm4459_vm6 = vweird.f32 %v9574_v61  ;;  %v4479_v19 = vand.u32 2147483648, %v4324_v28 }
 0x589   : > { %v4834_v15 = vmul.f32 %v4451_v24, %v13362_v34  ;;  %v4455_v12 = vsub.f32 1.0, %v4454_v57  ;;  %v4042_v7 = vadd.f32 %v9947_v29, %v4003_v62  ;;  %vm4460_vm7 = vmor %vm4458_vm10, %vm4459_vm6  ;;  %v4477_v39 = vand.u32 2147483647, %v4324_v28 }
 0x58a   : > { %v4165_v5 = vpop.f32.mrf.mxu1  ;;  %vm4473_vm11 = vweird.f32 %v4324_v28  ;;  %v4480_v55 = vor.u32 1.1754944e-38, %v4479_v19 }
 0x58b   : > { %4907 = vst [vmem:[#allocation2 + $0x61] sm:$0xff] %v4834_v15  ;;  %v4456_v63 = vmul.f32 %v9574_v61, %v4455_v12  ;;  %v13386_v33 = vadd.f32 %v13330_v17, %v4165_v5  ;;  %v4077_v27 = vpack.c.bf16 %v4042_v7, %v4041_v54  ;;  %vm4478_vm12 = vcmp.eq.f32.partialorder %v4477_v39, 8.507059e+37 }
 0x58d   : > { %v9576_v1 = vpop.eup %9575  ;;  %v4457_v46 = vadd.f32 %v9574_v61, %v4456_v63  ;;  %v8652_v34 = vmul.f32 -1.442695, %v13386_v33  ;;  %4204 = vmatmul.bf16.gmra.mxu1 %v4077_v27 }
 0x58e   : > { %v9578_v42 = vpop.eup %9577  ;;  %v4325_v58 = vadd.f32 1.0, %v9576_v1  ;;  %v4005_v43 = vpop.f32.mrf.mxu3 }
 0x58f   : > { %v4461_v11 = vsel %vm4460_vm7, %v9574_v61, %v4457_v46  ;;  %v4469_v25 = vmul.f32 %v9578_v42, %v4324_v28  ;;  %9579 = vpow2.f32 %v8652_v34  ;;  %vm4474_vm9 = vweird.f32 %v9578_v42 }
 0x590   : > { %v4466_v3 = vsel %vm4463_vm8, %v4465_v23, %v4461_v11  ;;  %9581 = vrcp.f32 %v4325_v58  ;;  %vm4475_vm14 = vmor %vm4473_vm11, %vm4474_vm9  ;;  %v4492_v38 = vand.u32 2147483647, %v4325_v58  ;;  %v4494_v41 = vand.u32 2147483648, %v4325_v58 }
 0x591   : > { %v4835_v22 = vmul.f32 %v4466_v3, %v13367_v51  ;;  %v4470_v0 = vsub.f32 1.0, %v4469_v25  ;;  %v4006_v51 = vadd.f32 %v13281_v59, %v4005_v43  ;;  %vm4488_vm15 = vweird.f32 %v4325_v58 }
 0x592   : > { %v4167_v52 = vpop.f32.mrf.mxu1  ;;  %v4495_v50 = vor.u32 1.1754944e-38, %v4494_v41  ;;  %vm4493_vm1 = vcmp.eq.f32.partialorder %v4492_v38, 8.507059e+37 }
 0x593   : > { %4908 = vst [vmem:[#allocation2 + $0x69] sm:$0xff] %v4835_v22  ;;  %v4471_v31 = vmul.f32 %v9578_v42, %v4470_v0  ;;  %v13391_v16 = vadd.f32 %v13330_v17, %v4167_v52  ;;  %v4043_v32 = vadd.f32 %v9948_v14, %v4006_v51  ;;  %v9950_v52 = vld [vmem:[#allocation2 + $0x181] sm:$0xff] }
 0x595   : > { %v9580_v49 = vpop.eup %9579  ;;  %v4472_v47 = vadd.f32 %v9578_v42, %v4471_v31  ;;  %v8653_v18 = vmul.f32 -1.442695, %v13391_v16 }
 0x596   : > { %v9582_v35 = vpop.eup %9581  ;;  %v4326_v30 = vadd.f32 1.0, %v9580_v49  ;;  %v4007_v26 = vpop.f32.mrf.mxu3 }
 0x597   : > { %v4476_v9 = vsel %vm4475_vm14, %v9578_v42, %v4472_v47  ;;  %v4484_v4 = vmul.f32 %v9582_v35, %v4325_v58  ;;  %9583 = vpow2.f32 %v8653_v18  ;;  %v4008_v37 = vadd.f32 %v13281_v59, %v4007_v26  ;;  %v9951_v47 = vld [vmem:[#allocation2 + $0x189] sm:$0xff] }
 0x598   : > { %v4481_v10 = vsel %vm4478_vm12, %v4480_v55, %v4476_v9  ;;  %9585 = vrcp.f32 %v4326_v30  ;;  %vm4489_vm13 = vweird.f32 %v9582_v35  ;;  %v4509_v36 = vand.u32 2147483648, %v4326_v30 }
 0x599   : > { %v4836_v20 = vmul.f32 %v4481_v10, %v13374_v2  ;;  %v4485_v60 = vsub.f32 1.0, %v4484_v4  ;;  %v4044_v40 = vadd.f32 %v9949_v48, %v4008_v37  ;;  %vm4490_vm0 = vmor %vm4488_vm15, %vm4489_vm13  ;;  %v4507_v63 = vand.u32 2147483647, %v4326_v30 }
 0x59a   : > { %v4170_v6 = vpop.f32.mrf.mxu1  ;;  %vm4503_vm3 = vweird.f32 %v4326_v30  ;;  %v4510_v27 = vor.u32 1.1754944e-38, %v4509_v36 }
 0x59b   : > { %4909 = vst [vmem:[#allocation2 + $0x79] sm:$0xff] %v4836_v20  ;;  %v4486_v56 = vmul.f32 %v9582_v35, %v4485_v60  ;;  %v13398_v61 = vadd.f32 %v13330_v17, %v4170_v6  ;;  %v4078_v21 = vpack.c.bf16 %v4044_v40, %v4043_v32  ;;  %vm4508_vm5 = vcmp.eq.f32.partialorder %v4507_v63, 8.507059e+37 }
 0x59d   : > { %v9584_v53 = vpop.eup %9583  ;;  %v4487_v28 = vadd.f32 %v9582_v35, %v4486_v56  ;;  %v8654_v2 = vmul.f32 -1.442695, %v13398_v61  ;;  %4209 = vmatmul.bf16.gmra.mxu1 %v4078_v21 }
 0x59e   : > { %v9586_v13 = vpop.eup %9585  ;;  %v4327_v57 = vadd.f32 1.0, %v9584_v53  ;;  %v4010_v24 = vpop.f32.mrf.mxu3 }
 0x59f   : > { %v4491_v15 = vsel %vm4490_vm0, %v9582_v35, %v4487_v28  ;;  %v4499_v12 = vmul.f32 %v9586_v13, %v4326_v30  ;;  %9587 = vpow2.f32 %v8654_v2  ;;  %vm4504_vm2 = vweird.f32 %v9586_v13 }
 0x5a0   : > { %v4496_v62 = vsel %vm4493_vm1, %v4495_v50, %v4491_v15  ;;  %9589 = vrcp.f32 %v4327_v57  ;;  %vm4505_vm4 = vmor %vm4503_vm3, %vm4504_vm2  ;;  %v4522_v0 = vand.u32 2147483647, %v4327_v57  ;;  %v4524_v19 = vand.u32 2147483648, %v4327_v57 }
 0x5a1   : > { %v4837_v8 = vmul.f32 %v4496_v62, %v13379_v44  ;;  %v4500_v45 = vsub.f32 1.0, %v4499_v12  ;;  %v4011_v44 = vadd.f32 %v13281_v59, %v4010_v24  ;;  %vm4518_vm10 = vweird.f32 %v4327_v57 }
 0x5a2   : > { %v4172_v54 = vpop.f32.mrf.mxu1  ;;  %v4525_v26 = vor.u32 1.1754944e-38, %v4524_v19  ;;  %vm4523_vm8 = vcmp.eq.f32.partialorder %v4522_v0, 8.507059e+37 }
 0x5a3   : > { %4910 = vst [vmem:[#allocation2 + $0x81] sm:$0xff] %v4837_v8  ;;  %v4501_v5 = vmul.f32 %v9586_v13, %v4500_v45  ;;  %v13403_v29 = vadd.f32 %v13330_v17, %v4172_v54  ;;  %v4045_v31 = vadd.f32 %v9950_v52, %v4011_v44 }
 0x5a5   : > { %v9588_v7 = vpop.eup %9587  ;;  %v4502_v1 = vadd.f32 %v9586_v13, %v4501_v5  ;;  %v8655_v46 = vmul.f32 -1.442695, %v13403_v29 }
 0x5a6   : > { %v9590_v34 = vpop.eup %9589  ;;  %v4328_v42 = vadd.f32 1.0, %v9588_v7  ;;  %v4012_v23 = vpop.f32.mrf.mxu3 }
 0x5a7   : > { %v4506_v58 = vsel %vm4505_vm4, %v9586_v13, %v4502_v1  ;;  %v4514_v43 = vmul.f32 %v9590_v34, %v4327_v57  ;;  %9591 = vpow2.f32 %v8655_v46  ;;  %v4013_v22 = vadd.f32 %v13281_v59, %v4012_v23 }
 0x5a8   : > { %v4511_v11 = vsel %vm4508_vm5, %v4510_v27, %v4506_v58  ;;  %9593 = vrcp.f32 %v4328_v42  ;;  %vm4519_vm6 = vweird.f32 %v9590_v34  ;;  %v4539_v38 = vand.u32 2147483648, %v4328_v42 }
 0x5a9   : > { %v13408_v25 = vmul.f32 %v4511_v11, %v13386_v33  ;;  %v4515_v3 = vsub.f32 1.0, %v4514_v43  ;;  %v4046_v18 = vadd.f32 %v9951_v47, %v4013_v22  ;;  %vm4520_vm7 = vmor %vm4518_vm10, %vm4519_vm6  ;;  %v4537_v32 = vand.u32 2147483647, %v4328_v42 }
 0x5aa   : > { %v4175_v39 = vpop.f32.mrf.mxu1  ;;  %vm4533_vm11 = vweird.f32 %v4328_v42 }
 0x5ab   : > { %4911 = vst [vmem:[#allocation2 + $0x91] sm:$0xff] %v13408_v25  ;;  %v4516_v49 = vmul.f32 %v9590_v34, %v4515_v3  ;;  %v13413_v35 = vadd.f32 %v13330_v17, %v4175_v39  ;;  %v4079_v59 = vpack.c.bf16 %v4046_v18, %v4045_v31  ;;  %vm4538_vm12 = vcmp.eq.f32.partialorder %v4537_v32, 8.507059e+37 }
 0x5ad   : > { %v9592_v55 = vpop.eup %9591  ;;  %v4517_v33 = vadd.f32 %v9590_v34, %v4516_v49  ;;  %v8656_v30 = vmul.f32 -1.442695, %v13413_v35  ;;  %4214 = vmatmul.bf16.gmra.mxu1 %v4079_v59 }
 0x5ae   : > { %v9594_v51 = vpop.eup %9593  ;;  %v4329_v9 = vadd.f32 1.0, %v9592_v55 }
 0x5af   : > { %v4521_v4 = vsel %vm4520_vm7, %v9590_v34, %v4517_v33  ;;  %v4529_v10 = vmul.f32 %v9594_v51, %v4328_v42  ;;  %9595 = vpow2.f32 %v8656_v30  ;;  %vm4534_vm9 = vweird.f32 %v9594_v51 }
 0x5b0   : > { %v4526_v20 = vsel %vm4523_vm8, %v4525_v26, %v4521_v4  ;;  %9597 = vrcp.f32 %v4329_v9  ;;  %vm4535_vm14 = vmor %vm4533_vm11, %vm4534_vm9  ;;  %v4554_v24 = vand.u32 2147483648, %v4329_v9  ;;  %v4552_v62 = vand.u32 2147483647, %v4329_v9 }
 0x5b1   : > { %v13417_v60 = vmul.f32 %v4526_v20, %v13391_v16  ;;  %v4530_v37 = vsub.f32 1.0, %v4529_v10  ;;  %v4540_v16 = vor.u32 1.1754944e-38, %v4539_v38  ;;  %vm4548_vm15 = vweird.f32 %v4329_v9 }
 0x5b2   : > { %v4177_v41 = vpop.f32.mrf.mxu1  ;;  %vm4553_vm1 = vcmp.eq.f32.partialorder %v4552_v62, 8.507059e+37 }
 0x5b3   : > { %4912 = vst [vmem:[#allocation2 + $0x99] sm:$0xff] %v13417_v60  ;;  %v4531_v14 = vmul.f32 %v9594_v51, %v4530_v37  ;;  %v13421_v6 = vadd.f32 %v13330_v17, %v4177_v41 }
 0x5b5   : > { %v9596_v56 = vpop.eup %9595  ;;  %v4532_v48 = vadd.f32 %v9594_v51, %v4531_v14  ;;  %v8657_v40 = vmul.f32 -1.442695, %v13421_v6 }
 0x5b6   : > { %v9598_v53 = vpop.eup %9597  ;;  %v4330_v28 = vadd.f32 1.0, %v9596_v56 }
 0x5b7   : > { %v4536_v2 = vsel %vm4535_vm14, %v9594_v51, %v4532_v48  ;;  %v4544_v21 = vmul.f32 %v9598_v53, %v4329_v9  ;;  %9599 = vpow2.f32 %v8657_v40  ;;  %vm4549_vm13 = vweird.f32 %v9598_v53 }
 0x5b8   : > { %v4541_v13 = vsel %vm4538_vm12, %v4540_v16, %v4536_v2  ;;  %9601 = vrcp.f32 %v4330_v28  ;;  %vm4550_vm0 = vmor %vm4548_vm15, %vm4549_vm13  ;;  %v4569_v42 = vand.u32 2147483648, %v4330_v28  ;;  %v4567_v58 = vand.u32 2147483647, %v4330_v28 }
 0x5b9   : > { %v13425_v50 = vmul.f32 %v4541_v13, %v13398_v61  ;;  %v4545_v57 = vsub.f32 1.0, %v4544_v21  ;;  %v4555_v61 = vor.u32 1.1754944e-38, %v4554_v24  ;;  %vm4563_vm3 = vweird.f32 %v4330_v28 }
 0x5ba   : > { %v4180_v15 = vpop.f32.mrf.mxu1  ;;  %vm4568_vm5 = vcmp.eq.f32.partialorder %v4567_v58, 8.507059e+37 }
 0x5bb   : > { %4913 = vst [vmem:[#allocation2 + $0xa9] sm:$0xff] %v13425_v50  ;;  %v4546_v12 = vmul.f32 %v9598_v53, %v4545_v57  ;;  %v13429_v8 = vadd.f32 %v13330_v17, %v4180_v15 }
 0x5bd   : > { %v9600_v45 = vpop.eup %9599  ;;  %v4547_v36 = vadd.f32 %v9598_v53, %v4546_v12  ;;  %v8658_v54 = vmul.f32 -1.442695, %v13429_v8 }
 0x5be   : > { %v9602_v5 = vpop.eup %9601  ;;  %v4331_v63 = vadd.f32 1.0, %v9600_v45 }
 0x5bf   : > { %v4551_v7 = vsel %vm4550_vm0, %v9598_v53, %v4547_v36  ;;  %v4559_v1 = vmul.f32 %v9602_v5, %v4330_v28  ;;  %9603 = vpow2.f32 %v8658_v54  ;;  %vm4564_vm2 = vweird.f32 %v9602_v5 }
 0x5c0   : > { %v4556_v46 = vsel %vm4553_vm1, %v4555_v61, %v4551_v7  ;;  %9605 = vrcp.f32 %v4331_v63  ;;  %vm4565_vm4 = vmor %vm4563_vm3, %vm4564_vm2  ;;  %v4584_v18 = vand.u32 2147483648, %v4331_v63  ;;  %v4582_v30 = vand.u32 2147483647, %v4331_v63 }
 0x5c1   : > { %v13433_v34 = vmul.f32 %v4556_v46, %v13403_v29  ;;  %v4560_v27 = vsub.f32 1.0, %v4559_v1  ;;  %v4570_v29 = vor.u32 1.1754944e-38, %v4569_v42  ;;  %vm4578_vm10 = vweird.f32 %v4331_v63 }
 0x5c2   : > { %v4182_v44 = vpop.f32.mrf.mxu1  ;;  %vm4583_vm8 = vcmp.eq.f32.partialorder %v4582_v30, 8.507059e+37 }
 0x5c3   : > { %4914 = vst [vmem:[#allocation2 + $0xb1] sm:$0xff] %v13433_v34  ;;  %v4561_v23 = vmul.f32 %v9602_v5, %v4560_v27  ;;  %v13437_v43 = vadd.f32 %v13330_v17, %v4182_v44 }
 0x5c5   : > { %v9604_v11 = vpop.eup %9603  ;;  %v4562_v3 = vadd.f32 %v9602_v5, %v4561_v23  ;;  %v8659_v22 = vmul.f32 -1.442695, %v13437_v43 }
 0x5c6   : > { %v9606_v0 = vpop.eup %9605  ;;  %v4332_v19 = vadd.f32 1.0, %v9604_v11 }
 0x5c7   : > { %v4566_v52 = vsel %vm4565_vm4, %v9602_v5, %v4562_v3  ;;  %v4574_v31 = vmul.f32 %v9606_v0, %v4331_v63  ;;  %9607 = vpow2.f32 %v8659_v22  ;;  %vm4579_vm6 = vweird.f32 %v9606_v0 }
 0x5c8   : > { %v4571_v39 = vsel %vm4568_vm5, %v4570_v29, %v4566_v52  ;;  %9609 = vrcp.f32 %v4332_v19  ;;  %vm4580_vm7 = vmor %vm4578_vm10, %vm4579_vm6  ;;  %v4599_v32 = vand.u32 2147483648, %v4332_v19  ;;  %v4597_v40 = vand.u32 2147483647, %v4332_v19  ;;  %v4860_v29 = vld [vmem:[%s16078_s12] sm:$0xff] }
 0x5c9   : > { %v13441_v49 = vmul.f32 %v4571_v39, %v13413_v35  ;;  %v4575_v47 = vsub.f32 1.0, %v4574_v31  ;;  %v4585_v35 = vor.u32 1.1754944e-38, %v4584_v18  ;;  %vm4593_vm11 = vweird.f32 %v4332_v19 }
 0x5ca   : > { %v4185_v55 = vpop.f32.mrf.mxu1  ;;  %vm4598_vm12 = vcmp.eq.f32.partialorder %v4597_v40, 8.507059e+37 }
 0x5cb   : > { %4915 = vst [vmem:[#allocation2 + $0xc1] sm:$0xff] %v13441_v49  ;;  %v4576_v33 = vmul.f32 %v9606_v0, %v4575_v47  ;;  %v13445_v59 = vadd.f32 %v13330_v17, %v4185_v55 }
 0x5cd   : > { %v9608_v51 = vpop.eup %9607  ;;  %v4577_v26 = vadd.f32 %v9606_v0, %v4576_v33  ;;  %v8660_v9 = vmul.f32 -1.442695, %v13445_v59 }
 0x5ce   : > { %v9610_v4 = vpop.eup %9609  ;;  %v4333_v10 = vadd.f32 1.0, %v9608_v51 }
 0x5cf   : > { %v4581_v20 = vsel %vm4580_vm7, %v9606_v0, %v4577_v26  ;;  %v4589_v37 = vmul.f32 %v9610_v4, %v4332_v19  ;;  %9611 = vpow2.f32 %v8660_v9  ;;  %vm4594_vm9 = vweird.f32 %v9610_v4 }
 0x5d0   : > { %v4586_v38 = vsel %vm4583_vm8, %v4585_v35, %v4581_v20  ;;  %9613 = vrcp.f32 %v4333_v10  ;;  %vm4595_vm14 = vmor %vm4593_vm11, %vm4594_vm9  ;;  %v4614_v45 = vand.u32 2147483648, %v4333_v10  ;;  %v4612_v54 = vand.u32 2147483647, %v4333_v10  ;;  %v5039_v35 = vld [vmem:[#allocation2 + $0x69] sm:$0xff] }
 0x5d1   : > { %v13449_v41 = vmul.f32 %v4586_v38, %v13421_v6  ;;  %v4590_v14 = vsub.f32 1.0, %v4589_v37  ;;  %v4600_v6 = vor.u32 1.1754944e-38, %v4599_v32  ;;  %vm4608_vm15 = vweird.f32 %v4333_v10  ;;  %v4941_v38 = vld [vmem:[#allocation2 + $0x60] sm:$0xff] }
 0x5d2   : > { %v4187_v56 = vpop.f32.mrf.mxu1  ;;  %v4615_v46 = vor.u32 1.1754944e-38, %v4614_v45  ;;  %vm4613_vm1 = vcmp.eq.f32.partialorder %v4612_v54, 8.507059e+37  ;;  %v13481_v9 = vperm.slane %v4860_v29, 1  ;;  %v13486_v37 = vperm.slane %v4860_v29, 3  ;;  %v13504_v45 = vld [vmem:[%s16081_s6] ss:$0 sm:$0xff] }
 0x5d3   : > { %4916 = vst [vmem:[#allocation2 + $0xc9] sm:$0xff] %v13449_v41  ;;  %v4591_v48 = vmul.f32 %v9610_v4, %v4590_v14  ;;  %v13453_v53 = vadd.f32 %v13330_v17, %v4187_v56  ;;  %v13491_v56 = vperm.slane %v4860_v29, 4 }
 0x5d4   : > { %16315 = vst [vmem:[#allocation67_spill] sm:$0xff] %v13481_v9 }
 0x5d5   : > { %v9612_v16 = vpop.eup %9611  ;;  %v4592_v28 = vadd.f32 %v9610_v4, %v4591_v48  ;;  %v8661_v2 = vmul.f32 -1.442695, %v13453_v53  ;;  %16316 = vst [vmem:[#allocation64_spill] sm:$0xff] %v13486_v37  ;;  %v5038_v48 = vld [vmem:[#allocation2 + $0x61] sm:$0xff] }
 0x5d6   : > { %v9614_v21 = vpop.eup %9613  ;;  %v4334_v13 = vadd.f32 1.0, %v9612_v16  ;;  %16317 = vst [vmem:[#allocation70_spill] sm:$0xff] %v13491_v56  ;;  %v4943_v16 = vld [vmem:[#allocation2 + $0x78] sm:$0xff]  ;;  %v5071_v54 = vmul.f32 %v13481_v9, %v5038_v48 }
 0x5d7   : > { %v4596_v57 = vsel %vm4595_vm14, %v9610_v4, %v4592_v28  ;;  %v4604_v24 = vmul.f32 %v9614_v21, %v4333_v10  ;;  %9615 = vpow2.f32 %v8661_v2  ;;  %vm4609_vm13 = vweird.f32 %v9614_v21 }
 0x5d8   : > { %v4601_v15 = vsel %vm4598_vm12, %v4600_v6, %v4596_v57  ;;  %9617 = vrcp.f32 %v4334_v13  ;;  %vm4610_vm0 = vmor %vm4608_vm15, %vm4609_vm13  ;;  %v4629_v3 = vand.u32 2147483648, %v4334_v13  ;;  %v4627_v0 = vand.u32 2147483647, %v4334_v13 }
 0x5d9   : > { %v13457_v12 = vmul.f32 %v4601_v15, %v13429_v8  ;;  %v4605_v62 = vsub.f32 1.0, %v4604_v24  ;;  %vm4623_vm3 = vweird.f32 %v4334_v13  ;;  %v13483_v4 = vperm.slane %v4860_v29, 2  ;;  %v5135_v15 = vld [vmem:[#allocation2 + $0x62] sm:$0xff] }
 0x5da   : > { %v4190_v5 = vpop.f32.mrf.mxu1  ;;  %v4630_v47 = vor.u32 1.1754944e-38, %v4629_v3  ;;  %vm4628_vm5 = vcmp.eq.f32.partialorder %v4627_v0, 8.507059e+37  ;;  %v5072_v2 = vmul.f32 %v13481_v9, %v5039_v35  ;;  %v13495_v6 = vperm.slane %v4860_v29, 5 }
 0x5db   : > { %4917 = vst [vmem:[#allocation2 + $0xd9] sm:$0xff] %v13457_v12  ;;  %v4606_v36 = vmul.f32 %v9614_v21, %v4605_v62  ;;  %v13461_v7 = vadd.f32 %v13330_v17, %v4190_v5  ;;  %v13499_v57 = vperm.slane %v4860_v29, 7 }
 0x5dd   : > { %v9616_v61 = vpop.eup %9615  ;;  %v4607_v63 = vadd.f32 %v9614_v21, %v4606_v36  ;;  %v8662_v44 = vmul.f32 -1.442695, %v13461_v7 }
 0x5de   : > { %v9618_v1 = vpop.eup %9617  ;;  %v13463_v8 = vadd.f32 1.0, %v9616_v61 }
 0x5df   : > { %v4611_v27 = vsel %vm4610_vm0, %v9614_v21, %v4607_v63  ;;  %v4619_v42 = vmul.f32 %v9618_v1, %v4334_v13  ;;  %vm4624_vm2 = vweird.f32 %v9618_v1  ;;  %v13497_v13 = vperm.slane %v4860_v29, 6 }
 0x5e0   : > { %v4616_v23 = vsel %vm4613_vm1, %v4615_v46, %v4611_v27  ;;  %9619 = vrcp.f32 %v13463_v8  ;;  %vm4625_vm4 = vmor %vm4623_vm3, %vm4624_vm2  ;;  %v4642_v14 = vand.u32 2147483647, %v13463_v8  ;;  %v4644_v32 = vand.u32 2147483648, %v13463_v8 }
 0x5e1   : > { %v13468_v58 = vmul.f32 %v4616_v23, %v13437_v43  ;;  %v4620_v11 = vsub.f32 1.0, %v4619_v42  ;;  %9621 = vpow2.f32 %v8662_v44  ;;  %v13475_v43 = vperm.slane %v4860_v29, 0  ;;  %v5136_v42 = vld [vmem:[#allocation2 + $0x6a] sm:$0xff]  ;;  %v4944_v29 = vld [vmem:[#allocation2 + $0x80] sm:$0xff] }
 0x5e2   : > { %v4192_v19 = vpop.f32.mrf.mxu1  ;;  %vm4638_vm10 = vweird.f32 %v13463_v8  ;;  %vm4643_vm8 = vcmp.eq.f32.partialorder %v4642_v14, 8.507059e+37  ;;  %v4645_v5 = vor.u32 1.1754944e-38, %v4644_v32  ;;  %v5168_v44 = vmul.f32 %v13483_v4, %v5135_v15 }
 0x5e3   : > { %4918 = vst [vmem:[#allocation2 + $0xe1] sm:$0xff] %v13468_v58  ;;  %v4621_v22 = vmul.f32 %v9618_v1, %v4620_v11  ;;  %v13473_v31 = vadd.f32 %v13330_v17, %v4192_v19  ;;  %v4942_v17 = vld [vmem:[#allocation2 + $0x68] sm:$0xff]  ;;  %v4974_v24 = vmul.f32 %v13475_v43, %v4941_v38  ;;  %v4976_v61 = vmul.f32 %v13475_v43, %v4943_v16 }
 0x5e4   : > { %16314 = vst [vmem:[#allocation69_spill] sm:$0xff] %v13475_v43  ;;  %v4975_v28 = vmul.f32 %v13475_v43, %v4942_v17  ;;  %v5041_v19 = vld [vmem:[#allocation2 + $0x81] sm:$0xff]  ;;  %v5265_v14 = vmul.f32 %v13486_v37, %v4943_v16 }
 0x5e5   : > { %v4622_v52 = vadd.f32 %v9618_v1, %v4621_v22  ;;  %v8663_v30 = vmul.f32 -1.442695, %v13473_v31  ;;  %v5074_v17 = vmul.f32 %v13481_v9, %v5041_v19 }
 0x5e6   : > { %v9620_v39 = vpop.eup %9619 }
 0x5e7   : > { %v9622_v18 = vpop.eup %9621  ;;  %v4626_v55 = vsel %vm4625_vm4, %v9618_v1, %v4622_v52  ;;  %v4634_v33 = vmul.f32 %v9620_v39, %v13463_v8  ;;  %9623 = vpow2.f32 %v8663_v30  ;;  %vm4639_vm6 = vweird.f32 %v9620_v39 }
 0x5e8   : > { %v4631_v51 = vsel %vm4628_vm5, %v4630_v47, %v4626_v55  ;;  %v13479_v26 = vadd.f32 1.0, %v9622_v18  ;;  %vm4640_vm7 = vmor %vm4638_vm10, %vm4639_vm6  ;;  %v5104_v8 = vadd.f32 %v5072_v2, %v4975_v28  ;;  %v5103_v47 = vadd.f32 %v5071_v54, %v4974_v24  ;;  %v5137_v55 = vld [vmem:[#allocation2 + $0x7a] sm:$0xff] }
 0x5e9   : > { %v4846_v10 = vmul.f32 %v4631_v51, %v13445_v59  ;;  %v4635_v20 = vsub.f32 1.0, %v4634_v33  ;;  %v5040_v59 = vld [vmem:[#allocation2 + $0x79] sm:$0xff]  ;;  %v5169_v33 = vmul.f32 %v13483_v4, %v5136_v42  ;;  %v4977_v51 = vmul.f32 %v13475_v43, %v4944_v29 }
 0x5ea   : > { %9625 = vrcp.f32 %v13479_v26  ;;  %v4195_v21 = vpop.f32.mrf.mxu1  ;;  %v5073_v63 = vmul.f32 %v13481_v9, %v5040_v59  ;;  %v4657_v3 = vand.u32 2147483647, %v13479_v26  ;;  %v4659_v22 = vand.u32 2147483648, %v13479_v26 }
 0x5eb   : > { %4919 = vst [vmem:[#allocation2 + $0xf1] sm:$0xff] %v4846_v10  ;;  %v4636_v40 = vmul.f32 %v9620_v39, %v4635_v20  ;;  %v13507_v36 = vadd.f32 %v13504_v45, %v4195_v21  ;;  %vm4653_vm9 = vweird.f32 %v13479_v26  ;;  %v5200_v35 = vadd.f32 %v5168_v44, %v5103_v47 }
 0x5ec   : > { %v5105_v18 = vadd.f32 %v5073_v63, %v4976_v61  ;;  %vm13526_vm11 = vcmp.eq.f32.partialorder %v4657_v3, 8.507059e+37  ;;  %v4660_v10 = vor.u32 1.1754944e-38, %v4659_v22  ;;  %v5201_v38 = vadd.f32 %v5169_v33, %v5104_v8  ;;  %v4945_v8 = vld [vmem:[#allocation2 + $0x90] sm:$0xff] }
 0x5ed   : > { %v4637_v62 = vadd.f32 %v9620_v39, %v4636_v40  ;;  %v9624_v1 = vpop.eup %9623  ;;  %v8664_v27 = vmul.f32 -1.442695, %v13507_v36  ;;  %v5138_v40 = vld [vmem:[#allocation2 + $0x82] sm:$0xff]  ;;  %v5170_v28 = vmul.f32 %v13483_v4, %v5137_v55  ;;  %v5075_v24 = vmul.f32 %v13481_v9, %v13408_v25 }
 0x5ee   : > { %v13517_v0 = vadd.f32 1.0, %v9624_v1  ;;  %v5362_v15 = vmul.f32 %v13491_v56, %v5040_v59  ;;  %v5171_v1 = vmul.f32 %v13483_v4, %v5138_v40  ;;  %v5297_v25 = vadd.f32 %v5265_v14, %v5200_v35 }
 0x5ef   : > { %v4641_v46 = vsel %vm4640_vm7, %v9620_v39, %v4637_v62  ;;  %9627 = vpow2.f32 %v8664_v27  ;;  %v5202_v42 = vadd.f32 %v5170_v28, %v5105_v18  ;;  %v5267_v47 = vmul.f32 %v13486_v37, %v4945_v8  ;;  %v5331_v18 = vld [vmem:[#allocation2 + $0x91] sm:$0xff] }
 0x5f0   : > { %v9626_v23 = vpop.eup %9625  ;;  %v4646_v11 = vsel %vm4643_vm8, %v4645_v5, %v4641_v46  ;;  %9629 = vrcp.f32 %v13517_v0  ;;  %v4672_v2 = vand.u32 2147483647, %v13517_v0  ;;  %v4674_v21 = vand.u32 2147483648, %v13517_v0 }
 0x5f1   : > { %v4847_v52 = vmul.f32 %v4646_v11, %v13453_v53  ;;  %v4649_v39 = vmul.f32 %v9626_v23, %v13479_v26  ;;  %vm4654_vm14 = vweird.f32 %v9626_v23  ;;  %vm4668_vm12 = vweird.f32 %v13517_v0 }
 0x5f2   : > { %v4197_v20 = vpop.f32.mrf.mxu1  ;;  %v5106_v5 = vadd.f32 %v5074_v17, %v4977_v51  ;;  %vm4655_vm13 = vmor %vm4653_vm9, %vm4654_vm14  ;;  %v5266_v46 = vmul.f32 %v13486_v37, %v4944_v29  ;;  %vm13551_vm15 = vcmp.eq.f32.partialorder %v4672_v2, 8.507059e+37  ;;  %v4675_v26 = vor.u32 1.1754944e-38, %v4674_v21  ;;  %v13578_v21 = vld [vmem:[#allocation2 + $0x98] sm:$0xff] }
 0x5f3   : > { %4920 = vst [vmem:[#allocation2 + $0xf9] sm:$0xff] %v4847_v52  ;;  %v4650_v30 = vsub.f32 1.0, %v4649_v39  ;;  %v13532_v48 = vadd.f32 %v13504_v45, %v4197_v20  ;;  %v4978_v39 = vmul.f32 %v13475_v43, %v4945_v8  ;;  %v5459_v53 = vmul.f32 %v13495_v6, %v5137_v55 }
 0x5f4   : > { %v13557_v29 = vadd.f32 %v5171_v1, %v5106_v5  ;;  %v5298_v33 = vadd.f32 %v5266_v46, %v5201_v38  ;;  %v5299_v55 = vadd.f32 %v5267_v47, %v5202_v42  ;;  %v4979_v46 = vmul.f32 %v13475_v43, %v13578_v21 }
 0x5f5   : > { %v4651_v32 = vmul.f32 %v9626_v23, %v4650_v30  ;;  %v9628_v62 = vpop.eup %9627  ;;  %v8665_v16 = vmul.f32 -1.442695, %v13532_v48  ;;  %v5394_v30 = vadd.f32 %v5362_v15, %v5297_v25  ;;  %v13595_v25 = vld [vmem:[#allocation2 + $0x9a] sm:$0xff]  ;;  %v13620_v47 = vmul.f32 %v13499_v57, %v5331_v18 }
 0x5f6   : > { %v9630_v61 = vpop.eup %9629  ;;  %v13544_v63 = vadd.f32 1.0, %v9628_v62 }
 0x5f7   : > { %v4652_v54 = vadd.f32 %v9626_v23, %v4651_v32  ;;  %v4664_v59 = vmul.f32 %v9630_v61, %v13517_v0  ;;  %9631 = vpow2.f32 %v8665_v16  ;;  %vm4669_vm0 = vweird.f32 %v9630_v61  ;;  %v13585_v16 = vld [vmem:[#allocation2 + $0x92] sm:$0xff] }
 0x5f8   : > { %9633 = vrcp.f32 %v13544_v63  ;;  %v4687_v17 = vand.u32 2147483647, %v13544_v63  ;;  %v4689_v35 = vand.u32 2147483648, %v13544_v63  ;;  %vm4683_vm1 = vweird.f32 %v13544_v63  ;;  %vm4670_vm2 = vmor %vm4668_vm12, %vm4669_vm0 }
 0x5f9   : > { %v4656_v27 = vsel %vm4655_vm13, %v9626_v23, %v4652_v54  ;;  %v4665_v22 = vsub.f32 1.0, %v4664_v59  ;;  %v5363_v23 = vmul.f32 %v13491_v56, %v5041_v19  ;;  %v5076_v19 = vmul.f32 %v13481_v9, %v13417_v60 }
 0x5fa   : > { %v4661_v44 = vsel %vm13526_vm11, %v4660_v10, %v4656_v27  ;;  %v4200_v52 = vpop.f32.mrf.mxu1  ;;  %v5460_v10 = vmul.f32 %v13495_v6, %v5138_v40  ;;  %v5364_v32 = vmul.f32 %v13491_v56, %v5331_v18  ;;  %v5107_v60 = vadd.f32 %v5075_v24, %v4978_v39  ;;  %v13617_v39 = vld [vmem:[#allocation2 + $0x99] sm:$0xff] }
 0x5fb   : > { %v4848_v3 = vmul.f32 %v4661_v44, %v13461_v7  ;;  %v4666_v51 = vmul.f32 %v9630_v61, %v4665_v22  ;;  %v13564_v7 = vadd.f32 %v13504_v45, %v4200_v52  ;;  %v5395_v15 = vadd.f32 %v5363_v23, %v5298_v33 }
 0x5fc   : > { %vm13581_vm3 = vcmp.eq.f32.partialorder %v4687_v17, 8.507059e+37  ;;  %v4690_v5 = vor.u32 1.1754944e-38, %v4689_v35  ;;  %v13590_v1 = vadd.f32 %v5459_v53, %v5394_v30  ;;  %v13598_v27 = vmul.f32 %v13497_v13, %v4945_v8  ;;  %v4947_v17 = vld [vmem:[#allocation2 + $0xa8] sm:$0xff] }
 0x5fd   : > { %4921 = vst [vmem:[#allocation2 + $0x109] sm:$0xff] %v4848_v3  ;;  %v9632_v20 = vpop.eup %9631  ;;  %v4667_v38 = vadd.f32 %v9630_v61, %v4666_v51  ;;  %v8666_v14 = vmul.f32 -1.442695, %v13564_v7  ;;  %v5172_v42 = vmul.f32 %v13483_v4, %v13585_v16  ;;  %v5268_v44 = vmul.f32 %v13486_v37, %v13578_v21 }
 0x5fe   : > { %v9634_v28 = vpop.eup %9633  ;;  %v13576_v2 = vadd.f32 1.0, %v9632_v20  ;;  %v13604_v11 = vadd.f32 %v5364_v32, %v5299_v55  ;;  %v5077_v23 = vmul.f32 %v13481_v9, %v13425_v50  ;;  %v5173_v52 = vmul.f32 %v13483_v4, %v13595_v25 }
 0x5ff   : > { %v4671_v40 = vsel %vm4670_vm2, %v9630_v61, %v4667_v38  ;;  %v4679_v62 = vmul.f32 %v9634_v28, %v13544_v63  ;;  %9635 = vpow2.f32 %v8666_v14  ;;  %vm4684_vm4 = vweird.f32 %v9634_v28 }
 0x600   : > { %v4676_v0 = vsel %vm13551_vm15, %v4675_v26, %v4671_v40  ;;  %9637 = vrcp.f32 %v13576_v2  ;;  %v13606_v26 = vadd.f32 %v5460_v10, %v5395_v15  ;;  %v4702_v3 = vand.u32 2147483647, %v13576_v2  ;;  %vm4685_vm5 = vmor %vm4683_vm1, %vm4684_vm4 }
 0x601   : > { %v4849_v24 = vmul.f32 %v4676_v0, %v13473_v31  ;;  %v4680_v61 = vsub.f32 1.0, %v4679_v62  ;;  %v4704_v8 = vand.u32 2147483648, %v13576_v2  ;;  %v5108_v35 = vadd.f32 %v5076_v19, %v4979_v46 }
 0x602   : > { %v4202_v59 = vpop.f32.mrf.mxu1  ;;  %v5366_v53 = vmul.f32 %v13491_v56, %v13425_v50  ;;  %vm4698_vm6 = vweird.f32 %v13576_v2  ;;  %v5204_v18 = vadd.f32 %v5172_v42, %v5107_v60  ;;  %v5300_v38 = vadd.f32 %v5268_v44, %v13557_v29 }
 0x603   : > { %4922 = vst [vmem:[#allocation2 + $0x111] sm:$0xff] %v4849_v24  ;;  %v4681_v31 = vmul.f32 %v9634_v28, %v4680_v61  ;;  %v13610_v22 = vadd.f32 %v13504_v45, %v4202_v59  ;;  %vm13633_vm10 = vcmp.eq.f32.partialorder %v4702_v3, 8.507059e+37  ;;  %v5365_v50 = vmul.f32 %v13491_v56, %v13617_v39  ;;  %v13656_v59 = vld [vmem:[#allocation2 + $0xb0] sm:$0xff] }
 0x604   : > { %v4705_v55 = vor.u32 1.1754944e-38, %v4704_v8  ;;  %v5269_v60 = vmul.f32 %v13486_v37, %v4947_v17  ;;  %v4980_v15 = vmul.f32 %v13475_v43, %v4947_v17  ;;  %v13645_v40 = vadd.f32 %v5173_v52, %v5108_v35  ;;  %v13672_v35 = vld [vmem:[#allocation2 + $0xaa] sm:$0xff] }
 0x605   : > { %v9636_v33 = vpop.eup %9635  ;;  %v4682_v30 = vadd.f32 %v9634_v28, %v4681_v31  ;;  %v8667_v51 = vmul.f32 -1.442695, %v13610_v22  ;;  %v5397_v24 = vadd.f32 %v5365_v50, %v5300_v38  ;;  %v5461_v54 = vmul.f32 %v13495_v6, %v13585_v16 }
 0x606   : > { %v9638_v10 = vpop.eup %9637  ;;  %v13629_v20 = vadd.f32 1.0, %v9636_v33  ;;  %v5078_v42 = vmul.f32 %v13481_v9, %v13433_v34  ;;  %v5301_v44 = vadd.f32 %v5269_v60, %v5204_v18  ;;  %v13662_v31 = vmul.f32 %v13491_v56, %v13433_v34  ;;  %v5622_v60 = vld [vmem:[#allocation2 + $0xa9] sm:$0xff] }
 0x607   : > { %v4686_v14 = vsel %vm4685_vm5, %v9634_v28, %v4682_v30  ;;  %v4694_v32 = vmul.f32 %v9638_v10, %v13576_v2  ;;  %9639 = vpow2.f32 %v8667_v51  ;;  %vm4699_vm7 = vweird.f32 %v9638_v10 }
 0x608   : > { %v4691_v63 = vsel %vm13581_vm3, %v4690_v5, %v4686_v14  ;;  %9641 = vrcp.f32 %v13629_v20  ;;  %v4719_v62 = vand.u32 2147483648, %v13629_v20  ;;  %v5462_v5 = vmul.f32 %v13495_v6, %v13595_v25  ;;  %vm4700_vm9 = vmor %vm4698_vm6, %vm4699_vm7 }
 0x609   : > { %v4850_v29 = vmul.f32 %v4691_v63, %v13507_v36  ;;  %v4695_v28 = vsub.f32 1.0, %v4694_v32  ;;  %v4717_v36 = vand.u32 2147483647, %v13629_v20  ;;  %v13666_v3 = vmul.f32 %v13497_v13, %v13578_v21  ;;  %v13689_v63 = vld [vmem:[#allocation2 + $0xb2] sm:$0xff] }
 0x60a   : > { %v4205_v0 = vpop.f32.mrf.mxu1  ;;  %vm4713_vm8 = vweird.f32 %v13629_v20  ;;  %v4981_v30 = vmul.f32 %v13475_v43, %v13656_v59  ;;  %v5109_v51 = vadd.f32 %v5077_v23, %v4980_v15  ;;  %v4720_v34 = vor.u32 1.1754944e-38, %v4719_v62  ;;  %v5723_v23 = vld [vmem:[#allocation2 + $0xda] sm:$0xff] }
 0x60b   : > { %4923 = vst [vmem:[#allocation2 + $0x121] sm:$0xff] %v4850_v29  ;;  %v4696_v61 = vmul.f32 %v9638_v10, %v4695_v28  ;;  %v13654_v46 = vadd.f32 %v13504_v45, %v4205_v0  ;;  %v13680_v38 = vadd.f32 %v5461_v54, %v13604_v11  ;;  %v13682_v14 = vadd.f32 %v5462_v5, %v5397_v24 }
 0x60c   : > { %vm13685_vm11 = vcmp.eq.f32.partialorder %v4717_v36, 8.507059e+37  ;;  %v13692_v2 = vmul.f32 %v13497_v13, %v4947_v17  ;;  %v13699_v29 = vadd.f32 %v5366_v53, %v5301_v44  ;;  %v5110_v62 = vadd.f32 %v5078_v42, %v4981_v30  ;;  %v5239_v36 = vld [vmem:[#allocation2 + $0xc8] sm:$0xff] }
 0x60d   : > { %v9640_v8 = vpop.eup %9639  ;;  %v4697_v52 = vadd.f32 %v9638_v10, %v4696_v61  ;;  %v8668_v33 = vmul.f32 -1.442695, %v13654_v46  ;;  %v5270_v0 = vmul.f32 %v13486_v37, %v13656_v59  ;;  %v5175_v19 = vmul.f32 %v13483_v4, %v13689_v63  ;;  %v5238_v61 = vld [vmem:[#allocation2 + $0xc0] sm:$0xff] }
 0x60e   : > { %v9642_v18 = vpop.eup %9641  ;;  %v13677_v21 = vadd.f32 1.0, %v9640_v8  ;;  %v13709_v24 = vmul.f32 %v13499_v57, %v5622_v60  ;;  %v5271_v8 = vmul.f32 %v13486_v37, %v5238_v61 }
 0x60f   : > { %v4701_v32 = vsel %vm4700_vm9, %v9638_v10, %v4697_v52  ;;  %v4709_v50 = vmul.f32 %v9642_v18, %v13629_v20  ;;  %9643 = vpow2.f32 %v8668_v33  ;;  %v5174_v10 = vmul.f32 %v13483_v4, %v13672_v35  ;;  %v13718_v33 = vld [vmem:[#allocation2 + $0xc2] sm:$0xff] }
 0x610   : > { %v4706_v11 = vsel %vm13633_vm10, %v4705_v55, %v4701_v32  ;;  %9645 = vrcp.f32 %v13677_v21  ;;  %vm4714_vm14 = vweird.f32 %v9642_v18  ;;  %v5368_v55 = vmul.f32 %v13491_v56, %v13441_v49 }
 0x611   : > { %v4851_v28 = vmul.f32 %v4706_v11, %v13532_v48  ;;  %v4710_v15 = vsub.f32 1.0, %v4709_v50  ;;  %v4732_v48 = vand.u32 2147483647, %v13677_v21  ;;  %v4734_v54 = vand.u32 2147483648, %v13677_v21  ;;  %vm4715_vm13 = vmor %vm4713_vm8, %vm4714_vm14 }
 0x612   : > { %v4207_v17 = vpop.f32.mrf.mxu1  ;;  %v5206_v42 = vadd.f32 %v5174_v10, %v5109_v51  ;;  %v5207_v44 = vadd.f32 %v5175_v19, %v5110_v62  ;;  %v5272_v52 = vmul.f32 %v13486_v37, %v5239_v36  ;;  %vm4728_vm12 = vweird.f32 %v13677_v21 }
 0x613   : > { %4924 = vst [vmem:[#allocation2 + $0x129] sm:$0xff] %v4851_v28  ;;  %v4711_v53 = vmul.f32 %v9642_v18, %v4710_v15  ;;  %v13714_v5 = vadd.f32 %v13504_v45, %v4207_v17  ;;  %v5302_v60 = vadd.f32 %v5270_v0, %v13645_v40  ;;  %v5529_v15 = vld [vmem:[#allocation2 + $0xd8] sm:$0xff]  ;;  %v5463_v62 = vmul.f32 %v13495_v6, %v13672_v35  ;;  %v13735_v40 = vld [vmem:[#allocation2 + $0xca] sm:$0xff]  ;;  %v5530_v0 = vld [vmem:[#allocation2 + $0xe0] sm:$0xff] }
 0x614   : > { %v5303_v10 = vadd.f32 %v5271_v8, %v5206_v42  ;;  %v5304_v28 = vadd.f32 %v5272_v52, %v5207_v44  ;;  %vm13731_vm15 = vcmp.eq.f32.partialorder %v4732_v48, 8.507059e+37  ;;  %v5465_v20 = vmul.f32 %v13495_v6, %v13718_v33 }
 0x615   : > { %v9644_v30 = vpop.eup %9643  ;;  %v4712_v32 = vadd.f32 %v9642_v18, %v4711_v53  ;;  %v8669_v50 = vmul.f32 -1.442695, %v13714_v5  ;;  %v4735_v44 = vor.u32 1.1754944e-38, %v4734_v54 }
 0x616   : > { %v9646_v11 = vpop.eup %9645  ;;  %v13726_v51 = vadd.f32 1.0, %v9644_v30  ;;  %v5400_v52 = vadd.f32 %v5368_v55, %v5303_v10  ;;  %v5562_v30 = vmul.f32 %v13497_v13, %v5529_v15  ;;  %v5659_v10 = vmul.f32 %v13499_v57, %v13457_v12 }
 0x617   : > { %v4716_v17 = vsel %vm4715_vm13, %v9642_v18, %v4712_v32  ;;  %v4724_v19 = vmul.f32 %v9646_v11, %v13677_v21  ;;  %9647 = vpow2.f32 %v8669_v50  ;;  %v5369_v18 = vmul.f32 %v13491_v56, %v13449_v41 }
 0x618   : > { %v4721_v42 = vsel %vm13685_vm11, %v4720_v34, %v4716_v17  ;;  %9649 = vrcp.f32 %v13726_v51  ;;  %vm4729_vm0 = vweird.f32 %v9646_v11  ;;  %v5466_v50 = vmul.f32 %v13495_v6, %v13735_v40 }
 0x619   : > { %v4852_v48 = vmul.f32 %v4721_v42, %v13564_v7  ;;  %v4725_v8 = vsub.f32 1.0, %v4724_v19  ;;  %v5401_v32 = vadd.f32 %v5369_v18, %v5304_v28  ;;  %v5563_v34 = vmul.f32 %v13497_v13, %v5530_v0  ;;  %v13752_v7 = vld [vmem:[%s16078_s12 + $0x8] ss:$0 sm:$0xff]  ;;  %vm4730_vm2 = vmor %vm4728_vm12, %vm4729_vm0 }
 0x61a   : > { %v4747_v17 = vand.u32 2147483647, %v13726_v51  ;;  %v4749_v56 = vand.u32 2147483648, %v13726_v51  ;;  %v5497_v37 = vadd.f32 %v5465_v20, %v5400_v52  ;;  %v5660_v28 = vmul.f32 %v13499_v57, %v13468_v58 }
 0x61b   : > { %4925 = vst [vmem:[#allocation2 + $0x139] sm:$0xff] %v4852_v48  ;;  %v4726_v54 = vmul.f32 %v9646_v11, %v4725_v8  ;;  %v5498_v55 = vadd.f32 %v5466_v50, %v5401_v32  ;;  %v5399_v15 = vadd.f32 %v13662_v31, %v5302_v60  ;;  %vm4743_vm1 = vweird.f32 %v13726_v51  ;;  %v5724_v8 = vld [vmem:[#allocation2 + $0xe2] sm:$0xff] }
 0x61c   : > { %v5594_v42 = vadd.f32 %v5562_v30, %v5497_v37  ;;  %v5756_v18 = vmul.f32 %v13752_v7, %v5723_v23  ;;  %v5464_v20 = vmul.f32 %v13495_v6, %v13689_v63  ;;  %v5560_v31 = vmul.f32 %v13497_v13, %v5238_v61 }
 0x61d   : > { %v9648_v19 = vpop.eup %9647  ;;  %v4727_v0 = vadd.f32 %v9646_v11, %v4726_v54  ;;  %v5595_v58 = vadd.f32 %v5563_v34, %v5498_v55  ;;  %v5561_v60 = vmul.f32 %v13497_v13, %v5239_v36  ;;  %vm13771_vm3 = vcmp.eq.f32.partialorder %v4747_v17, 8.507059e+37  ;;  %v13782_v55 = vld [vmem:[%s16330_s16] ss:$0 sm:$0xff] }
 0x61e   : > { %v9650_v48 = vpop.eup %9649  ;;  %v13766_v12 = vadd.f32 1.0, %v9648_v19  ;;  %v4750_v32 = vor.u32 1.1754944e-38, %v4749_v56  ;;  %v5495_v21 = vadd.f32 %v5463_v62, %v13699_v29  ;;  %v5691_v34 = vadd.f32 %v5659_v10, %v5594_v42 }
 0x61f   : > { %v4731_v37 = vsel %vm4730_vm2, %v9646_v11, %v4727_v0  ;;  %v4739_v52 = vmul.f32 %v9650_v48, %v13726_v51  ;;  %v5496_v61 = vadd.f32 %v5464_v20, %v5399_v15  ;;  %v5692_v11 = vadd.f32 %v5660_v28, %v5595_v58  ;;  %v5623_v0 = vld [vmem:[#allocation2 + $0xb1] sm:$0xff] }
 0x620   : > { %v4736_v50 = vsel %vm13731_vm15, %v4735_v44, %v4731_v37  ;;  %9651 = vrcp.f32 %v13766_v12  ;;  %v5757_v54 = vmul.f32 %v13752_v7, %v5724_v8  ;;  %vm4744_vm4 = vweird.f32 %v9650_v48 }
 0x621   : > { %v4853_v36 = vmul.f32 %v4736_v50, %v13610_v22  ;;  %v4740_v23 = vsub.f32 1.0, %v4739_v52  ;;  %v5788_v17 = vadd.f32 %v5756_v18, %v5691_v34  ;;  %v5592_v56 = vadd.f32 %v5560_v31, %v5495_v21  ;;  %vm4745_vm5 = vmor %vm4743_vm1, %vm4744_vm4 }
 0x622   : > { %v5593_v19 = vadd.f32 %v5561_v60, %v5496_v61  ;;  %v4762_v62 = vand.u32 2147483647, %v13766_v12  ;;  %v4764_v53 = vand.u32 2147483648, %v13766_v12  ;;  %v5789_v44 = vadd.f32 %v5757_v54, %v5692_v11 }
 0x623   : > { %4926 = vst [vmem:[#allocation2 + $0x141] sm:$0xff] %v4853_v36  ;;  %v4741_v29 = vmul.f32 %v9650_v48, %v4740_v23  ;;  %v13787_v10 = vadd.f32 %v13782_v55, %v5788_v17  ;;  %v5657_v22 = vmul.f32 %v13499_v57, %v13441_v49  ;;  %v5658_v28 = vmul.f32 %v13499_v57, %v13449_v41 }
 0x624   : > { %v5754_v15 = vmul.f32 %v13752_v7, %v13718_v33  ;;  %v13796_v18 = vadd.f32 %v13782_v55, %v5789_v44  ;;  %v5755_v20 = vmul.f32 %v13752_v7, %v13735_v40  ;;  %v5559_v58 = vmul.f32 %v13497_v13, %v13656_v59 }
 0x625   : > { %v4742_v42 = vadd.f32 %v9650_v48, %v4741_v29  ;;  %v8688_v49 = vmul.f32 -1.442695, %v13787_v10  ;;  %v5689_v41 = vadd.f32 %v5657_v22, %v5592_v56  ;;  %v5690_v33 = vadd.f32 %v5658_v28, %v5593_v19 }
 0x626   : > { %v9652_v8 = vpop.eup %9651  ;;  %v5590_v31 = vadd.f32 %v13692_v2, %v13680_v38  ;;  %v8689_v40 = vmul.f32 -1.442695, %v13796_v18  ;;  %v5656_v52 = vmul.f32 %v13499_v57, %v5623_v0  ;;  %v5591_v61 = vadd.f32 %v5559_v58, %v13682_v14 }
 0x627   : > { %v4746_v60 = vsel %vm4745_vm5, %v9650_v48, %v4742_v42  ;;  %v4754_v37 = vmul.f32 %v9652_v8, %v13766_v12  ;;  %9653 = vpow2.f32 %v8688_v49  ;;  %v5786_v51 = vadd.f32 %v5754_v15, %v5689_v41  ;;  %v13861_v41 = vld [vmem:[#allocation2 + $0x50] sm:$0xff] }
 0x628   : > { %v4751_v59 = vsel %vm13771_vm3, %v4750_v32, %v4746_v60  ;;  %v5787_v21 = vadd.f32 %v5755_v20, %v5690_v33  ;;  %9655 = vpow2.f32 %v8689_v40  ;;  %v5687_v48 = vadd.f32 %v13709_v24, %v5590_v31 }
 0x629   : > { %v4854_v50 = vmul.f32 %v4751_v59, %v13654_v46  ;;  %v4755_v34 = vsub.f32 1.0, %v4754_v37  ;;  %v13816_v38 = vadd.f32 %v13782_v55, %v5786_v51  ;;  %v5752_v30 = vmul.f32 %v13752_v7, %v13672_v35  ;;  %v4210_v35 = vpop.f32.mrf.mxu1 }
 0x62a   : > { %v13819_v2 = vadd.f32 %v13782_v55, %v5787_v21  ;;  %vm4759_vm6 = vweird.f32 %v9652_v8  ;;  %v5688_v36 = vadd.f32 %v5656_v52, %v5591_v61  ;;  %v5753_v46 = vmul.f32 %v13752_v7, %v13689_v63 }
 0x62b   : > { %4927 = vst [vmem:[#allocation2 + $0x151] sm:$0xff] %v4854_v50  ;;  %v4756_v32 = vmul.f32 %v9652_v8, %v4755_v34  ;;  %v8686_v14 = vmul.f32 -1.442695, %v13816_v38  ;;  %v5784_v11 = vadd.f32 %v5752_v30, %v5687_v48  ;;  %v5588_v54 = vadd.f32 %v13598_v27, %v13590_v1  ;;  %v13842_v27 = vld [vmem:[#allocation2 + $0x48] sm:$0xff]  ;;  %v13884_v34 = vld [vmem:[#allocation2 + $0x51] sm:$0xff] }
 0x62c   : > { %v8687_v23 = vmul.f32 -1.442695, %v13819_v2  ;;  %vm4758_vm10 = vweird.f32 %v13766_v12  ;;  %vm4763_vm7 = vcmp.eq.f32.partialorder %v4762_v62, 8.507059e+37  ;;  %v5785_v24 = vadd.f32 %v5753_v46, %v5688_v36 }
 0x62d   : > { %v4757_v17 = vadd.f32 %v9652_v8, %v4756_v32  ;;  %v9654_v56 = vpop.eup %9653  ;;  %vm4760_vm8 = vmor %vm4758_vm10, %vm4759_vm6  ;;  %v4765_v19 = vor.u32 1.1754944e-38, %v4764_v53  ;;  %9657 = vpow2.f32 %v8686_v14  ;;  %v13832_v63 = vadd.f32 %v13504_v45, %v4210_v35 }
 0x62e   : > { %v13835_v29 = vadd.f32 %v13782_v55, %v5784_v11  ;;  %v9656_v44 = vpop.eup %9655  ;;  %v13837_v28 = vadd.f32 1.0, %v9654_v56  ;;  %9659 = vpow2.f32 %v8687_v23  ;;  %v13840_v1 = vadd.f32 %v13782_v55, %v5785_v24 }
 0x62f   : > { %v4761_v22 = vsel %vm4760_vm8, %v9652_v8, %v4757_v17  ;;  %v13844_v62 = vadd.f32 1.0, %v9656_v44  ;;  %v8670_v53 = vmul.f32 -1.442695, %v13832_v63  ;;  %v5589_v42 = vadd.f32 %v13666_v3, %v13606_v26  ;;  %v13863_v26 = vld [vmem:[#allocation2 + $0x49] sm:$0xff] }
 0x630   : > { %v4766_v12 = vsel %vm4763_vm7, %v4765_v19, %v4761_v22  ;;  %v8684_v15 = vmul.f32 -1.442695, %v13835_v29  ;;  %9661 = vrcp.f32 %v13837_v28  ;;  %v5750_v20 = vmul.f32 %v13752_v7, %v13585_v16 }
 0x631   : > { %v4855_v0 = vmul.f32 %v4766_v12, %v13714_v5  ;;  %9663 = vrcp.f32 %v13844_v62  ;;  %v4972_v58 = vmul.f32 %v13475_v43, %v13842_v27  ;;  %v8685_v8 = vmul.f32 -1.442695, %v13840_v1 }
 0x632   : > { %9665 = vpow2.f32 %v8670_v53  ;;  %v5654_v5 = vmul.f32 %v13499_v57, %v13617_v39  ;;  %v5685_v49 = vadd.f32 %v13620_v47, %v5588_v54  ;;  %v6188_v16 = vand.u32 2147483647, %v13837_v28 }
 0x633   : > { %4928 = vst [vmem:[#allocation2 + $0x159] sm:$0xff] %v4855_v0  ;;  %v9658_v3 = vpop.eup %9657  ;;  %v6190_v33 = vand.u32 2147483648, %v13837_v28  ;;  %v6205_v31 = vand.u32 2147483648, %v13844_v62  ;;  %9667 = vpow2.f32 %v8684_v15  ;;  %v6203_v37 = vand.u32 2147483647, %v13844_v62 }
 0x634   : > { %v9660_v60 = vpop.eup %9659  ;;  %v13869_v40 = vadd.f32 1.0, %v9658_v3  ;;  %v5686_v39 = vadd.f32 %v5654_v5, %v5589_v42  ;;  %v5782_v52 = vadd.f32 %v5750_v20, %v5685_v49  ;;  %9669 = vpow2.f32 %v8685_v8 }
 0x635   : > { %v13871_v47 = vadd.f32 1.0, %v9660_v60  ;;  %v13875_v59 = vmul.f32 %v13475_v43, %v13861_v41  ;;  %v5069_v51 = vmul.f32 %v13481_v9, %v13863_v26  ;;  %vm6184_vm9 = vweird.f32 %v13837_v28 }
 0x636   : > { %v9662_v21 = vpop.eup %9661  ;;  %vm6199_vm11 = vweird.f32 %v13844_v62  ;;  %9671 = vrcp.f32 %v13869_v40  ;;  %v5751_v50 = vmul.f32 %v13752_v7, %v13595_v25  ;;  %vm13887_vm14 = vcmp.eq.f32.partialorder %v6188_v16, 8.507059e+37 }
 0x637   : > { %v9664_v61 = vpop.eup %9663  ;;  %v6180_v48 = vmul.f32 %v9662_v21, %v13837_v28  ;;  %v6191_v32 = vor.u32 1.1754944e-38, %v6190_v33  ;;  %v6206_v36 = vor.u32 1.1754944e-38, %v6205_v31  ;;  %9673 = vrcp.f32 %v13871_v47 }
 0x638   : > { %v9666_v46 = vpop.eup %9665  ;;  %v6195_v14 = vmul.f32 %v9664_v61, %v13844_v62  ;;  %vm13893_vm12 = vcmp.eq.f32.partialorder %v6203_v37, 8.507059e+37  ;;  %v6160_v25 = vand.u32 2147483648, %v13869_v40  ;;  %v5783_v11 = vadd.f32 %v5751_v50, %v5686_v39  ;;  %v4212_v39 = vpop.f32.mrf.mxu1 }
 0x639   : > { %v13899_v54 = vadd.f32 %v13782_v55, %v5782_v52  ;;  %v9668_v17 = vpop.eup %9667  ;;  %v6181_v35 = vsub.f32 1.0, %v6180_v48  ;;  %v6158_v24 = vand.u32 2147483647, %v13869_v40  ;;  %v13902_v56 = vadd.f32 1.0, %v9666_v46 }
 0x63a   : > { %v13906_v19 = vmul.f32 %v13481_v9, %v13884_v34  ;;  %v6196_v44 = vsub.f32 1.0, %v6195_v14  ;;  %v6173_v22 = vand.u32 2147483647, %v13871_v47  ;;  %v6175_v12 = vand.u32 2147483648, %v13871_v47  ;;  %v9670_v15 = vpop.eup %9669 }
 0x63b   : > { %v13910_v53 = vadd.f32 %v5069_v51, %v4972_v58  ;;  %v6182_v0 = vmul.f32 %v9662_v21, %v6181_v35  ;;  %vm6185_vm13 = vweird.f32 %v9662_v21  ;;  %vm6154_vm15 = vweird.f32 %v13869_v40 }
 0x63c   : > { %9675 = vrcp.f32 %v13902_v56  ;;  %v13914_v42 = vadd.f32 1.0, %v9668_v17  ;;  %v9672_v20 = vpop.eup %9671  ;;  %v6197_v8 = vmul.f32 %v9664_v61, %v6196_v44  ;;  %vm6200_vm0 = vweird.f32 %v9664_v61  ;;  %vm6186_vm3 = vmor %vm6184_vm9, %vm6185_vm13 }
 0x63d   : > { %v6161_v5 = vor.u32 1.1754944e-38, %v6160_v25  ;;  %vm6169_vm1 = vweird.f32 %v13871_v47  ;;  %v9674_v49 = vpop.eup %9673  ;;  %v6183_v3 = vadd.f32 %v9662_v21, %v6182_v0  ;;  %v6150_v58 = vmul.f32 %v9672_v20, %v13869_v40  ;;  %vm6201_vm5 = vmor %vm6199_vm11, %vm6200_vm0 }
 0x63e   : > { %vm13918_vm2 = vcmp.eq.f32.partialorder %v6158_v24, 8.507059e+37  ;;  %v13923_v33 = vadd.f32 %v13782_v55, %v5783_v11  ;;  %v8682_v31 = vmul.f32 -1.442695, %v13899_v54  ;;  %v6198_v60 = vadd.f32 %v9664_v61, %v6197_v8 }
 0x63f   : > { %v6165_v37 = vmul.f32 %v9674_v49, %v13871_v47  ;;  %vm13930_vm4 = vcmp.eq.f32.partialorder %v6173_v22, 8.507059e+37  ;;  %v6176_v52 = vor.u32 1.1754944e-38, %v6175_v12  ;;  %v4777_v51 = vand.u32 2147483647, %v13902_v56 }
 0x640   : > { %v6187_v50 = vsel %vm6186_vm3, %v9662_v21, %v6183_v3  ;;  %v6151_v48 = vsub.f32 1.0, %v6150_v58  ;;  %v13938_v46 = vadd.f32 1.0, %v9670_v15  ;;  %9677 = vrcp.f32 %v13914_v42  ;;  %v13968_v58 = vld [vmem:[#allocation2 + $0x4a] sm:$0xff] }
 0x641   : > { %v6192_v28 = vsel %vm13887_vm14, %v6191_v32, %v6187_v50  ;;  %v6202_v14 = vsel %vm6201_vm5, %v9664_v61, %v6198_v60  ;;  %v6166_v25 = vsub.f32 1.0, %v6165_v37  ;;  %v4779_v11 = vand.u32 2147483648, %v13902_v56 }
 0x642   : > { %v9676_v17 = vpop.eup %9675  ;;  %v6207_v21 = vsel %vm13893_vm12, %v6206_v36, %v6202_v14  ;;  %v6152_v35 = vmul.f32 %v9672_v20, %v6151_v48  ;;  %vm6155_vm6 = vweird.f32 %v9672_v20  ;;  %vm6170_vm10 = vweird.f32 %v9674_v49 }
 0x643   : > { %v6463_v62 = vmul.f32 %v6192_v28, %v13787_v10  ;;  %v6464_v24 = vmul.f32 %v6207_v21, %v13796_v18  ;;  %v6167_v44 = vmul.f32 %v9674_v49, %v6166_v25  ;;  %v4769_v22 = vmul.f32 %v9676_v17, %v13902_v56  ;;  %vm6156_vm9 = vmor %vm6154_vm15, %vm6155_vm6 }
 0x644   : > { %v6153_v30 = vadd.f32 %v9672_v20, %v6152_v35  ;;  %vm4773_vm7 = vweird.f32 %v13902_v56  ;;  %vm13950_vm8 = vcmp.eq.f32.partialorder %v4777_v51, 8.507059e+37  ;;  %9679 = vrcp.f32 %v13938_v46  ;;  %vm6171_vm11 = vmor %vm6169_vm1, %vm6170_vm10 }
 0x645   : > { %v6496_v32 = vpack.c.bf16 %v6464_v24, %v6463_v62  ;;  %v6168_v36 = vadd.f32 %v9674_v49, %v6167_v44  ;;  %v4770_v10 = vsub.f32 1.0, %v4769_v22  ;;  %v6128_v18 = vand.u32 2147483647, %v13914_v42  ;;  %v14013_v44 = vld [vmem:[#allocation2 + $0x60] sm:$0xff] }
 0x646   : > { %v13958_v23 = vpop.eup %9677  ;;  %v6157_v12 = vsel %vm6156_vm9, %v9672_v20, %v6153_v30  ;;  %vm4774_vm14 = vweird.f32 %v9676_v17  ;;  %v4780_v15 = vor.u32 1.1754944e-38, %v4779_v11  ;;  %vm6124_vm12 = vweird.f32 %v13914_v42  ;;  %v14017_v30 = vld [vmem:[#allocation2 + $0x68] sm:$0xff]  ;;  %v9960_v62 = vld [vmem:[#allocation2 + $0x80] sm:$0xff] }
 0x647   : > { %6545 = vmatpush.bf16.msra.mxu2 %v6496_v32  ;;  %v6162_v40 = vsel %vm13918_vm2, %v6161_v5, %v6157_v12  ;;  %v6172_v0 = vsel %vm6171_vm11, %v9674_v49, %v6168_v36  ;;  %v4771_v8 = vmul.f32 %v9676_v17, %v4770_v10  ;;  %v6120_v3 = vmul.f32 %v13958_v23, %v13914_v42  ;;  %vm4775_vm0 = vmor %vm4773_vm7, %vm4774_vm14 }
 0x648   : > { %v6177_v20 = vsel %vm13930_vm4, %v6176_v52, %v6172_v0  ;;  %v6461_v47 = vmul.f32 %v6162_v40, %v13816_v38  ;;  %v6130_v60 = vand.u32 2147483648, %v13914_v42  ;;  %v6143_v37 = vand.u32 2147483647, %v13938_v46  ;;  %v13987_v52 = vld [vmem:[#allocation2 + $0x52] sm:$0xff] }
 0x649   : > { %v6462_v51 = vmul.f32 %v6177_v20, %v13819_v2  ;;  %v4772_v16 = vadd.f32 %v9676_v17, %v4771_v8  ;;  %v6121_v5 = vsub.f32 1.0, %v6120_v3  ;;  %vm6125_vm13 = vweird.f32 %v13958_v23  ;;  %v16348_v20 = vld [vmem:[#allocation70_spill] sm:$0xff] }
 0x64a   : > { %vm13977_vm15 = vcmp.eq.f32.partialorder %v6128_v18, 8.507059e+37  ;;  %v9680_v50 = vpop.eup %9679  ;;  %9681 = vpow2.f32 %v8682_v31  ;;  %v8683_v38 = vmul.f32 -1.442695, %v13923_v33  ;;  %v5102_v2 = vadd.f32 %v13906_v19, %v13875_v59  ;;  %vm14007_vm1 = vmor %vm6124_vm12, %vm6125_vm13 }
 0x64b   : > { %v5166_v48 = vmul.f32 %v13483_v4, %v13968_v58  ;;  %v6495_v28 = vpack.c.bf16 %v6462_v51, %v6461_v47  ;;  %v4776_v14 = vsel %vm4775_vm0, %v9676_v17, %v4772_v16  ;;  %v6122_v25 = vmul.f32 %v13958_v23, %v6121_v5  ;;  %v14037_v51 = vld [vmem:[#allocation2 + $0x62] sm:$0xff] }
 0x64c   : > { %v6135_v11 = vmul.f32 %v9680_v50, %v13938_v46  ;;  %v4781_v56 = vsel %vm13950_vm8, %v4780_v15, %v4776_v14  ;;  %v6145_v31 = vand.u32 2147483648, %v13938_v46  ;;  %9683 = vpow2.f32 %v8683_v38 }
 0x64d   : > { %v13997_v21 = vadd.f32 %v13504_v45, %v4212_v39  ;;  %6546 = vmatpush.bf16.msra.mxu2 %v6495_v28  ;;  %v4856_v59 = vmul.f32 %v4781_v56, %v13832_v63  ;;  %v6123_v19 = vadd.f32 %v13958_v23, %v6122_v25  ;;  %v5167_v17 = vmul.f32 %v13483_v4, %v13987_v52  ;;  %v16347_v63 = vld [vmem:[#allocation64_spill] sm:$0xff] }
 0x64e   : > { %v6136_v35 = vsub.f32 1.0, %v6135_v11  ;;  %v5198_v24 = vadd.f32 %v5166_v48, %v13910_v53  ;;  %v5263_v22 = vmul.f32 %v14013_v44, %v16347_v63  ;;  %v5264_v61 = vmul.f32 %v14017_v30, %v16347_v63  ;;  %v9958_v48 = vld [vmem:[#allocation2 + $0x78] sm:$0xff] }
 0x64f   : > { %v8671_v45 = vmul.f32 -1.442695, %v13997_v21  ;;  %4929 = vst [vmem:[#allocation2 + $0x169] sm:$0xff] %v4856_v59  ;;  %v6127_v42 = vsel %vm14007_vm1, %v13958_v23, %v6123_v19  ;;  %vm6140_vm2 = vweird.f32 %v9680_v50  ;;  %v5199_v36 = vadd.f32 %v5167_v17, %v5102_v2  ;;  %v14029_v23 = vld [vmem:[#allocation2 + $0x61] sm:$0xff] }
 0x650   : > { %v6137_v32 = vmul.f32 %v9680_v50, %v6136_v35  ;;  %v9682_v10 = vpop.eup %9681  ;;  %v6131_v53 = vor.u32 1.1754944e-38, %v6130_v60  ;;  %vm6139_vm3 = vweird.f32 %v13938_v46  ;;  %v5295_v18 = vadd.f32 %v5263_v22, %v5198_v24  ;;  %v14033_v60 = vld [vmem:[#allocation2 + $0x69] sm:$0xff] }
 0x651   : > { %9685 = vpow2.f32 %v8671_v45  ;;  %v6146_v15 = vor.u32 1.1754944e-38, %v6145_v31  ;;  %v14025_v40 = vadd.f32 1.0, %v9682_v10  ;;  %v5296_v0 = vadd.f32 %v5264_v61, %v5199_v36  ;;  %vm6141_vm4 = vmor %vm6139_vm3, %vm6140_vm2  ;;  %v14051_v31 = vld [vmem:[#allocation2 + $0x6a] sm:$0xff] }
 0x652   : > { %v6138_v12 = vadd.f32 %v9680_v50, %v6137_v32  ;;  %v9684_v8 = vpop.eup %9683  ;;  %v6132_v3 = vsel %vm13977_vm15, %v6131_v53, %v6127_v42  ;;  %v5360_v47 = vmul.f32 %v14029_v23, %v16348_v20  ;;  %v5361_v46 = vmul.f32 %v14033_v60, %v16348_v20  ;;  %v9961_v42 = vld [vmem:[#allocation2 + $0x79] sm:$0xff] }
 0x653   : > { %v5457_v16 = vmul.f32 %v14037_v51, %v13495_v6  ;;  %vm6144_vm5 = vcmp.eq.f32.partialorder %v6143_v37, 8.507059e+37  ;;  %v14041_v49 = vadd.f32 1.0, %v9684_v8  ;;  %9687 = vrcp.f32 %v14025_v40  ;;  %v14071_v8 = vld [vmem:[#allocation2 + $0x38] sm:$0xff] }
 0x654   : > { %v6142_v5 = vsel %vm6141_vm4, %v9680_v50, %v6138_v12  ;;  %v5392_v39 = vadd.f32 %v5360_v47, %v5295_v18  ;;  %v5393_v2 = vadd.f32 %v5361_v46, %v5296_v0  ;;  %v5554_v28 = vmul.f32 %v9958_v48, %v13497_v13  ;;  %v9962_v12 = vld [vmem:[#allocation2 + $0x81] sm:$0xff]  ;;  %v14069_v0 = vld [vmem:[#allocation2 + $0x30] sm:$0xff] }
 0x655   : > { %v6147_v38 = vsel %vm6144_vm5, %v6146_v15, %v6142_v5  ;;  %v6459_v14 = vmul.f32 %v6132_v3, %v13835_v29  ;;  %v6100_v11 = vand.u32 2147483648, %v14025_v40  ;;  %9689 = vrcp.f32 %v14041_v49  ;;  %v9963_v5 = vld [vmem:[#allocation2 + $0x7a] sm:$0xff] }
 0x656   : > { %v6460_v25 = vmul.f32 %v6147_v38, %v13840_v1  ;;  %v6098_v37 = vand.u32 2147483647, %v14025_v40  ;;  %v6115_v56 = vand.u32 2147483648, %v14041_v49  ;;  %v5458_v59 = vmul.f32 %v14051_v31, %v13495_v6 }
 0x657   : > { %v9686_v50 = vpop.eup %9685  ;;  %v5489_v19 = vadd.f32 %v5457_v16, %v5392_v39  ;;  %v6113_v29 = vand.u32 2147483647, %v14041_v49  ;;  %v5555_v45 = vmul.f32 %v9960_v62, %v13497_v13  ;;  %vm6094_vm6 = vweird.f32 %v14025_v40  ;;  %v14076_v39 = vld [vmem:[#allocation2 + $0x31] sm:$0xff] }
 0x658   : > { %v6494_v35 = vpack.c.bf16 %v6460_v25, %v6459_v14  ;;  %v14055_v17 = vadd.f32 1.0, %v9686_v50  ;;  %v5490_v1 = vadd.f32 %v5458_v59, %v5393_v2  ;;  %v6101_v61 = vor.u32 1.1754944e-38, %v6100_v11  ;;  %v14078_v2 = vld [vmem:[#allocation2 + $0x39] sm:$0xff]  ;;  %v9964_v50 = vld [vmem:[#allocation2 + $0x82] sm:$0xff] }
 0x659   : > { %v5586_v24 = vadd.f32 %v5554_v28, %v5489_v19  ;;  %v9688_v22 = vpop.eup %9687  ;;  %v5651_v32 = vmul.f32 %v9961_v42, %v13499_v57  ;;  %vm14063_vm10 = vcmp.eq.f32.partialorder %v6098_v37, 8.507059e+37  ;;  %vm6109_vm7 = vweird.f32 %v14041_v49  ;;  %v14085_v11 = vld [vmem:[#allocation2 + $0x32] sm:$0xff] }
 0x65a   : > { %6547 = vmatpush.bf16.msra.mxu2 %v6494_v35  ;;  %9691 = vrcp.f32 %v14055_v17  ;;  %v6090_v36 = vmul.f32 %v9688_v22, %v14025_v40  ;;  %v6116_v53 = vor.u32 1.1754944e-38, %v6115_v56  ;;  %v5587_v18 = vadd.f32 %v5555_v45, %v5490_v1  ;;  %v14092_v35 = vld [vmem:[#allocation2 + $0x3a] sm:$0xff] }
 0x65b   : > { %v5652_v15 = vmul.f32 %v9962_v12, %v13499_v57  ;;  %v9690_v3 = vpop.eup %9689  ;;  %v4792_v47 = vand.u32 2147483647, %v14055_v17  ;;  %v4794_v46 = vand.u32 2147483648, %v14055_v17  ;;  %v5683_v16 = vadd.f32 %v5651_v32, %v5586_v24 }
 0x65c   : > { %v5748_v38 = vmul.f32 %v9963_v5, %v13752_v7  ;;  %v6091_v48 = vsub.f32 1.0, %v6090_v36  ;;  %vm6095_vm8 = vweird.f32 %v9688_v22  ;;  %v6105_v28 = vmul.f32 %v9690_v3, %v14041_v49 }
 0x65d   : > { %vm14081_vm9 = vcmp.eq.f32.partialorder %v6113_v29, 8.507059e+37  ;;  %v5684_v25 = vadd.f32 %v5652_v15, %v5587_v18  ;;  %v5749_v37 = vmul.f32 %v9964_v50, %v13752_v7  ;;  %v4970_v59 = vmul.f32 %v13475_v43, %v14069_v0  ;;  %vm6096_vm13 = vmor %vm6094_vm6, %vm6095_vm8 }
 0x65e   : > { %v5780_v56 = vadd.f32 %v5748_v38, %v5683_v16  ;;  %v4971_v19 = vmul.f32 %v13475_v43, %v14071_v8  ;;  %v6092_v1 = vmul.f32 %v9688_v22, %v6091_v48  ;;  %v6106_v29 = vsub.f32 1.0, %v6105_v28 }
 0x65f   : > { %vm4788_vm11 = vweird.f32 %v14055_v17  ;;  %v5067_v62 = vmul.f32 %v13481_v9, %v14076_v39  ;;  %v5068_v45 = vmul.f32 %v13481_v9, %v14078_v2  ;;  %vm6110_vm14 = vweird.f32 %v9690_v3 }
 0x660   : > { %v9692_v24 = vpop.eup %9691  ;;  %v5781_v42 = vadd.f32 %v5749_v37, %v5684_v25  ;;  %v14100_v32 = vadd.f32 %v13782_v55, %v5780_v56  ;;  %v5164_v36 = vmul.f32 %v13483_v4, %v14085_v11  ;;  %v6093_v18 = vadd.f32 %v9688_v22, %v6092_v1  ;;  %vm6111_vm15 = vmor %vm6109_vm7, %vm6110_vm14 }
 0x661   : > { %v6107_v12 = vmul.f32 %v9690_v3, %v6106_v29  ;;  %v4784_v15 = vmul.f32 %v9692_v24, %v14055_v17  ;;  %vm14105_vm12 = vcmp.eq.f32.partialorder %v4792_v47, 8.507059e+37  ;;  %v5165_v5 = vmul.f32 %v13483_v4, %v14092_v35 }
 0x662   : > { %v14115_v38 = vadd.f32 %v13782_v55, %v5781_v42  ;;  %v8680_v48 = vmul.f32 -1.442695, %v14100_v32  ;;  %v5099_v28 = vadd.f32 %v5067_v62, %v4970_v59  ;;  %v5100_v25 = vadd.f32 %v5068_v45, %v4971_v19 }
 0x663   : > { %v6097_v50 = vsel %vm6096_vm13, %v9688_v22, %v6093_v18  ;;  %v6108_v37 = vadd.f32 %v9690_v3, %v6107_v12  ;;  %v4785_v47 = vsub.f32 1.0, %v4784_v15  ;;  %v5261_v56 = vmul.f32 %v16347_v63, %v13842_v27 }
 0x664   : > { %v6102_v1 = vsel %vm14063_vm10, %v6101_v61, %v6097_v50  ;;  %9693 = vpow2.f32 %v8680_v48  ;;  %v8681_v40 = vmul.f32 -1.442695, %v14115_v38  ;;  %v5196_v29 = vadd.f32 %v5164_v36, %v5099_v28 }
 0x665   : > { %v6112_v42 = vsel %vm6111_vm15, %v9690_v3, %v6108_v37  ;;  %v4786_v59 = vmul.f32 %v9692_v24, %v4785_v47  ;;  %vm4789_vm0 = vweird.f32 %v9692_v24  ;;  %v5197_v22 = vadd.f32 %v5165_v5, %v5100_v25  ;;  %v14148_v25 = vld [vmem:[#allocation2 + $0x18] sm:$0xff] }
 0x666   : > { %v6117_v19 = vsel %vm14081_vm9, %v6116_v53, %v6112_v42  ;;  %9695 = vpow2.f32 %v8681_v40  ;;  %v5262_v10 = vmul.f32 %v16347_v63, %v13861_v41  ;;  %v5293_v61 = vadd.f32 %v5261_v56, %v5196_v29  ;;  %vm4790_vm1 = vmor %vm4788_vm11, %vm4789_vm0  ;;  %v14155_v37 = vld [vmem:[#allocation2 + $0x19] sm:$0xff] }
 0x667   : > { %v6457_v62 = vmul.f32 %v6102_v1, %v13899_v54  ;;  %v6458_v49 = vmul.f32 %v6117_v19, %v13923_v33  ;;  %v4787_v45 = vadd.f32 %v9692_v24, %v4786_v59  ;;  %v4795_v18 = vor.u32 1.1754944e-38, %v4794_v46  ;;  %v14159_v1 = vld [vmem:[#allocation2 + $0x20] sm:$0xff] }
 0x668   : > { %v5294_v3 = vadd.f32 %v5262_v10, %v5197_v22  ;;  %v5358_v36 = vmul.f32 %v16348_v20, %v13863_v26  ;;  %v5359_v53 = vmul.f32 %v16348_v20, %v13884_v34  ;;  %v5455_v14 = vmul.f32 %v13495_v6, %v13968_v58  ;;  %v14175_v19 = vld [vmem:[#allocation2 + $0x1a] sm:$0xff] }
 0x669   : > { %v6493_v12 = vpack.c.bf16 %v6458_v49, %v6457_v62  ;;  %v4791_v15 = vsel %vm4790_vm1, %v9692_v24, %v4787_v45  ;;  %v5456_v54 = vmul.f32 %v13495_v6, %v13987_v52  ;;  %v5552_v33 = vmul.f32 %v14013_v44, %v13497_v13 }
 0x66a   : > { %v9694_v17 = vpop.eup %9693  ;;  %v4796_v46 = vsel %vm14105_vm12, %v4795_v18, %v4791_v15  ;;  %v5390_v5 = vadd.f32 %v5358_v36, %v5293_v61  ;;  %v5391_v48 = vadd.f32 %v5359_v53, %v5294_v3  ;;  %v5553_v28 = vmul.f32 %v14017_v30, %v13497_v13  ;;  %v14182_v61 = vld [vmem:[#allocation2 + $0x22] sm:$0xff] }
 0x66b   : > { %6548 = vmatpush.bf16.msra.mxu2 %v6493_v12  ;;  %v14151_v24 = vmul.f32 %v4796_v46, %v13997_v21  ;;  %v14153_v50 = vadd.f32 1.0, %v9694_v17  ;;  %v5649_v16 = vmul.f32 %v14029_v23, %v13499_v57  ;;  %v5650_v21 = vmul.f32 %v14033_v60, %v13499_v57  ;;  %v14171_v23 = vld [vmem:[#allocation2 + $0x21] sm:$0xff] }
 0x66c   : > { %v9696_v44 = vpop.eup %9695  ;;  %v5487_v47 = vadd.f32 %v5455_v14, %v5390_v5  ;;  %v5488_v56 = vadd.f32 %v5456_v54, %v5391_v48  ;;  %v4968_v40 = vmul.f32 %v13475_v43, %v14148_v25  ;;  %v5746_v59 = vmul.f32 %v14037_v51, %v13752_v7 }
 0x66d   : > { %4930 = vst [vmem:[#allocation2 + $0x171] sm:$0xff] %v14151_v24  ;;  %v14162_v30 = vadd.f32 1.0, %v9696_v44  ;;  %9697 = vrcp.f32 %v14153_v50  ;;  %v5065_v22 = vmul.f32 %v13481_v9, %v14155_v37  ;;  %v5747_v60 = vmul.f32 %v14051_v31, %v13752_v7 }
 0x66e   : > { %v5584_v29 = vadd.f32 %v5552_v33, %v5487_v47  ;;  %v5585_v42 = vadd.f32 %v5553_v28, %v5488_v56  ;;  %v4969_v10 = vmul.f32 %v13475_v43, %v14159_v1  ;;  %v6068_v62 = vand.u32 2147483647, %v14153_v50  ;;  %v5030_v28 = vld [vmem:[#allocation2 + $0x1] sm:$0xff] }
 0x66f   : > { %9699 = vrcp.f32 %v14162_v30  ;;  %v6070_v51 = vand.u32 2147483648, %v14153_v50  ;;  %v6083_v18 = vand.u32 2147483647, %v14162_v30  ;;  %v5066_v3 = vmul.f32 %v13481_v9, %v14171_v23 }
 0x670   : > { %v5681_v49 = vadd.f32 %v5649_v16, %v5584_v29  ;;  %v5682_v45 = vadd.f32 %v5650_v21, %v5585_v42  ;;  %v5097_v36 = vadd.f32 %v5065_v22, %v4968_v40  ;;  %v5162_v31 = vmul.f32 %v13483_v4, %v14175_v19 }
 0x671   : > { %vm6064_vm2 = vweird.f32 %v14153_v50  ;;  %v6085_v53 = vand.u32 2147483648, %v14162_v30  ;;  %v5163_v15 = vmul.f32 %v13483_v4, %v14182_v61  ;;  %v5098_v33 = vadd.f32 %v5066_v3, %v4969_v10  ;;  %v4215_v10 = vpop.f32.mrf.mxu1 }
 0x672   : > { %v5778_v14 = vadd.f32 %v5746_v59, %v5681_v49  ;;  %v5779_v12 = vadd.f32 %v5747_v60, %v5682_v45  ;;  %v5194_v17 = vadd.f32 %v5162_v31, %v5097_v36  ;;  %v5259_v46 = vmul.f32 %v16347_v63, %v14069_v0  ;;  %v14221_v31 = vld [vmem:[%s16081_s6] ss:$0 sm:$0xff]  ;;  %s16433_s6 = sld [smem:[#allocation18_spill]] }
 0x673   : > { %v9698_v54 = vpop.eup %9697  ;;  %v5260_v5 = vmul.f32 %v16347_v63, %v14071_v8  ;;  %vm14200_vm4 = vcmp.eq.f32.partialorder %v6068_v62, 8.507059e+37  ;;  %vm6079_vm5 = vweird.f32 %v14162_v30  ;;  %v5195_v16 = vadd.f32 %v5163_v15, %v5098_v33 }
 0x674   : > { %v6060_v48 = vmul.f32 %v9698_v54, %v14153_v50  ;;  %vm6065_vm3 = vweird.f32 %v9698_v54  ;;  %v14206_v44 = vadd.f32 %v13782_v55, %v5778_v14  ;;  %v14209_v47 = vadd.f32 %v13782_v55, %v5779_v12 }
 0x675   : > { %v9700_v56 = vpop.eup %9699  ;;  %v5291_v21 = vadd.f32 %v5259_v46, %v5194_v17  ;;  %v5356_v40 = vmul.f32 %v16348_v20, %v14076_v39  ;;  %v5357_v29 = vmul.f32 %v16348_v20, %v14078_v2  ;;  %v5292_v62 = vadd.f32 %v5260_v5, %v5195_v16  ;;  %vm6066_vm10 = vmor %vm6064_vm2, %vm6065_vm3 }
 0x676   : > { %v6061_v42 = vsub.f32 1.0, %v6060_v48  ;;  %v6075_v59 = vmul.f32 %v9700_v56, %v14162_v30  ;;  %vm6080_vm6 = vweird.f32 %v9700_v56  ;;  %v8678_v22 = vmul.f32 -1.442695, %v14206_v44  ;;  %v14256_v30 = vld [vmem:[#allocation2] sm:$0xff] }
 0x677   : > { %v8679_v60 = vmul.f32 -1.442695, %v14209_v47  ;;  %v5388_v49 = vadd.f32 %v5356_v40, %v5291_v21  ;;  %v5453_v45 = vmul.f32 %v13495_v6, %v14085_v11  ;;  %v14224_v14 = vadd.f32 %v14221_v31, %v4215_v10  ;;  %vm6081_vm7 = vmor %vm6079_vm5, %vm6080_vm6 }
 0x678   : > { %v6062_v3 = vmul.f32 %v9698_v54, %v6061_v42  ;;  %v6076_v36 = vsub.f32 1.0, %v6075_v59  ;;  %9701 = vpow2.f32 %v8678_v22  ;;  %v5389_v12 = vadd.f32 %v5357_v29, %v5292_v62 }
 0x679   : > { %9703 = vpow2.f32 %v8679_v60  ;;  %v5454_v15 = vmul.f32 %v13495_v6, %v14092_v35  ;;  %v5485_v33 = vadd.f32 %v5453_v45, %v5388_v49  ;;  %v8672_v5 = vmul.f32 -1.442695, %v14224_v14 }
 0x67a   : > { %v6063_v17 = vadd.f32 %v9698_v54, %v6062_v3  ;;  %v6077_v46 = vmul.f32 %v9700_v56, %v6076_v36  ;;  %v5550_v48 = vmul.f32 %v13497_v13, %v13842_v27  ;;  %v6071_v16 = vor.u32 1.1754944e-38, %v6070_v51 }
 0x67b   : > { %v5486_v21 = vadd.f32 %v5454_v15, %v5389_v12  ;;  %v5551_v40 = vmul.f32 %v13497_v13, %v13861_v41  ;;  %v5647_v29 = vmul.f32 %v13499_v57, %v13863_v26  ;;  %9705 = vpow2.f32 %v8672_v5 }
 0x67c   : > { %v6067_v42 = vsel %vm6066_vm10, %v9698_v54, %v6063_v17  ;;  %v6078_v59 = vadd.f32 %v9700_v56, %v6077_v46  ;;  %v5582_v22 = vadd.f32 %v5550_v48, %v5485_v33  ;;  %v6086_v27 = vor.u32 1.1754944e-38, %v6085_v53  ;;  %v5031_v53 = vld [vmem:[#allocation2 + $0x9] sm:$0xff] }
 0x67d   : > { %v6072_v60 = vsel %vm14200_vm4, %v6071_v16, %v6067_v42  ;;  %v5583_v50 = vadd.f32 %v5551_v40, %v5486_v21  ;;  %v5744_v51 = vmul.f32 %v13752_v7, %v13968_v58  ;;  %vm6084_vm8 = vcmp.eq.f32.partialorder %v6083_v18, 8.507059e+37  ;;  %v5127_v21 = vld [vmem:[#allocation2 + $0x2] sm:$0xff]  ;;  %v5128_v40 = vld [vmem:[#allocation2 + $0xa] sm:$0xff] }
 0x67e   : > { %v9702_v41 = vpop.eup %9701  ;;  %v6082_v10 = vsel %vm6081_vm7, %v9700_v56, %v6078_v59  ;;  %v5648_v26 = vmul.f32 %v13499_v57, %v13884_v34  ;;  %v5679_v54 = vadd.f32 %v5647_v29, %v5582_v22  ;;  %v6455_v45 = vmul.f32 %v6072_v60, %v14100_v32 }
 0x67f   : > { %v9704_v62 = vpop.eup %9703  ;;  %v6087_v49 = vsel %vm6084_vm8, %v6086_v27, %v6082_v10  ;;  %v14250_v3 = vadd.f32 1.0, %v9702_v41  ;;  %v4966_v34 = vmul.f32 %v14256_v30, %v13475_v43  ;;  %v5063_v18 = vmul.f32 %v13481_v9, %v5030_v28 }
 0x680   : > { %v6456_v36 = vmul.f32 %v6087_v49, %v14115_v38  ;;  %v14253_v58 = vadd.f32 1.0, %v9704_v62  ;;  %v5680_v56 = vadd.f32 %v5648_v26, %v5583_v50  ;;  %v5776_v12 = vadd.f32 %v5744_v51, %v5679_v54 }
 0x681   : > { %9707 = vrcp.f32 %v14250_v3  ;;  %v9706_v15 = vpop.eup %9705  ;;  %v5745_v38 = vmul.f32 %v13752_v7, %v13987_v52  ;;  %v5064_v33 = vmul.f32 %v13481_v9, %v5031_v53  ;;  %v6038_v46 = vand.u32 2147483647, %v14250_v3 }
 0x682   : > { %v6492_v32 = vpack.c.bf16 %v6456_v36, %v6455_v45  ;;  %9709 = vrcp.f32 %v14253_v58  ;;  %v14265_v17 = vadd.f32 1.0, %v9706_v15  ;;  %v6040_v5 = vand.u32 2147483648, %v14250_v3 }
 0x683   : > { %v5777_v48 = vadd.f32 %v5745_v38, %v5680_v56  ;;  %v14270_v16 = vadd.f32 %v13782_v55, %v5776_v12  ;;  %v6053_v29 = vand.u32 2147483647, %v14253_v58  ;;  %v6055_v42 = vand.u32 2147483648, %v14253_v58 }
 0x684   : > { %6549 = vmatpush.bf16.msra.mxu2 %v6492_v32  ;;  %9711 = vrcp.f32 %v14265_v17  ;;  %v5095_v7 = vadd.f32 %v5063_v18, %v4966_v34  ;;  %vm6034_vm9 = vweird.f32 %v14250_v3  ;;  %v5096_v22 = vadd.f32 %v5064_v33, %v4966_v34 }
 0x685   : > { %v14277_v52 = vadd.f32 %v13782_v55, %v5777_v48  ;;  %v8676_v59 = vmul.f32 -1.442695, %v14270_v16  ;;  %vm6049_vm11 = vweird.f32 %v14253_v58  ;;  %v5160_v27 = vmul.f32 %v13483_v4, %v5127_v21 }
 0x686   : > { %v5161_v50 = vmul.f32 %v13483_v4, %v5128_v40  ;;  %v5257_v51 = vmul.f32 %v16347_v63, %v14148_v25  ;;  %vm14286_vm14 = vcmp.eq.f32.partialorder %v6038_v46, 8.507059e+37  ;;  %v6041_v55 = vor.u32 1.1754944e-38, %v6040_v5 }
 0x687   : > { %v9708_v60 = vpop.eup %9707  ;;  %9713 = vpow2.f32 %v8676_v59  ;;  %vm14291_vm12 = vcmp.eq.f32.partialorder %v6053_v29, 8.507059e+37  ;;  %v6056_v62 = vor.u32 1.1754944e-38, %v6055_v42  ;;  %v8677_v49 = vmul.f32 -1.442695, %v14277_v52 }
 0x688   : > { %v9710_v41 = vpop.eup %9709  ;;  %v6030_v10 = vmul.f32 %v9708_v60, %v14250_v3  ;;  %v5192_v45 = vadd.f32 %v5160_v27, %v5095_v7  ;;  %vm4803_vm13 = vweird.f32 %v14265_v17  ;;  %v4807_v53 = vand.u32 2147483647, %v14265_v17 }
 0x689   : > { %v6045_v54 = vmul.f32 %v9710_v41, %v14253_v58  ;;  %v5193_v36 = vadd.f32 %v5161_v50, %v5096_v22  ;;  %v5258_v56 = vmul.f32 %v16347_v63, %v14159_v1  ;;  %v4809_v18 = vand.u32 2147483648, %v14265_v17 }
 0x68a   : > { %v6031_v25 = vsub.f32 1.0, %v6030_v10  ;;  %v9712_v12 = vpop.eup %9711  ;;  %9715 = vpow2.f32 %v8677_v49  ;;  %v5289_v15 = vadd.f32 %v5257_v51, %v5192_v45  ;;  %vm6035_vm15 = vweird.f32 %v9708_v60 }
 0x68b   : > { %v6046_v34 = vsub.f32 1.0, %v6045_v54  ;;  %v4799_v38 = vmul.f32 %v9712_v12, %v14265_v17  ;;  %v5290_v33 = vadd.f32 %v5258_v56, %v5193_v36  ;;  %vm6050_vm0 = vweird.f32 %v9710_v41  ;;  %vm6036_vm2 = vmor %vm6034_vm9, %vm6035_vm15 }
 0x68c   : > { %v6032_v32 = vmul.f32 %v9708_v60, %v6031_v25  ;;  %v5354_v5 = vmul.f32 %v16348_v20, %v14155_v37  ;;  %v5451_v48 = vmul.f32 %v13495_v6, %v14175_v19  ;;  %vm4804_vm1 = vweird.f32 %v9712_v12  ;;  %vm6051_vm3 = vmor %vm6049_vm11, %vm6050_vm0 }
 0x68d   : > { %v6047_v46 = vmul.f32 %v9710_v41, %v6046_v34  ;;  %v9714_v1 = vpop.eup %9713  ;;  %v4800_v40 = vsub.f32 1.0, %v4799_v38  ;;  %v5355_v29 = vmul.f32 %v16348_v20, %v14171_v23  ;;  %v5548_v37 = vmul.f32 %v13497_v13, %v14069_v0  ;;  %vm4805_vm4 = vmor %vm4803_vm13, %vm4804_vm1  ;;  %v14351_v38 = vld [vmem:[%s16330_s16] ss:$0 sm:$0xff] }
 0x68e   : > { %v6033_v21 = vadd.f32 %v9708_v60, %v6032_v32  ;;  %v14310_v7 = vadd.f32 1.0, %v9714_v1  ;;  %v5386_v59 = vadd.f32 %v5354_v5, %v5289_v15  ;;  %v5452_v50 = vmul.f32 %v13495_v6, %v14182_v61 }
 0x68f   : > { %v6048_v42 = vadd.f32 %v9710_v41, %v6047_v46  ;;  %v4801_v19 = vmul.f32 %v9712_v12, %v4800_v40  ;;  %v5387_v27 = vadd.f32 %v5355_v29, %v5290_v33  ;;  %v5549_v58 = vmul.f32 %v13497_v13, %v14071_v8 }
 0x690   : > { %v6037_v22 = vsel %vm6036_vm2, %v9708_v60, %v6033_v21  ;;  %v9716_v23 = vpop.eup %9715  ;;  %9717 = vrcp.f32 %v14310_v7  ;;  %v5483_v10 = vadd.f32 %v5451_v48, %v5386_v59  ;;  %vm4808_vm5 = vcmp.eq.f32.partialorder %v4807_v53, 8.507059e+37  ;;  %v14341_v53 = vld [vmem:[%s16078_s12 + $0x8] ss:$0 sm:$0xff] }
 0x691   : > { %v6042_v3 = vsel %vm14286_vm14, %v6041_v55, %v6037_v22  ;;  %v6052_v51 = vsel %vm6051_vm3, %v9710_v41, %v6048_v42  ;;  %v4802_v60 = vadd.f32 %v9712_v12, %v4801_v19  ;;  %v14323_v54 = vadd.f32 1.0, %v9716_v23 }
 0x692   : > { %v6057_v0 = vsel %vm14291_vm12, %v6056_v62, %v6052_v51  ;;  %v6453_v49 = vmul.f32 %v6042_v3, %v14206_v44  ;;  %v4810_v41 = vor.u32 1.1754944e-38, %v4809_v18  ;;  %v5580_v26 = vadd.f32 %v5548_v37, %v5483_v10  ;;  %v4217_v37 = vpop.f32.mrf.mxu1 }
 0x693   : > { %v6454_v61 = vmul.f32 %v6057_v0, %v14209_v47  ;;  %v4806_v55 = vsel %vm4805_vm4, %v9712_v12, %v4802_v60  ;;  %9719 = vrcp.f32 %v14323_v54  ;;  %v5484_v28 = vadd.f32 %v5452_v50, %v5387_v27 }
 0x694   : > { %v4811_v45 = vsel %vm4808_vm5, %v4810_v41, %v4806_v55  ;;  %v5645_v8 = vmul.f32 %v13499_v57, %v14076_v39  ;;  %v5646_v25 = vmul.f32 %v13499_v57, %v14078_v2  ;;  %v5742_v56 = vmul.f32 %v14341_v53, %v14085_v11 }
 0x695   : > { %v6491_v62 = vpack.c.bf16 %v6454_v61, %v6453_v49  ;;  %v14336_v44 = vmul.f32 %v4811_v45, %v14224_v14  ;;  %v5581_v47 = vadd.f32 %v5549_v58, %v5484_v28  ;;  %v5743_v14 = vmul.f32 %v14341_v53, %v14092_v35 }
 0x696   : > { %v9718_v17 = vpop.eup %9717  ;;  %v5677_v36 = vadd.f32 %v5645_v8, %v5580_v26  ;;  %v6010_v46 = vand.u32 2147483648, %v14310_v7  ;;  %v6008_v5 = vand.u32 2147483647, %v14310_v7  ;;  %vm6004_vm10 = vweird.f32 %v14310_v7 }
 0x697   : > { %6550 = vmatpush.bf16.msra.mxu2 %v6491_v62  ;;  %4931 = vst [vmem:[#allocation2 + $0x181] sm:$0xff] %v14336_v44  ;;  %v6000_v39 = vmul.f32 %v9718_v17, %v14310_v7  ;;  %v5678_v12 = vadd.f32 %v5646_v25, %v5581_v47  ;;  %vm6005_vm6 = vweird.f32 %v9718_v17  ;;  %v6023_v40 = vand.u32 2147483647, %v14323_v54 }
 0x698   : > { %v5774_v34 = vadd.f32 %v5742_v56, %v5677_v36  ;;  %v6025_v29 = vand.u32 2147483648, %v14323_v54  ;;  %vm6006_vm7 = vmor %vm6004_vm10, %vm6005_vm6  ;;  %v6011_v19 = vor.u32 1.1754944e-38, %v6010_v46  ;;  %v14367_v27 = vadd.f32 %v14221_v31, %v4217_v37  ;;  %v8708_v37 = vld [vmem:[%s16361_s26] sm:$0xf] }
 0x699   : > { %v9720_v18 = vpop.eup %9719  ;;  %v6001_v15 = vsub.f32 1.0, %v6000_v39  ;;  %v5775_v2 = vadd.f32 %v5743_v14, %v5678_v12  ;;  %vm6009_vm9 = vcmp.eq.f32.partialorder %v6008_v5, 8.507059e+37  ;;  %vm6019_vm11 = vweird.f32 %v14323_v54 }
 0x69a   : > { %v6015_v32 = vmul.f32 %v9720_v18, %v14323_v54  ;;  %v14354_v33 = vadd.f32 %v14351_v38, %v5774_v34  ;;  %vm6020_vm8 = vweird.f32 %v9720_v18  ;;  %v6026_v23 = vor.u32 1.1754944e-38, %v6025_v29 }
 0x69b   : > { %v6002_v11 = vmul.f32 %v9718_v17, %v6001_v15  ;;  %v14359_v35 = vadd.f32 %v14351_v38, %v5775_v2  ;;  %vm6021_vm14 = vmor %vm6019_vm11, %vm6020_vm8  ;;  %v8673_v3 = vmul.f32 -1.442695, %v14367_v27  ;;  %vm6024_vm12 = vcmp.eq.f32.partialorder %v6023_v40, 8.507059e+37 }
 0x69c   : > { %v6016_v48 = vsub.f32 1.0, %v6015_v32  ;;  %v8674_v1 = vmul.f32 -1.442695, %v14354_v33 }
 0x69d   : > { %v6003_v21 = vadd.f32 %v9718_v17, %v6002_v11  ;;  %v8675_v59 = vmul.f32 -1.442695, %v14359_v35 }
 0x69e   : > { %v6017_v42 = vmul.f32 %v9720_v18, %v6016_v48  ;;  %9721 = vpow2.f32 %v8674_v1 }
 0x69f   : > { %v6007_v22 = vsel %vm6006_vm7, %v9718_v17, %v6003_v21  ;;  %9723 = vpow2.f32 %v8675_v59 }
 0x6a0   : > { %v6018_v50 = vadd.f32 %v9720_v18, %v6017_v42  ;;  %v6012_v7 = vsel %vm6009_vm9, %v6011_v19, %v6007_v22  ;;  %9725 = vpow2.f32 %v8673_v3  ;;  %v9097_v22 = vld [vmem:[%s16361_s26 + $0x4] sm:$0xf0] }
 0x6a1   : > { %v6451_v60 = vmul.f32 %v6012_v7, %v14270_v16  ;;  %v8709_v3 = vor.u32 %v9097_v22, %v8708_v37 }
 0x6a2   : > { %v6022_v51 = vsel %vm6021_vm14, %v9720_v18, %v6018_v50 }
 0x6a3   : > { %v6027_v10 = vsel %vm6024_vm12, %v6026_v23, %v6022_v51  ;;  %v14381_v51 = vld [vmem:[#allocation2 + $0x168] sm:$0xff] }
 0x6a4   : > { %v9722_v0 = vpop.eup %9721  ;;  %v6452_v31 = vmul.f32 %v6027_v10, %v14277_v52  ;;  %v4996_v10 = vmul.f32 %v13475_v43, %v14381_v51 }
 0x6a5   : > { %v5937_v58 = vadd.f32 1.0, %v9722_v0  ;;  %v9724_v49 = vpop.eup %9723 }
 0x6a6   : > { %v6490_v61 = vpack.c.bf16 %v6452_v31, %v6451_v60  ;;  %v5938_v41 = vadd.f32 1.0, %v9724_v49  ;;  %v9726_v54 = vpop.eup %9725  ;;  %v5094_v60 = vmul.f32 %v13481_v9, %v14151_v24  ;;  %v14395_v31 = vld [vmem:[#allocation2 + $0x16a] sm:$0xff]  ;;  %v14399_v49 = vld [vmem:[#allocation2 + $0x180] sm:$0xff] }
 0x6a7   : > { %9727 = vrcp.f32 %v5937_v58  ;;  %v4347_v26 = vadd.f32 1.0, %v9726_v54  ;;  %v5978_v47 = vand.u32 2147483647, %v5937_v58  ;;  %v5980_v17 = vand.u32 2147483648, %v5937_v58 }
 0x6a8   : > { %6551 = vmatpush.bf16.msra.mxu2 %v6490_v61  ;;  %9729 = vrcp.f32 %v5938_v41  ;;  %v5995_v36 = vand.u32 2147483648, %v5938_v41  ;;  %vm5974_vm15 = vweird.f32 %v5937_v58  ;;  %v5993_v14 = vand.u32 2147483647, %v5938_v41 }
 0x6a9   : > { %9731 = vrcp.f32 %v4347_v26  ;;  %vm5979_vm2 = vcmp.eq.f32.partialorder %v5978_v47, 8.507059e+37  ;;  %v5981_v34 = vor.u32 1.1754944e-38, %v5980_v17  ;;  %vm5989_vm3 = vweird.f32 %v5938_v41 }
 0x6aa   : > { %v5996_v2 = vor.u32 1.1754944e-38, %v5995_v36  ;;  %v4824_v11 = vand.u32 2147483648, %v4347_v26  ;;  %v4822_v48 = vand.u32 2147483647, %v4347_v26  ;;  %vm5994_vm6 = vcmp.eq.f32.partialorder %v5993_v14, 8.507059e+37 }
 0x6ab   : > { %vm4818_vm10 = vweird.f32 %v4347_v26  ;;  %v5190_v61 = vmul.f32 %v13483_v4, %v14395_v31  ;;  %v5384_v17 = vmul.f32 %v16348_v20, %v14336_v44 }
 0x6ac   : > { %v4825_v59 = vor.u32 1.1754944e-38, %v4824_v11  ;;  %vm4823_vm8 = vcmp.eq.f32.partialorder %v4822_v48, 8.507059e+37 }
 0x6ad   : > { %v9728_v55 = vpop.eup %9727 }
 0x6ae   : > { %v5970_v28 = vmul.f32 %v9728_v55, %v5937_v58  ;;  %v9730_v62 = vpop.eup %9729  ;;  %vm5975_vm13 = vweird.f32 %v9728_v55  ;;  %v14397_v58 = vld [vmem:[#allocation2 + $0x172] sm:$0xff] }
 0x6af   : > { %v5985_v8 = vmul.f32 %v9730_v62, %v5938_v41  ;;  %v9732_v16 = vpop.eup %9731  ;;  %vm5990_vm0 = vweird.f32 %v9730_v62  ;;  %vm5976_vm1 = vmor %vm5974_vm15, %vm5975_vm13 }
 0x6b0   : > { %v5971_v45 = vsub.f32 1.0, %v5970_v28  ;;  %v4814_v56 = vmul.f32 %v9732_v16, %v4347_v26  ;;  %vm5991_vm4 = vmor %vm5989_vm3, %vm5990_vm0  ;;  %vm4819_vm5 = vweird.f32 %v9732_v16  ;;  %v5287_v26 = vmul.f32 %v16347_v63, %v14399_v49 }
 0x6b1   : > { %v5986_v52 = vsub.f32 1.0, %v5985_v8  ;;  %vm4820_vm7 = vmor %vm4818_vm10, %vm4819_vm5 }
 0x6b2   : > { %v5972_v25 = vmul.f32 %v9728_v55, %v5971_v45  ;;  %v4815_v18 = vsub.f32 1.0, %v4814_v56  ;;  %v5642_v56 = vld [vmem:[#allocation2 + $0x199] sm:$0xff] }
 0x6b3   : > { %v5987_v12 = vmul.f32 %v9730_v62, %v5986_v52 }
 0x6b4   : > { %v5973_v39 = vadd.f32 %v9728_v55, %v5972_v25  ;;  %v4816_v5 = vmul.f32 %v9732_v16, %v4815_v18  ;;  %v5643_v18 = vld [vmem:[#allocation2 + $0x1a1] sm:$0xff] }
 0x6b5   : > { %v5988_v32 = vadd.f32 %v9730_v62, %v5987_v12  ;;  %v9099_v12 = vld [vmem:[%s16361_s26 + $0x14] sm:$0xf0] }
 0x6b6   : > { %v5977_v15 = vsel %vm5976_vm1, %v9728_v55, %v5973_v39  ;;  %v4817_v40 = vadd.f32 %v9732_v16, %v4816_v5  ;;  %v5191_v55 = vmul.f32 %v13483_v4, %v14397_v58  ;;  %v8716_v39 = vld [vmem:[%s16361_s26 + $0x10] sm:$0xf]  ;;  %v5740_v5 = vld [vmem:[#allocation2 + $0x1a2] sm:$0xff] }
 0x6b7   : > { %v5982_v46 = vsel %vm5979_vm2, %v5981_v34, %v5977_v15  ;;  %v5992_v1 = vsel %vm5991_vm4, %v9730_v62, %v5988_v32  ;;  %v5578_v34 = vmul.f32 %v14256_v30, %v13497_v13  ;;  %v8717_v48 = vor.u32 %v9099_v12, %v8716_v39 }
 0x6b8   : > { %v5997_v21 = vsel %vm5994_vm6, %v5996_v2, %v5992_v1  ;;  %v6449_v29 = vmul.f32 %v5982_v46, %v14354_v33  ;;  %v4821_v19 = vsel %vm4820_vm7, %v9732_v16, %v4817_v40  ;;  %v14383_v33 = vld [vmem:[#allocation2 + $0x170] sm:$0xff]  ;;  %v5739_v2 = vld [vmem:[#allocation2 + $0x19a] sm:$0xff]  ;;  %v5675_v46 = vmul.f32 %v13499_v57, %v5642_v56 }
 0x6b9   : > { %v6450_v42 = vmul.f32 %v5997_v21, %v14359_v35  ;;  %v4826_v7 = vsel %vm4823_vm8, %v4825_v59, %v4821_v19  ;;  %v14385_v35 = vld [vmem:[#allocation2 + $0x169] sm:$0xff]  ;;  %v4997_v0 = vmul.f32 %v13475_v43, %v14383_v33  ;;  %v5676_v21 = vmul.f32 %v13499_v57, %v5643_v18 }
 0x6ba   : > { %v14378_v23 = vmul.f32 %v4826_v7, %v14367_v27  ;;  %v5093_v27 = vmul.f32 %v13481_v9, %v14385_v35  ;;  %v5773_v30 = vmul.f32 %v14341_v53, %v5740_v5  ;;  %v5286_v39 = vmul.f32 %v16347_v63, %v14383_v33 }
 0x6bb   : > { %v6489_v50 = vpack.c.bf16 %v6450_v42, %v6449_v29  ;;  %v5126_v54 = vadd.f32 %v5094_v60, %v4997_v0  ;;  %v5772_v29 = vmul.f32 %v14341_v53, %v5739_v2  ;;  %v14439_v0 = vld [vmem:[#allocation2 + $0x150] sm:$0xff]  ;;  %v5382_v5 = vmul.f32 %v16348_v20, %v14385_v35 }
 0x6bc   : > { %4932 = vst [vmem:[#allocation2 + $0x189] sm:$0xff] %v14378_v23  ;;  %v5125_v41 = vadd.f32 %v5093_v27, %v4996_v10  ;;  %v5385_v36 = vmul.f32 %v16348_v20, %v14378_v23  ;;  %v14441_v27 = vld [vmem:[#allocation2 + $0x158] sm:$0xff] }
 0x6bd   : > { %6552 = vmatpush.bf16.msra.mxu2 %v6489_v50  ;;  %v5223_v45 = vadd.f32 %v5191_v55, %v5126_v54  ;;  %v14443_v60 = vld [vmem:[#allocation2 + $0x151] sm:$0xff]  ;;  %v14449_v54 = vld [vmem:[#allocation2 + $0x159] sm:$0xff] }
 0x6be   : > { %v5222_v24 = vadd.f32 %v5190_v61, %v5125_v41  ;;  %v4994_v61 = vmul.f32 %v13475_v43, %v14439_v0  ;;  %v4995_v41 = vmul.f32 %v13475_v43, %v14441_v27  ;;  %v14453_v55 = vld [vmem:[#allocation2 + $0x152] sm:$0xff] }
 0x6c0   : > { %6553 = vmatmul.bf16.vlgmr.msra.gmra.mxu2 %v8709_v3  ;;  %v5319_v47 = vadd.f32 %v5287_v26, %v5222_v24  ;;  %v5091_v26 = vmul.f32 %v13481_v9, %v14443_v60  ;;  %v14455_v24 = vld [vmem:[#allocation2 + $0x15a] sm:$0xff] }
 0x6c1   : > { %v5189_v56 = vmul.f32 %v13483_v4, %v14455_v24 }
 0x6c2   : > { %v5416_v14 = vadd.f32 %v5384_v17, %v5319_v47  ;;  %v8724_v47 = vld [vmem:[%s16361_s26 + $0x20] sm:$0xf]  ;;  %v9101_v17 = vld [vmem:[%s16361_s26 + $0x24] sm:$0xf0] }
 0x6c3   : > { %v14407_v28 = vld [vmem:[#allocation2 + $0x188] sm:$0xff] }
 0x6c4   : > { %v14409_v62 = vld [vmem:[#allocation2 + $0x182] sm:$0xff]  ;;  %v5288_v8 = vmul.f32 %v16347_v63, %v14407_v28  ;;  %v14415_v16 = vld [vmem:[#allocation2 + $0x18a] sm:$0xff] }
 0x6c5   : > { %v5481_v25 = vmul.f32 %v13495_v6, %v14409_v62  ;;  %v5482_v32 = vmul.f32 %v13495_v6, %v14415_v16 }
 0x6c6   : > { %v5320_v52 = vadd.f32 %v5288_v8, %v5223_v45  ;;  %v5092_v45 = vmul.f32 %v13481_v9, %v14449_v54  ;;  %v5188_v8 = vmul.f32 %v13483_v4, %v14453_v55 }
 0x6c7   : > { %v5513_v11 = vadd.f32 %v5481_v25, %v5416_v14  ;;  %v5123_v25 = vadd.f32 %v5091_v26, %v4994_v61  ;;  %v8725_v14 = vor.u32 %v9101_v17, %v8724_v47 }
 0x6c8   : > { %v5417_v15 = vadd.f32 %v5385_v36, %v5320_v52  ;;  %v5285_v52 = vmul.f32 %v16347_v63, %v14381_v51  ;;  %v5124_v36 = vadd.f32 %v5092_v45, %v4995_v41 }
 0x6c9   : > { %v5610_v40 = vadd.f32 %v5578_v34, %v5513_v11  ;;  %v5220_v12 = vadd.f32 %v5188_v8, %v5123_v25 }
 0x6ca   : > { %v5514_v1 = vadd.f32 %v5482_v32, %v5417_v15  ;;  %v14469_v32 = vld [vmem:[#allocation2 + $0x171] sm:$0xff] }
 0x6cb   : > { %v5707_v59 = vadd.f32 %v5675_v46, %v5610_v40  ;;  %v5317_v15 = vadd.f32 %v5285_v52, %v5220_v12 }
 0x6cc   : > { %v5611_v42 = vadd.f32 %v5578_v34, %v5514_v1  ;;  %v5221_v34 = vadd.f32 %v5189_v56, %v5124_v36 }
 0x6cd   : > { %v5804_v22 = vadd.f32 %v5772_v29, %v5707_v59  ;;  %v5414_v40 = vadd.f32 %v5382_v5, %v5317_v15  ;;  %v5576_v29 = vmul.f32 %v13497_v13, %v14399_v49  ;;  %v5674_v49 = vmul.f32 %v13499_v57, %v14378_v23 }
 0x6ce   : > { %v5708_v37 = vadd.f32 %v5676_v21, %v5611_v42  ;;  %v5318_v46 = vadd.f32 %v5286_v39, %v5221_v34  ;;  %v5383_v21 = vmul.f32 %v16348_v20, %v14469_v32 }
 0x6cf   : > { %v14432_v50 = vadd.f32 %v14351_v38, %v5804_v22 }
 0x6d0   : > { %6558 = vmatmul.bf16.gmra.mxu2 %v8717_v48  ;;  %v5805_v19 = vadd.f32 %v5773_v30, %v5708_v37  ;;  %v5479_v48 = vmul.f32 %v13495_v6, %v14395_v31  ;;  %v5415_v42 = vadd.f32 %v5383_v21, %v5318_v46  ;;  %v5480_v30 = vmul.f32 %v13495_v6, %v14397_v58 }
 0x6d1   : > { %v8704_v3 = vmul.f32 -1.442695, %v14432_v50  ;;  %v5577_v37 = vmul.f32 %v13497_v13, %v14407_v28  ;;  %v5771_v28 = vmul.f32 %v14341_v53, %v14415_v16 }
 0x6d2   : > { %v14435_v7 = vadd.f32 %v14351_v38, %v5805_v19  ;;  %v5511_v59 = vadd.f32 %v5479_v48, %v5414_v40  ;;  %v5512_v22 = vadd.f32 %v5480_v30, %v5415_v42  ;;  %v14517_v42 = vld [vmem:[#allocation2 + $0x140] sm:$0xff]  ;;  %v5477_v48 = vmul.f32 %v13495_v6, %v14453_v55 }
 0x6d3   : > { %9733 = vpow2.f32 %v8704_v3  ;;  %v5673_v3 = vmul.f32 %v13499_v57, %v14336_v44  ;;  %v14519_v30 = vld [vmem:[#allocation2 + $0x139] sm:$0xff] }
 0x6d4   : > { %v8705_v10 = vmul.f32 -1.442695, %v14435_v7  ;;  %v5608_v19 = vadd.f32 %v5576_v29, %v5511_v59  ;;  %v5609_v41 = vadd.f32 %v5577_v37, %v5512_v22  ;;  %v14515_v29 = vld [vmem:[#allocation2 + $0x138] sm:$0xff]  ;;  %v5283_v59 = vmul.f32 %v16347_v63, %v14439_v0 }
 0x6d5   : > { %v4992_v22 = vmul.f32 %v13475_v43, %v14515_v29 }
 0x6d6   : > { %9735 = vpow2.f32 %v8705_v10  ;;  %v5770_v10 = vmul.f32 %v14341_v53, %v14409_v62  ;;  %v5705_v26 = vadd.f32 %v5673_v3, %v5608_v19  ;;  %v5706_v52 = vadd.f32 %v5674_v49, %v5609_v41  ;;  %v14529_v3 = vld [vmem:[#allocation2 + $0x141] sm:$0xff] }
 0x6d7   : > { %v4993_v19 = vmul.f32 %v13475_v43, %v14517_v42  ;;  %16370 = vst [vmem:[#allocation74_spill] sm:$0xff] %v14529_v3  ;;  %v14533_v41 = vld [vmem:[#allocation2 + $0x13a] sm:$0xff]  ;;  %v14535_v49 = vld [vmem:[#allocation2 + $0x142] sm:$0xff] }
 0x6d8   : > { %v5802_v36 = vadd.f32 %v5770_v10, %v5705_v26  ;;  %v5803_v12 = vadd.f32 %v5771_v28, %v5706_v52  ;;  %v5089_v10 = vmul.f32 %v13481_v9, %v14519_v30  ;;  %16371 = vst [vmem:[#allocation73_spill] sm:$0xff] %v14535_v49 }
 0x6d9   : > { %v9734_v18 = vpop.eup %9733 }
 0x6da   : > { %v5967_v11 = vadd.f32 1.0, %v9734_v18  ;;  %v14492_v23 = vadd.f32 %v14351_v38, %v5802_v36  ;;  %v14503_v15 = vadd.f32 %v14351_v38, %v5803_v12 }
 0x6dc   : > { %v9736_v2 = vpop.eup %9735  ;;  %9737 = vrcp.f32 %v5967_v11  ;;  %v6428_v47 = vand.u32 2147483647, %v5967_v11  ;;  %v6430_v17 = vand.u32 2147483648, %v5967_v11  ;;  %vm6424_vm14 = vweird.f32 %v5967_v11 }
 0x6dd   : > { %v5968_v1 = vadd.f32 1.0, %v9736_v2  ;;  %v8702_v2 = vmul.f32 -1.442695, %v14492_v23  ;;  %v8703_v40 = vmul.f32 -1.442695, %v14503_v15 }
 0x6de   : > { %vm14498_vm15 = vcmp.eq.f32.partialorder %v6428_v47, 8.507059e+37  ;;  %v6431_v5 = vor.u32 1.1754944e-38, %v6430_v17  ;;  %v5121_v17 = vadd.f32 %v5089_v10, %v4992_v22  ;;  %v5575_v10 = vmul.f32 %v13497_v13, %v14383_v33 }
 0x6df   : > { %9739 = vrcp.f32 %v5968_v1  ;;  %v6443_v56 = vand.u32 2147483647, %v5968_v1  ;;  %v6445_v62 = vand.u32 2147483648, %v5968_v1  ;;  %vm6439_vm12 = vweird.f32 %v5968_v1 }
 0x6e0   : > { %6563 = vmatmul.bf16.gmra.mxu2 %v8725_v14  ;;  %9741 = vpow2.f32 %v8702_v2  ;;  %v5672_v33 = vmul.f32 %v13499_v57, %v14469_v32 }
 0x6e1   : > { %vm14510_vm1 = vcmp.eq.f32.partialorder %v6443_v56, 8.507059e+37  ;;  %9743 = vpow2.f32 %v8703_v40  ;;  %v14553_v56 = vld [vmem:[#allocation2 + $0xd8] sm:$0xff]  ;;  %v4949_v40 = vld [vmem:[#allocation2 + $0xc0] sm:$0xff] }
 0x6e2   : > { %v9738_v61 = vpop.eup %9737  ;;  %16372 = vst [vmem:[#allocation55_spill] sm:$0xff] %v14553_v56 }
 0x6e3   : > { %v6420_v8 = vmul.f32 %v9738_v61, %v5967_v11  ;;  %vm6425_vm9 = vweird.f32 %v9738_v61 }
 0x6e4   : > { %vm14494_vm13 = vmor %vm6424_vm14, %vm6425_vm9 }
 0x6e5   : > { %v9740_v45 = vpop.eup %9739  ;;  %v6421_v44 = vsub.f32 1.0, %v6420_v8  ;;  %v5090_v8 = vmul.f32 %v13481_v9, %v14529_v3 }
 0x6e6   : > { %v6435_v25 = vmul.f32 %v9740_v45, %v5968_v1  ;;  %vm6440_vm11 = vweird.f32 %v9740_v45  ;;  %v6446_v1 = vor.u32 1.1754944e-38, %v6445_v62 }
 0x6e7   : > { %v6422_v14 = vmul.f32 %v9738_v61, %v6421_v44  ;;  %vm14506_vm0 = vmor %vm6439_vm12, %vm6440_vm11  ;;  %v5122_v36 = vadd.f32 %v5090_v8, %v4993_v19  ;;  %v5187_v44 = vmul.f32 %v13483_v4, %v14535_v49  ;;  %v5574_v19 = vmul.f32 %v13497_v13, %v14381_v51  ;;  %v14579_v8 = vld [vmem:[#allocation2 + $0xf0] sm:$0xff] }
 0x6e8   : > { %v6436_v39 = vsub.f32 1.0, %v6435_v25  ;;  %v5186_v25 = vmul.f32 %v13483_v4, %v14533_v41  ;;  %v5671_v51 = vmul.f32 %v13499_v57, %v14385_v35 }
 0x6e9   : > { %v6423_v46 = vadd.f32 %v9738_v61, %v6422_v14  ;;  %v5219_v14 = vadd.f32 %v5187_v44, %v5122_v36  ;;  %v5768_v44 = vmul.f32 %v14341_v53, %v14395_v31 }
 0x6ea   : > { %v6437_v18 = vmul.f32 %v9740_v45, %v6436_v39  ;;  %v5218_v62 = vadd.f32 %v5186_v25, %v5121_v17  ;;  %v9742_v39 = vpop.eup %9741 }
 0x6eb   : > { %v6427_v37 = vsel %vm14494_vm13, %v9738_v61, %v6423_v46  ;;  %v14557_v34 = vadd.f32 1.0, %v9742_v39  ;;  %v5380_v46 = vmul.f32 %v16348_v20, %v14443_v60  ;;  %v14600_v39 = vld [vmem:[#allocation2 + $0xe0] sm:$0xff] }
 0x6ec   : > { %v6438_v21 = vadd.f32 %v9740_v45, %v6437_v18  ;;  %v6432_v26 = vsel %vm14498_vm15, %v6431_v5, %v6427_v37  ;;  %v5315_v16 = vadd.f32 %v5283_v59, %v5218_v62  ;;  %v9744_v18 = vpop.eup %9743  ;;  %v5381_v5 = vmul.f32 %v16348_v20, %v14449_v54  ;;  %v5046_v59 = vld [vmem:[#allocation2 + $0xc1] sm:$0xff]  ;;  %v14598_v62 = vld [vmem:[#allocation2 + $0xf1] sm:$0xff]  ;;  %16377 = vst [vmem:[#allocation72_spill] sm:$0xff] %v14600_v39 }
 0x6ed   : > { %v6479_v28 = vmul.f32 %v6432_v26, %v14432_v50  ;;  %v14555_v50 = vld [vmem:[#allocation2 + $0xd9] sm:$0xff]  ;;  %v14567_v11 = vadd.f32 1.0, %v9744_v18  ;;  %9745 = vrcp.f32 %v14557_v34  ;;  %v6398_v17 = vand.u32 2147483647, %v14557_v34  ;;  %16376 = vst [vmem:[#allocation68_spill] sm:$0xff] %v14598_v62 }
 0x6ee   : > { %v6442_v61 = vsel %vm14506_vm0, %v9740_v45, %v6438_v21  ;;  %v5284_v45 = vmul.f32 %v16347_v63, %v14441_v27  ;;  %16373 = vst [vmem:[#allocation48_spill] sm:$0xff] %v14555_v50  ;;  %v5081_v21 = vmul.f32 %v13481_v9, %v14555_v50  ;;  %v5412_v37 = vadd.f32 %v5380_v46, %v5315_v16 }
 0x6ef   : > { %v6447_v47 = vsel %vm14510_vm1, %v6446_v1, %v6442_v61  ;;  %v5478_v1 = vmul.f32 %v13495_v6, %v14455_v24  ;;  %9747 = vrcp.f32 %v14567_v11  ;;  %vm6394_vm2 = vweird.f32 %v14557_v34 }
 0x6f0   : > { %v6480_v52 = vmul.f32 %v6447_v47, %v14435_v7  ;;  %v4984_v7 = vmul.f32 %v13475_v43, %v14553_v56  ;;  %v5316_v2 = vadd.f32 %v5284_v45, %v5219_v14  ;;  %v5509_v26 = vadd.f32 %v5477_v48, %v5412_v37  ;;  %v14623_v37 = vld [vmem:[#allocation2 + $0xda] sm:$0xff] }
 0x6f1   : > { %v14582_v47 = vmul.f32 %v13475_v43, %v4949_v40  ;;  %v5769_v45 = vmul.f32 %v14341_v53, %v14397_v58  ;;  %v6400_v32 = vand.u32 2147483648, %v14557_v34  ;;  %v6413_v14 = vand.u32 2147483647, %v14567_v11  ;;  %16381 = vst [vmem:[#allocation61_spill] sm:$0xff] %v14623_v37 }
 0x6f2   : > { %v6504_v12 = vpack.c.bf16 %v6480_v52, %v6479_v28  ;;  %v5413_v22 = vadd.f32 %v5381_v5, %v5316_v2  ;;  %v14585_v28 = vmul.f32 %v13481_v9, %v5046_v59  ;;  %v14592_v25 = vadd.f32 %v5081_v21, %v4984_v7 }
 0x6f3   : > { %16374 = vst [vmem:[#allocation52_spill] sm:$0xff] %v14582_v47  ;;  %v5606_v52 = vadd.f32 %v5574_v19, %v5509_v26  ;;  %v9746_v35 = vpop.eup %9745  ;;  %v4986_v16 = vmul.f32 %v13475_v43, %v14579_v8  ;;  %v6415_v58 = vand.u32 2147483648, %v14567_v11  ;;  %vm14611_vm3 = vcmp.eq.f32.partialorder %v6398_v17, 8.507059e+37 }
 0x6f4   : > { %6574 = vmatpush.bf16.msrb.mxu2 %v6504_v12  ;;  %v5510_v61 = vadd.f32 %v5478_v1, %v5413_v22  ;;  %16375 = vst [vmem:[#allocation71_spill] sm:$0xff] %v14585_v28  ;;  %v14602_v12 = vld [vmem:[#allocation2 + $0xe1] sm:$0xff]  ;;  %v6390_v31 = vmul.f32 %v9746_v35, %v14557_v34  ;;  %v5083_v5 = vmul.f32 %v13481_v9, %v14598_v62  ;;  %vm6409_vm4 = vweird.f32 %v14567_v11 }
 0x6f5   : > { %16378 = vst [vmem:[#allocation42_spill] sm:$0xff] %v14602_v12  ;;  %v5703_v7 = vadd.f32 %v5671_v51, %v5606_v52  ;;  %v9748_v2 = vpop.eup %9747  ;;  %v4985_v48 = vmul.f32 %v13475_v43, %v14600_v39  ;;  %v5082_v1 = vmul.f32 %v13481_v9, %v14602_v12  ;;  %vm6395_vm5 = vweird.f32 %v9746_v35  ;;  %v14634_v52 = vld [vmem:[#allocation2 + $0xf9] sm:$0xff]  ;;  %v14676_v12 = vld [vmem:[#allocation2 + $0x122] sm:$0xff] }
 0x6f6   : > { %v5607_v36 = vadd.f32 %v5575_v10, %v5510_v61  ;;  %v6391_v21 = vsub.f32 1.0, %v6390_v31  ;;  %v6405_v40 = vmul.f32 %v9748_v2, %v14567_v11  ;;  %v6401_v22 = vor.u32 1.1754944e-38, %v6400_v32  ;;  %16385 = vst [vmem:[#allocation63_spill] sm:$0xff] %v14634_v52  ;;  %vm14650_vm10 = vmor %vm6394_vm2, %vm6395_vm5 }
 0x6f7   : > { %v5800_v59 = vadd.f32 %v5768_v44, %v5703_v7  ;;  %vm14625_vm6 = vcmp.eq.f32.partialorder %v6413_v14, 8.507059e+37  ;;  %v6416_v17 = vor.u32 1.1754944e-38, %v6415_v58  ;;  %v5115_v32 = vadd.f32 %v5083_v5, %v4986_v16  ;;  %v14658_v5 = vld [vmem:[#allocation2 + $0x120] sm:$0xff]  ;;  %v14687_v58 = vld [vmem:[#allocation2 + $0x12a] sm:$0xff] }
 0x6f8   : > { %v5704_v18 = vadd.f32 %v5672_v33, %v5607_v36  ;;  %v6392_v26 = vmul.f32 %v9746_v35, %v6391_v21  ;;  %v6406_v61 = vsub.f32 1.0, %v6405_v40  ;;  %v14632_v33 = vld [vmem:[#allocation2 + $0xf8] sm:$0xff]  ;;  %v14641_v14 = vadd.f32 %v5082_v1, %v4985_v48  ;;  %v14660_v48 = vld [vmem:[#allocation2 + $0x128] sm:$0xff] }
 0x6f9   : > { %v14630_v51 = vadd.f32 %v14351_v38, %v5800_v59  ;;  %16384 = vst [vmem:[#allocation59_spill] sm:$0xff] %v14632_v33  ;;  %v14636_v36 = vld [vmem:[#allocation2 + $0xf2] sm:$0xff]  ;;  %vm6410_vm7 = vweird.f32 %v9748_v2  ;;  %v14655_v21 = vld [vmem:[#allocation2 + $0xfa] sm:$0xff]  ;;  %v4987_v34 = vmul.f32 %v13475_v43, %v14632_v33  ;;  %v5084_v40 = vmul.f32 %v13481_v9, %v14634_v52 }
 0x6fa   : > { %v5801_v10 = vadd.f32 %v5769_v45, %v5704_v18  ;;  %16386 = vst [vmem:[#allocation58_spill] sm:$0xff] %v14636_v36  ;;  %v14645_v45 = vmul.f32 %v13483_v4, %v14623_v37  ;;  %v6393_v31 = vadd.f32 %v9746_v35, %v6392_v26  ;;  %v6407_v7 = vmul.f32 %v9748_v2, %v6406_v61  ;;  %v14662_v1 = vld [vmem:[#allocation2 + $0x121] sm:$0xff]  ;;  %v14674_v37 = vld [vmem:[#allocation2 + $0x129] sm:$0xff]  ;;  %vm6411_vm8 = vmor %vm6409_vm4, %vm6410_vm7 }
 0x6fb   : > { %v8700_v18 = vmul.f32 -1.442695, %v14630_v51  ;;  %16389 = vst [vmem:[#allocation51_spill] sm:$0xff] %v14655_v21  ;;  %v5180_v59 = vmul.f32 %v13483_v4, %v14636_v36  ;;  %v4990_v61 = vmul.f32 %v13475_v43, %v14658_v5  ;;  %v5184_v46 = vmul.f32 %v13483_v4, %v14676_v12  ;;  %v14755_v52 = vld [vmem:[#allocation2 + $0x112] sm:$0xff] }
 0x6fc   : > { %v14639_v44 = vadd.f32 %v14351_v38, %v5801_v10  ;;  %v6397_v10 = vsel %vm14650_vm10, %v9746_v35, %v6393_v31  ;;  %v6408_v26 = vadd.f32 %v9748_v2, %v6407_v7  ;;  %v4991_v35 = vmul.f32 %v13475_v43, %v14660_v48 }
 0x6fd   : > { %9749 = vpow2.f32 %v8700_v18  ;;  %v6402_v50 = vsel %vm14611_vm3, %v6401_v22, %v6397_v10  ;;  %v5087_v31 = vmul.f32 %v13481_v9, %v14662_v1  ;;  %v5088_v18 = vmul.f32 %v13481_v9, %v14674_v37 }
 0x6fe   : > { %v8701_v16 = vmul.f32 -1.442695, %v14639_v44  ;;  %v6412_v7 = vsel %vm6411_vm8, %v9748_v2, %v6408_v26  ;;  %v5181_v11 = vmul.f32 %v13483_v4, %v14655_v21  ;;  %v5281_v10 = vmul.f32 %v16347_v63, %v14515_v29 }
 0x6ff   : > { %v6417_v22 = vsel %vm14625_vm6, %v6416_v17, %v6412_v7  ;;  %v5282_v39 = vmul.f32 %v16347_v63, %v14517_v42  ;;  %v6477_v2 = vmul.f32 %v6402_v50, %v14492_v23  ;;  %v5120_v56 = vadd.f32 %v5088_v18, %v4991_v35 }
 0x700   : > { %9751 = vpow2.f32 %v8701_v16  ;;  %v5119_v16 = vadd.f32 %v5087_v31, %v4990_v61  ;;  %v6478_v26 = vmul.f32 %v6417_v22, %v14503_v15  ;;  %v5185_v28 = vmul.f32 %v13483_v4, %v14687_v58 }
 0x701   : > { %v5378_v19 = vmul.f32 %v16348_v20, %v14519_v30  ;;  %v5116_v17 = vadd.f32 %v5084_v40, %v4987_v34  ;;  %v14707_v61 = vadd.f32 %v5180_v59, %v5115_v32  ;;  %v5379_v36 = vmul.f32 %v16348_v20, %v14529_v3  ;;  %v14719_v34 = vld [vmem:[#allocation2 + $0x108] sm:$0xff] }
 0x702   : > { %v5216_v47 = vadd.f32 %v5184_v46, %v5119_v16  ;;  %v6503_v7 = vpack.c.bf16 %v6478_v26, %v6477_v2  ;;  %v5217_v21 = vadd.f32 %v5185_v28, %v5120_v56  ;;  %v5475_v23 = vmul.f32 %v13495_v6, %v14533_v41  ;;  %16390 = vst [vmem:[#allocation56_spill] sm:$0xff] %v14719_v34  ;;  %v14721_v40 = vld [vmem:[#allocation2 + $0x109] sm:$0xff] }
 0x703   : > { %v9750_v31 = vpop.eup %9749  ;;  %v5476_v18 = vmul.f32 %v13495_v6, %v14535_v49  ;;  %v5572_v32 = vmul.f32 %v13497_v13, %v14439_v0  ;;  %16391 = vst [vmem:[#allocation57_spill] sm:$0xff] %v14721_v40  ;;  %v5573_v59 = vmul.f32 %v13497_v13, %v14441_v27  ;;  %v5670_v0 = vmul.f32 %v13499_v57, %v14449_v54  ;;  %v14735_v16 = vld [vmem:[#allocation2 + $0x110] sm:$0xff] }
 0x704   : > { %v14713_v50 = vadd.f32 1.0, %v9750_v31  ;;  %v5313_v35 = vadd.f32 %v5281_v10, %v5216_v47  ;;  %6575 = vmatpush.bf16.msrb.mxu2 %v6503_v7  ;;  %v5314_v28 = vadd.f32 %v5282_v39, %v5217_v21  ;;  %v5669_v47 = vmul.f32 %v13499_v57, %v14443_v60  ;;  %16392 = vst [vmem:[#allocation35_spill] sm:$0xff] %v14735_v16  ;;  %v14737_v10 = vld [vmem:[#allocation2 + $0x111] sm:$0xff] }
 0x705   : > { %v5766_v22 = vmul.f32 %v14341_v53, %v14453_v55  ;;  %v5767_v27 = vmul.f32 %v14341_v53, %v14455_v24  ;;  %v4988_v60 = vmul.f32 %v13475_v43, %v14719_v34  ;;  %v5085_v39 = vmul.f32 %v13481_v9, %v14721_v40  ;;  %v14746_v21 = vld [vmem:[#allocation2 + $0x10a] sm:$0xff] }
 0x706   : > { %v9752_v15 = vpop.eup %9751  ;;  %9753 = vrcp.f32 %v14713_v50  ;;  %v6370_v46 = vand.u32 2147483648, %v14713_v50  ;;  %v5410_v55 = vadd.f32 %v5378_v19, %v5313_v35  ;;  %v5411_v2 = vadd.f32 %v5379_v36, %v5314_v28 }
 0x707   : > { %v14723_v56 = vadd.f32 1.0, %v9752_v15  ;;  %v5213_v26 = vadd.f32 %v5181_v11, %v5116_v17  ;;  %v6368_v31 = vand.u32 2147483647, %v14713_v50  ;;  %v4989_v24 = vmul.f32 %v13475_v43, %v14735_v16 }
 0x708   : > { %v5086_v15 = vmul.f32 %v13481_v9, %v14737_v10  ;;  %v6371_v49 = vor.u32 1.1754944e-38, %v6370_v46  ;;  %v5507_v62 = vadd.f32 %v5475_v23, %v5410_v55  ;;  %v5508_v33 = vadd.f32 %v5476_v18, %v5411_v2 }
 0x709   : > { %9755 = vrcp.f32 %v14723_v56  ;;  %v6385_v54 = vand.u32 2147483648, %v14723_v56  ;;  %v6383_v7 = vand.u32 2147483647, %v14723_v56  ;;  %v5182_v19 = vmul.f32 %v13483_v4, %v14746_v21 }
 0x70a   : > { %vm6364_vm9 = vweird.f32 %v14713_v50  ;;  %v5117_v36 = vadd.f32 %v5085_v39, %v4988_v60  ;;  %v5118_v11 = vadd.f32 %v5086_v15, %v4989_v24  ;;  %v5277_v17 = vmul.f32 %v16347_v63, %v14719_v34 }
 0x70b   : > { %v5278_v35 = vmul.f32 %v16347_v63, %v14735_v16  ;;  %vm6379_vm11 = vweird.f32 %v14723_v56  ;;  %v6386_v9 = vor.u32 1.1754944e-38, %v6385_v54  ;;  %v5604_v46 = vadd.f32 %v5572_v32, %v5507_v62 }
 0x70c   : > { %v9754_v28 = vpop.eup %9753  ;;  %v5605_v23 = vadd.f32 %v5573_v59, %v5508_v33  ;;  %v5183_v18 = vmul.f32 %v13483_v4, %v14755_v52  ;;  %vm14768_vm12 = vcmp.eq.f32.partialorder %v6368_v31, 8.507059e+37  ;;  %v5214_v39 = vadd.f32 %v5182_v19, %v5117_v36 }
 0x70d   : > { %v6360_v2 = vmul.f32 %v9754_v28, %v14713_v50  ;;  %vm6365_vm14 = vweird.f32 %v9754_v28  ;;  %v5374_v24 = vmul.f32 %v16348_v20, %v14721_v40  ;;  %vm14775_vm13 = vcmp.eq.f32.partialorder %v6383_v7, 8.507059e+37 }
 0x70e   : > { %v5701_v33 = vadd.f32 %v5669_v47, %v5604_v46  ;;  %v5702_v32 = vadd.f32 %v5670_v0, %v5605_v23  ;;  %v5309_v59 = vadd.f32 %v5277_v17, %v14707_v61  ;;  %v5215_v16 = vadd.f32 %v5183_v18, %v5118_v11  ;;  %vm6366_vm0 = vmor %vm6364_vm9, %vm6365_vm14 }
 0x70f   : > { %v9756_v55 = vpop.eup %9755  ;;  %v6361_v54 = vsub.f32 1.0, %v6360_v2  ;;  %v5279_v31 = vmul.f32 %v16347_v63, %v14658_v5  ;;  %v5310_v34 = vadd.f32 %v5278_v35, %v5213_v26  ;;  %v5376_v7 = vmul.f32 %v16348_v20, %v14662_v1 }
 0x710   : > { %v6375_v15 = vmul.f32 %v9756_v55, %v14723_v56  ;;  %vm6380_vm15 = vweird.f32 %v9756_v55  ;;  %v5798_v36 = vadd.f32 %v5766_v22, %v5701_v33  ;;  %v5799_v40 = vadd.f32 %v5767_v27, %v5702_v32 }
 0x711   : > { %v6362_v43 = vmul.f32 %v9754_v28, %v6361_v54  ;;  %v5311_v3 = vadd.f32 %v5279_v31, %v5214_v39  ;;  %v5375_v47 = vmul.f32 %v16348_v20, %v14737_v10  ;;  %v5406_v11 = vadd.f32 %v5374_v24, %v5309_v59  ;;  %vm6381_vm1 = vmor %vm6379_vm11, %vm6380_vm15 }
 0x712   : > { %v6376_v19 = vsub.f32 1.0, %v6375_v15  ;;  %v14787_v0 = vadd.f32 %v14351_v38, %v5798_v36  ;;  %v14790_v26 = vadd.f32 %v14351_v38, %v5799_v40  ;;  %v5471_v35 = vmul.f32 %v13495_v6, %v14746_v21 }
 0x713   : > { %v6363_v22 = vadd.f32 %v9754_v28, %v6362_v43  ;;  %v5408_v27 = vadd.f32 %v5376_v7, %v5311_v3  ;;  %v5407_v17 = vadd.f32 %v5375_v47, %v5310_v34  ;;  %v5472_v38 = vmul.f32 %v13495_v6, %v14755_v52  ;;  %v8732_v43 = vld [vmem:[%s16361_s26 + $0x30] sm:$0xf]  ;;  %v9103_v3 = vld [vmem:[%s16361_s26 + $0x34] sm:$0xf0] }
 0x714   : > { %v6377_v61 = vmul.f32 %v9756_v55, %v6376_v19  ;;  %v8698_v23 = vmul.f32 -1.442695, %v14787_v0  ;;  %v8699_v18 = vmul.f32 -1.442695, %v14790_v26  ;;  %v5280_v34 = vmul.f32 %v16347_v63, %v14660_v48 }
 0x715   : > { %v6367_v40 = vsel %vm6366_vm0, %v9754_v28, %v6363_v22  ;;  %v5473_v50 = vmul.f32 %v13495_v6, %v14676_v12  ;;  %v5568_v2 = vmul.f32 %v13497_v13, %v14658_v5  ;;  %v8733_v28 = vor.u32 %v9103_v3, %v8732_v43 }
 0x716   : > { %v6378_v46 = vadd.f32 %v9756_v55, %v6377_v61  ;;  %v6372_v39 = vsel %vm14768_vm12, %v6371_v49, %v6367_v40  ;;  %9757 = vpow2.f32 %v8698_v23  ;;  %v5312_v15 = vadd.f32 %v5280_v34, %v5215_v16  ;;  %v16398_v40 = vld [vmem:[#allocation59_spill] sm:$0xff] }
 0x717   : > { %9759 = vpow2.f32 %v8699_v18  ;;  %v5377_v33 = vmul.f32 %v16348_v20, %v14674_v37  ;;  %v6475_v32 = vmul.f32 %v6372_v39, %v14630_v51  ;;  %6568 = vmatmul.bf16.gmra.mxu2 %v8733_v28  ;;  %v5505_v5 = vadd.f32 %v5473_v50, %v5408_v27  ;;  %v16400_v50 = vld [vmem:[#allocation69_spill] sm:$0xff] }
 0x718   : > { %v6382_v24 = vsel %vm6381_vm1, %v9756_v55, %v6378_v46  ;;  %v5570_v49 = vmul.f32 %v13497_v13, %v14515_v29  ;;  %v14822_v55 = vld [vmem:[#allocation2 + $0xe2] sm:$0xff]  ;;  %v5571_v16 = vmul.f32 %v13497_v13, %v14517_v42  ;;  %v5503_v62 = vadd.f32 %v5471_v35, %v5406_v11 }
 0x719   : > { %v6387_v56 = vsel %vm14775_vm13, %v6386_v9, %v6382_v24  ;;  %v5409_v60 = vadd.f32 %v5377_v33, %v5312_v15  ;;  %v5474_v9 = vmul.f32 %v13495_v6, %v14687_v58  ;;  %v5667_v51 = vmul.f32 %v13499_v57, %v14519_v30  ;;  %v4950_v35 = vld [vmem:[#allocation2 + $0xc8] sm:$0xff]  ;;  %v16401_v24 = vld [vmem:[#allocation73_spill] sm:$0xff] }
 0x71a   : > { %v6476_v59 = vmul.f32 %v6387_v56, %v14639_v44  ;;  %v5602_v31 = vadd.f32 %v5570_v49, %v5505_v5  ;;  %v5764_v44 = vmul.f32 %v14341_v53, %v14533_v41  ;;  %v5569_v29 = vmul.f32 %v13497_v13, %v14660_v48  ;;  %v14869_v56 = vld [vmem:[%s16330_s16] ss:$0 sm:$0xff] }
 0x71b   : > { %v5506_v19 = vadd.f32 %v5474_v9, %v5409_v60  ;;  %v5179_v36 = vmul.f32 %v13483_v4, %v14822_v55  ;;  %v5275_v7 = vmul.f32 %v16347_v63, %v14579_v8  ;;  %v5504_v61 = vadd.f32 %v5472_v38, %v5407_v17  ;;  %v14848_v17 = vld [vmem:[%s16078_s12 + $0x8] ss:$0 sm:$0xff] }
 0x71c   : > { %v6502_v54 = vpack.c.bf16 %v6476_v59, %v6475_v32  ;;  %v9758_v42 = vpop.eup %9757  ;;  %v5699_v47 = vadd.f32 %v5667_v51, %v5602_v31  ;;  %v5600_v11 = vadd.f32 %v5568_v2, %v5503_v62  ;;  %v5210_v30 = vadd.f32 %v14645_v45, %v14592_v25  ;;  %v16397_v45 = vld [vmem:[#allocation74_spill] sm:$0xff] }
 0x71d   : > { %v9760_v53 = vpop.eup %9759  ;;  %v14840_v41 = vadd.f32 1.0, %v9758_v42  ;;  %v5603_v22 = vadd.f32 %v5571_v16, %v5506_v19  ;;  %v5665_v48 = vmul.f32 %v13499_v57, %v14662_v1  ;;  %v5211_v27 = vadd.f32 %v5179_v36, %v14641_v14  ;;  %v16399_v14 = vld [vmem:[#allocation68_spill] sm:$0xff] }
 0x71e   : > { %6576 = vmatpush.bf16.msrb.mxu2 %v6502_v54  ;;  %v14845_v46 = vadd.f32 1.0, %v9760_v53  ;;  %v5796_v23 = vadd.f32 %v5764_v44, %v5699_v47  ;;  %v5601_v18 = vadd.f32 %v5569_v29, %v5504_v61  ;;  %v5762_v25 = vmul.f32 %v14848_v17, %v14676_v12  ;;  %v16404_v47 = vld [vmem:[#allocation63_spill] sm:$0xff] }
 0x71f   : > { %9761 = vrcp.f32 %v14840_v41  ;;  %v5668_v38 = vmul.f32 %v13499_v57, %v16397_v45  ;;  %v5276_v1 = vmul.f32 %v16347_v63, %v16398_v40  ;;  %v5372_v43 = vmul.f32 %v16348_v20, %v16399_v14 }
 0x720   : > { %9763 = vrcp.f32 %v14845_v46  ;;  %v5666_v3 = vmul.f32 %v13499_v57, %v14674_v37  ;;  %v5697_v34 = vadd.f32 %v5665_v48, %v5600_v11  ;;  %v14863_v2 = vmul.f32 %v16400_v50, %v4950_v35 }
 0x721   : > { %v6340_v12 = vand.u32 2147483648, %v14840_v41  ;;  %v5700_v39 = vadd.f32 %v5668_v38, %v5603_v22  ;;  %v5765_v28 = vmul.f32 %v14848_v17, %v16401_v24  ;;  %v14872_v15 = vadd.f32 %v14869_v56, %v5796_v23  ;;  %v16405_v22 = vld [vmem:[#allocation58_spill] sm:$0xff]  ;;  %v16407_v38 = vld [vmem:[#allocation56_spill] sm:$0xff] }
 0x722   : > { %v6338_v33 = vand.u32 2147483647, %v14840_v41  ;;  %v5698_v32 = vadd.f32 %v5666_v3, %v5601_v18  ;;  %v5763_v37 = vmul.f32 %v14848_v17, %v14687_v58  ;;  %v5794_v59 = vadd.f32 %v5762_v25, %v5697_v34  ;;  %v16406_v25 = vld [vmem:[#allocation51_spill] sm:$0xff] }
 0x723   : > { %v5797_v5 = vadd.f32 %v5765_v28, %v5700_v39  ;;  %v8696_v49 = vmul.f32 -1.442695, %v14872_v15  ;;  %v5307_v60 = vadd.f32 %v5275_v7, %v5210_v30  ;;  %v5308_v9 = vadd.f32 %v5276_v1, %v5211_v27 }
 0x724   : > { %vm6334_vm2 = vweird.f32 %v14840_v41  ;;  %v6353_v16 = vand.u32 2147483647, %v14845_v46  ;;  %v5795_v62 = vadd.f32 %v5763_v37, %v5698_v32  ;;  %v14881_v54 = vadd.f32 %v14869_v56, %v5794_v59 }
 0x725   : > { %v9762_v31 = vpop.eup %9761  ;;  %v6341_v51 = vor.u32 1.1754944e-38, %v6340_v12  ;;  %vm6349_vm3 = vweird.f32 %v14845_v46  ;;  %v6355_v58 = vand.u32 2147483648, %v14845_v46  ;;  %v14886_v44 = vadd.f32 %v14869_v56, %v5797_v5 }
 0x726   : > { %9765 = vpow2.f32 %v8696_v49  ;;  %v9764_v19 = vpop.eup %9763  ;;  %v6330_v29 = vmul.f32 %v9762_v31, %v14840_v41  ;;  %vm14889_vm4 = vcmp.eq.f32.partialorder %v6338_v33, 8.507059e+37  ;;  %v14894_v7 = vadd.f32 %v14869_v56, %v5795_v62  ;;  %v16411_v49 = vld [vmem:[#allocation57_spill] sm:$0xff] }
 0x727   : > { %v8694_v42 = vmul.f32 -1.442695, %v14881_v54  ;;  %v5373_v61 = vmul.f32 %v16348_v20, %v16404_v47  ;;  %v6345_v11 = vmul.f32 %v9764_v19, %v14845_v46  ;;  %v8697_v30 = vmul.f32 -1.442695, %v14886_v44 }
 0x728   : > { %v5404_v53 = vadd.f32 %v5372_v43, %v5307_v60  ;;  %v5469_v48 = vmul.f32 %v13495_v6, %v16405_v22  ;;  %v6331_v27 = vsub.f32 1.0, %v6330_v29  ;;  %v8695_v35 = vmul.f32 -1.442695, %v14894_v7  ;;  %v16408_v43 = vld [vmem:[#allocation35_spill] sm:$0xff] }
 0x729   : > { %9767 = vpow2.f32 %v8694_v42  ;;  %v5405_v23 = vadd.f32 %v5373_v61, %v5308_v9  ;;  %v6346_v18 = vsub.f32 1.0, %v6345_v11  ;;  %v5470_v45 = vmul.f32 %v13495_v6, %v16406_v25 }
 0x72a   : > { %9769 = vpow2.f32 %v8697_v30  ;;  %v5566_v1 = vmul.f32 %v13497_v13, %v16407_v38  ;;  %v6332_v3 = vmul.f32 %v9762_v31, %v6331_v27  ;;  %vm6335_vm5 = vweird.f32 %v9762_v31  ;;  %v16412_v38 = vld [vmem:[#allocation67_spill] sm:$0xff] }
 0x72b   : > { %9771 = vpow2.f32 %v8695_v35  ;;  %v5567_v34 = vmul.f32 %v13497_v13, %v16408_v43  ;;  %v6347_v12 = vmul.f32 %v9764_v19, %v6346_v18  ;;  %vm6350_vm6 = vweird.f32 %v9764_v19  ;;  %vm6336_vm7 = vmor %vm6334_vm2, %vm6335_vm5 }
 0x72c   : > { %v9766_v50 = vpop.eup %9765  ;;  %vm14910_vm10 = vcmp.eq.f32.partialorder %v6353_v16, 8.507059e+37  ;;  %v5501_v24 = vadd.f32 %v5469_v48, %v5404_v53  ;;  %v6333_v28 = vadd.f32 %v9762_v31, %v6332_v3  ;;  %v6356_v33 = vor.u32 1.1754944e-38, %v6355_v58  ;;  %vm6351_vm8 = vmor %vm6349_vm3, %vm6350_vm6  ;;  %v5047_v48 = vld [vmem:[#allocation2 + $0xc9] sm:$0xff] }
 0x72d   : > { %v14914_v32 = vadd.f32 1.0, %v9766_v50  ;;  %v5502_v37 = vadd.f32 %v5470_v45, %v5405_v23  ;;  %v6348_v59 = vadd.f32 %v9764_v19, %v6347_v12  ;;  %v5663_v60 = vmul.f32 %v13499_v57, %v16411_v49  ;;  %v16413_v3 = vld [vmem:[#allocation52_spill] sm:$0xff] }
 0x72e   : > { %v5598_v5 = vadd.f32 %v5566_v1, %v5501_v24  ;;  %v5664_v9 = vmul.f32 %v13499_v57, %v14737_v10  ;;  %v6337_v62 = vsel %vm6336_vm7, %v9762_v31, %v6333_v28  ;;  %v5760_v41 = vmul.f32 %v14848_v17, %v14746_v21 }
 0x72f   : > { %v9768_v16 = vpop.eup %9767  ;;  %9773 = vrcp.f32 %v14914_v32  ;;  %v5599_v58 = vadd.f32 %v5567_v34, %v5502_v37  ;;  %v6342_v42 = vsel %vm14889_vm4, %v6341_v51, %v6337_v62  ;;  %v6352_v61 = vsel %vm6351_vm8, %v9764_v19, %v6348_v59  ;;  %v5144_v37 = vld [vmem:[#allocation2 + $0xca] sm:$0xff] }
 0x730   : > { %v9770_v29 = vpop.eup %9769  ;;  %v14929_v11 = vadd.f32 1.0, %v9768_v16  ;;  %v5761_v10 = vmul.f32 %v14848_v17, %v14755_v52  ;;  %v6357_v46 = vsel %vm14910_vm10, %v6356_v33, %v6352_v61  ;;  %v6308_v53 = vand.u32 2147483647, %v14914_v32  ;;  %v5143_v52 = vld [vmem:[#allocation2 + $0xc2] sm:$0xff] }
 0x731   : > { %v9772_v31 = vpop.eup %9771  ;;  %v14935_v30 = vadd.f32 1.0, %v9770_v29  ;;  %v6310_v21 = vand.u32 2147483648, %v14914_v32  ;;  %v6473_v36 = vmul.f32 %v6342_v42, %v14787_v0  ;;  %v6474_v51 = vmul.f32 %v6357_v46, %v14790_v26  ;;  %v16414_v0 = vld [vmem:[#allocation71_spill] sm:$0xff] }
 0x732   : > { %v14941_v19 = vadd.f32 1.0, %v9772_v31  ;;  %9775 = vrcp.f32 %v14929_v11  ;;  %v5695_v35 = vadd.f32 %v5663_v60, %v5598_v5  ;;  %v5696_v23 = vadd.f32 %v5664_v9, %v5599_v58 }
 0x733   : > { %9777 = vrcp.f32 %v14935_v30  ;;  %v6325_v27 = vand.u32 2147483648, %v14935_v30  ;;  %v6501_v18 = vpack.c.bf16 %v6474_v51, %v6473_v36  ;;  %v6280_v45 = vand.u32 2147483648, %v14929_v11 }
 0x734   : > { %v5080_v1 = vmul.f32 %v16412_v38, %v5047_v48  ;;  %v5111_v43 = vadd.f32 %v16414_v0, %v16413_v3  ;;  %vm6304_vm9 = vweird.f32 %v14914_v32  ;;  %v6278_v34 = vand.u32 2147483647, %v14929_v11  ;;  %v16424_v0 = vld [vmem:[#allocation72_spill] sm:$0xff] }
 0x735   : > { %v9774_v26 = vpop.eup %9773  ;;  %9779 = vrcp.f32 %v14941_v19  ;;  %v5176_v50 = vmul.f32 %v13483_v4, %v5143_v52  ;;  %6577 = vmatpush.bf16.msrb.mxu2 %v6501_v18  ;;  %vm14955_vm11 = vcmp.eq.f32.partialorder %v6308_v53, 8.507059e+37  ;;  %v6311_v24 = vor.u32 1.1754944e-38, %v6310_v21 }
 0x736   : > { %v6300_v12 = vmul.f32 %v9774_v26, %v14914_v32  ;;  %v6323_v28 = vand.u32 2147483647, %v14935_v30  ;;  %v14960_v33 = vor.u32 1.1754944e-38, %v6325_v27  ;;  %vm6305_vm14 = vweird.f32 %v9774_v26 }
 0x737   : > { %vm6274_vm12 = vweird.f32 %v14929_v11  ;;  %v6295_v59 = vand.u32 2147483648, %v14941_v19  ;;  %v5792_v5 = vadd.f32 %v5760_v41, %v5695_v35  ;;  %v5793_v49 = vadd.f32 %v5761_v10, %v5696_v23  ;;  %vm6306_vm5 = vmor %vm6304_vm9, %vm6305_vm14 }
 0x738   : > { %v9776_v60 = vpop.eup %9775  ;;  %v6301_v9 = vsub.f32 1.0, %v6300_v12  ;;  %vm6319_vm13 = vweird.f32 %v14935_v30  ;;  %v6281_v16 = vor.u32 1.1754944e-38, %v6280_v45  ;;  %v6293_v62 = vand.u32 2147483647, %v14941_v19 }
 0x739   : > { %v5112_v58 = vadd.f32 %v5080_v1, %v14863_v2  ;;  %v9778_v29 = vpop.eup %9777  ;;  %v6270_v42 = vmul.f32 %v9776_v60, %v14929_v11  ;;  %vm6275_vm15 = vweird.f32 %v9776_v60  ;;  %vm14968_vm0 = vcmp.eq.f32.partialorder %v6278_v34, 8.507059e+37 }
 0x73a   : > { %v5177_v41 = vmul.f32 %v13483_v4, %v5144_v37  ;;  %v5208_v10 = vadd.f32 %v5176_v50, %v5111_v43  ;;  %v6302_v31 = vmul.f32 %v9774_v26, %v6301_v9  ;;  %v6315_v46 = vmul.f32 %v9778_v29, %v14935_v30  ;;  %v16421_v4 = vld [vmem:[#allocation55_spill] sm:$0xff]  ;;  %vm6276_vm6 = vmor %vm6274_vm12, %vm6275_vm15 }
 0x73b   : > { %vm14974_vm1 = vcmp.eq.f32.partialorder %v6323_v28, 8.507059e+37  ;;  %vm6289_vm2 = vweird.f32 %v14941_v19  ;;  %v6296_v2 = vor.u32 1.1754944e-38, %v6295_v59  ;;  %v14980_v21 = vadd.f32 %v14869_v56, %v5792_v5  ;;  %v9780_v48 = vpop.eup %9779 }
 0x73c   : > { %vm6320_vm3 = vweird.f32 %v9778_v29  ;;  %v6271_v36 = vsub.f32 1.0, %v6270_v42  ;;  %v14983_v51 = vadd.f32 %v14869_v56, %v5793_v49  ;;  %v5273_v52 = vmul.f32 %v16347_v63, %v16421_v4 }
 0x73d   : > { %v6303_v27 = vadd.f32 %v9774_v26, %v6302_v31  ;;  %v6316_v35 = vsub.f32 1.0, %v6315_v46  ;;  %v6285_v23 = vmul.f32 %v9780_v48, %v14941_v19  ;;  %vm14988_vm4 = vcmp.eq.f32.partialorder %v6293_v62, 8.507059e+37  ;;  %vm6321_vm7 = vmor %vm6319_vm13, %vm6320_vm3  ;;  %v16427_v62 = vld [vmem:[#allocation61_spill] sm:$0xff] }
 0x73e   : > { %v5209_v45 = vadd.f32 %v5177_v41, %v5112_v58  ;;  %v6272_v38 = vmul.f32 %v9776_v60, %v6271_v36  ;;  %v8692_v1 = vmul.f32 -1.442695, %v14980_v21  ;;  %v8693_v3 = vmul.f32 -1.442695, %v14983_v51 }
 0x73f   : > { %v5274_v43 = vmul.f32 %v16347_v63, %v16424_v0  ;;  %v6307_v34 = vsel %vm6306_vm5, %v9774_v26, %v6303_v27  ;;  %v6317_v50 = vmul.f32 %v9778_v29, %v6316_v35  ;;  %v6286_v12 = vsub.f32 1.0, %v6285_v23  ;;  %v16425_v26 = vld [vmem:[#allocation48_spill] sm:$0xff] }
 0x740   : > { %v5305_v28 = vadd.f32 %v5273_v52, %v5208_v10  ;;  %v6312_v37 = vsel %vm14955_vm11, %v6311_v24, %v6307_v34  ;;  %v6273_v59 = vadd.f32 %v9776_v60, %v6272_v38  ;;  %9781 = vpow2.f32 %v8692_v1  ;;  %v16426_v24 = vld [vmem:[#allocation42_spill] sm:$0xff] }
 0x741   : > { %v5306_v5 = vadd.f32 %v5274_v43, %v5209_v45  ;;  %v6318_v32 = vadd.f32 %v9778_v29, %v6317_v50  ;;  %v6287_v49 = vmul.f32 %v9780_v48, %v6286_v12  ;;  %vm6290_vm10 = vweird.f32 %v9780_v48 }
 0x742   : > { %9783 = vpow2.f32 %v8693_v3  ;;  %v6277_v63 = vsel %vm6276_vm6, %v9776_v60, %v6273_v59  ;;  %v5370_v39 = vmul.f32 %v16348_v20, %v16425_v26  ;;  %v5371_v9 = vmul.f32 %v16348_v20, %v16426_v24  ;;  %vm6291_vm8 = vmor %vm6289_vm2, %vm6290_vm10 }
 0x743   : > { %v5467_v58 = vmul.f32 %v13495_v6, %v16427_v62  ;;  %v6322_v42 = vsel %vm6321_vm7, %v9778_v29, %v6318_v32  ;;  %v6471_v11 = vmul.f32 %v6312_v37, %v14872_v15  ;;  %v6282_v41 = vsel %vm14968_vm0, %v6281_v16, %v6277_v63 }
 0x744   : > { %v6288_v10 = vadd.f32 %v9780_v48, %v6287_v49  ;;  %v6327_v30 = vsel %vm14974_vm1, %v14960_v33, %v6322_v42  ;;  %v5402_v60 = vadd.f32 %v5370_v39, %v5305_v28  ;;  %v5403_v31 = vadd.f32 %v5371_v9, %v5306_v5 }
 0x745   : > { %v5468_v20 = vmul.f32 %v13495_v6, %v14822_v55  ;;  %v6472_v29 = vmul.f32 %v6327_v30, %v14886_v44  ;;  %v5564_v15 = vmul.f32 %v13497_v13, %v14579_v8  ;;  %v5565_v16 = vmul.f32 %v13497_v13, %v16398_v40 }
 0x746   : > { %v6292_v46 = vsel %vm6291_vm8, %v9780_v48, %v6288_v10  ;;  %v9782_v61 = vpop.eup %9781  ;;  %v5499_v19 = vadd.f32 %v5467_v58, %v5402_v60  ;;  %v6469_v55 = vmul.f32 %v6282_v41, %v14881_v54  ;;  %v5661_v13 = vmul.f32 %v13499_v57, %v16399_v14 }
 0x747   : > { %v6297_v33 = vsel %vm14988_vm4, %v6296_v2, %v6292_v46  ;;  %v5500_v53 = vadd.f32 %v5468_v20, %v5403_v31  ;;  %v6500_v4 = vpack.c.bf16 %v6472_v29, %v6471_v11  ;;  %v5955_v6 = vadd.f32 1.0, %v9782_v61 }
 0x748   : > { %v9784_v36 = vpop.eup %9783  ;;  %v6470_v52 = vmul.f32 %v6297_v33, %v14894_v7  ;;  %v5596_v48 = vadd.f32 %v5564_v15, %v5499_v19  ;;  %v5662_v8 = vmul.f32 %v13499_v57, %v16404_v47  ;;  %v5758_v40 = vmul.f32 %v14848_v17, %v16405_v22 }
 0x749   : > { %v5956_v44 = vadd.f32 1.0, %v9784_v36  ;;  %v5597_v27 = vadd.f32 %v5565_v16, %v5500_v53  ;;  %6578 = vmatpush.bf16.msrb.mxu2 %v6500_v4  ;;  %9785 = vrcp.f32 %v5955_v6  ;;  %v5759_v54 = vmul.f32 %v14848_v17, %v16406_v25 }
 0x74a   : > { %v6499_v2 = vpack.c.bf16 %v6470_v52, %v6469_v55  ;;  %v5693_v7 = vadd.f32 %v5661_v13, %v5596_v48  ;;  %v6248_v43 = vand.u32 2147483647, %v5955_v6  ;;  %v6250_v17 = vand.u32 2147483648, %v5955_v6  ;;  %v9096_v48 = vld [vmem:[%s16361_s26 + $0x4] sm:$0xf] }
 0x74b   : > { %9787 = vrcp.f32 %v5956_v44  ;;  %v5694_v35 = vadd.f32 %v5662_v8, %v5597_v27  ;;  %v6265_v50 = vand.u32 2147483648, %v5956_v44  ;;  %v6263_v28 = vand.u32 2147483647, %v5956_v44  ;;  %v8710_v27 = vld [vmem:[%s16361_s26 + $0x8] sm:$0xf0] }
 0x74c   : > { %v5790_v23 = vadd.f32 %v5758_v40, %v5693_v7  ;;  %vm6244_vm14 = vweird.f32 %v5955_v6  ;;  %vm6259_vm13 = vweird.f32 %v5956_v44  ;;  %vm6249_vm15 = vcmp.eq.f32.partialorder %v6248_v43, 8.507059e+37  ;;  %v9098_v40 = vld [vmem:[%s16361_s26 + $0x14] sm:$0xf] }
 0x74d   : > { %6579 = vmatpush.bf16.msrb.mxu2 %v6499_v2  ;;  %v5791_v18 = vadd.f32 %v5759_v54, %v5694_v35  ;;  %v6266_v32 = vor.u32 1.1754944e-38, %v6265_v50  ;;  %vm6264_vm1 = vcmp.eq.f32.partialorder %v6263_v28, 8.507059e+37  ;;  %v8713_v8 = vor.u32 %v9096_v48, %v8710_v27  ;;  %v8718_v2 = vld [vmem:[%s16361_s26 + $0x18] sm:$0xf0]  ;;  %v9100_v35 = vld [vmem:[%s16361_s26 + $0x24] sm:$0xf] }
 0x74e   : > { %v15041_v38 = vadd.f32 %v14869_v56, %v5790_v23  ;;  %v8721_v7 = vor.u32 %v9098_v40, %v8718_v2  ;;  %v8726_v54 = vld [vmem:[%s16361_s26 + $0x28] sm:$0xf0] }
 0x74f   : > { %v9786_v45 = vpop.eup %9785  ;;  %v15044_v57 = vadd.f32 %v14869_v56, %v5791_v18  ;;  %v6251_v56 = vor.u32 1.1754944e-38, %v6250_v17  ;;  %v8729_v23 = vor.u32 %v9100_v35, %v8726_v54  ;;  %v9102_v18 = vld [vmem:[%s16361_s26 + $0x34] sm:$0xf]  ;;  %v9109_v28 = vld [vmem:[%s16428_s10 + $0x28] sm:$0xff] }
 0x750   : > { %v6240_v1 = vmul.f32 %v9786_v45, %v5955_v6  ;;  %v8690_v22 = vmul.f32 -1.442695, %v15041_v38  ;;  %vm6245_vm9 = vweird.f32 %v9786_v45  ;;  %v9118_v54 = vld [vmem:[%s16430_s3 + $0x30] sm:$0xff] }
 0x751   : > { %v9788_v14 = vpop.eup %9787  ;;  %v8691_v0 = vmul.f32 -1.442695, %v15044_v57  ;;  %vm6246_vm12 = vmor %vm6244_vm14, %vm6245_vm9 }
 0x752   : > { %v6255_v47 = vmul.f32 %v9788_v14, %v5956_v44  ;;  %v6241_v3 = vsub.f32 1.0, %v6240_v1  ;;  %9789 = vpow2.f32 %v8690_v22  ;;  %vm6260_vm11 = vweird.f32 %v9788_v14 }
 0x753   : > { %9791 = vpow2.f32 %v8691_v0  ;;  %vm6261_vm0 = vmor %vm6259_vm13, %vm6260_vm11 }
 0x754   : > { %v6256_v25 = vsub.f32 1.0, %v6255_v47  ;;  %v6242_v34 = vmul.f32 %v9786_v45, %v6241_v3 }
 0x756   : > { %v6257_v12 = vmul.f32 %v9788_v14, %v6256_v25  ;;  %v6243_v37 = vadd.f32 %v9786_v45, %v6242_v34  ;;  %v9111_v34 = vld [vmem:[%s16428_s10 + $0x38] sm:$0xff] }
 0x758   : > { %v6258_v59 = vadd.f32 %v9788_v14, %v6257_v12  ;;  %v6247_v5 = vsel %vm6246_vm12, %v9786_v45, %v6243_v37  ;;  %v9790_v49 = vpop.eup %9789  ;;  %v8734_v45 = vld [vmem:[%s16361_s26 + $0x38] sm:$0xf0]  ;;  %v9110_v12 = vld [vmem:[%s16428_s10 + $0x30] sm:$0xff] }
 0x759   : > { %v6252_v63 = vsel %vm6249_vm15, %v6251_v56, %v6247_v5  ;;  %v9792_v39 = vpop.eup %9791  ;;  %v5953_v9 = vadd.f32 1.0, %v9790_v49 }
 0x75a   : > { %v6262_v26 = vsel %vm6261_vm0, %v9788_v14, %v6258_v59  ;;  %v6467_v62 = vmul.f32 %v6252_v63, %v14980_v21  ;;  %v5954_v42 = vadd.f32 1.0, %v9792_v39  ;;  %v6554_v14 = vpop.f32.mrf.mxu2  ;;  %v9108_v59 = vld [vmem:[%s16428_s10 + $0x20] sm:$0xff]  ;;  %v9106_v39 = vld [vmem:[%s16428_s10 + $0x10] sm:$0xff] }
 0x75b   : > { %v6267_v24 = vsel %vm6264_vm1, %v6266_v32, %v6262_v26  ;;  %9793 = vrcp.f32 %v5953_v9  ;;  %v6220_v20 = vand.u32 2147483648, %v5953_v9  ;;  %v6218_v15 = vand.u32 2147483647, %v5953_v9  ;;  %v9107_v32 = vld [vmem:[%s16428_s10 + $0x18] sm:$0xff] }
 0x75c   : > { %v6468_v58 = vmul.f32 %v6267_v24, %v14983_v51  ;;  %9795 = vrcp.f32 %v5954_v42  ;;  %v6235_v16 = vand.u32 2147483648, %v5954_v42  ;;  %v6233_v21 = vand.u32 2147483647, %v5954_v42 }
 0x75d   : > { %vm6214_vm4 = vweird.f32 %v5953_v9  ;;  %v6221_v33 = vor.u32 1.1754944e-38, %v6220_v20  ;;  %vm6229_vm6 = vweird.f32 %v5954_v42  ;;  %vm6219_vm10 = vcmp.eq.f32.partialorder %v6218_v15, 8.507059e+37 }
 0x75e   : > { %v6498_v11 = vpack.c.bf16 %v6468_v58, %v6467_v62  ;;  %v6236_v36 = vor.u32 1.1754944e-38, %v6235_v16  ;;  %vm6234_vm8 = vcmp.eq.f32.partialorder %v6233_v21, 8.507059e+37  ;;  %v10074_v24 = vmov 64.0  }
 0x75f   : > { %9797 = vrcp.f32 %v10074_v24  ;;  %v9127_v24 = vld [vmem:[%s16433_s6 + $0x38] sm:$0xff] }
 0x760   : > { %6580 = vmatpush.bf16.msrb.mxu2 %v6498_v11 }
 0x761   : > { %v9794_v41 = vpop.eup %9793 }
 0x762   : > { %v9796_v10 = vpop.eup %9795  ;;  %v6210_v30 = vmul.f32 %v9794_v41, %v5953_v9  ;;  %vm6215_vm2 = vweird.f32 %v9794_v41  ;;  %v6556_v1 = vpop.f32.mrf.mxu2 }
 0x763   : > { %v6225_v60 = vmul.f32 %v9796_v10, %v5954_v42  ;;  %vm6230_vm3 = vweird.f32 %v9796_v10  ;;  %vm6216_vm5 = vmor %vm6214_vm4, %vm6215_vm2 }
 0x764   : > { %v6211_v31 = vsub.f32 1.0, %v6210_v30  ;;  %vm6231_vm7 = vmor %vm6229_vm6, %vm6230_vm3 }
 0x765   : > { %v6226_v29 = vsub.f32 1.0, %v6225_v60 }
 0x766   : > { %v6212_v46 = vmul.f32 %v9794_v41, %v6211_v31 }
 0x767   : > { %v6227_v61 = vmul.f32 %v9796_v10, %v6226_v29  ;;  %v9104_v29 = vld [vmem:[%s16428_s10] sm:$0xff] }
 0x768   : > { %v6213_v51 = vadd.f32 %v9794_v41, %v6212_v46 }
 0x769   : > { %v6228_v19 = vadd.f32 %v9796_v10, %v6227_v61 }
 0x76a   : > { %v6217_v53 = vsel %vm6216_vm5, %v9794_v41, %v6213_v51  ;;  %v9105_v41 = vld [vmem:[%s16428_s10 + $0x8] sm:$0xff] }
 0x76b   : > { %v6222_v4 = vsel %vm6219_vm10, %v6221_v33, %v6217_v53  ;;  %v6232_v52 = vsel %vm6231_vm7, %v9796_v10, %v6228_v19  ;;  %v9798_v10 = vpop.eup %9797 }
 0x76c   : > { %v6237_v6 = vsel %vm6234_vm8, %v6236_v36, %v6232_v52  ;;  %v6465_v55 = vmul.f32 %v6222_v4, %v15041_v38  ;;  %v8737_v38 = vor.u32 %v9102_v18, %v8734_v45  ;;  %v6651_v46 = vmul.f32 64.0, %v9798_v10  ;;  %v9134_v18 = vld [vmem:[%s16431_s5 + $0x30] sm:$0xff]  ;;  %v9117_v45 = vld [vmem:[%s16430_s3 + $0x28] sm:$0xff] }
 0x76d   : > { %v6466_v44 = vmul.f32 %v6237_v6, %v15044_v57  ;;  %v6559_v57 = vpop.f32.mrf.mxu2  ;;  %vm6655_vm9 = vweird.f32 %v9798_v10 }
 0x76e   : > { %v6652_v51 = vsub.f32 1.0, %v6651_v46 }
 0x76f   : > { %v6497_v13 = vpack.c.bf16 %v6466_v44, %v6465_v55 }
 0x770   : > { %v6653_v53 = vmul.f32 %v9798_v10, %v6652_v51 }
 0x771   : > { %6581 = vmatpush.bf16.msrb.mxu2 %v6497_v13 }
 0x772   : > { %v6654_v52 = vadd.f32 %v9798_v10, %v6653_v53  ;;  %v9132_v53 = vld [vmem:[%s16431_s5 + $0x20] sm:$0xff] }
 0x774   : > { %6582 = vmatmul.bf16.vlgmr.msrb.gmra.mxu2 %v8713_v8  ;;  %v15092_v44 = vsel %vm6655_vm9, %v9798_v10, %v6654_v52  ;;  %v6619_v8 = vld [vmem:[%s16429_s15] sm:$0x1]  ;;  %s16432_s15 = sld [smem:[#allocation17_spill]] }
 0x775   : > { %v6561_v47 = vpop.f32.mrf.mxu2  ;;  %6707 = vmatpush.bf16.msra.mxu2 %v9111_v34 }
 0x779   : > { %6708 = vmatpush.bf16.msra.mxu2 %v9110_v12 }
 0x77d   : > { %v6564_v22 = vpop.f32.mrf.mxu2  ;;  %6709 = vmatpush.bf16.msra.mxu2 %v9109_v28  ;;  %v9112_v28 = vld [vmem:[%s16430_s3] sm:$0xff] }
 0x781   : > { %6710 = vmatpush.bf16.msra.mxu2 %v9108_v59 }
 0x784   : > { %6587 = vmatmul.bf16.gmra.mxu2 %v8721_v7  ;;  %v9119_v7 = vld [vmem:[%s16430_s3 + $0x38] sm:$0xff] }
 0x785   : > { %v6566_v3 = vpop.f32.mrf.mxu2  ;;  %6711 = vmatpush.bf16.msra.mxu2 %v9107_v32 }
 0x789   : > { %6712 = vmatpush.bf16.msra.mxu2 %v9106_v39  ;;  %v6636_v39 = vld [vmem:[%s16432_s15] sm:$0x1]  ;;  %s16434_s15 = sld [smem:[#allocation19_spill]] }
 0x78d   : > { %6713 = vmatpush.bf16.msra.mxu2 %v9105_v41  ;;  %v9126_v41 = vld [vmem:[%s16433_s6 + $0x30] sm:$0xff] }
 0x791   : > { %6714 = vmatpush.bf16.msra.mxu2 %v9104_v29  ;;  %v9124_v29 = vld [vmem:[%s16433_s6 + $0x20] sm:$0xff] }
 0x794   : > { %6592 = vmatmul.bf16.gmra.mxu2 %v8729_v23  ;;  %v9135_v23 = vld [vmem:[%s16431_s5 + $0x38] sm:$0xff] }
 0x795   : > { %6789 = vmatpush.bf16.msrb.mxu2 %v9119_v7  ;;  %7003 = vmatpush.bf16.msrb.mxu0 %v9135_v23 }
 0x799   : > { %6790 = vmatpush.bf16.msrb.mxu2 %v9118_v54  ;;  %7004 = vmatpush.bf16.msrb.mxu0 %v9134_v18 }
 0x79a   : > { %v6569_v0 = vpop.f32.mrf.mxu2 }
 0x79d   : > { %6791 = vmatpush.bf16.msrb.mxu2 %v9117_v45  ;;  %v9131_v45 = vld [vmem:[%s16431_s5 + $0x18] sm:$0xff] }
 0x7a2   : > { %v6571_v43 = vpop.f32.mrf.mxu2 }
 0x7a4   : > { %6597 = vmatmul.bf16.gmra.mxu2 %v8737_v38 }
 0x7f7   : > { %v6583_v17 = vpop.f32.mrf.mxu2 }
 0x7f8   : > { %v15067_v63 = vadd.f32 %v6583_v17, %v6554_v14  ;;  %v9113_v17 = vld [vmem:[%s16430_s3 + $0x8] sm:$0xff] }
 0x7ff   : > { %v6585_v25 = vpop.f32.mrf.mxu2 }
 0x800   : > { %v15065_v49 = vadd.f32 %v6585_v25, %v6556_v1  ;;  %v9116_v1 = vld [vmem:[%s16430_s3 + $0x20] sm:$0xff] }
 0x801   : > { %6792 = vmatpush.bf16.msrb.mxu2 %v9116_v1 }
 0x802   : > { %v6637_v9 = vadd.f32 %v15065_v49, %v15067_v63 }
 0x807   : > { %v6588_v50 = vpop.f32.mrf.mxu2 }
 0x808   : > { %v15069_v26 = vadd.f32 %v6588_v50, %v6559_v57 }
 0x80a   : > { %v6638_v42 = vadd.f32 %v6637_v9, %v15069_v26 }
 0x80f   : > { %v6590_v37 = vpop.f32.mrf.mxu2 }
 0x810   : > { %v15074_v62 = vadd.f32 %v6590_v37, %v6561_v47  ;;  %v9115_v47 = vld [vmem:[%s16430_s3 + $0x18] sm:$0xff] }
 0x811   : > { %6793 = vmatpush.bf16.msrb.mxu2 %v9115_v47  ;;  %v9128_v47 = vld [vmem:[%s16431_s5] sm:$0xff] }
 0x812   : > { %v6639_v30 = vadd.f32 %v6638_v42, %v15074_v62 }
 0x817   : > { %v6593_v56 = vpop.f32.mrf.mxu2 }
 0x818   : > { %v15077_v11 = vadd.f32 %v6593_v56, %v6564_v22  ;;  %v9114_v22 = vld [vmem:[%s16430_s3 + $0x10] sm:$0xff]  ;;  %s16435_s3 = sld [smem:[#allocation24_spill]] }
 0x819   : > { %6794 = vmatpush.bf16.msrb.mxu2 %v9114_v22 }
 0x81a   : > { %v6640_v31 = vadd.f32 %v6639_v30, %v15077_v11  ;;  %v9125_v30 = vld [vmem:[%s16433_s6 + $0x28] sm:$0xff] }
 0x81d   : > { %6795 = vmatpush.bf16.msrb.mxu2 %v9113_v17 }
 0x81f   : > { %v6595_v5 = vpop.f32.mrf.mxu2 }
 0x820   : > { %v15081_v60 = vadd.f32 %v6595_v5, %v6566_v3 }
 0x821   : > { %6796 = vmatpush.bf16.msrb.mxu2 %v9112_v28 }
 0x822   : > { %v6641_v15 = vadd.f32 %v6640_v31, %v15081_v60 }
 0x827   : > { %v6598_v58 = vpop.f32.mrf.mxu2 }
 0x828   : > { %v15084_v20 = vadd.f32 %v6598_v58, %v6569_v0  ;;  %v9133_v58 = vld [vmem:[%s16431_s5 + $0x28] sm:$0xff] }
 0x829   : > { %7005 = vmatpush.bf16.msrb.mxu0 %v9133_v58 }
 0x82a   : > { %v6642_v61 = vadd.f32 %v6641_v15, %v15084_v20 }
 0x82d   : > { %7006 = vmatpush.bf16.msrb.mxu0 %v9132_v53 }
 0x82f   : > { %v6600_v16 = vpop.f32.mrf.mxu2 }
 0x830   : > { %v15089_v21 = vadd.f32 %v6600_v16, %v6571_v43  ;;  %v9123_v16 = vld [vmem:[%s16433_s6 + $0x18] sm:$0xff] }
 0x831   : > { %7007 = vmatpush.bf16.msrb.mxu0 %v9131_v45 }
 0x832   : > { %v6643_v33 = vadd.f32 %v6642_v61, %v15089_v21  ;;  %v9122_v61 = vld [vmem:[%s16433_s6 + $0x10] sm:$0xff] }
 0x834   : > { %v6644_v19 = vrot.slane %v6643_v33, 4 }
 0x836   : > { %v6645_v36 = vadd.f32 %v6644_v19, %v6643_v33  ;;  %v9121_v19 = vld [vmem:[%s16433_s6 + $0x8] sm:$0xff] }
 0x838   : > { %v6646_v4 = vrot.slane %v6645_v36, 2 }
 0x83a   : > { %v6647_v6 = vadd.f32 %v6646_v4, %v6645_v36 }
 0x83c   : > { %v6648_v55 = vrot.slane %v6647_v6, 1 }
 0x83e   : > { %v6649_v48 = vadd.f32 %v6648_v55, %v6647_v6  ;;  %v9120_v55 = vld [vmem:[%s16433_s6] sm:$0xff]  ;;  %s16467_s6 = sld [smem:[#allocation27_spill]] }
 0x840   : > { %v6657_v27 = vmul.f32 %v15092_v44, %v6649_v48 }
 0x842   : > { %v6658_v13 = vpack.c.bf16 %v6657_v27, %v6657_v27 }
 0x844   : > { %6715 = vmatmul.bf16.vlgmr.msra.gmra.mxu2 %v6658_v13 }
 0x845   : > { %6902 = vmatpush.bf16.msra.mxu2 %v9127_v24 }
 0x849   : > { %6903 = vmatpush.bf16.msra.mxu2 %v9126_v41 }
 0x84d   : > { %6904 = vmatpush.bf16.msra.mxu2 %v9125_v30 }
 0x851   : > { %6905 = vmatpush.bf16.msra.mxu2 %v9124_v29 }
 0x855   : > { %6906 = vmatpush.bf16.msra.mxu2 %v9123_v16 }
 0x859   : > { %6907 = vmatpush.bf16.msra.mxu2 %v9122_v61 }
 0x85d   : > { %6908 = vmatpush.bf16.msra.mxu2 %v9121_v19 }
 0x861   : > { %6909 = vmatpush.bf16.msra.mxu2 %v9120_v55 }
 0x8c7   : > { %v6716_v40 = vpop.f32.mrf.mxu2 }
 0x8c8   : > { %v6717_v2 = vadd.f32 %v6716_v40, %v6619_v8 }
 0x8ca   : > { %v8770_v35 = vmul.f32 -1.442695, %v6717_v2 }
 0x8cc   : > { %9799 = vpow2.f32 %v8770_v35 }
 0x8cf   : > { %v6718_v38 = vpop.f32.mrf.mxu2 }
 0x8d0   : > { %v9130_v38 = vld [vmem:[%s16431_s5 + $0x10] sm:$0xff] }
 0x8d1   : > { %7008 = vmatpush.bf16.msrb.mxu0 %v9130_v38 }
 0x8d2   : > { %v9800_v14 = vpop.eup %9799 }
 0x8d3   : > { %v6723_v57 = vadd.f32 1.0, %v9800_v14  ;;  %v9129_v14 = vld [vmem:[%s16431_s5 + $0x8] sm:$0xff]  ;;  %s16438_s5 = sld [smem:[#allocation26_spill]] }
 0x8d5   : > { %9801 = vrcp.f32 %v6723_v57  ;;  %v6735_v25 = vand.u32 2147483648, %v6723_v57  ;;  %v6733_v50 = vand.u32 2147483647, %v6723_v57  ;;  %vm6729_vm14 = vweird.f32 %v6723_v57  ;;  %7009 = vmatpush.bf16.msrb.mxu0 %v9129_v14 }
 0x8d7   : > { %v6736_v37 = vor.u32 1.1754944e-38, %v6735_v25  ;;  %vm6734_vm13 = vcmp.eq.f32.partialorder %v6733_v50, 8.507059e+37  ;;  %v9143_v50 = vld [vmem:[%s16435_s3 + $0x38] sm:$0xff] }
 0x8d8   : > { %7719 = vmatpush.bf16.msrb.mxu3 %v9143_v50 }
 0x8d9   : > { %7010 = vmatpush.bf16.msrb.mxu0 %v9128_v47 }
 0x8db   : > { %v9802_v3 = vpop.eup %9801 }
 0x8dc   : > { %v6725_v0 = vmul.f32 %v9802_v3, %v6723_v57  ;;  %vm6730_vm11 = vweird.f32 %v9802_v3 }
 0x8dd   : > { %vm6731_vm12 = vmor %vm6729_vm14, %vm6730_vm11 }
 0x8de   : > { %v6726_v43 = vsub.f32 1.0, %v6725_v0 }
 0x8e0   : > { %v6727_v34 = vmul.f32 %v9802_v3, %v6726_v43 }
 0x8e2   : > { %v6728_v12 = vadd.f32 %v9802_v3, %v6727_v34 }
 0x8e4   : > { %v6732_v56 = vsel %vm6731_vm12, %v9802_v3, %v6728_v12  ;;  %v9269_v3 = vld [vmem:[%s16434_s15] ss:$0 sm:$0xff]  ;;  %s16436_s15 = sld [smem:[#allocation21_spill]]  ;;  %v9142_v12 = vld [vmem:[%s16435_s3 + $0x30] sm:$0xff] }
 0x8e5   : > { %v6737_v59 = vsel %vm6734_vm13, %v6736_v37, %v6732_v56  ;;  %7720 = vmatpush.bf16.msrb.mxu3 %v9142_v12 }
 0x8e6   : > { %v6739_v5 = vmul.f32 %v6737_v59, %v6717_v2 }
 0x8e8   : > { %v6740_v32 = vpack.c.bf16 %v6739_v5, %v6739_v5 }
 0x8ea   : > { %6797 = vmatmul.bf16.vlgmr.msrb.gmra.mxu2 %v6740_v32 }
 0x96d   : > { %v6798_v9 = vpop.f32.mrf.mxu2 }
 0x96e   : > { %v6799_v42 = vadd.f32 %v6798_v9, %v6636_v39 }
 0x970   : > { %v8803_v10 = vmul.f32 -1.442695, %v6799_v42  ;;  %v15157_v42 = vld [vmem:[%s16436_s15] ss:$0 sm:$0xff]  ;;  %s16437_s15 = sld [smem:[#allocation22_spill]] }
 0x972   : > { %9803 = vpow2.f32 %v8803_v10 }
 0x975   : > { %v6800_v31 = vpop.f32.mrf.mxu2 }
 0x978   : > { %v9804_v46 = vpop.eup %9803 }
 0x979   : > { %v6805_v15 = vadd.f32 1.0, %v9804_v46  ;;  %v9141_v46 = vld [vmem:[%s16435_s3 + $0x28] sm:$0xff] }
 0x97a   : > { %7721 = vmatpush.bf16.msrb.mxu3 %v9141_v46 }
 0x97b   : > { %9805 = vrcp.f32 %v6805_v15  ;;  %v6817_v4 = vand.u32 2147483648, %v6805_v15  ;;  %v6815_v6 = vand.u32 2147483647, %v6805_v15  ;;  %vm6811_vm0 = vweird.f32 %v6805_v15 }
 0x97d   : > { %v6818_v27 = vor.u32 1.1754944e-38, %v6817_v4  ;;  %vm6816_vm2 = vcmp.eq.f32.partialorder %v6815_v6, 8.507059e+37 }
 0x981   : > { %v9806_v51 = vpop.eup %9805 }
 0x982   : > { %v6807_v33 = vmul.f32 %v9806_v51, %v6805_v15  ;;  %vm6812_vm15 = vweird.f32 %v9806_v51 }
 0x983   : > { %vm6813_vm1 = vmor %vm6811_vm0, %vm6812_vm15 }
 0x984   : > { %v6808_v36 = vsub.f32 1.0, %v6807_v33 }
 0x986   : > { %v6809_v52 = vmul.f32 %v9806_v51, %v6808_v36 }
 0x988   : > { %v6810_v48 = vadd.f32 %v9806_v51, %v6809_v52 }
 0x98a   : > { %v6814_v13 = vsel %vm6813_vm1, %v9806_v51, %v6810_v48 }
 0x98b   : > { %v6819_v8 = vsel %vm6816_vm2, %v6818_v27, %v6814_v13 }
 0x98c   : > { %v6821_v40 = vperm.slane %v6819_v8, 0 }
 0x98e   : > { %v6822_v2 = vmul.f32 %v6821_v40, %v15067_v63  ;;  %v6823_v7 = vmul.f32 %v6821_v40, %v15065_v49  ;;  %v6824_v54 = vmul.f32 %v6821_v40, %v15069_v26  ;;  %v6825_v23 = vmul.f32 %v6821_v40, %v15074_v62 }
 0x98f   : > { %v6826_v1 = vmul.f32 %v6821_v40, %v15077_v11  ;;  %v6827_v63 = vmul.f32 %v6821_v40, %v15081_v60  ;;  %v6828_v26 = vmul.f32 %v6821_v40, %v15084_v20  ;;  %v6829_v62 = vmul.f32 %v6821_v40, %v15089_v21 }
 0x990   : > { %v6847_v35 = vpack.c.bf16 %v6823_v7, %v6822_v2  ;;  %v6848_v18 = vpack.c.bf16 %v6825_v23, %v6824_v54 }
 0x991   : > { %v6849_v49 = vpack.c.bf16 %v6827_v63, %v6826_v1  ;;  %v6850_v57 = vpack.c.bf16 %v6829_v62, %v6828_v26 }
 0x992   : > { %6910 = vmatmul.bf16.vlgmr.msra.gmra.mxu2 %v6847_v35 }
 0x9a2   : > { %6915 = vmatmul.bf16.gmra.mxu2 %v6848_v18 }
 0x9b2   : > { %6920 = vmatmul.bf16.gmra.mxu2 %v6849_v49  ;;  %v15170_v49 = vld [vmem:[%s16437_s15] sm:$0xff] }
 0x9c2   : > { %6925 = vmatmul.bf16.gmra.mxu2 %v6850_v57 }
 0xa15   : > { %v6911_v22 = vpop.f32.mrf.mxu2 }
 0xa16   : > { %v15130_v43 = vadd.f32 %v9269_v3, %v6911_v22 }
 0xa1d   : > { %v6913_v0 = vpop.f32.mrf.mxu2 }
 0xa1e   : > { %v15132_v11 = vadd.f32 %v9269_v3, %v6913_v0  ;;  %v15178_v0 = vperm.slane %v15170_v49, 1 }
 0xa20   : > { %v6948_v60 = vpack.c.bf16 %v15132_v11, %v15130_v43 }
 0xa22   : > { %7011 = vmatmul.bf16.vlgmr.msrb.gmra.mxu0 %v6948_v60 }
 0xa25   : > { %v6916_v20 = vpop.f32.mrf.mxu2 }
 0xa26   : > { %v15136_v21 = vadd.f32 %v9269_v3, %v6916_v20 }
 0xa2d   : > { %v6918_v17 = vpop.f32.mrf.mxu2 }
 0xa2e   : > { %v15138_v25 = vadd.f32 %v9269_v3, %v6918_v17 }
 0xa30   : > { %v6949_v34 = vpack.c.bf16 %v15138_v25, %v15136_v21 }
 0xa32   : > { %7016 = vmatmul.bf16.gmra.mxu0 %v6949_v34 }
 0xa35   : > { %v6921_v28 = vpop.f32.mrf.mxu2 }
 0xa36   : > { %v15144_v56 = vadd.f32 %v9269_v3, %v6921_v28 }
 0xa3d   : > { %v6923_v37 = vpop.f32.mrf.mxu2 }
 0xa3e   : > { %v15146_v59 = vadd.f32 %v9269_v3, %v6923_v37 }
 0xa40   : > { %v6950_v5 = vpack.c.bf16 %v15146_v59, %v15144_v56 }
 0xa42   : > { %7021 = vmatmul.bf16.gmra.mxu0 %v6950_v5 }
 0xa45   : > { %v6926_v32 = vpop.f32.mrf.mxu2 }
 0xa46   : > { %v15150_v24 = vadd.f32 %v9269_v3, %v6926_v32  ;;  %v15194_v32 = vperm.slane %v15170_v49, 2 }
 0xa4d   : > { %v6928_v39 = vpop.f32.mrf.mxu2 }
 0xa4e   : > { %v15152_v9 = vadd.f32 %v9269_v3, %v6928_v39  ;;  %v15175_v3 = vperm.slane %v15170_v49, 0 }
 0xa50   : > { %v6951_v58 = vpack.c.bf16 %v15152_v9, %v15150_v24 }
 0xa52   : > { %7026 = vmatmul.bf16.gmra.mxu0 %v6951_v58 }
 0xa9f   : > { %v7012_v41 = vpop.f32.mrf.mxu0 }
 0xaa0   : > { %v7013_v10 = vadd.f32 %v15157_v42, %v7012_v41  ;;  %v15199_v41 = vperm.slane %v15170_v49, 3 }
 0xaa2   : > { %v8868_v30 = vmul.f32 -1.442695, %v7013_v10 }
 0xaa4   : > { %9807 = vpow2.f32 %v8868_v30 }
 0xaa7   : > { %v7014_v15 = vpop.f32.mrf.mxu0 }
 0xaa8   : > { %v7015_v16 = vadd.f32 %v15157_v42, %v7014_v15 }
 0xaaa   : > { %v9808_v31 = vpop.eup %9807  ;;  %v8869_v61 = vmul.f32 -1.442695, %v7015_v16 }
 0xaab   : > { %v7056_v29 = vadd.f32 1.0, %v9808_v31 }
 0xaad   : > { %9809 = vrcp.f32 %v7056_v29  ;;  %v7075_v53 = vand.u32 2147483648, %v7056_v29  ;;  %v7073_v4 = vand.u32 2147483647, %v7056_v29  ;;  %vm7069_vm4 = vweird.f32 %v7056_v29 }
 0xaae   : > { %9811 = vpow2.f32 %v8869_v61 }
 0xaaf   : > { %v7076_v48 = vor.u32 1.1754944e-38, %v7075_v53  ;;  %vm7074_vm6 = vcmp.eq.f32.partialorder %v7073_v4, 8.507059e+37  ;;  %v7017_v8 = vpop.f32.mrf.mxu0 }
 0xab0   : > { %v15165_v2 = vadd.f32 %v15157_v42, %v7017_v8 }
 0xab2   : > { %v8870_v7 = vmul.f32 -1.442695, %v15165_v2 }
 0xab3   : > { %v9810_v51 = vpop.eup %9809 }
 0xab4   : > { %v7065_v33 = vmul.f32 %v9810_v51, %v7056_v29  ;;  %vm7070_vm3 = vweird.f32 %v9810_v51  ;;  %v9812_v52 = vpop.eup %9811 }
 0xab5   : > { %v7057_v55 = vadd.f32 1.0, %v9812_v52  ;;  %vm7071_vm5 = vmor %vm7069_vm4, %vm7070_vm3 }
 0xab6   : > { %v7066_v19 = vsub.f32 1.0, %v7065_v33 }
 0xab7   : > { %9813 = vrcp.f32 %v7057_v55  ;;  %v7090_v18 = vand.u32 2147483648, %v7057_v55  ;;  %v7088_v38 = vand.u32 2147483647, %v7057_v55  ;;  %vm7084_vm7 = vweird.f32 %v7057_v55  ;;  %v7019_v62 = vpop.f32.mrf.mxu0 }
 0xab8   : > { %v7067_v36 = vmul.f32 %v9810_v51, %v7066_v19  ;;  %9815 = vpow2.f32 %v8870_v7  ;;  %v15183_v20 = vadd.f32 %v15157_v42, %v7019_v62 }
 0xab9   : > { %v7091_v26 = vor.u32 1.1754944e-38, %v7090_v18  ;;  %vm7089_vm9 = vcmp.eq.f32.partialorder %v7088_v38, 8.507059e+37 }
 0xaba   : > { %v7068_v6 = vadd.f32 %v9810_v51, %v7067_v36  ;;  %v8871_v34 = vmul.f32 -1.442695, %v15183_v20 }
 0xabc   : > { %v7072_v27 = vsel %vm7071_vm5, %v9810_v51, %v7068_v6 }
 0xabd   : > { %v7077_v13 = vsel %vm7074_vm6, %v7076_v48, %v7072_v27  ;;  %v9814_v35 = vpop.eup %9813 }
 0xabe   : > { %v15162_v40 = vmul.f32 %v7077_v13, %v7013_v10  ;;  %v7080_v54 = vmul.f32 %v9814_v35, %v7057_v55  ;;  %vm7085_vm10 = vweird.f32 %v9814_v35  ;;  %v9816_v14 = vpop.eup %9815 }
 0xabf   : > { %v7058_v63 = vadd.f32 1.0, %v9816_v14  ;;  %vm7086_vm8 = vmor %vm7084_vm7, %vm7085_vm10  ;;  %v7022_v4 = vpop.f32.mrf.mxu0 }
 0xac0   : > { %7217 = vst [vmem:[#allocation3 + $0x11] sm:$0xff] %v15162_v40  ;;  %v7081_v23 = vsub.f32 1.0, %v7080_v54  ;;  %v7260_v12 = vmul.f32 %v15178_v0, %v15162_v40  ;;  %v15216_v27 = vadd.f32 %v15157_v42, %v7022_v4 }
 0xac1   : > { %9817 = vrcp.f32 %v7058_v63  ;;  %v7105_v10 = vand.u32 2147483648, %v7058_v63  ;;  %v7103_v29 = vand.u32 2147483647, %v7058_v63  ;;  %vm7099_vm14 = vweird.f32 %v7058_v63 }
 0xac2   : > { %v7082_v45 = vmul.f32 %v9814_v35, %v7081_v23  ;;  %9819 = vpow2.f32 %v8871_v34  ;;  %v8872_v8 = vmul.f32 -1.442695, %v15216_v27 }
 0xac3   : > { %v7106_v36 = vor.u32 1.1754944e-38, %v7105_v10  ;;  %vm7104_vm13 = vcmp.eq.f32.partialorder %v7103_v29, 8.507059e+37 }
 0xac4   : > { %v7083_v1 = vadd.f32 %v9814_v35, %v7082_v45 }
 0xac6   : > { %v7087_v57 = vsel %vm7086_vm8, %v9814_v35, %v7083_v1 }
 0xac7   : > { %v15172_v47 = vld [vmem:[#allocation3 + $0x10] sm:$0xff]  ;;  %v7092_v22 = vsel %vm7089_vm9, %v7091_v26, %v7087_v57  ;;  %v9818_v50 = vpop.eup %9817 }
 0xac8   : > { %v15180_v60 = vmul.f32 %v7092_v22, %v7015_v16  ;;  %v7235_v17 = vmul.f32 %v15175_v3, %v15172_v47  ;;  %v15191_v28 = vld [vmem:[#allocation3 + $0x12] sm:$0xff]  ;;  %v7095_v37 = vmul.f32 %v9818_v50, %v7058_v63  ;;  %vm7100_vm11 = vweird.f32 %v9818_v50  ;;  %v9820_v46 = vpop.eup %9819 }
 0xac9   : > { %v7285_v58 = vmul.f32 %v15194_v32, %v15191_v28  ;;  %v15204_v16 = vperm.slane %v15170_v49, 4  ;;  %v7059_v33 = vadd.f32 1.0, %v9820_v46  ;;  %vm7101_vm12 = vmor %vm7099_vm14, %vm7100_vm11  ;;  %v9140_v22 = vld [vmem:[%s16435_s3 + $0x20] sm:$0xff] }
 0xaca   : > { %7218 = vst [vmem:[#allocation3 + $0x21] sm:$0xff] %v15180_v60  ;;  %v7268_v5 = vadd.f32 %v7260_v12, %v7235_v17  ;;  %v7096_v39 = vsub.f32 1.0, %v7095_v37  ;;  %v7261_v35 = vmul.f32 %v15178_v0, %v15180_v60  ;;  %v7024_v17 = vpop.f32.mrf.mxu0  ;;  %v7250_v37 = vld [vmem:[#allocation3 + $0x1] sm:$0xff]  ;;  %7722 = vmatpush.bf16.msrb.mxu3 %v9140_v22  ;;  %v15240_v46 = vld [vmem:[#allocation2] sm:$0xff]  ;;  %v15263_v22 = vperm.slane %v15170_v49, 5 }
 0xacb   : > { %v7335_v53 = vmul.f32 %v15204_v16, %v15180_v60  ;;  %9821 = vrcp.f32 %v7059_v33  ;;  %v7120_v38 = vand.u32 2147483648, %v7059_v33  ;;  %v7118_v63 = vand.u32 2147483647, %v7059_v33 }
 0xacc   : > { %v7097_v31 = vmul.f32 %v9818_v50, %v7096_v39  ;;  %v7293_v15 = vadd.f32 %v7285_v58, %v7268_v5  ;;  %9823 = vpow2.f32 %v8872_v8  ;;  %vm7114_vm0 = vweird.f32 %v7059_v33 }
 0xacd   : > { %v15234_v12 = vadd.f32 %v15157_v42, %v7024_v17  ;;  %v7121_v58 = vor.u32 1.1754944e-38, %v7120_v38  ;;  %vm7119_vm2 = vcmp.eq.f32.partialorder %v7118_v63, 8.507059e+37 }
 0xace   : > { %v7098_v51 = vadd.f32 %v9818_v50, %v7097_v31 }
 0xad0   : > { %v7102_v52 = vsel %vm7101_vm12, %v9818_v50, %v7098_v51 }
 0xad1   : > { %v15201_v30 = vld [vmem:[#allocation3 + $0x20] sm:$0xff]  ;;  %v7107_v55 = vsel %vm7104_vm13, %v7106_v36, %v7102_v52  ;;  %v9822_v7 = vpop.eup %9821 }
 0xad2   : > { %v7310_v61 = vmul.f32 %v15199_v41, %v15201_v30  ;;  %v15213_v48 = vmul.f32 %v7107_v55, %v15165_v2  ;;  %v7236_v13 = vmul.f32 %v15175_v3, %v15201_v30  ;;  %v15224_v54 = vld [vmem:[#allocation3 + $0x22] sm:$0xff]  ;;  %v7110_v2 = vmul.f32 %v9822_v7, %v7059_v33  ;;  %v9824_v26 = vpop.eup %9823  ;;  %v7027_v55 = vpop.f32.mrf.mxu0 }
 0xad3   : > { %v7286_v45 = vmul.f32 %v15194_v32, %v15224_v54  ;;  %vm7115_vm15 = vweird.f32 %v9822_v7  ;;  %v7060_v50 = vadd.f32 1.0, %v9824_v26  ;;  %v8873_v33 = vmul.f32 -1.442695, %v15234_v12 }
 0xad4   : > { %v7318_v19 = vadd.f32 %v7310_v61, %v7293_v15  ;;  %7219 = vst [vmem:[#allocation3 + $0x31] sm:$0xff] %v15213_v48  ;;  %v7269_v23 = vadd.f32 %v7261_v35, %v7236_v13  ;;  %v7111_v18 = vsub.f32 1.0, %v7110_v2  ;;  %v7336_v39 = vmul.f32 %v15204_v16, %v15213_v48  ;;  %vm7116_vm1 = vmor %vm7114_vm0, %vm7115_vm15 }
 0xad5   : > { %9825 = vrcp.f32 %v7060_v50  ;;  %v7234_v15 = vmul.f32 %v15240_v46, %v15175_v3  ;;  %v7259_v61 = vmul.f32 %v15178_v0, %v7250_v37  ;;  %v15252_v8 = vadd.f32 %v15157_v42, %v7027_v55 }
 0xad6   : > { %v15210_v6 = vadd.f32 %v7335_v53, %v7318_v19  ;;  %v7112_v1 = vmul.f32 %v9822_v7, %v7111_v18  ;;  %v7294_v62 = vadd.f32 %v7286_v45, %v7269_v23  ;;  %v7275_v19 = vld [vmem:[#allocation3 + $0x2] sm:$0xff]  ;;  %9827 = vpow2.f32 %v8873_v33 }
 0xad7   : > { %v7267_v36 = vadd.f32 %v7259_v61, %v7234_v15  ;;  %v7284_v4 = vmul.f32 %v15194_v32, %v7275_v19  ;;  %v7133_v2 = vand.u32 2147483647, %v7060_v50  ;;  %v7135_v23 = vand.u32 2147483648, %v7060_v50  ;;  %v9139_v33 = vld [vmem:[%s16435_s3 + $0x18] sm:$0xff] }
 0xad8   : > { %v7113_v34 = vadd.f32 %v9822_v7, %v7112_v1  ;;  %v8874_v38 = vmul.f32 -1.442695, %v15252_v8  ;;  %vm7129_vm4 = vweird.f32 %v7060_v50  ;;  %v15283_v15 = vperm.slane %v15170_v49, 7  ;;  %7723 = vmatpush.bf16.msrb.mxu3 %v9139_v33 }
 0xad9   : > { %v7292_v35 = vadd.f32 %v7284_v4, %v7267_v36  ;;  %v7136_v63 = vor.u32 1.1754944e-38, %v7135_v23  ;;  %vm7134_vm6 = vcmp.eq.f32.partialorder %v7133_v2, 8.507059e+37  ;;  %v7262_v61 = vmul.f32 %v15178_v0, %v15213_v48  ;;  %v9151_v4 = vld [vmem:[%s16438_s5 + $0x38] sm:$0xff] }
 0xada   : > { %v7117_v10 = vsel %vm7116_vm1, %v9822_v7, %v7113_v34  ;;  %7801 = vmatpush.bf16.msrb.mxu1 %v9151_v4  ;;  %v7360_v2 = vmul.f32 %v15263_v22, %v15224_v54  ;;  %v15307_v23 = vmul.f32 %v15283_v15, %v15180_v60 }
 0xadb   : > { %v15228_v14 = vld [vmem:[#allocation3 + $0x30] sm:$0xff]  ;;  %v7122_v29 = vsel %vm7119_vm2, %v7121_v58, %v7117_v10  ;;  %v9826_v53 = vpop.eup %9825 }
 0xadc   : > { %v7311_v57 = vmul.f32 %v15199_v41, %v15228_v14  ;;  %v15246_v51 = vmul.f32 %v7122_v29, %v15183_v20  ;;  %v7125_v52 = vmul.f32 %v9826_v53, %v7060_v50  ;;  %v9828_v7 = vpop.eup %9827  ;;  %v7309_v20 = vmul.f32 %v15199_v41, %v15172_v47  ;;  %v15288_v19 = vld [vmem:[#allocation3 + $0x32] sm:$0xff] }
 0xadd   : > { %vm7130_vm3 = vweird.f32 %v9826_v53  ;;  %v15256_v45 = vadd.f32 1.0, %v9828_v7  ;;  %v7334_v47 = vmul.f32 %v15204_v16, %v15162_v40  ;;  %v7237_v37 = vmul.f32 %v15175_v3, %v15228_v14 }
 0xade   : > { %v7319_v5 = vadd.f32 %v7311_v57, %v7294_v62  ;;  %7220 = vst [vmem:[#allocation3 + $0x41] sm:$0xff] %v15246_v51  ;;  %v7126_v13 = vsub.f32 1.0, %v7125_v52  ;;  %vm7131_vm5 = vmor %vm7129_vm4, %vm7130_vm3  ;;  %v7317_v26 = vadd.f32 %v7309_v20, %v7292_v35  ;;  %v15280_v29 = vperm.slane %v15170_v49, 6  ;;  %v9150_v20 = vld [vmem:[%s16438_s5 + $0x30] sm:$0xff] }
 0xadf   : > { %9829 = vrcp.f32 %v15256_v45  ;;  %v7270_v52 = vadd.f32 %v7262_v61, %v7237_v37  ;;  %v7150_v55 = vand.u32 2147483648, %v15256_v45  ;;  %v7148_v35 = vand.u32 2147483647, %v15256_v45  ;;  %v9137_v37 = vld [vmem:[%s16435_s3 + $0x8] sm:$0xff]  ;;  %7802 = vmatpush.bf16.msrb.mxu1 %v9150_v20 }
 0xae0   : > { %v15238_v31 = vadd.f32 %v7336_v39, %v7319_v5  ;;  %v7127_v18 = vmul.f32 %v9826_v53, %v7126_v13  ;;  %9831 = vpow2.f32 %v8874_v38  ;;  %v7342_v50 = vadd.f32 %v7334_v47, %v7317_v26  ;;  %v7029_v5 = vpop.f32.mrf.mxu0  ;;  %v9138_v13 = vld [vmem:[%s16435_s3 + $0x10] sm:$0xff] }
 0xae1   : > { %v15275_v58 = vadd.f32 %v15157_v42, %v7029_v5  ;;  %v7263_v38 = vmul.f32 %v15178_v0, %v15246_v51  ;;  %vm7144_vm7 = vweird.f32 %v15256_v45  ;;  %v7385_v60 = vmul.f32 %v15280_v29, %v15201_v30  ;;  %7724 = vmatpush.bf16.msrb.mxu3 %v9138_v13 }
 0xae2   : > { %v7128_v1 = vadd.f32 %v9826_v53, %v7127_v18  ;;  %v7287_v18 = vmul.f32 %v15194_v32, %v15288_v19  ;;  %vm7149_vm9 = vcmp.eq.f32.partialorder %v7148_v35, 8.507059e+37  ;;  %v7361_v30 = vmul.f32 %v15263_v22, %v15288_v19 }
 0xae3   : > { %v8875_v36 = vmul.f32 -1.442695, %v15275_v58  ;;  %v7337_v4 = vmul.f32 %v15204_v16, %v15246_v51 }
 0xae4   : > { %v7132_v62 = vsel %vm7131_vm5, %v9826_v53, %v7128_v1  ;;  %v7295_v5 = vadd.f32 %v7287_v18, %v7270_v52 }
 0xae5   : > { %v7137_v57 = vsel %vm7134_vm6, %v7136_v63, %v7132_v62  ;;  %v9830_v34 = vpop.eup %9829  ;;  %v15271_v39 = vld [vmem:[#allocation3 + $0x40] sm:$0xff]  ;;  %v7368_v62 = vadd.f32 %v7360_v2, %v15210_v6  ;;  %v7386_v6 = vmul.f32 %v15280_v29, %v15228_v14  ;;  %7725 = vmatpush.bf16.msrb.mxu3 %v9137_v37 }
 0xae6   : > { %v15266_v17 = vmul.f32 %v7137_v57, %v15216_v27  ;;  %v7140_v40 = vmul.f32 %v9830_v34, %v15256_v45  ;;  %v9832_v10 = vpop.eup %9831  ;;  %v7359_v27 = vmul.f32 %v15263_v22, %v15191_v28  ;;  %v7238_v49 = vmul.f32 %v15175_v3, %v15271_v39  ;;  %v15323_v47 = vld [vmem:[#allocation3 + $0x42] sm:$0xff] }
 0xae7   : > { %v15290_v53 = vadd.f32 1.0, %v9832_v10  ;;  %vm7145_vm10 = vweird.f32 %v9830_v34  ;;  %v7312_v1 = vmul.f32 %v15199_v41, %v15271_v39  ;;  %v15321_v57 = vmul.f32 %v15283_v15, %v15213_v48 }
 0xae8   : > { %7221 = vst [vmem:[#allocation3 + $0x51] sm:$0xff] %v15266_v17  ;;  %v7141_v42 = vsub.f32 1.0, %v7140_v40  ;;  %v15294_v28 = vadd.f32 %v7359_v27, %v7342_v50  ;;  %vm7146_vm8 = vmor %vm7144_vm7, %vm7145_vm10  ;;  %v7151_v50 = vor.u32 1.1754944e-38, %v7150_v55  ;;  %v7271_v40 = vadd.f32 %v7263_v38, %v7238_v49  ;;  %v9136_v55 = vld [vmem:[%s16435_s3] sm:$0xff]  ;;  %s16441_s3 = sld [smem:[#allocation23_spill]] }
 0xae9   : > { %9833 = vrcp.f32 %v15290_v53  ;;  %v7288_v61 = vmul.f32 %v15194_v32, %v15323_v47  ;;  %v7320_v33 = vadd.f32 %v7312_v1, %v7295_v5  ;;  %v7264_v14 = vmul.f32 %v15178_v0, %v15266_v17  ;;  %7726 = vmatpush.bf16.msrb.mxu3 %v9136_v55 }
 0xaea   : > { %v7142_v7 = vmul.f32 %v9830_v34, %v7141_v42  ;;  %9835 = vpow2.f32 %v8875_v36  ;;  %v7163_v49 = vand.u32 2147483647, %v15290_v53  ;;  %v7387_v2 = vmul.f32 %v15280_v29, %v15271_v39 }
 0xaeb   : > { %v7296_v13 = vadd.f32 %v7288_v61, %v7271_v40  ;;  %v7338_v38 = vmul.f32 %v15204_v16, %v15266_v17  ;;  %vm7159_vm11 = vweird.f32 %v15290_v53 }
 0xaec   : > { %v7143_v26 = vadd.f32 %v9830_v34, %v7142_v7  ;;  %v7362_v7 = vmul.f32 %v15263_v22, %v15323_v47  ;;  %vm15361_vm12 = vcmp.eq.f32.partialorder %v7163_v49, 8.507059e+37 }
 0xaee   : > { %v7147_v10 = vsel %vm7146_vm8, %v9830_v34, %v7143_v26 }
 0xaef   : > { %v7230_v63 = vld [vmem:[#allocation3 + $0x50] sm:$0xff]  ;;  %v7152_v45 = vsel %vm7149_vm9, %v7151_v50, %v7147_v10  ;;  %v9834_v27 = vpop.eup %9833  ;;  %v7345_v50 = vadd.f32 %v7337_v4, %v7320_v33 }
 0xaf0   : > { %v7239_v48 = vmul.f32 %v15175_v3, %v7230_v63  ;;  %v7313_v42 = vmul.f32 %v15199_v41, %v7230_v63  ;;  %v15336_v34 = vmul.f32 %v7152_v45, %v15234_v12  ;;  %v9836_v36 = vpop.eup %9835  ;;  %v7155_v52 = vmul.f32 %v9834_v27, %v15290_v53  ;;  %v15347_v35 = vld [vmem:[#allocation3 + $0x52] sm:$0xff] }
 0xaf1   : > { %v7165_v12 = vand.u32 2147483648, %v15290_v53  ;;  %v15351_v20 = vadd.f32 1.0, %v9836_v36  ;;  %v7289_v37 = vmul.f32 %v15194_v32, %v15347_v35  ;;  %vm7160_vm14 = vweird.f32 %v9834_v27 }
 0xaf2   : > { %7222 = vst [vmem:[#allocation3 + $0x61] sm:$0xff] %v15336_v34  ;;  %v7272_v18 = vadd.f32 %v7264_v14, %v7239_v48  ;;  %v7156_v1 = vsub.f32 1.0, %v7155_v52  ;;  %v7321_v26 = vadd.f32 %v7313_v42, %v7296_v13  ;;  %v7388_v10 = vmul.f32 %v15280_v29, %v7230_v63  ;;  %vm7161_vm13 = vmor %vm7159_vm11, %vm7160_vm14 }
 0xaf3   : > { %9837 = vrcp.f32 %v15351_v20  ;;  %v7166_v39 = vor.u32 1.1754944e-38, %v7165_v12  ;;  %v7393_v48 = vadd.f32 %v7385_v60, %v15294_v28  ;;  %v7394_v45 = vadd.f32 %v7386_v6, %v7368_v62 }
 0xaf4   : > { %v7157_v5 = vmul.f32 %v9834_v27, %v7156_v1  ;;  %v7265_v61 = vmul.f32 %v15178_v0, %v15336_v34  ;;  %v7297_v42 = vadd.f32 %v7289_v37, %v7272_v18  ;;  %v7369_v36 = vadd.f32 %v7361_v30, %v15238_v31 }
 0xaf5   : > { %v7339_v4 = vmul.f32 %v15204_v16, %v15336_v34  ;;  %v7346_v14 = vadd.f32 %v7338_v38, %v7321_v26  ;;  %v7370_v52 = vadd.f32 %v7362_v7, %v7345_v50  ;;  %v7418_v63 = vadd.f32 %v15307_v23, %v7393_v48 }
 0xaf6   : > { %v7158_v33 = vadd.f32 %v9834_v27, %v7157_v5  ;;  %v7363_v60 = vmul.f32 %v15263_v22, %v15347_v35  ;;  %v7395_v6 = vadd.f32 %v7387_v2, %v7369_v36  ;;  %v7419_v49 = vadd.f32 %v15321_v57, %v7394_v45  ;;  %v15390_v57 = vld [vmem:[%s16437_s15 + $0x8] ss:$0 sm:$0xff]  ;;  %v15407_v45 = vld [vmem:[%s16441_s3] ss:$0 sm:$0xff]  ;;  %s16466_s3 = sld [smem:[#allocation25_spill]] }
 0xaf7   : > { %vm7174_vm15 = vweird.f32 %v15351_v20  ;;  %v7396_v55 = vadd.f32 %v7388_v10, %v7370_v52  ;;  %v7412_v7 = vmul.f32 %v15283_v15, %v15246_v51  ;;  %v7413_v38 = vmul.f32 %v15283_v15, %v15266_v17 }
 0xaf8   : > { %v7162_v62 = vsel %vm7161_vm13, %v9834_v27, %v7158_v33  ;;  %v7178_v27 = vand.u32 2147483647, %v15351_v20  ;;  %v7371_v2 = vadd.f32 %v7363_v60, %v7346_v14  ;;  %v7180_v26 = vand.u32 2147483648, %v15351_v20 }
 0xaf9   : > { %v7231_v28 = vld [vmem:[#allocation3 + $0x60] sm:$0xff]  ;;  %v9838_v31 = vpop.eup %9837  ;;  %v7167_v30 = vsel %vm15361_vm12, %v7166_v39, %v7162_v62  ;;  %v7414_v51 = vmul.f32 %v15283_v15, %v15336_v34  ;;  %v7420_v50 = vadd.f32 %v7412_v7, %v7395_v6  ;;  %v7421_v40 = vadd.f32 %v7413_v38, %v7396_v55 }
 0xafa   : > { %v7314_v53 = vmul.f32 %v15199_v41, %v7231_v28  ;;  %v15383_v13 = vmul.f32 %v7167_v30, %v15252_v8  ;;  %v7170_v23 = vmul.f32 %v9838_v31, %v15351_v20  ;;  %v7240_v12 = vmul.f32 %v15175_v3, %v7231_v28  ;;  %v7281_v8 = vld [vmem:[#allocation3 + $0x62] sm:$0xff] }
 0xafb   : > { %v7389_v18 = vmul.f32 %v15280_v29, %v7231_v28  ;;  %vm7175_vm0 = vweird.f32 %v9838_v31  ;;  %v7435_v10 = vmul.f32 %v15390_v57, %v15224_v54  ;;  %v7436_v17 = vmul.f32 %v15390_v57, %v15288_v19 }
 0xafc   : > { %7223 = vst [vmem:[#allocation3 + $0x71] sm:$0xff] %v15383_v13  ;;  %v7171_v1 = vsub.f32 1.0, %v7170_v23  ;;  %v7322_v37 = vadd.f32 %v7314_v53, %v7297_v42  ;;  %v7437_v48 = vmul.f32 %v15390_v57, %v15323_v47  ;;  %v7273_v33 = vadd.f32 %v7265_v61, %v7240_v12  ;;  %vm7176_vm1 = vmor %vm7174_vm15, %vm7175_vm0 }
 0xafd   : > { %v7397_v5 = vadd.f32 %v7389_v18, %v7371_v2  ;;  %v7438_v34 = vmul.f32 %v15390_v57, %v15347_v35  ;;  %v7439_v42 = vmul.f32 %v15390_v57, %v7281_v8  ;;  %v7443_v52 = vadd.f32 %v7435_v10, %v7418_v63 }
 0xafe   : > { %v7172_v39 = vmul.f32 %v9838_v31, %v7171_v1  ;;  %v7444_v28 = vadd.f32 %v7436_v17, %v7419_v49  ;;  %v7445_v62 = vadd.f32 %v7437_v48, %v7420_v50  ;;  %vm7179_vm2 = vcmp.eq.f32.partialorder %v7178_v27, 8.507059e+37 }
 0xaff   : > { %v7422_v36 = vadd.f32 %v7414_v51, %v7397_v5  ;;  %v7181_v54 = vor.u32 1.1754944e-38, %v7180_v26  ;;  %v7347_v19 = vadd.f32 %v7339_v4, %v7322_v37  ;;  %v7446_v47 = vadd.f32 %v7438_v34, %v7421_v40 }
 0xb00   : > { %v7173_v14 = vadd.f32 %v9838_v31, %v7172_v39  ;;  %v7290_v61 = vmul.f32 %v15194_v32, %v7281_v8  ;;  %v15417_v35 = vadd.f32 %v15407_v45, %v7443_v52  ;;  %v7364_v63 = vmul.f32 %v15263_v22, %v7281_v8 }
 0xb01   : > { %v7447_v6 = vadd.f32 %v7439_v42, %v7422_v36  ;;  %v15421_v49 = vadd.f32 %v15407_v45, %v7444_v28  ;;  %v15424_v20 = vadd.f32 %v15407_v45, %v7445_v62  ;;  %v7266_v18 = vmul.f32 %v15178_v0, %v15383_v13 }
 0xb02   : > { %v7177_v60 = vsel %vm7176_vm1, %v9838_v31, %v7173_v14  ;;  %v7298_v55 = vadd.f32 %v7290_v61, %v7273_v33  ;;  %v15429_v31 = vadd.f32 %v15407_v45, %v7446_v47  ;;  %v7372_v7 = vadd.f32 %v7364_v63, %v7347_v19 }
 0xb03   : > { %v7232_v53 = vld [vmem:[#allocation3 + $0x70] sm:$0xff]  ;;  %v7182_v30 = vsel %vm7179_vm2, %v7181_v54, %v7177_v60  ;;  %v8876_v2 = vmul.f32 -1.442695, %v15417_v35  ;;  %v15439_v1 = vadd.f32 %v15407_v45, %v7447_v6  ;;  %v8878_v51 = vmul.f32 -1.442695, %v15424_v20 }
 0xb04   : > { %v7191_v4 = vmul.f32 %v7182_v30, %v15275_v58  ;;  %v7315_v23 = vmul.f32 %v15199_v41, %v7232_v53  ;;  %v7241_v27 = vmul.f32 %v15175_v3, %v7232_v53  ;;  %v7390_v12 = vmul.f32 %v15280_v29, %v7232_v53  ;;  %v7282_v38 = vld [vmem:[#allocation3 + $0x72] sm:$0xff] }
 0xb05   : > { %v7415_v58 = vmul.f32 %v15283_v15, %v15383_v13  ;;  %9839 = vpow2.f32 %v8876_v2  ;;  %v8877_v3 = vmul.f32 -1.442695, %v15421_v49  ;;  %v7340_v50 = vmul.f32 %v15204_v16, %v15383_v13 }
 0xb06   : > { %7224 = vst [vmem:[#allocation3 + $0x81] sm:$0xff] %v7191_v4  ;;  %v7323_v8 = vadd.f32 %v7315_v23, %v7298_v55  ;;  %v7398_v26 = vadd.f32 %v7390_v12, %v7372_v7  ;;  %v8879_v0 = vmul.f32 -1.442695, %v15429_v31  ;;  %v7274_v37 = vadd.f32 %v7266_v18, %v7241_v27  ;;  %v7408_v23 = vld [vmem:[#allocation3 + $0x91] sm:$0xff] }
 0xb07   : > { %v7440_v40 = vmul.f32 %v15390_v57, %v7282_v38  ;;  %9841 = vpow2.f32 %v8877_v3  ;;  %v8880_v10 = vmul.f32 -1.442695, %v15439_v1  ;;  %v7291_v17 = vmul.f32 %v15194_v32, %v7282_v38  ;;  %v7433_v12 = vld [vmem:[#allocation3 + $0x92] sm:$0xff] }
 0xb08   : > { %v7423_v5 = vadd.f32 %v7415_v58, %v7398_v26  ;;  %v7348_v39 = vadd.f32 %v7340_v50, %v7323_v8  ;;  %9843 = vpow2.f32 %v8878_v51  ;;  %v7365_v33 = vmul.f32 %v15263_v22, %v7282_v38 }
 0xb09   : > { %9845 = vpow2.f32 %v8879_v0  ;;  %v7299_v34 = vadd.f32 %v7291_v17, %v7274_v37  ;;  %v7341_v32 = vmul.f32 %v15204_v16, %v7191_v4  ;;  %v7416_v19 = vmul.f32 %v15283_v15, %v7191_v4 }
 0xb0a   : > { %v7448_v48 = vadd.f32 %v7440_v40, %v7423_v5  ;;  %v7373_v28 = vadd.f32 %v7365_v33, %v7348_v39  ;;  %9847 = vpow2.f32 %v8880_v10  ;;  %v7392_v55 = vmul.f32 %v15240_v46, %v15280_v29 }
 0xb0b   : > { %v9840_v36 = vpop.eup %9839 }
 0xb0c   : > { %v15451_v42 = vadd.f32 %v15407_v45, %v7448_v48  ;;  %v15457_v47 = vadd.f32 1.0, %v9840_v36 }
 0xb0d   : > { %v7307_v13 = vld [vmem:[#allocation3 + $0x80] sm:$0xff]  ;;  %v9842_v54 = vpop.eup %9841 }
 0xb0e   : > { %v7316_v14 = vmul.f32 %v15199_v41, %v7307_v13  ;;  %v7357_v52 = vld [vmem:[#allocation3 + $0x82] sm:$0xff]  ;;  %v7391_v62 = vmul.f32 %v15280_v29, %v7307_v13  ;;  %v9844_v61 = vpop.eup %9843  ;;  %v8881_v53 = vmul.f32 -1.442695, %v15451_v42  ;;  %v15460_v30 = vadd.f32 1.0, %v9842_v54 }
 0xb0f   : > { %v9846_v41 = vpop.eup %9845  ;;  %v7366_v63 = vmul.f32 %v15263_v22, %v7357_v52  ;;  %v15465_v27 = vadd.f32 1.0, %v9844_v61  ;;  %v7441_v7 = vmul.f32 %v15390_v57, %v7357_v52  ;;  %9849 = vrcp.f32 %v15457_v47 }
 0xb10   : > { %v7324_v60 = vadd.f32 %v7316_v14, %v7299_v34  ;;  %v7399_v6 = vadd.f32 %v7391_v62, %v7373_v28  ;;  %v15469_v2 = vadd.f32 1.0, %v9846_v41  ;;  %9851 = vrcp.f32 %v15460_v30  ;;  %v9848_v18 = vpop.eup %9847 }
 0xb11   : > { %v7417_v22 = vmul.f32 %v15283_v15, %v7408_v23  ;;  %9853 = vpow2.f32 %v8881_v53  ;;  %v7442_v29 = vmul.f32 %v15390_v57, %v7433_v12  ;;  %v15478_v26 = vadd.f32 1.0, %v9848_v18 }
 0xb12   : > { %v7349_v16 = vadd.f32 %v7341_v32, %v7324_v60  ;;  %v7424_v4 = vadd.f32 %v7416_v19, %v7399_v6  ;;  %9855 = vrcp.f32 %v15465_v27  ;;  %v7505_v37 = vand.u32 2147483648, %v15457_v47 }
 0xb13   : > { %9857 = vrcp.f32 %v15469_v2  ;;  %v7503_v17 = vand.u32 2147483647, %v15457_v47  ;;  %v7518_v48 = vand.u32 2147483647, %v15460_v30  ;;  %vm7499_vm3 = vweird.f32 %v15457_v47 }
 0xb14   : > { %v7374_v38 = vadd.f32 %v7366_v63, %v7349_v16  ;;  %v7449_v8 = vadd.f32 %v7441_v7, %v7424_v4  ;;  %vm7514_vm4 = vweird.f32 %v15460_v30  ;;  %v15507_v52 = vor.u32 1.1754944e-38, %v7505_v37  ;;  %v9145_v7 = vld [vmem:[%s16438_s5 + $0x8] sm:$0xff] }
 0xb15   : > { %v15481_v3 = vpop.eup %9849  ;;  %v7520_v28 = vand.u32 2147483648, %v15460_v30  ;;  %vm7529_vm5 = vweird.f32 %v15465_v27  ;;  %vm15517_vm10 = vcmp.eq.f32.partialorder %v7518_v48, 8.507059e+37  ;;  %v7533_v60 = vand.u32 2147483647, %v15465_v27 }
 0xb16   : > { %v7400_v46 = vadd.f32 %v7392_v55, %v7374_v38  ;;  %v15476_v58 = vadd.f32 %v15407_v45, %v7449_v8  ;;  %v15484_v15 = vpop.eup %9851  ;;  %v7495_v0 = vmul.f32 %v15481_v3, %v15457_v47  ;;  %v7535_v4 = vand.u32 2147483648, %v15465_v27 }
 0xb17   : > { %v9854_v57 = vpop.eup %9853  ;;  %v7510_v40 = vmul.f32 %v15484_v15, %v15460_v30  ;;  %vm7515_vm6 = vweird.f32 %v15484_v15  ;;  %v7521_v16 = vor.u32 1.1754944e-38, %v7520_v28  ;;  %vm7500_vm7 = vweird.f32 %v15481_v3 }
 0xb18   : > { %v7425_v51 = vadd.f32 %v7417_v22, %v7400_v46  ;;  %v8882_v50 = vmul.f32 -1.442695, %v15476_v58  ;;  %v15491_v39 = vpop.eup %9855  ;;  %v7496_v10 = vsub.f32 1.0, %v7495_v0  ;;  %v15505_v14 = vadd.f32 1.0, %v9854_v57  ;;  %vm15543_vm9 = vmor %vm7514_vm4, %vm7515_vm6  ;;  %v9148_v0 = vld [vmem:[%s16438_s5 + $0x20] sm:$0xff] }
 0xb19   : > { %v7511_v36 = vsub.f32 1.0, %v7510_v40  ;;  %v7525_v34 = vmul.f32 %v15491_v39, %v15465_v27  ;;  %v15503_v13 = vpop.eup %9857  ;;  %vm15531_vm8 = vcmp.eq.f32.partialorder %v7503_v17, 8.507059e+37  ;;  %v7548_v18 = vand.u32 2147483647, %v15469_v2  ;;  %vm15559_vm13 = vmor %vm7499_vm3, %vm7500_vm7 }
 0xb1a   : > { %v7450_v5 = vadd.f32 %v7442_v29, %v7425_v51  ;;  %9859 = vpow2.f32 %v8882_v50  ;;  %v7540_v32 = vmul.f32 %v15503_v13, %v15469_v2  ;;  %v7497_v19 = vmul.f32 %v15481_v3, %v7496_v10 }
 0xb1b   : > { %9861 = vrcp.f32 %v15478_v26  ;;  %v7512_v62 = vmul.f32 %v15484_v15, %v7511_v36  ;;  %v7526_v54 = vsub.f32 1.0, %v7525_v34  ;;  %v7550_v38 = vand.u32 2147483648, %v15469_v2 }
 0xb1c   : > { %v15497_v33 = vadd.f32 %v15407_v45, %v7450_v5  ;;  %v7541_v63 = vsub.f32 1.0, %v7540_v32  ;;  %v7498_v22 = vadd.f32 %v15481_v3, %v7497_v19  ;;  %vm7530_vm11 = vweird.f32 %v15491_v39 }
 0xb1d   : > { %v7513_v53 = vadd.f32 %v15484_v15, %v7512_v62  ;;  %v7527_v41 = vmul.f32 %v15491_v39, %v7526_v54  ;;  %vm7544_vm14 = vweird.f32 %v15469_v2  ;;  %vm7545_vm12 = vweird.f32 %v15503_v13  ;;  %vm15570_vm0 = vmor %vm7529_vm5, %vm7530_vm11 }
 0xb1e   : > { %v8883_v45 = vmul.f32 -1.442695, %v15497_v33  ;;  %v7542_v12 = vmul.f32 %v15503_v13, %v7541_v63  ;;  %vm15563_vm15 = vcmp.eq.f32.partialorder %v7533_v60, 8.507059e+37  ;;  %v7536_v37 = vor.u32 1.1754944e-38, %v7535_v4  ;;  %vm15591_vm2 = vmor %vm7544_vm14, %vm7545_vm12 }
 0xb1f   : > { %v7517_v29 = vsel %vm15543_vm9, %v15484_v15, %v7513_v53  ;;  %v7528_v51 = vadd.f32 %v15491_v39, %v7527_v41  ;;  %vm15574_vm1 = vcmp.eq.f32.partialorder %v7548_v18, 8.507059e+37  ;;  %v7551_v40 = vor.u32 1.1754944e-38, %v7550_v38 }
 0xb20   : > { %v9860_v6 = vpop.eup %9859  ;;  %9863 = vpow2.f32 %v8883_v45  ;;  %v7543_v50 = vadd.f32 %v15503_v13, %v7542_v12  ;;  %v7563_v10 = vand.u32 2147483647, %v15478_v26  ;;  %v7565_v17 = vand.u32 2147483648, %v15478_v26 }
 0xb21   : > { %v15524_v55 = vpop.eup %9861  ;;  %v15526_v23 = vadd.f32 1.0, %v9860_v6  ;;  %9865 = vrcp.f32 %v15505_v14  ;;  %v7502_v27 = vsel %vm15559_vm13, %v15481_v3, %v7498_v22  ;;  %v7522_v34 = vsel %vm15517_vm10, %v7521_v16, %v7517_v29 }
 0xb22   : > { %v7555_v46 = vmul.f32 %v15524_v55, %v15478_v26  ;;  %v7532_v62 = vsel %vm15570_vm0, %v15491_v39, %v7528_v51  ;;  %v7547_v3 = vsel %vm15591_vm2, %v15503_v13, %v7543_v50  ;;  %vm7560_vm3 = vweird.f32 %v15524_v55 }
 0xb23   : > { %9867 = vrcp.f32 %v15526_v23  ;;  %v7578_v32 = vand.u32 2147483647, %v15505_v14  ;;  %v7580_v19 = vand.u32 2147483648, %v15505_v14  ;;  %vm7559_vm4 = vweird.f32 %v15478_v26 }
 0xb24   : > { %v7556_v57 = vsub.f32 1.0, %v7555_v46  ;;  %vm15609_vm5 = vcmp.eq.f32.partialorder %v7563_v10, 8.507059e+37  ;;  %v7566_v61 = vor.u32 1.1754944e-38, %v7565_v17  ;;  %v7507_v6 = vsel %vm15531_vm8, %v15507_v52, %v7502_v27  ;;  %vm15620_vm6 = vmor %vm7559_vm4, %vm7560_vm3 }
 0xb25   : > { %v7537_v53 = vsel %vm15563_vm15, %v7536_v37, %v7532_v62  ;;  %v7552_v41 = vsel %vm15574_vm1, %v7551_v40, %v7547_v3  ;;  %v15629_v52 = vmul.f32 %v7522_v34, %v15421_v49  ;;  %vm7574_vm7 = vweird.f32 %v15505_v14  ;;  %v9149_v49 = vld [vmem:[%s16438_s5 + $0x28] sm:$0xff] }
 0xb26   : > { %v9864_v15 = vpop.eup %9863  ;;  %v7557_v45 = vmul.f32 %v15524_v55, %v7556_v57  ;;  %vm15632_vm8 = vcmp.eq.f32.partialorder %v7578_v32, 8.507059e+37  ;;  %v7581_v12 = vor.u32 1.1754944e-38, %v7580_v19  ;;  %v7593_v18 = vand.u32 2147483647, %v15526_v23  ;;  %7803 = vmatpush.bf16.msrb.mxu1 %v9149_v49  ;;  %v9146_v32 = vld [vmem:[%s16438_s5 + $0x10] sm:$0xff] }
 0xb27   : > { %v9866_v48 = vpop.eup %9865  ;;  %v15580_v36 = vadd.f32 1.0, %v9864_v15  ;;  %v15641_v8 = vmul.f32 %v7537_v53, %v15424_v20  ;;  %v7595_v29 = vand.u32 2147483648, %v15526_v23  ;;  %v15649_v51 = vmul.f32 %v7552_v41, %v15429_v31 }
 0xb28   : > { %v7570_v54 = vmul.f32 %v9866_v48, %v15505_v14  ;;  %v7558_v2 = vadd.f32 %v15524_v55, %v7557_v45  ;;  %vm7575_vm10 = vweird.f32 %v9866_v48  ;;  %vm7589_vm14 = vweird.f32 %v15526_v23 }
 0xb29   : > { %9869 = vrcp.f32 %v15580_v36  ;;  %v9868_v60 = vpop.eup %9867  ;;  %vm7576_vm9 = vmor %vm7574_vm7, %vm7575_vm10  ;;  %vm15658_vm12 = vcmp.eq.f32.partialorder %v7593_v18, 8.507059e+37  ;;  %v7596_v40 = vor.u32 1.1754944e-38, %v7595_v29  ;;  %v7608_v10 = vand.u32 2147483647, %v15580_v36  ;;  %v9144_v18 = vld [vmem:[%s16438_s5] sm:$0xff] }
 0xb2a   : > { %v7571_v13 = vsub.f32 1.0, %v7570_v54  ;;  %v7562_v63 = vsel %vm15620_vm6, %v15524_v55, %v7558_v2  ;;  %v7585_v4 = vmul.f32 %v9868_v60, %v15526_v23  ;;  %v15638_v55 = vmul.f32 %v7507_v6, %v15417_v35  ;;  %7804 = vmatpush.bf16.msrb.mxu1 %v9148_v0 }
 0xb2b   : > { %v7567_v14 = vsel %vm15609_vm5, %v7566_v61, %v7562_v63  ;;  %vm7590_vm11 = vweird.f32 %v9868_v60  ;;  %v7610_v23 = vand.u32 2147483648, %v15580_v36  ;;  %vm7604_vm0 = vweird.f32 %v15580_v36 }
 0xb2c   : > { %v7572_v16 = vmul.f32 %v9866_v48, %v7571_v13  ;;  %v7586_v22 = vsub.f32 1.0, %v7585_v4  ;;  %v7656_v20 = vadd.f32 %v15629_v52, %v15638_v55  ;;  %v15663_v5 = vmul.f32 %v7567_v14, %v15439_v1  ;;  %vm7591_vm13 = vmor %vm7589_vm14, %vm7590_vm11  ;;  %v9147_v1 = vld [vmem:[%s16438_s5 + $0x18] sm:$0xff] }
 0xb2d   : > { %v7611_v54 = vor.u32 1.1754944e-38, %v7610_v23  ;;  %vm7609_vm2 = vcmp.eq.f32.partialorder %v7608_v10, 8.507059e+37 }
 0xb2e   : > { %v7573_v38 = vadd.f32 %v9866_v48, %v7572_v16  ;;  %v7587_v30 = vmul.f32 %v9868_v60, %v7586_v22  ;;  %v7657_v47 = vadd.f32 %v7656_v20, %v15641_v8  ;;  %7805 = vmatpush.bf16.msrb.mxu1 %v9147_v1  ;;  %v7638_v16 = vld [vmem:[%s16466_s3] sm:$0x1]  ;;  %s16470_s3 = sld [smem:[#allocation29_spill]] }
 0xb2f   : > { %v9870_v46 = vpop.eup %9869 }
 0xb30   : > { %v7577_v50 = vsel %vm7576_vm9, %v9866_v48, %v7573_v38  ;;  %v7600_v35 = vmul.f32 %v9870_v46, %v15580_v36  ;;  %v7588_v31 = vadd.f32 %v9868_v60, %v7587_v30  ;;  %vm7605_vm15 = vweird.f32 %v9870_v46 }
 0xb31   : > { %v7582_v37 = vsel %vm15632_vm8, %v7581_v12, %v7577_v50  ;;  %v7658_v34 = vadd.f32 %v7657_v47, %v15649_v51  ;;  %vm7606_vm1 = vmor %vm7604_vm0, %vm7605_vm15  ;;  %v7655_v47 = vld [vmem:[%s16467_s6] sm:$0x1]  ;;  %s16469_s6 = sld [smem:[#allocation30_spill]] }
 0xb32   : > { %v7601_v15 = vsub.f32 1.0, %v7600_v35  ;;  %v7592_v17 = vsel %vm7591_vm13, %v9868_v60, %v7588_v31  ;;  %v15670_v27 = vmul.f32 %v7582_v37, %v15451_v42  ;;  %7806 = vmatpush.bf16.msrb.mxu1 %v9146_v32 }
 0xb33   : > { %v7597_v28 = vsel %vm15658_vm12, %v7596_v40, %v7592_v17  ;;  %v7659_v3 = vadd.f32 %v7658_v34, %v15663_v5  ;;  %v9159_v40 = vld [vmem:[%s16468_s8 + $0x38] sm:$0xff]  ;;  %v9158_v17 = vld [vmem:[%s16468_s8 + $0x30] sm:$0xff]  ;;  %v9157_v34 = vld [vmem:[%s16468_s8 + $0x28] sm:$0xff] }
 0xb34   : > { %v7602_v48 = vmul.f32 %v9870_v46, %v7601_v15  ;;  %v15678_v62 = vmul.f32 %v7597_v28, %v15476_v58  ;;  %7914 = vmatpush.bf16.msrb.mxu2 %v9159_v40  ;;  %v9156_v28 = vld [vmem:[%s16468_s8 + $0x20] sm:$0xff] }
 0xb35   : > { %v7660_v42 = vadd.f32 %v7659_v3, %v15670_v27 }
 0xb36   : > { %v7603_v45 = vadd.f32 %v9870_v46, %v7602_v48  ;;  %7807 = vmatpush.bf16.msrb.mxu1 %v9145_v7 }
 0xb37   : > { %v7661_v36 = vadd.f32 %v7660_v42, %v15678_v62 }
 0xb38   : > { %v7607_v2 = vsel %vm7606_vm1, %v9870_v46, %v7603_v45  ;;  %7915 = vmatpush.bf16.msrb.mxu2 %v9158_v17 }
 0xb39   : > { %v7612_v19 = vsel %vm7609_vm2, %v7611_v54, %v7607_v2  ;;  %v9155_v54 = vld [vmem:[%s16468_s8 + $0x18] sm:$0xff]  ;;  %v9154_v2 = vld [vmem:[%s16468_s8 + $0x10] sm:$0xff] }
 0xb3a   : > { %v15684_v39 = vmul.f32 %v7612_v19, %v15497_v33  ;;  %7808 = vmatpush.bf16.msrb.mxu1 %v9144_v18  ;;  %v9153_v19 = vld [vmem:[%s16468_s8 + $0x8] sm:$0xff] }
 0xb3c   : > { %v7662_v58 = vadd.f32 %v7661_v36, %v15684_v39  ;;  %7916 = vmatpush.bf16.msrb.mxu2 %v9157_v34 }
 0xb3e   : > { %v7663_v61 = vrot.slane %v7662_v58, 4 }
 0xb40   : > { %v7664_v13 = vadd.f32 %v7663_v61, %v7662_v58  ;;  %7917 = vmatpush.bf16.msrb.mxu2 %v9156_v28 }
 0xb42   : > { %v7665_v60 = vrot.slane %v7664_v13, 2 }
 0xb44   : > { %v7666_v6 = vadd.f32 %v7665_v60, %v7664_v13  ;;  %7918 = vmatpush.bf16.msrb.mxu2 %v9155_v54  ;;  %v9152_v60 = vld [vmem:[%s16468_s8] sm:$0xff] }
 0xb46   : > { %v7667_v53 = vrot.slane %v7666_v6, 1 }
 0xb48   : > { %v7668_v41 = vadd.f32 %v7667_v53, %v7666_v6  ;;  %7919 = vmatpush.bf16.msrb.mxu2 %v9154_v2 }
 0xb4a   : > { %v7669_v26 = vmul.f32 %v7668_v41, %v15092_v44 }
 0xb4c   : > { %v7670_v63 = vpack.c.bf16 %v7669_v26, %v7669_v26  ;;  %7920 = vmatpush.bf16.msrb.mxu2 %v9153_v19 }
 0xb4e   : > { %7727 = vmatmul.bf16.vlgmr.msrb.gmra.mxu3 %v7670_v63 }
 0xb50   : > { %7921 = vmatpush.bf16.msrb.mxu2 %v9152_v60 }
 0xbd1   : > { %v7728_v33 = vpop.f32.mrf.mxu3 }
 0xbd2   : > { %v7729_v4 = vadd.f32 %v7728_v33, %v7638_v16 }
 0xbd4   : > { %v8916_v12 = vmul.f32 -1.442695, %v7729_v4 }
 0xbd6   : > { %9871 = vpow2.f32 %v8916_v12 }
 0xbd9   : > { %v7730_v38 = vpop.f32.mrf.mxu3 }
 0xbda   : > { %v9167_v38 = vld [vmem:[%s16469_s6 + $0x38] sm:$0xff] }
 0xbdb   : > { %8023 = vmatpush.bf16.msra.mxu2 %v9167_v38  ;;  %9176 = vmatpush.bf16.msra.mxu3 %v9167_v38 }
 0xbdc   : > { %v9872_v22 = vpop.eup %9871 }
 0xbdd   : > { %v7735_v49 = vadd.f32 1.0, %v9872_v22  ;;  %v9166_v22 = vld [vmem:[%s16469_s6 + $0x30] sm:$0xff] }
 0xbdf   : > { %9873 = vrcp.f32 %v7735_v49  ;;  %v7747_v50 = vand.u32 2147483648, %v7735_v49  ;;  %v7745_v35 = vand.u32 2147483647, %v7735_v49  ;;  %vm7741_vm4 = vweird.f32 %v7735_v49  ;;  %8024 = vmatpush.bf16.msra.mxu2 %v9166_v22  ;;  %9177 = vmatpush.bf16.msra.mxu3 %v9166_v22 }
 0xbe1   : > { %v7748_v0 = vor.u32 1.1754944e-38, %v7747_v50  ;;  %vm7746_vm6 = vcmp.eq.f32.partialorder %v7745_v35, 8.507059e+37  ;;  %v9163_v50 = vld [vmem:[%s16469_s6 + $0x18] sm:$0xff] }
 0xbe5   : > { %v9874_v46 = vpop.eup %9873 }
 0xbe6   : > { %v7737_v14 = vmul.f32 %v9874_v46, %v7735_v49  ;;  %vm7742_vm3 = vweird.f32 %v9874_v46  ;;  %v9165_v49 = vld [vmem:[%s16469_s6 + $0x28] sm:$0xff] }
 0xbe7   : > { %vm7743_vm5 = vmor %vm7741_vm4, %vm7742_vm3  ;;  %8025 = vmatpush.bf16.msra.mxu2 %v9165_v49  ;;  %9178 = vmatpush.bf16.msra.mxu3 %v9165_v49 }
 0xbe8   : > { %v7738_v29 = vsub.f32 1.0, %v7737_v14 }
 0xbea   : > { %v7739_v30 = vmul.f32 %v9874_v46, %v7738_v29 }
 0xbec   : > { %v7740_v20 = vadd.f32 %v9874_v46, %v7739_v30  ;;  %v9160_v30 = vld [vmem:[%s16469_s6] sm:$0xff] }
 0xbee   : > { %v7744_v37 = vsel %vm7743_vm5, %v9874_v46, %v7740_v20  ;;  %v9164_v46 = vld [vmem:[%s16469_s6 + $0x20] sm:$0xff] }
 0xbef   : > { %v7749_v57 = vsel %vm7746_vm6, %v7748_v0, %v7744_v37  ;;  %8026 = vmatpush.bf16.msra.mxu2 %v9164_v46  ;;  %9179 = vmatpush.bf16.msra.mxu3 %v9164_v46  ;;  %v9273_v20 = vld [vmem:[%s16470_s3] ss:$0 sm:$0xff]  ;;  %s1090_s3 = sand.u32 1, %s10026_s1  }
 0xbf0   : > { %v7751_v31 = vmul.f32 %v7749_v57, %v7729_v4  ;;  %s1091_s5 = scalar_lea.vmem [#allocation4], %s1090_s3 }
 0xbf2   : > { %v7752_v15 = vpack.c.bf16 %v7751_v31, %v7751_v31 }
 0xbf3   : > { %8027 = vmatpush.bf16.msra.mxu2 %v9163_v50  ;;  %9180 = vmatpush.bf16.msra.mxu3 %v9163_v50 }
 0xbf4   : > { %7809 = vmatmul.bf16.vlgmr.msrb.gmra.mxu1 %v7752_v15 }
 0xc71   : > { %v7810_v10 = vpop.f32.mrf.mxu1 }
 0xc72   : > { %v7811_v23 = vadd.f32 %v7810_v10, %v7655_v47 }
 0xc74   : > { %v8949_v48 = vmul.f32 -1.442695, %v7811_v23 }
 0xc76   : > { %9875 = vpow2.f32 %v8949_v48 }
 0xc79   : > { %v7812_v1 = vpop.f32.mrf.mxu1 }
 0xc7c   : > { %v9876_v45 = vpop.eup %9875 }
 0xc7d   : > { %v7817_v3 = vadd.f32 1.0, %v9876_v45 }
 0xc7f   : > { %9877 = vrcp.f32 %v7817_v3  ;;  %v7829_v58 = vand.u32 2147483648, %v7817_v3  ;;  %v7827_v13 = vand.u32 2147483647, %v7817_v3  ;;  %vm7823_vm7 = vweird.f32 %v7817_v3 }
 0xc81   : > { %v7830_v53 = vor.u32 1.1754944e-38, %v7829_v58  ;;  %vm7828_vm9 = vcmp.eq.f32.partialorder %v7827_v13, 8.507059e+37  ;;  %v15727_v58 = vld [vmem:[%s16471_s4] ss:$0 sm:$0xff]  ;;  %s8315_s4 = scalar_lea.hbm %s10263_s27, %s10286_s0  ;;  %s9992_s0 = scalar_lea.hbm %s10263_s27, 2 }
 0xc82   : > { %s8319_s8 = sshll.u32 %s8315_s4, 4  ;;  %s8320_s8 = int_to_ptr.hbm [resolvable:$true] %s8319_s8 }
 0xc83   : > { %s9986_s10 = sshra.s32 %s8320_s8, 4  ;;  %s9987_s10 = int_to_ptr.hbm [resolvable:$true] %s9986_s10 }
 0xc84   : > { %s9988_s12 = scalar_lea.hbm %s9987_s10, 1  ;;  %p9993_p0 = scmp.lt.s32.totalorder %s9987_s10, %s10263_s27 }
 0xc85   : > { %v9878_v42 = vpop.eup %9877  ;;  %p9989_p11 = scmp.ne.s32.totalorder %s9987_s10, %s9988_s12  ;;  %p9994_p1 = scmp.lt.s32.totalorder %s9992_s0, %s9988_s12 }
 0xc86   : > { %v7819_v32 = vmul.f32 %v9878_v42, %v7817_v3  ;;  %vm7824_vm10 = vweird.f32 %v9878_v42 }
 0xc87   : > { %vm7825_vm8 = vmor %vm7823_vm7, %vm7824_vm10  ;;  %p9990_p12 = pnand %p9989_p11, %p10303_p5  ;;  %p9995_p2 = por %p9994_p1, %p9993_p0 }
 0xc88   : > { %v7820_v36 = vsub.f32 1.0, %v7819_v32 }
 0xc89   : > { %p9991_p13 = pneg %p9990_p12 }
 0xc8a   : > { %v7821_v61 = vmul.f32 %v9878_v42, %v7820_v36 }
 0xc8b   : > { %p9996_p3 = pnand %p9995_p2, %p9991_p13 }
 0xc8c   : > { %v7822_v6 = vadd.f32 %v9878_v42, %v7821_v61 }
 0xc8e   : > { %v7826_v41 = vsel %vm7825_vm8, %v9878_v42, %v7822_v6 }
 0xc8f   : > { %v7831_v26 = vsel %vm7828_vm9, %v7830_v53, %v7826_v41 }
 0xc90   : > { %v7833_v63 = vperm.slane %v7831_v26, 0 }
 0xc92   : > { %v7834_v16 = vmul.f32 %v7833_v63, %v15638_v55  ;;  %v7835_v33 = vmul.f32 %v7833_v63, %v15629_v52  ;;  %v7836_v7 = vmul.f32 %v7833_v63, %v15641_v8  ;;  %v7837_v12 = vmul.f32 %v7833_v63, %v15649_v51 }
 0xc93   : > { %v7838_v52 = vmul.f32 %v7833_v63, %v15663_v5  ;;  %v7839_v55 = vmul.f32 %v7833_v63, %v15670_v27  ;;  %v7840_v51 = vmul.f32 %v7833_v63, %v15678_v62  ;;  %v7841_v14 = vmul.f32 %v7833_v63, %v15684_v39  ;;  %v9162_v5 = vld [vmem:[%s16469_s6 + $0x10] sm:$0xff]  ;;  %v9161_v27 = vld [vmem:[%s16469_s6 + $0x8] sm:$0xff]  ;;  %s8317_s6 = sshll.u32 %s1091_s5, 4  ;;  %s8318_s6 = int_to_ptr.vmem [resolvable:$true] %s8317_s6 }
 0xc94   : > { %v7859_v4 = vpack.c.bf16 %v7835_v33, %v7834_v16  ;;  %v7860_v18 = vpack.c.bf16 %v7837_v12, %v7836_v7  ;;  %8028 = vmatpush.bf16.msra.mxu2 %v9162_v5  ;;  %9181 = vmatpush.bf16.msra.mxu3 %v9162_v5 }
 0xc95   : > { %v7861_v8 = vpack.c.bf16 %v7839_v55, %v7838_v52  ;;  %v7862_v29 = vpack.c.bf16 %v7841_v14, %v7840_v51 }
 0xc96   : > { %7922 = vmatmul.bf16.vlgmr.msrb.gmra.mxu2 %v7859_v4 }
 0xc98   : > { %8029 = vmatpush.bf16.msra.mxu2 %v9161_v27  ;;  %9182 = vmatpush.bf16.msra.mxu3 %v9161_v27 }
 0xc9c   : > { %8030 = vmatpush.bf16.msra.mxu2 %v9160_v30  ;;  %9183 = vmatpush.bf16.msra.mxu3 %v9160_v30 }
 0xca6   : > { %7927 = vmatmul.bf16.gmra.mxu2 %v7860_v18 }
 0xcb6   : > { %7932 = vmatmul.bf16.gmra.mxu2 %v7861_v8 }
 0xcc6   : > { %7937 = vmatmul.bf16.gmra.mxu2 %v7862_v29 }
 0xd19   : > { %v7923_v35 = vpop.f32.mrf.mxu2 }
 0xd1a   : > { %v7924_v62 = vadd.f32 %v9273_v20, %v7923_v35 }
 0xd1c   : > { %v7943_v37 = vadd.f32 %v7924_v62, %v15130_v43 }
 0xd21   : > { %v7925_v0 = vpop.f32.mrf.mxu2 }
 0xd22   : > { %v7926_v39 = vadd.f32 %v9273_v20, %v7925_v0 }
 0xd24   : > { %v7944_v57 = vadd.f32 %v7926_v39, %v15132_v11 }
 0xd26   : > { %v7968_v31 = vpack.c.bf16 %v7944_v57, %v7943_v37 }
 0xd28   : > { %8031 = vmatmul.bf16.vlgmr.msra.gmra.mxu2 %v7968_v31 }
 0xd29   : > { %v7928_v15 = vpop.f32.mrf.mxu2 }
 0xd2a   : > { %v7929_v47 = vadd.f32 %v9273_v20, %v7928_v15 }
 0xd2c   : > { %v7945_v23 = vadd.f32 %v7929_v47, %v15136_v21 }
 0xd31   : > { %v7930_v40 = vpop.f32.mrf.mxu2 }
 0xd32   : > { %v7931_v10 = vadd.f32 %v9273_v20, %v7930_v40 }
 0xd34   : > { %v7946_v17 = vadd.f32 %v7931_v10, %v15138_v25 }
 0xd36   : > { %v7969_v48 = vpack.c.bf16 %v7946_v17, %v7945_v23 }
 0xd38   : > { %8036 = vmatmul.bf16.vlgmr.msra.gmra.mxu3 %v7969_v48 }
 0xd39   : > { %v7933_v34 = vpop.f32.mrf.mxu2 }
 0xd3a   : > { %v7934_v1 = vadd.f32 %v9273_v20, %v7933_v34 }
 0xd3c   : > { %v7947_v43 = vadd.f32 %v7934_v1, %v15144_v56 }
 0xd41   : > { %v7935_v28 = vpop.f32.mrf.mxu2 }
 0xd42   : > { %v7936_v45 = vadd.f32 %v9273_v20, %v7935_v28 }
 0xd44   : > { %v7948_v11 = vadd.f32 %v7936_v45, %v15146_v59 }
 0xd46   : > { %v7970_v3 = vpack.c.bf16 %v7948_v11, %v7947_v43 }
 0xd48   : > { %8041 = vmatmul.bf16.gmra.mxu3 %v7970_v3 }
 0xd49   : > { %v7938_v54 = vpop.f32.mrf.mxu2 }
 0xd4a   : > { %v7939_v2 = vadd.f32 %v9273_v20, %v7938_v54 }
 0xd4c   : > { %v7949_v21 = vadd.f32 %v7939_v2, %v15150_v24 }
 0xd51   : > { %v7940_v42 = vpop.f32.mrf.mxu2 }
 0xd52   : > { %v7941_v32 = vadd.f32 %v9273_v20, %v7940_v42 }
 0xd54   : > { %v7950_v25 = vadd.f32 %v7941_v32, %v15152_v9 }
 0xd56   : > { %v7971_v19 = vpack.c.bf16 %v7950_v25, %v7949_v21 }
 0xd58   : > { %8046 = vmatmul.bf16.gmra.mxu3 %v7971_v19 }
 0xdab   : > { %v8032_v36 = vpop.f32.mrf.mxu2 }
 0xdac   : > { %v15730_v61 = vadd.f32 %v15727_v58, %v8032_v36 }
 0xdae   : > { %v9014_v13 = vmul.f32 -1.442695, %v15730_v61 }
 0xdb0   : > { %9879 = vpow2.f32 %v9014_v13 }
 0xdb3   : > { %v8034_v56 = vpop.f32.mrf.mxu2 }
 0xdb4   : > { %v15734_v60 = vadd.f32 %v15727_v58, %v8034_v56 }
 0xdb6   : > { %v9015_v9 = vmul.f32 -1.442695, %v15734_v60  ;;  %v9880_v26 = vpop.eup %9879 }
 0xdb7   : > { %v8076_v16 = vadd.f32 1.0, %v9880_v26 }
 0xdb8   : > { %9881 = vpow2.f32 %v9015_v9 }
 0xdb9   : > { %v8093_v23 = vand.u32 2147483647, %v8076_v16  ;;  %v8095_v17 = vand.u32 2147483648, %v8076_v16  ;;  %vm8089_vm14 = vweird.f32 %v8076_v16 }
 0xdbb   : > { %v8037_v59 = vpop.f32.mrf.mxu3  ;;  %vm15796_vm13 = vcmp.eq.f32.partialorder %v8093_v23, 8.507059e+37  ;;  %v8096_v2 = vor.u32 1.1754944e-38, %v8095_v17 }
 0xdbc   : > { %v15737_v24 = vadd.f32 %v15727_v58, %v8037_v59 }
 0xdbe   : > { %v9016_v53 = vmul.f32 -1.442695, %v15737_v24  ;;  %v9882_v33 = vpop.eup %9881 }
 0xdbf   : > { %v15748_v18 = vadd.f32 1.0, %v9882_v33 }
 0xdc0   : > { %9883 = vpow2.f32 %v9016_v53 }
 0xdc1   : > { %vm8104_vm15 = vweird.f32 %v15748_v18  ;;  %v8110_v53 = vand.u32 2147483648, %v15748_v18 }
 0xdc3   : > { %v8039_v6 = vpop.f32.mrf.mxu3 }
 0xdc4   : > { %v15742_v41 = vadd.f32 %v15727_v58, %v8039_v6 }
 0xdc6   : > { %v9017_v63 = vmul.f32 -1.442695, %v15742_v41  ;;  %v9884_v12 = vpop.eup %9883 }
 0xdc7   : > { %v15751_v49 = vadd.f32 1.0, %v9884_v12 }
 0xdc8   : > { %9885 = vpow2.f32 %v9017_v63 }
 0xdc9   : > { %9887 = vrcp.f32 %v8076_v16  ;;  %v8123_v26 = vand.u32 2147483647, %v15751_v49  ;;  %vm8119_vm3 = vweird.f32 %v15751_v49 }
 0xdcb   : > { %v8042_v4 = vpop.f32.mrf.mxu3  ;;  %vm15845_vm10 = vcmp.eq.f32.partialorder %v8123_v26, 8.507059e+37 }
 0xdcc   : > { %v15746_v7 = vadd.f32 %v15727_v58, %v8042_v4 }
 0xdce   : > { %v9018_v38 = vmul.f32 -1.442695, %v15746_v7  ;;  %v9886_v22 = vpop.eup %9885 }
 0xdcf   : > { %v9888_v52 = vpop.eup %9887  ;;  %v15754_v55 = vadd.f32 1.0, %v9886_v22 }
 0xdd0   : > { %9889 = vpow2.f32 %v9018_v38  ;;  %v8085_v14 = vmul.f32 %v9888_v52, %v8076_v16  ;;  %vm8090_vm11 = vweird.f32 %v9888_v52  ;;  %v8125_v16 = vand.u32 2147483648, %v15751_v49 }
 0xdd1   : > { %9891 = vrcp.f32 %v15748_v18  ;;  %vm15792_vm12 = vmor %vm8089_vm14, %vm8090_vm11  ;;  %v8138_v12 = vand.u32 2147483647, %v15754_v55  ;;  %v8140_v38 = vand.u32 2147483648, %v15754_v55  ;;  %vm8134_vm7 = vweird.f32 %v15754_v55 }
 0xdd2   : > { %9893 = vrcp.f32 %v15751_v49  ;;  %v8086_v27 = vsub.f32 1.0, %v8085_v14 }
 0xdd3   : > { %v8044_v46 = vpop.f32.mrf.mxu3  ;;  %9895 = vrcp.f32 %v15754_v55  ;;  %vm15858_vm9 = vcmp.eq.f32.partialorder %v8138_v12, 8.507059e+37 }
 0xdd4   : > { %v15757_v8 = vadd.f32 %v15727_v58, %v8044_v46  ;;  %v8087_v37 = vmul.f32 %v9888_v52, %v8086_v27  ;;  %v8126_v27 = vor.u32 1.1754944e-38, %v8125_v16 }
 0xdd6   : > { %v9890_v51 = vpop.eup %9889  ;;  %v9019_v29 = vmul.f32 -1.442695, %v15757_v8  ;;  %v8088_v48 = vadd.f32 %v9888_v52, %v8087_v37 }
 0xdd7   : > { %v15762_v50 = vadd.f32 1.0, %v9890_v51  ;;  %v15764_v5 = vpop.eup %9891  ;;  %v8111_v51 = vor.u32 1.1754944e-38, %v8110_v53 }
 0xdd8   : > { %9897 = vpow2.f32 %v9019_v29  ;;  %v15766_v30 = vpop.eup %9893  ;;  %v8100_v35 = vmul.f32 %v15764_v5, %v15748_v18  ;;  %v8092_v32 = vsel %vm15792_vm12, %v9888_v52, %v8088_v48  ;;  %vm8105_vm0 = vweird.f32 %v15764_v5 }
 0xdd9   : > { %9899 = vrcp.f32 %v15762_v50  ;;  %v15774_v0 = vpop.eup %9895  ;;  %v8115_v57 = vmul.f32 %v15766_v30, %v15751_v49  ;;  %v8097_v6 = vsel %vm15796_vm13, %v8096_v2, %v8092_v32  ;;  %vm8120_vm1 = vweird.f32 %v15766_v30  ;;  %vm15827_vm2 = vmor %vm8104_vm15, %vm8105_vm0 }
 0xdda   : > { %v8101_v15 = vsub.f32 1.0, %v8100_v35  ;;  %v8130_v40 = vmul.f32 %v15774_v0, %v15754_v55  ;;  %vm8135_vm4 = vweird.f32 %v15774_v0  ;;  %v8204_v46 = vmul.f32 %v8097_v6, %v15730_v61  ;;  %vm15841_vm6 = vmor %vm8119_vm3, %vm8120_vm1 }
 0xddb   : > { %v8047_v20 = vpop.f32.mrf.mxu3  ;;  %v8116_v34 = vsub.f32 1.0, %v8115_v57  ;;  %vm15854_vm8 = vmor %vm8134_vm7, %vm8135_vm4  ;;  %v8141_v57 = vor.u32 1.1754944e-38, %v8140_v38  ;;  %v8153_v17 = vand.u32 2147483647, %v15762_v50  ;;  %v8155_v48 = vand.u32 2147483648, %v15762_v50 }
 0xddc   : > { %v15772_v62 = vadd.f32 %v15727_v58, %v8047_v20  ;;  %v8102_v1 = vmul.f32 %v15764_v5, %v8101_v15  ;;  %v8131_v45 = vsub.f32 1.0, %v8130_v40  ;;  %v9175_v40 = vld [vmem:[%s16079_s9 + $0x38] sm:$0xff]  ;;  %vm8149_vm14 = vweird.f32 %v15762_v50 }
 0xddd   : > { %v8117_v21 = vmul.f32 %v15766_v30, %v8116_v34  ;;  %8292 = vmatpush.bf16.msra.mxu0 %v9175_v40  ;;  %vm8154_vm1 = vcmp.eq.f32.partialorder %v8153_v17, 8.507059e+37  ;;  %v8242_v40 = vld [vmem:[%s10258_s20] sm:$0x1] }
 0xdde   : > { %v9898_v39 = vpop.eup %9897  ;;  %v9020_v31 = vmul.f32 -1.442695, %v15772_v62  ;;  %v8103_v36 = vadd.f32 %v15764_v5, %v8102_v1  ;;  %v8132_v59 = vmul.f32 %v15774_v0, %v8131_v45  ;;  %v9174_v1 = vld [vmem:[%s16079_s9 + $0x30] sm:$0xff] }
 0xddf   : > { %v15779_v47 = vadd.f32 1.0, %v9898_v39  ;;  %v15783_v10 = vpop.eup %9899  ;;  %v8118_v63 = vadd.f32 %v15766_v30, %v8117_v21 }
 0xde0   : > { %9901 = vpow2.f32 %v9020_v31  ;;  %v8145_v43 = vmul.f32 %v15783_v10, %v15762_v50  ;;  %v8107_v22 = vsel %vm15827_vm2, %v15764_v5, %v8103_v36  ;;  %v8133_v52 = vadd.f32 %v15774_v0, %v8132_v59 }
 0xde1   : > { %9903 = vrcp.f32 %v15779_v47  ;;  %v8122_v5 = vsel %vm15841_vm6, %v15766_v30, %v8118_v63  ;;  %vm8150_vm11 = vweird.f32 %v15783_v10  ;;  %vm8164_vm15 = vweird.f32 %v15779_v47  ;;  %8293 = vmatpush.bf16.msra.mxu0 %v9174_v1 }
 0xde2   : > { %v8146_v13 = vsub.f32 1.0, %v8145_v43  ;;  %v8137_v55 = vsel %vm15854_vm8, %v15774_v0, %v8133_v52  ;;  %v8127_v23 = vsel %vm15845_vm10, %v8126_v27, %v8122_v5  ;;  %vm15885_vm13 = vmor %vm8149_vm14, %vm8150_vm11  ;;  %v8170_v50 = vand.u32 2147483648, %v15779_v47 }
 0xde3   : > { %v8049_v28 = vpop.f32.mrf.mxu3  ;;  %v8142_v45 = vsel %vm15858_vm9, %v8141_v57, %v8137_v55  ;;  %v8206_v2 = vmul.f32 %v8127_v23, %v15737_v24  ;;  %v9173_v24 = vld [vmem:[%s16079_s9 + $0x28] sm:$0xff]  ;;  %v9168_v57 = vld [vmem:[%s16079_s9] sm:$0xff] }
 0xde4   : > { %v15790_v11 = vadd.f32 %v15727_v58, %v8049_v28  ;;  %v8108_v58 = vand.u32 2147483647, %v15748_v18  ;;  %v8147_v18 = vmul.f32 %v15783_v10, %v8146_v13  ;;  %v8207_v59 = vmul.f32 %v8142_v45, %v15742_v41 }
 0xde5   : > { %8294 = vmatpush.bf16.msra.mxu0 %v9173_v24 }
 0xde6   : > { %v9902_v42 = vpop.eup %9901  ;;  %v9021_v25 = vmul.f32 -1.442695, %v15790_v11  ;;  %vm8109_vm5 = vcmp.eq.f32.partialorder %v8108_v58, 8.507059e+37  ;;  %v8148_v30 = vadd.f32 %v15783_v10, %v8147_v18 }
 0xde7   : > { %v15805_v19 = vpop.eup %9903  ;;  %v15810_v56 = vadd.f32 1.0, %v9902_v42  ;;  %v8112_v20 = vsel %vm8109_vm5, %v8111_v51, %v8107_v22  ;;  %v8156_v42 = vor.u32 1.1754944e-38, %v8155_v48  ;;  %v9171_v51 = vld [vmem:[%s16079_s9 + $0x18] sm:$0xff] }
 0xde8   : > { %v8160_v9 = vmul.f32 %v15805_v19, %v15779_v47  ;;  %9905 = vpow2.f32 %v9021_v25  ;;  %vm8165_vm12 = vweird.f32 %v15805_v19  ;;  %v8205_v28 = vmul.f32 %v8112_v20, %v15734_v60  ;;  %v9169_v20 = vld [vmem:[%s16079_s9 + $0x8] sm:$0xff] }
 0xde9   : > { %9907 = vrcp.f32 %v15810_v56  ;;  %v8152_v3 = vsel %vm15885_vm13, %v15783_v10, %v8148_v30  ;;  %v8168_v60 = vand.u32 2147483647, %v15779_v47  ;;  %vm15898_vm2 = vmor %vm8164_vm15, %vm8165_vm12  ;;  %v8185_v21 = vand.u32 2147483648, %v15810_v56 }
 0xdea   : > { %v8161_v33 = vsub.f32 1.0, %v8160_v9  ;;  %vm8179_vm3 = vweird.f32 %v15810_v56  ;;  %v8183_v47 = vand.u32 2147483647, %v15810_v56  ;;  %v8212_v58 = vadd.f32 %v8205_v28, %v8204_v46 }
 0xdeb   : > { %v8157_v13 = vsel %vm8154_vm1, %v8156_v42, %v8152_v3  ;;  %v8171_v9 = vor.u32 1.1754944e-38, %v8170_v50  ;;  %vm8169_vm5 = vcmp.eq.f32.partialorder %v8168_v60, 8.507059e+37  ;;  %v8186_v63 = vor.u32 1.1754944e-38, %v8185_v21 }
 0xdec   : > { %v8162_v61 = vmul.f32 %v15805_v19, %v8161_v33  ;;  %v8213_v53 = vadd.f32 %v8212_v58, %v8206_v2  ;;  %vm8184_vm6 = vcmp.eq.f32.partialorder %v8183_v47, 8.507059e+37  ;;  %v9172_v33 = vld [vmem:[%s16079_s9 + $0x20] sm:$0xff] }
 0xded   : > { %8295 = vmatpush.bf16.msra.mxu0 %v9172_v33 }
 0xdee   : > { %v9906_v29 = vpop.eup %9905  ;;  %v8163_v0 = vadd.f32 %v15805_v19, %v8162_v61  ;;  %v8214_v4 = vadd.f32 %v8213_v53, %v8207_v59  ;;  %v9170_v61 = vld [vmem:[%s16079_s9 + $0x10] sm:$0xff]  ;;  %s8307_s9 = scalar_lea.sflag [#allocation5], %s1090_s3 }
 0xdef   : > { %v9908_v35 = vpop.eup %9907  ;;  %v15862_v31 = vadd.f32 1.0, %v9906_v29 }
 0xdf0   : > { %v8175_v15 = vmul.f32 %v9908_v35, %v15810_v56  ;;  %vm8180_vm0 = vweird.f32 %v9908_v35  ;;  %v8167_v10 = vsel %vm15898_vm2, %v15805_v19, %v8163_v0  ;;  %v8208_v56 = vmul.f32 %v8157_v13, %v15746_v7 }
 0xdf1   : > { %9909 = vrcp.f32 %v15862_v31  ;;  %vm8181_vm4 = vmor %vm8179_vm3, %vm8180_vm0  ;;  %v8172_v26 = vsel %vm8169_vm5, %v8171_v9, %v8167_v10  ;;  %v8200_v12 = vand.u32 2147483648, %v15862_v31  ;;  %v8198_v52 = vand.u32 2147483647, %v15862_v31  ;;  %8296 = vmatpush.bf16.msra.mxu0 %v9171_v51 }
 0xdf2   : > { %v8176_v34 = vsub.f32 1.0, %v8175_v15  ;;  %v8209_v38 = vmul.f32 %v8172_v26, %v15757_v8  ;;  %v8215_v18 = vadd.f32 %v8214_v4, %v8208_v56  ;;  %vm8194_vm7 = vweird.f32 %v15862_v31 }
 0xdf3   : > { %v8201_v49 = vor.u32 1.1754944e-38, %v8200_v12  ;;  %vm8199_vm9 = vcmp.eq.f32.partialorder %v8198_v52, 8.507059e+37 }
 0xdf4   : > { %v8177_v54 = vmul.f32 %v9908_v35, %v8176_v34  ;;  %v8216_v14 = vadd.f32 %v8215_v18, %v8209_v38 }
 0xdf5   : > { %8297 = vmatpush.bf16.msra.mxu0 %v9170_v61 }
 0xdf6   : > { %v8178_v25 = vadd.f32 %v9908_v35, %v8177_v54 }
 0xdf7   : > { %v9910_v36 = vpop.eup %9909 }
 0xdf8   : > { %v8182_v6 = vsel %vm8181_vm4, %v9908_v35, %v8178_v25  ;;  %v8190_v19 = vmul.f32 %v9910_v36, %v15862_v31  ;;  %vm8195_vm10 = vweird.f32 %v9910_v36 }
 0xdf9   : > { %v8187_v41 = vsel %vm8184_vm6, %v8186_v63, %v8182_v6  ;;  %vm8196_vm8 = vmor %vm8194_vm7, %vm8195_vm10  ;;  %8298 = vmatpush.bf16.msra.mxu0 %v9169_v20 }
 0xdfa   : > { %v8191_v16 = vsub.f32 1.0, %v8190_v19  ;;  %v8210_v46 = vmul.f32 %v8187_v41, %v15772_v62 }
 0xdfc   : > { %v8192_v22 = vmul.f32 %v9910_v36, %v8191_v16  ;;  %v8217_v5 = vadd.f32 %v8216_v14, %v8210_v46 }
 0xdfd   : > { %8299 = vmatpush.bf16.msra.mxu0 %v9168_v57 }
 0xdfe   : > { %v8193_v7 = vadd.f32 %v9910_v36, %v8192_v22 }
 0xe00   : > { %v8197_v29 = vsel %vm8196_vm8, %v9910_v36, %v8193_v7 }
 0xe01   : > { %v8202_v8 = vsel %vm8199_vm9, %v8201_v49, %v8197_v29 }
 0xe02   : > { %v8211_v27 = vmul.f32 %v8202_v8, %v15790_v11 }
 0xe04   : > { %v8218_v62 = vadd.f32 %v8217_v5, %v8211_v27 }
 0xe06   : > { %v8219_v35 = vrot.slane %v8218_v62, 4 }
 0xe08   : > { %v8220_v39 = vadd.f32 %v8219_v35, %v8218_v62 }
 0xe0a   : > { %v8221_v37 = vrot.slane %v8220_v39, 2 }
 0xe0c   : > { %v8222_v31 = vadd.f32 %v8221_v37, %v8220_v39 }
 0xe0e   : > { %v8223_v55 = vrot.slane %v8222_v31, 1 }
 0xe10   : > { %v8224_v30 = vadd.f32 %v8223_v55, %v8222_v31 }
 0xe12   : > { %v8225_v11 = vmul.f32 %v8224_v30, %v15092_v44 }
 0xe14   : > { %v8243_v15 = vpack.c.bf16 %v8225_v11, %v8225_v11 }
 0xe16   : > { %8300 = vmatmul.bf16.vlgmr.msra.gmra.mxu0 %v8243_v15 }
 0xe93   : > { %v8301_v23 = vpop.f32.mrf.mxu0 }
 0xe94   : > { %v8302_v17 = vadd.f32 %v8301_v23, %v8242_v40 }
 0xe96   : > { %8305 = vst [vmem:[%s1091_s5] sm:$0x1] %v8302_v17 }
 0xe97   : > { %9999 = shalt.err (!%p9996_p3)
}
 0xe98   : > { %9184 = dma.vmem_to_hbm [thread:$0]  (%p10303_p5), %s8318_s6, 16, %s8320_s8, %s8307_s9  }
 0xe9b   : > { %v8303_v44 = vpop.f32.mrf.mxu0 }
 0xe9c PF: > { %p9190_p4 = scmp.ge.s32.totalorder %s10034_s7, 2  ;;  %s8331_s5 = sand.u32 1, %s10022_s28  }
 0xe9d   : > { %s8332_s4 = scalar_lea.sflag [#allocation5], %s8331_s5 }
 0xe9e   : > { %p9187_p7 = pnand %p9190_p4, %p10307_p6 }
 0xea0   : > { %p9188_p8 = pneg %p9187_p7 }
 0xea2   : > { %10017 = dma.done.wait (%p9188_p8), %s8332_s4, 16  }
 0xea3   : > { %10019 = vsyncadd (%p9188_p8), %s8332_s4, 4294967280  ;;  %p83_p9 = scmp.ge.s32.totalorder %s10290_s11, 4   ;;  %s16490_s28 = smov %s10026_s1 }
 0xea4   : > { %s16491_s1 = smov %s10030_s2  ;;  %s16492_s2 = smov %s10301_s18 }
 0xea5   : > { %s16493_s7 = smov %s10290_s11  ;;  %85 = sbr.rel (!%p83_p9) target bundleno = 75 (0x4b), region = 241 }
 0xeaa   :  { %8337 = vsyncpa [#allocation5], 1 }
 0xeab   :  { %8339 = vsyncpa [#allocation5 + $0x1], 1 }

</bundles_post_ra>
